<compile_context>
chip_gen: v7x
topology: tpu7x:2x2x1
jax: 0.10.0
libtpu: 0.0.40
codegen_flags: <defaults>
</compile_context>

<pallas_src>
import functools

import jax
import jax.numpy as jnp
from jax.experimental import pallas as pl
from jax.experimental.pallas import tpu as pltpu


# ---------------------------------------------------------------- helpers ----
def _silu(x):
    # matches torch.nn.SiLU: x * sigmoid(x)
    return x * jax.nn.sigmoid(x)


def _clinear(x, c, wx_ref, wc_ref, b_ref):
    """CLinear(x, c) = x @ Wx + c @ Wc + b (weights pre-split in the wrapper)."""
    return (jnp.dot(x, wx_ref[...], preferred_element_type=jnp.float32)
            + jnp.dot(c, wc_ref[...], preferred_element_type=jnp.float32)
            + b_ref[...])


def _take(it, n):
    return [next(it) for _ in range(n)]


def _choose_tile(n, cap=512):
    """Largest row tile <= cap that divides n (full n if it already fits)."""
    if n <= cap:
        return n
    t = cap - (cap % 8)
    while t >= 8:
        if n % t == 0:
            return t
        t -= 8
    return n


def _row_spec(tile, dim):
    return pl.BlockSpec((tile, dim), lambda i: (i, 0))


def _full_spec(arr):
    return pl.BlockSpec(arr.shape, lambda i: (0, 0))


# ---------------------------------------------------------------- kernels ----
def _prior_kernel(*refs):
    """PriorBlock.forward fused: q Block -> reparam -> fc_z -> out Block -> KL."""
    it = iter(refs)
    h_ref, ze_ref, eps_ref = next(it), next(it), next(it)
    q1 = _take(it, 3)
    q2 = _take(it, 3)
    q3m = _take(it, 3)
    q3v = _take(it, 3)
    fcz = _take(it, 3)
    o1 = _take(it, 3)
    o2 = _take(it, 3)
    o3 = _take(it, 3)
    z_out, kl_out = next(it), next(it)

    c = ze_ref[...]
    h = h_ref[...]

    t = _silu(_clinear(h, c, *q1))
    t = _silu(_clinear(t, c, *q2))
    q_mu = _silu(_clinear(t, c, *q3m))       # SiLU applied after fc3 (as in Block)
    q_lv = _silu(_clinear(t, c, *q3v))

    z_s = q_mu + jnp.exp(0.5 * q_lv) * eps_ref[...]
    z_s = _clinear(z_s, c, *fcz)

    u = _silu(_clinear(z_s, c, *o1))
    u = _silu(_clinear(u, c, *o2))
    u = _silu(_clinear(u, c, *o3)) + z_s     # residual out block
    z_out[...] = u.astype(z_out.dtype)

    # analytical_kl(q || N(0, I)) per element, reduced over the feature (lane) axis
    kl = -0.5 * q_lv + 0.5 * (jnp.exp(q_lv) + q_mu * q_mu) - 0.5
    kl_out[...] = jnp.sum(kl, axis=1, keepdims=True)


def _topdown_kernel(*refs):
    """TopDownBlock.forward fused: q Block, p Block, reparam+fc_z, out Block, KL."""
    it = iter(refs)
    z_ref, h_ref, ze_ref, eps_ref = next(it), next(it), next(it), next(it)
    q1 = _take(it, 4)                         # (Wz, Wh, Wc, b): cat([z, h]) avoided
    q2 = _take(it, 3)
    q3m = _take(it, 3)
    q3v = _take(it, 3)
    p1 = _take(it, 3)
    p2 = _take(it, 3)
    p3r = _take(it, 3)
    p3m = _take(it, 3)
    p3v = _take(it, 3)
    fcz = _take(it, 3)
    o1 = _take(it, 3)
    o2 = _take(it, 3)
    o3 = _take(it, 3)
    z_out, kl_out = next(it), next(it)

    z = z_ref[...]
    h = h_ref[...]
    c = ze_ref[...]

    wz, wh, wc, b = q1
    t = _silu(jnp.dot(z, wz[...], preferred_element_type=jnp.float32)
              + jnp.dot(h, wh[...], preferred_element_type=jnp.float32)
              + jnp.dot(c, wc[...], preferred_element_type=jnp.float32)
              + b[...])
    t = _silu(_clinear(t, c, *q2))
    q_mu = _silu(_clinear(t, c, *q3m))
    q_lv = _silu(_clinear(t, c, *q3v))

    s = _silu(_clinear(z, c, *p1))
    s = _silu(_clinear(s, c, *p2))
    z_res = _silu(_clinear(s, c, *p3r))
    p_mu = _silu(_clinear(s, c, *p3m))
    p_lv = _silu(_clinear(s, c, *p3v))

    z_s = q_mu + jnp.exp(0.5 * q_lv) * eps_ref[...]
    z_s = _clinear(z_s, c, *fcz)
    z_new = z + z_res + z_s

    u = _silu(_clinear(z_new, c, *o1))
    u = _silu(_clinear(u, c, *o2))
    u = _silu(_clinear(u, c, *o3)) + z_new    # residual out block
    z_out[...] = u.astype(z_out.dtype)

    kl = (0.5 * (p_lv - q_lv)
          + (jnp.exp(q_lv) + (q_mu - p_mu) ** 2) / (2.0 * jnp.exp(p_lv))
          - 0.5)
    kl_out[...] = jnp.sum(kl, axis=1, keepdims=True)


def _xhead_kernel(*refs):
    """x Block + reparametrization fused (positional encoding is None)."""
    it = iter(refs)
    z_ref, ze_ref, eps_ref = next(it), next(it), next(it)
    l1 = _take(it, 3)
    l2 = _take(it, 3)
    l3m = _take(it, 3)
    l3v = _take(it, 3)
    mu_out, lv_out, rec_out = next(it), next(it), next(it)

    z = z_ref[...]
    c = ze_ref[...]
    t = _silu(_clinear(z, c, *l1))
    t = _silu(_clinear(t, c, *l2))
    x_mu = _silu(_clinear(t, c, *l3m))
    x_lv = _silu(_clinear(t, c, *l3v))
    x_rec = x_mu + jnp.exp(0.5 * x_lv) * eps_ref[...]

    mu_out[...] = x_mu.astype(mu_out.dtype)
    lv_out[...] = x_lv.astype(lv_out.dtype)
    rec_out[...] = x_rec.astype(rec_out.dtype)


# --------------------------------------------------------------- wrappers ----
def prior_block_apply(h, ze, eps, q_params, fcz_params, out_params, z_dim, *, tile):
    N, h_dim = h.shape
    ze_dim = ze.shape[1]
    (q1x, q1c, q1b), (q2x, q2c, q2b), (q3x, q3c, q3b) = q_params
    (fzx, fzc, fzb) = fcz_params
    (o1x, o1c, o1b), (o2x, o2c, o2b), (o3x, o3c, o3b) = out_params

    weights = [
        q1x, q1c, q1b, q2x, q2c, q2b,
        q3x[:, :z_dim], q3c[:, :z_dim], q3b[:, :z_dim],     # mu head
        q3x[:, z_dim:], q3c[:, z_dim:], q3b[:, z_dim:],     # logvar head
        fzx, fzc, fzb,
        o1x, o1c, o1b, o2x, o2c, o2b, o3x, o3c, o3b,
    ]
    z, kl_rows = pl.pallas_call(
        _prior_kernel,
        grid=(N // tile,),
        in_specs=[_row_spec(tile, h_dim), _row_spec(tile, ze_dim),
                  _row_spec(tile, z_dim)] + [_full_spec(w) for w in weights],
        out_specs=(_row_spec(tile, z_dim), _row_spec(tile, 1)),
        out_shape=(jax.ShapeDtypeStruct((N, z_dim), h.dtype),
                   jax.ShapeDtypeStruct((N, 1), jnp.float32)),
        compiler_params=pltpu.CompilerParams(dimension_semantics=("parallel",)),
    )(h, ze, eps, *weights)
    return z, jnp.sum(kl_rows)


def topdown_block_apply(z, h, ze, eps, bp, z_dim, *, tile):
    N = z.shape[0]
    h_dim = h.shape[1]
    ze_dim = ze.shape[1]
    (q1x, q1c, q1b), (q2x, q2c, q2b), (q3x, q3c, q3b) = bp['q']
    (p1x, p1c, p1b), (p2x, p2c, p2b), (p3x, p3c, p3b) = bp['p']
    (fzx, fzc, fzb) = bp['fc_z']
    (o1x, o1c, o1b), (o2x, o2c, o2b), (o3x, o3c, o3b) = bp['out']

    weights = [
        q1x[:z_dim], q1x[z_dim:], q1c, q1b,                  # (Wz, Wh, Wc, b)
        q2x, q2c, q2b,
        q3x[:, :z_dim], q3c[:, :z_dim], q3b[:, :z_dim],      # q mu head
        q3x[:, z_dim:], q3c[:, z_dim:], q3b[:, z_dim:],      # q logvar head
        p1x, p1c, p1b, p2x, p2c, p2b,
        p3x[:, :z_dim], p3c[:, :z_dim], p3b[:, :z_dim],              # z residual
        p3x[:, z_dim:2 * z_dim], p3c[:, z_dim:2 * z_dim], p3b[:, z_dim:2 * z_dim],
        p3x[:, 2 * z_dim:], p3c[:, 2 * z_dim:], p3b[:, 2 * z_dim:],  # p logvar
        fzx, fzc, fzb,
        o1x, o1c, o1b, o2x, o2c, o2b, o3x, o3c, o3b,
    ]
    z_new, kl_rows = pl.pallas_call(
        _topdown_kernel,
        grid=(N // tile,),
        in_specs=[_row_spec(tile, z_dim), _row_spec(tile, h_dim),
                  _row_spec(tile, ze_dim), _row_spec(tile, z_dim)]
                 + [_full_spec(w) for w in weights],
        out_specs=(_row_spec(tile, z_dim), _row_spec(tile, 1)),
        out_shape=(jax.ShapeDtypeStruct((N, z_dim), z.dtype),
                   jax.ShapeDtypeStruct((N, 1), jnp.float32)),
        compiler_params=pltpu.CompilerParams(dimension_semantics=("parallel",)),
    )(z, h, ze, eps, *weights)
    return z_new, jnp.sum(kl_rows)


def x_head_apply(z, ze, eps, x_params, x_dim, *, tile):
    N, z_dim = z.shape
    ze_dim = ze.shape[1]
    (l1x, l1c, l1b), (l2x, l2c, l2b), (l3x, l3c, l3b) = x_params

    weights = [
        l1x, l1c, l1b, l2x, l2c, l2b,
        l3x[:, :x_dim], l3c[:, :x_dim], l3b[:, :x_dim],      # x_mu head
        l3x[:, x_dim:], l3c[:, x_dim:], l3b[:, x_dim:],      # x_logvar head
    ]
    x_mu, x_logvar, x_recon = pl.pallas_call(
        _xhead_kernel,
        grid=(N // tile,),
        in_specs=[_row_spec(tile, z_dim), _row_spec(tile, ze_dim),
                  _row_spec(tile, x_dim)] + [_full_spec(w) for w in weights],
        out_specs=(_row_spec(tile, x_dim), _row_spec(tile, x_dim),
                   _row_spec(tile, x_dim)),
        out_shape=(jax.ShapeDtypeStruct((N, x_dim), z.dtype),
                   jax.ShapeDtypeStruct((N, x_dim), z.dtype),
                   jax.ShapeDtypeStruct((N, x_dim), z.dtype)),
        compiler_params=pltpu.CompilerParams(dimension_semantics=("parallel",)),
    )(z, ze, eps, *weights)
    return x_mu, x_logvar, x_recon


# ---------------------------------------------------------- param builders ----
def init_clinear(key, in_dim, c_dim, out_dim):
    """nn.Linear(in_dim + c_dim, out_dim) with weight split into (Wx, Wc)."""
    kw, kb = jax.random.split(key)
    fan_in = in_dim + c_dim
    bound = 1.0 / (fan_in ** 0.5)
    w = jax.random.uniform(kw, (fan_in, out_dim), jnp.float32, -bound, bound)
    b = jax.random.uniform(kb, (1, out_dim), jnp.float32, -bound, bound)
    return w[:in_dim], w[in_dim:], b


def init_block(key, in_dim, c_dim, hid_dim, out_dim):
    k1, k2, k3 = jax.random.split(key, 3)
    return (init_clinear(k1, in_dim, c_dim, hid_dim),
            init_clinear(k2, hid_dim, c_dim, hid_dim),
            init_clinear(k3, hid_dim, c_dim, out_dim))


def init_decoder(key, n_latents, ze_dim, z_dim, h_dim, hid_dim, x_dim):
    keys = jax.random.split(key, n_latents + 2)
    kz = jax.random.split(keys[0], 3)
    params = {
        'zn': {
            'q': init_block(kz[0], h_dim, ze_dim, hid_dim, 2 * z_dim),
            'out': init_block(kz[1], z_dim, ze_dim, hid_dim, z_dim),
            'fc_z': init_clinear(kz[2], z_dim, ze_dim, z_dim),
        },
        'z_blocks': [],
    }
    for i in range(n_latents - 1):
        kt = jax.random.split(keys[1 + i], 4)
        params['z_blocks'].append({
            'q': init_block(kt[0], z_dim + h_dim, ze_dim, hid_dim, 2 * z_dim),
            'p': init_block(kt[1], z_dim, ze_dim, hid_dim, 3 * z_dim),
            'out': init_block(kt[2], z_dim, ze_dim, hid_dim, z_dim),
            'fc_z': init_clinear(kt[3], z_dim, ze_dim, z_dim),
        })
    params['x_block'] = init_block(keys[n_latents], z_dim, ze_dim, hid_dim, 2 * x_dim)
    # NOTE: Decoder.ze_block is only used by sample()/get_ze(), never by
    # forward(), so it is not instantiated here.
    return params


# ------------------------------------------------------------ Decoder fwd ----
def decoder_forward(params, hs, ze, rng, *, z_dim, x_dim):
    """Decoder.forward with positional_encoding left as None (no hardtanh/decode)."""
    N = ze.shape[0]
    tile = _choose_tile(N)

    # zn_block = PriorBlock(z_dim, h_dim, ze_dim, hid_dim)
    rng, sub = jax.random.split(rng)
    eps = jax.random.normal(sub, (N, z_dim), jnp.float32)
    # TODO(synk): eps comes from jax.random (not in-kernel PRNG) for portability;
    # the random stream necessarily differs from torch.randn.
    z, kl = prior_block_apply(hs[-1], ze, eps, params['zn']['q'],
                              params['zn']['fc_z'], params['zn']['out'],
                              z_dim, tile=tile)
    kls = [kl]

    # TopDownBlocks (reference code indexes hs[-i-1], reusing hs[-1] at i=0)
    for i, bp in enumerate(params['z_blocks']):
        rng, sub = jax.random.split(rng)
        eps = jax.random.normal(sub, (N, z_dim), jnp.float32)
        z, kl = topdown_block_apply(z, hs[-i - 1], ze, eps, bp, z_dim, tile=tile)
        kls.append(kl)

    # x_block = Block(z_dim, ze_dim, hid_dim, 2*x_dim, residual=False) + reparam
    rng, sub = jax.random.split(rng)
    eps_x = jax.random.normal(sub, (N, x_dim), jnp.float32)
    x_mu, x_logvar, x_recon = x_head_apply(z, ze, eps_x, params['x_block'],
                                           x_dim, tile=tile)
    return x_mu, x_logvar, kls, x_recon


# ------------------------------------------------------------------- main ----
if __name__ == "__main__":
    # small config consistent with the module's constructor
    n_latents = 3
    ze_dim, z_dim, h_dim, hid_dim, x_dim = 16, 8, 16, 32, 3
    batch, n_points_per_cloud = 2, 32
    N = batch * n_points_per_cloud  # 64 rows -> single row tile, grid=(1,)

    key = jax.random.PRNGKey(0)
    k_params, k_hs, k_ze, k_eps = jax.random.split(key, 4)

    params = init_decoder(k_params, n_latents, ze_dim, z_dim, h_dim, hid_dim, x_dim)

    hs = [jax.random.normal(jax.random.fold_in(k_hs, i), (N, h_dim), jnp.float32)
          for i in range(n_latents)]
    ze = jax.random.normal(k_ze, (N, ze_dim), jnp.float32)

    fwd = jax.jit(functools.partial(decoder_forward, z_dim=z_dim, x_dim=x_dim))
    x_mu, x_logvar, kls, x_recon = fwd(params, hs, ze, k_eps)
    jax.block_until_ready((x_mu, x_logvar, x_recon, *kls))

    assert x_mu.shape == (N, x_dim) and x_logvar.shape == (N, x_dim)
    assert x_recon.shape == (N, x_dim) and len(kls) == n_latents
    assert bool(jnp.isfinite(x_recon).all()) and all(bool(jnp.isfinite(k)) for k in kls)
    print("KERNEL_OK")
</pallas_src>

<mosaic_0001>
module attributes {stable_mosaic.version = 11 : i64} {
  func.func @_prior_kernel(%arg0: i32, %arg1: memref<64x16xf32, #tpu.memory_space<vmem>>, %arg2: memref<64x16xf32, #tpu.memory_space<vmem>>, %arg3: memref<64x8xf32, #tpu.memory_space<vmem>>, %arg4: memref<16x32xf32, #tpu.memory_space<vmem>>, %arg5: memref<16x32xf32, #tpu.memory_space<vmem>>, %arg6: memref<1x32xf32, #tpu.memory_space<vmem>>, %arg7: memref<32x32xf32, #tpu.memory_space<vmem>>, %arg8: memref<16x32xf32, #tpu.memory_space<vmem>>, %arg9: memref<1x32xf32, #tpu.memory_space<vmem>>, %arg10: memref<32x8xf32, #tpu.memory_space<vmem>>, %arg11: memref<16x8xf32, #tpu.memory_space<vmem>>, %arg12: memref<1x8xf32, #tpu.memory_space<vmem>>, %arg13: memref<32x8xf32, #tpu.memory_space<vmem>>, %arg14: memref<16x8xf32, #tpu.memory_space<vmem>>, %arg15: memref<1x8xf32, #tpu.memory_space<vmem>>, %arg16: memref<8x8xf32, #tpu.memory_space<vmem>>, %arg17: memref<16x8xf32, #tpu.memory_space<vmem>>, %arg18: memref<1x8xf32, #tpu.memory_space<vmem>>, %arg19: memref<8x32xf32, #tpu.memory_space<vmem>>, %arg20: memref<16x32xf32, #tpu.memory_space<vmem>>, %arg21: memref<1x32xf32, #tpu.memory_space<vmem>>, %arg22: memref<32x32xf32, #tpu.memory_space<vmem>>, %arg23: memref<16x32xf32, #tpu.memory_space<vmem>>, %arg24: memref<1x32xf32, #tpu.memory_space<vmem>>, %arg25: memref<32x8xf32, #tpu.memory_space<vmem>>, %arg26: memref<16x8xf32, #tpu.memory_space<vmem>>, %arg27: memref<1x8xf32, #tpu.memory_space<vmem>>, %arg28: memref<64x8xf32, #tpu.memory_space<vmem>>, %arg29: memref<64x1xf32, #tpu.memory_space<vmem>>) attributes {dimension_semantics = [#tpu.dimension_semantics<parallel>], iteration_bounds = array<i64: 1>, scalar_prefetch = 0 : i64, scratch_operands = 0 : i64, tpu.core_type = #tpu.core_type<tc>, window_params = [{transform_indices = @transform_0, window_bounds = array<i64: 64, 16>}, {transform_indices = @transform_1, window_bounds = array<i64: 64, 16>}, {transform_indices = @transform_2, window_bounds = array<i64: 64, 8>}, {pipeline_mode = #tpu.pipeline_mode<synchronous>, transform_indices = @transform_3, window_bounds = array<i64: 16, 32>}, {pipeline_mode = #tpu.pipeline_mode<synchronous>, transform_indices = @transform_4, window_bounds = array<i64: 16, 32>}, {pipeline_mode = #tpu.pipeline_mode<synchronous>, transform_indices = @transform_5, window_bounds = array<i64: 1, 32>}, {pipeline_mode = #tpu.pipeline_mode<synchronous>, transform_indices = @transform_6, window_bounds = array<i64: 32, 32>}, {pipeline_mode = #tpu.pipeline_mode<synchronous>, transform_indices = @transform_7, window_bounds = array<i64: 16, 32>}, {pipeline_mode = #tpu.pipeline_mode<synchronous>, transform_indices = @transform_8, window_bounds = array<i64: 1, 32>}, {pipeline_mode = #tpu.pipeline_mode<synchronous>, transform_indices = @transform_9, window_bounds = array<i64: 32, 8>}, {pipeline_mode = #tpu.pipeline_mode<synchronous>, transform_indices = @transform_10, window_bounds = array<i64: 16, 8>}, {pipeline_mode = #tpu.pipeline_mode<synchronous>, transform_indices = @transform_11, window_bounds = array<i64: 1, 8>}, {pipeline_mode = #tpu.pipeline_mode<synchronous>, transform_indices = @transform_12, window_bounds = array<i64: 32, 8>}, {pipeline_mode = #tpu.pipeline_mode<synchronous>, transform_indices = @transform_13, window_bounds = array<i64: 16, 8>}, {pipeline_mode = #tpu.pipeline_mode<synchronous>, transform_indices = @transform_14, window_bounds = array<i64: 1, 8>}, {pipeline_mode = #tpu.pipeline_mode<synchronous>, transform_indices = @transform_15, window_bounds = array<i64: 8, 8>}, {pipeline_mode = #tpu.pipeline_mode<synchronous>, transform_indices = @transform_16, window_bounds = array<i64: 16, 8>}, {pipeline_mode = #tpu.pipeline_mode<synchronous>, transform_indices = @transform_17, window_bounds = array<i64: 1, 8>}, {pipeline_mode = #tpu.pipeline_mode<synchronous>, transform_indices = @transform_18, window_bounds = array<i64: 8, 32>}, {pipeline_mode = #tpu.pipeline_mode<synchronous>, transform_indices = @transform_19, window_bounds = array<i64: 16, 32>}, {pipeline_mode = #tpu.pipeline_mode<synchronous>, transform_indices = @transform_20, window_bounds = array<i64: 1, 32>}, {pipeline_mode = #tpu.pipeline_mode<synchronous>, transform_indices = @transform_21, window_bounds = array<i64: 32, 32>}, {pipeline_mode = #tpu.pipeline_mode<synchronous>, transform_indices = @transform_22, window_bounds = array<i64: 16, 32>}, {pipeline_mode = #tpu.pipeline_mode<synchronous>, transform_indices = @transform_23, window_bounds = array<i64: 1, 32>}, {pipeline_mode = #tpu.pipeline_mode<synchronous>, transform_indices = @transform_24, window_bounds = array<i64: 32, 8>}, {pipeline_mode = #tpu.pipeline_mode<synchronous>, transform_indices = @transform_25, window_bounds = array<i64: 16, 8>}, {pipeline_mode = #tpu.pipeline_mode<synchronous>, transform_indices = @transform_26, window_bounds = array<i64: 1, 8>}, {transform_indices = @transform_27, window_bounds = array<i64: 64, 8>}, {transform_indices = @transform_28, window_bounds = array<i64: 64, 1>}]} {
    %c0 = arith.constant 0 : index
    %c0_0 = arith.constant 0 : index
    %0 = vector.load %arg2[%c0, %c0_0] : memref<64x16xf32, #tpu.memory_space<vmem>>, vector<64x16xf32>
    %c0_1 = arith.constant 0 : index
    %c0_2 = arith.constant 0 : index
    %1 = vector.load %arg1[%c0_1, %c0_2] : memref<64x16xf32, #tpu.memory_space<vmem>>, vector<64x16xf32>
    %c0_3 = arith.constant 0 : index
    %c0_4 = arith.constant 0 : index
    %2 = vector.load %arg4[%c0_3, %c0_4] : memref<16x32xf32, #tpu.memory_space<vmem>>, vector<16x32xf32>
    %cst = arith.constant dense<0.000000e+00> : vector<64x32xf32>
    %3 = tpu.matmul %1, %2, %cst {dimension_numbers = #tpu.dot_dimension_numbers<[1], [0], [0], [1], [0, 0, 1, 1], [], []>} : vector<64x16xf32>, vector<16x32xf32>, vector<64x32xf32> -> vector<64x32xf32>
    %c0_5 = arith.constant 0 : index
    %c0_6 = arith.constant 0 : index
    %4 = vector.load %arg5[%c0_5, %c0_6] : memref<16x32xf32, #tpu.memory_space<vmem>>, vector<16x32xf32>
    %cst_7 = arith.constant dense<0.000000e+00> : vector<64x32xf32>
    %5 = tpu.matmul %0, %4, %cst_7 {dimension_numbers = #tpu.dot_dimension_numbers<[1], [0], [0], [1], [0, 0, 1, 1], [], []>} : vector<64x16xf32>, vector<16x32xf32>, vector<64x32xf32> -> vector<64x32xf32>
    %6 = arith.addf %3, %5 : vector<64x32xf32>
    %c0_8 = arith.constant 0 : index
    %c0_9 = arith.constant 0 : index
    %7 = vector.load %arg6[%c0_8, %c0_9] : memref<1x32xf32, #tpu.memory_space<vmem>>, vector<1x32xf32>
    %8 = vector.broadcast %7 : vector<1x32xf32> to vector<64x32xf32>
    %9 = arith.addf %6, %8 : vector<64x32xf32>
    %10 = arith.negf %9 : vector<64x32xf32>
    %11 = math.exp %10 : vector<64x32xf32>
    %cst_10 = arith.constant 1.000000e+00 : f32
    %12 = vector.broadcast %cst_10 : f32 to vector<64x32xf32>
    %13 = arith.addf %12, %11 : vector<64x32xf32>
    %14 = arith.divf %12, %13 : vector<64x32xf32>
    %15 = arith.mulf %9, %14 : vector<64x32xf32>
    %c0_11 = arith.constant 0 : index
    %c0_12 = arith.constant 0 : index
    %16 = vector.load %arg7[%c0_11, %c0_12] : memref<32x32xf32, #tpu.memory_space<vmem>>, vector<32x32xf32>
    %cst_13 = arith.constant dense<0.000000e+00> : vector<64x32xf32>
    %17 = tpu.matmul %15, %16, %cst_13 {dimension_numbers = #tpu.dot_dimension_numbers<[1], [0], [0], [1], [0, 0, 1, 1], [], []>} : vector<64x32xf32>, vector<32x32xf32>, vector<64x32xf32> -> vector<64x32xf32>
    %c0_14 = arith.constant 0 : index
    %c0_15 = arith.constant 0 : index
    %18 = vector.load %arg8[%c0_14, %c0_15] : memref<16x32xf32, #tpu.memory_space<vmem>>, vector<16x32xf32>
    %cst_16 = arith.constant dense<0.000000e+00> : vector<64x32xf32>
    %19 = tpu.matmul %0, %18, %cst_16 {dimension_numbers = #tpu.dot_dimension_numbers<[1], [0], [0], [1], [0, 0, 1, 1], [], []>} : vector<64x16xf32>, vector<16x32xf32>, vector<64x32xf32> -> vector<64x32xf32>
    %20 = arith.addf %17, %19 : vector<64x32xf32>
    %c0_17 = arith.constant 0 : index
    %c0_18 = arith.constant 0 : index
    %21 = vector.load %arg9[%c0_17, %c0_18] : memref<1x32xf32, #tpu.memory_space<vmem>>, vector<1x32xf32>
    %22 = vector.broadcast %21 : vector<1x32xf32> to vector<64x32xf32>
    %23 = arith.addf %20, %22 : vector<64x32xf32>
    %24 = arith.negf %23 : vector<64x32xf32>
    %25 = math.exp %24 : vector<64x32xf32>
    %cst_19 = arith.constant 1.000000e+00 : f32
    %26 = vector.broadcast %cst_19 : f32 to vector<64x32xf32>
    %27 = arith.addf %26, %25 : vector<64x32xf32>
    %28 = arith.divf %26, %27 : vector<64x32xf32>
    %29 = arith.mulf %23, %28 : vector<64x32xf32>
    %c0_20 = arith.constant 0 : index
    %c0_21 = arith.constant 0 : index
    %30 = vector.load %arg10[%c0_20, %c0_21] : memref<32x8xf32, #tpu.memory_space<vmem>>, vector<32x8xf32>
    %cst_22 = arith.constant dense<0.000000e+00> : vector<64x8xf32>
    %31 = tpu.matmul %29, %30, %cst_22 {dimension_numbers = #tpu.dot_dimension_numbers<[1], [0], [0], [1], [0, 0, 1, 1], [], []>} : vector<64x32xf32>, vector<32x8xf32>, vector<64x8xf32> -> vector<64x8xf32>
    %c0_23 = arith.constant 0 : index
    %c0_24 = arith.constant 0 : index
    %32 = vector.load %arg11[%c0_23, %c0_24] : memref<16x8xf32, #tpu.memory_space<vmem>>, vector<16x8xf32>
    %cst_25 = arith.constant dense<0.000000e+00> : vector<64x8xf32>
    %33 = tpu.matmul %0, %32, %cst_25 {dimension_numbers = #tpu.dot_dimension_numbers<[1], [0], [0], [1], [0, 0, 1, 1], [], []>} : vector<64x16xf32>, vector<16x8xf32>, vector<64x8xf32> -> vector<64x8xf32>
    %34 = arith.addf %31, %33 : vector<64x8xf32>
    %c0_26 = arith.constant 0 : index
    %c0_27 = arith.constant 0 : index
    %35 = vector.load %arg12[%c0_26, %c0_27] : memref<1x8xf32, #tpu.memory_space<vmem>>, vector<1x8xf32>
    %36 = vector.broadcast %35 : vector<1x8xf32> to vector<64x8xf32>
    %37 = arith.addf %34, %36 : vector<64x8xf32>
    %38 = arith.negf %37 : vector<64x8xf32>
    %39 = math.exp %38 : vector<64x8xf32>
    %cst_28 = arith.constant 1.000000e+00 : f32
    %40 = vector.broadcast %cst_28 : f32 to vector<64x8xf32>
    %41 = arith.addf %40, %39 : vector<64x8xf32>
    %42 = arith.divf %40, %41 : vector<64x8xf32>
    %43 = arith.mulf %37, %42 : vector<64x8xf32>
    %c0_29 = arith.constant 0 : index
    %c0_30 = arith.constant 0 : index
    %44 = vector.load %arg13[%c0_29, %c0_30] : memref<32x8xf32, #tpu.memory_space<vmem>>, vector<32x8xf32>
    %cst_31 = arith.constant dense<0.000000e+00> : vector<64x8xf32>
    %45 = tpu.matmul %29, %44, %cst_31 {dimension_numbers = #tpu.dot_dimension_numbers<[1], [0], [0], [1], [0, 0, 1, 1], [], []>} : vector<64x32xf32>, vector<32x8xf32>, vector<64x8xf32> -> vector<64x8xf32>
    %c0_32 = arith.constant 0 : index
    %c0_33 = arith.constant 0 : index
    %46 = vector.load %arg14[%c0_32, %c0_33] : memref<16x8xf32, #tpu.memory_space<vmem>>, vector<16x8xf32>
    %cst_34 = arith.constant dense<0.000000e+00> : vector<64x8xf32>
    %47 = tpu.matmul %0, %46, %cst_34 {dimension_numbers = #tpu.dot_dimension_numbers<[1], [0], [0], [1], [0, 0, 1, 1], [], []>} : vector<64x16xf32>, vector<16x8xf32>, vector<64x8xf32> -> vector<64x8xf32>
    %48 = arith.addf %45, %47 : vector<64x8xf32>
    %c0_35 = arith.constant 0 : index
    %c0_36 = arith.constant 0 : index
    %49 = vector.load %arg15[%c0_35, %c0_36] : memref<1x8xf32, #tpu.memory_space<vmem>>, vector<1x8xf32>
    %50 = vector.broadcast %49 : vector<1x8xf32> to vector<64x8xf32>
    %51 = arith.addf %48, %50 : vector<64x8xf32>
    %52 = arith.negf %51 : vector<64x8xf32>
    %53 = math.exp %52 : vector<64x8xf32>
    %cst_37 = arith.constant 1.000000e+00 : f32
    %54 = vector.broadcast %cst_37 : f32 to vector<64x8xf32>
    %55 = arith.addf %54, %53 : vector<64x8xf32>
    %56 = arith.divf %54, %55 : vector<64x8xf32>
    %57 = arith.mulf %51, %56 : vector<64x8xf32>
    %cst_38 = arith.constant 5.000000e-01 : f32
    %58 = vector.broadcast %cst_38 : f32 to vector<64x8xf32>
    %59 = arith.mulf %58, %57 : vector<64x8xf32>
    %60 = math.exp %59 : vector<64x8xf32>
    %c0_39 = arith.constant 0 : index
    %c0_40 = arith.constant 0 : index
    %61 = vector.load %arg3[%c0_39, %c0_40] : memref<64x8xf32, #tpu.memory_space<vmem>>, vector<64x8xf32>
    %62 = arith.mulf %60, %61 : vector<64x8xf32>
    %63 = arith.addf %43, %62 : vector<64x8xf32>
    %c0_41 = arith.constant 0 : index
    %c0_42 = arith.constant 0 : index
    %64 = vector.load %arg16[%c0_41, %c0_42] : memref<8x8xf32, #tpu.memory_space<vmem>>, vector<8x8xf32>
    %cst_43 = arith.constant dense<0.000000e+00> : vector<64x8xf32>
    %65 = tpu.matmul %63, %64, %cst_43 {dimension_numbers = #tpu.dot_dimension_numbers<[1], [0], [0], [1], [0, 0, 1, 1], [], []>} : vector<64x8xf32>, vector<8x8xf32>, vector<64x8xf32> -> vector<64x8xf32>
    %c0_44 = arith.constant 0 : index
    %c0_45 = arith.constant 0 : index
    %66 = vector.load %arg17[%c0_44, %c0_45] : memref<16x8xf32, #tpu.memory_space<vmem>>, vector<16x8xf32>
    %cst_46 = arith.constant dense<0.000000e+00> : vector<64x8xf32>
    %67 = tpu.matmul %0, %66, %cst_46 {dimension_numbers = #tpu.dot_dimension_numbers<[1], [0], [0], [1], [0, 0, 1, 1], [], []>} : vector<64x16xf32>, vector<16x8xf32>, vector<64x8xf32> -> vector<64x8xf32>
    %68 = arith.addf %65, %67 : vector<64x8xf32>
    %c0_47 = arith.constant 0 : index
    %c0_48 = arith.constant 0 : index
    %69 = vector.load %arg18[%c0_47, %c0_48] : memref<1x8xf32, #tpu.memory_space<vmem>>, vector<1x8xf32>
    %70 = vector.broadcast %69 : vector<1x8xf32> to vector<64x8xf32>
    %71 = arith.addf %68, %70 : vector<64x8xf32>
    %c0_49 = arith.constant 0 : index
    %c0_50 = arith.constant 0 : index
    %72 = vector.load %arg19[%c0_49, %c0_50] : memref<8x32xf32, #tpu.memory_space<vmem>>, vector<8x32xf32>
    %cst_51 = arith.constant dense<0.000000e+00> : vector<64x32xf32>
    %73 = tpu.matmul %71, %72, %cst_51 {dimension_numbers = #tpu.dot_dimension_numbers<[1], [0], [0], [1], [0, 0, 1, 1], [], []>} : vector<64x8xf32>, vector<8x32xf32>, vector<64x32xf32> -> vector<64x32xf32>
    %c0_52 = arith.constant 0 : index
    %c0_53 = arith.constant 0 : index
    %74 = vector.load %arg20[%c0_52, %c0_53] : memref<16x32xf32, #tpu.memory_space<vmem>>, vector<16x32xf32>
    %cst_54 = arith.constant dense<0.000000e+00> : vector<64x32xf32>
    %75 = tpu.matmul %0, %74, %cst_54 {dimension_numbers = #tpu.dot_dimension_numbers<[1], [0], [0], [1], [0, 0, 1, 1], [], []>} : vector<64x16xf32>, vector<16x32xf32>, vector<64x32xf32> -> vector<64x32xf32>
    %76 = arith.addf %73, %75 : vector<64x32xf32>
    %c0_55 = arith.constant 0 : index
    %c0_56 = arith.constant 0 : index
    %77 = vector.load %arg21[%c0_55, %c0_56] : memref<1x32xf32, #tpu.memory_space<vmem>>, vector<1x32xf32>
    %78 = vector.broadcast %77 : vector<1x32xf32> to vector<64x32xf32>
    %79 = arith.addf %76, %78 : vector<64x32xf32>
    %80 = arith.negf %79 : vector<64x32xf32>
    %81 = math.exp %80 : vector<64x32xf32>
    %cst_57 = arith.constant 1.000000e+00 : f32
    %82 = vector.broadcast %cst_57 : f32 to vector<64x32xf32>
    %83 = arith.addf %82, %81 : vector<64x32xf32>
    %84 = arith.divf %82, %83 : vector<64x32xf32>
    %85 = arith.mulf %79, %84 : vector<64x32xf32>
    %c0_58 = arith.constant 0 : index
    %c0_59 = arith.constant 0 : index
    %86 = vector.load %arg22[%c0_58, %c0_59] : memref<32x32xf32, #tpu.memory_space<vmem>>, vector<32x32xf32>
    %cst_60 = arith.constant dense<0.000000e+00> : vector<64x32xf32>
    %87 = tpu.matmul %85, %86, %cst_60 {dimension_numbers = #tpu.dot_dimension_numbers<[1], [0], [0], [1], [0, 0, 1, 1], [], []>} : vector<64x32xf32>, vector<32x32xf32>, vector<64x32xf32> -> vector<64x32xf32>
    %c0_61 = arith.constant 0 : index
    %c0_62 = arith.constant 0 : index
    %88 = vector.load %arg23[%c0_61, %c0_62] : memref<16x32xf32, #tpu.memory_space<vmem>>, vector<16x32xf32>
    %cst_63 = arith.constant dense<0.000000e+00> : vector<64x32xf32>
    %89 = tpu.matmul %0, %88, %cst_63 {dimension_numbers = #tpu.dot_dimension_numbers<[1], [0], [0], [1], [0, 0, 1, 1], [], []>} : vector<64x16xf32>, vector<16x32xf32>, vector<64x32xf32> -> vector<64x32xf32>
    %90 = arith.addf %87, %89 : vector<64x32xf32>
    %c0_64 = arith.constant 0 : index
    %c0_65 = arith.constant 0 : index
    %91 = vector.load %arg24[%c0_64, %c0_65] : memref<1x32xf32, #tpu.memory_space<vmem>>, vector<1x32xf32>
    %92 = vector.broadcast %91 : vector<1x32xf32> to vector<64x32xf32>
    %93 = arith.addf %90, %92 : vector<64x32xf32>
    %94 = arith.negf %93 : vector<64x32xf32>
    %95 = math.exp %94 : vector<64x32xf32>
    %cst_66 = arith.constant 1.000000e+00 : f32
    %96 = vector.broadcast %cst_66 : f32 to vector<64x32xf32>
    %97 = arith.addf %96, %95 : vector<64x32xf32>
    %98 = arith.divf %96, %97 : vector<64x32xf32>
    %99 = arith.mulf %93, %98 : vector<64x32xf32>
    %c0_67 = arith.constant 0 : index
    %c0_68 = arith.constant 0 : index
    %100 = vector.load %arg25[%c0_67, %c0_68] : memref<32x8xf32, #tpu.memory_space<vmem>>, vector<32x8xf32>
    %cst_69 = arith.constant dense<0.000000e+00> : vector<64x8xf32>
    %101 = tpu.matmul %99, %100, %cst_69 {dimension_numbers = #tpu.dot_dimension_numbers<[1], [0], [0], [1], [0, 0, 1, 1], [], []>} : vector<64x32xf32>, vector<32x8xf32>, vector<64x8xf32> -> vector<64x8xf32>
    %c0_70 = arith.constant 0 : index
    %c0_71 = arith.constant 0 : index
    %102 = vector.load %arg26[%c0_70, %c0_71] : memref<16x8xf32, #tpu.memory_space<vmem>>, vector<16x8xf32>
    %cst_72 = arith.constant dense<0.000000e+00> : vector<64x8xf32>
    %103 = tpu.matmul %0, %102, %cst_72 {dimension_numbers = #tpu.dot_dimension_numbers<[1], [0], [0], [1], [0, 0, 1, 1], [], []>} : vector<64x16xf32>, vector<16x8xf32>, vector<64x8xf32> -> vector<64x8xf32>
    %104 = arith.addf %101, %103 : vector<64x8xf32>
    %c0_73 = arith.constant 0 : index
    %c0_74 = arith.constant 0 : index
    %105 = vector.load %arg27[%c0_73, %c0_74] : memref<1x8xf32, #tpu.memory_space<vmem>>, vector<1x8xf32>
    %106 = vector.broadcast %105 : vector<1x8xf32> to vector<64x8xf32>
    %107 = arith.addf %104, %106 : vector<64x8xf32>
    %108 = arith.negf %107 : vector<64x8xf32>
    %109 = math.exp %108 : vector<64x8xf32>
    %cst_75 = arith.constant 1.000000e+00 : f32
    %110 = vector.broadcast %cst_75 : f32 to vector<64x8xf32>
    %111 = arith.addf %110, %109 : vector<64x8xf32>
    %112 = arith.divf %110, %111 : vector<64x8xf32>
    %113 = arith.mulf %107, %112 : vector<64x8xf32>
    %114 = arith.addf %113, %71 : vector<64x8xf32>
    %c0_76 = arith.constant 0 : index
    %c0_77 = arith.constant 0 : index
    %115 = vector.load %arg28[%c0_76, %c0_77] : memref<64x8xf32, #tpu.memory_space<vmem>>, vector<64x8xf32>
    tpu.vector_store %arg28[%c0_76, %c0_77], %114 {strides = array<i32>} : memref<64x8xf32, #tpu.memory_space<vmem>>, vector<64x8xf32>,
    %cst_78 = arith.constant -5.000000e-01 : f32
    %116 = vector.broadcast %cst_78 : f32 to vector<64x8xf32>
    %117 = arith.mulf %116, %57 : vector<64x8xf32>
    %118 = math.exp %57 : vector<64x8xf32>
    %119 = arith.mulf %43, %43 : vector<64x8xf32>
    %120 = arith.addf %118, %119 : vector<64x8xf32>
    %cst_79 = arith.constant 5.000000e-01 : f32
    %121 = vector.broadcast %cst_79 : f32 to vector<64x8xf32>
    %122 = arith.mulf %121, %120 : vector<64x8xf32>
    %123 = arith.addf %117, %122 : vector<64x8xf32>
    %cst_80 = arith.constant 5.000000e-01 : f32
    %124 = vector.broadcast %cst_80 : f32 to vector<64x8xf32>
    %125 = arith.subf %123, %124 : vector<64x8xf32>
    %cst_81 = arith.constant dense<0.000000e+00> : vector<64xf32>
    %126 = vector.multi_reduction <add>, %125, %cst_81 [1] : vector<64x8xf32> to vector<64xf32>
    %127 = vector.shape_cast %126 : vector<64xf32> to vector<64x1xf32>
    %c0_82 = arith.constant 0 : index
    %c0_83 = arith.constant 0 : index
    %128 = vector.load %arg29[%c0_82, %c0_83] : memref<64x1xf32, #tpu.memory_space<vmem>>, vector<64x1xf32>
    tpu.vector_store %arg29[%c0_82, %c0_83], %127 {strides = array<i32>} : memref<64x1xf32, #tpu.memory_space<vmem>>, vector<64x1xf32>,
    return
  }
  func.func @transform_0(%arg0: i32) -> (i32, i32) {
    %c0_i32 = arith.constant 0 : i32
    %c0_i32_0 = arith.constant 0 : i32
    return %arg0, %c0_i32 : i32, i32
  }
  func.func @transform_1(%arg0: i32) -> (i32, i32) {
    %c0_i32 = arith.constant 0 : i32
    %c0_i32_0 = arith.constant 0 : i32
    return %arg0, %c0_i32 : i32, i32
  }
  func.func @transform_2(%arg0: i32) -> (i32, i32) {
    %c0_i32 = arith.constant 0 : i32
    %c0_i32_0 = arith.constant 0 : i32
    return %arg0, %c0_i32 : i32, i32
  }
  func.func @transform_3(%arg0: i32) -> (i32, i32) {
    %c0_i32 = arith.constant 0 : i32
    %c0_i32_0 = arith.constant 0 : i32
    %c0_i32_1 = arith.constant 0 : i32
    return %c0_i32, %c0_i32_0 : i32, i32
  }
  func.func @transform_4(%arg0: i32) -> (i32, i32) {
    %c0_i32 = arith.constant 0 : i32
    %c0_i32_0 = arith.constant 0 : i32
    %c0_i32_1 = arith.constant 0 : i32
    return %c0_i32, %c0_i32_0 : i32, i32
  }
  func.func @transform_5(%arg0: i32) -> (i32, i32) {
    %c0_i32 = arith.constant 0 : i32
    %c0_i32_0 = arith.constant 0 : i32
    %c0_i32_1 = arith.constant 0 : i32
    return %c0_i32, %c0_i32_0 : i32, i32
  }
  func.func @transform_6(%arg0: i32) -> (i32, i32) {
    %c0_i32 = arith.constant 0 : i32
    %c0_i32_0 = arith.constant 0 : i32
    %c0_i32_1 = arith.constant 0 : i32
    return %c0_i32, %c0_i32_0 : i32, i32
  }
  func.func @transform_7(%arg0: i32) -> (i32, i32) {
    %c0_i32 = arith.constant 0 : i32
    %c0_i32_0 = arith.constant 0 : i32
    %c0_i32_1 = arith.constant 0 : i32
    return %c0_i32, %c0_i32_0 : i32, i32
  }
  func.func @transform_8(%arg0: i32) -> (i32, i32) {
    %c0_i32 = arith.constant 0 : i32
    %c0_i32_0 = arith.constant 0 : i32
    %c0_i32_1 = arith.constant 0 : i32
    return %c0_i32, %c0_i32_0 : i32, i32
  }
  func.func @transform_9(%arg0: i32) -> (i32, i32) {
    %c0_i32 = arith.constant 0 : i32
    %c0_i32_0 = arith.constant 0 : i32
    %c0_i32_1 = arith.constant 0 : i32
    return %c0_i32, %c0_i32_0 : i32, i32
  }
  func.func @transform_10(%arg0: i32) -> (i32, i32) {
    %c0_i32 = arith.constant 0 : i32
    %c0_i32_0 = arith.constant 0 : i32
    %c0_i32_1 = arith.constant 0 : i32
    return %c0_i32, %c0_i32_0 : i32, i32
  }
  func.func @transform_11(%arg0: i32) -> (i32, i32) {
    %c0_i32 = arith.constant 0 : i32
    %c0_i32_0 = arith.constant 0 : i32
    %c0_i32_1 = arith.constant 0 : i32
    return %c0_i32, %c0_i32_0 : i32, i32
  }
  func.func @transform_12(%arg0: i32) -> (i32, i32) {
    %c0_i32 = arith.constant 0 : i32
    %c0_i32_0 = arith.constant 0 : i32
    %c0_i32_1 = arith.constant 0 : i32
    return %c0_i32, %c0_i32_0 : i32, i32
  }
  func.func @transform_13(%arg0: i32) -> (i32, i32) {
    %c0_i32 = arith.constant 0 : i32
    %c0_i32_0 = arith.constant 0 : i32
    %c0_i32_1 = arith.constant 0 : i32
    return %c0_i32, %c0_i32_0 : i32, i32
  }
  func.func @transform_14(%arg0: i32) -> (i32, i32) {
    %c0_i32 = arith.constant 0 : i32
    %c0_i32_0 = arith.constant 0 : i32
    %c0_i32_1 = arith.constant 0 : i32
    return %c0_i32, %c0_i32_0 : i32, i32
  }
  func.func @transform_15(%arg0: i32) -> (i32, i32) {
    %c0_i32 = arith.constant 0 : i32
    %c0_i32_0 = arith.constant 0 : i32
    %c0_i32_1 = arith.constant 0 : i32
    return %c0_i32, %c0_i32_0 : i32, i32
  }
  func.func @transform_16(%arg0: i32) -> (i32, i32) {
    %c0_i32 = arith.constant 0 : i32
    %c0_i32_0 = arith.constant 0 : i32
    %c0_i32_1 = arith.constant 0 : i32
    return %c0_i32, %c0_i32_0 : i32, i32
  }
  func.func @transform_17(%arg0: i32) -> (i32, i32) {
    %c0_i32 = arith.constant 0 : i32
    %c0_i32_0 = arith.constant 0 : i32
    %c0_i32_1 = arith.constant 0 : i32
    return %c0_i32, %c0_i32_0 : i32, i32
  }
  func.func @transform_18(%arg0: i32) -> (i32, i32) {
    %c0_i32 = arith.constant 0 : i32
    %c0_i32_0 = arith.constant 0 : i32
    %c0_i32_1 = arith.constant 0 : i32
    return %c0_i32, %c0_i32_0 : i32, i32
  }
  func.func @transform_19(%arg0: i32) -> (i32, i32) {
    %c0_i32 = arith.constant 0 : i32
    %c0_i32_0 = arith.constant 0 : i32
    %c0_i32_1 = arith.constant 0 : i32
    return %c0_i32, %c0_i32_0 : i32, i32
  }
  func.func @transform_20(%arg0: i32) -> (i32, i32) {
    %c0_i32 = arith.constant 0 : i32
    %c0_i32_0 = arith.constant 0 : i32
    %c0_i32_1 = arith.constant 0 : i32
    return %c0_i32, %c0_i32_0 : i32, i32
  }
  func.func @transform_21(%arg0: i32) -> (i32, i32) {
    %c0_i32 = arith.constant 0 : i32
    %c0_i32_0 = arith.constant 0 : i32
    %c0_i32_1 = arith.constant 0 : i32
    return %c0_i32, %c0_i32_0 : i32, i32
  }
  func.func @transform_22(%arg0: i32) -> (i32, i32) {
    %c0_i32 = arith.constant 0 : i32
    %c0_i32_0 = arith.constant 0 : i32
    %c0_i32_1 = arith.constant 0 : i32
    return %c0_i32, %c0_i32_0 : i32, i32
  }
  func.func @transform_23(%arg0: i32) -> (i32, i32) {
    %c0_i32 = arith.constant 0 : i32
    %c0_i32_0 = arith.constant 0 : i32
    %c0_i32_1 = arith.constant 0 : i32
    return %c0_i32, %c0_i32_0 : i32, i32
  }
  func.func @transform_24(%arg0: i32) -> (i32, i32) {
    %c0_i32 = arith.constant 0 : i32
    %c0_i32_0 = arith.constant 0 : i32
    %c0_i32_1 = arith.constant 0 : i32
    return %c0_i32, %c0_i32_0 : i32, i32
  }
  func.func @transform_25(%arg0: i32) -> (i32, i32) {
    %c0_i32 = arith.constant 0 : i32
    %c0_i32_0 = arith.constant 0 : i32
    %c0_i32_1 = arith.constant 0 : i32
    return %c0_i32, %c0_i32_0 : i32, i32
  }
  func.func @transform_26(%arg0: i32) -> (i32, i32) {
    %c0_i32 = arith.constant 0 : i32
    %c0_i32_0 = arith.constant 0 : i32
    %c0_i32_1 = arith.constant 0 : i32
    return %c0_i32, %c0_i32_0 : i32, i32
  }
  func.func @transform_27(%arg0: i32) -> (i32, i32) {
    %c0_i32 = arith.constant 0 : i32
    %c0_i32_0 = arith.constant 0 : i32
    return %arg0, %c0_i32 : i32, i32
  }
  func.func @transform_28(%arg0: i32) -> (i32, i32) {
    %c0_i32 = arith.constant 0 : i32
    %c0_i32_0 = arith.constant 0 : i32
    return %arg0, %c0_i32 : i32, i32
  }
}

module attributes {stable_mosaic.version = 11 : i64} {
  func.func @_topdown_kernel(%arg0: i32, %arg1: memref<64x8xf32, #tpu.memory_space<vmem>>, %arg2: memref<64x16xf32, #tpu.memory_space<vmem>>, %arg3: memref<64x16xf32, #tpu.memory_space<vmem>>, %arg4: memref<64x8xf32, #tpu.memory_space<vmem>>, %arg5: memref<8x32xf32, #tpu.memory_space<vmem>>, %arg6: memref<16x32xf32, #tpu.memory_space<vmem>>, %arg7: memref<16x32xf32, #tpu.memory_space<vmem>>, %arg8: memref<1x32xf32, #tpu.memory_space<vmem>>, %arg9: memref<32x32xf32, #tpu.memory_space<vmem>>, %arg10: memref<16x32xf32, #tpu.memory_space<vmem>>, %arg11: memref<1x32xf32, #tpu.memory_space<vmem>>, %arg12: memref<32x8xf32, #tpu.memory_space<vmem>>, %arg13: memref<16x8xf32, #tpu.memory_space<vmem>>, %arg14: memref<1x8xf32, #tpu.memory_space<vmem>>, %arg15: memref<32x8xf32, #tpu.memory_space<vmem>>, %arg16: memref<16x8xf32, #tpu.memory_space<vmem>>, %arg17: memref<1x8xf32, #tpu.memory_space<vmem>>, %arg18: memref<8x32xf32, #tpu.memory_space<vmem>>, %arg19: memref<16x32xf32, #tpu.memory_space<vmem>>, %arg20: memref<1x32xf32, #tpu.memory_space<vmem>>, %arg21: memref<32x32xf32, #tpu.memory_space<vmem>>, %arg22: memref<16x32xf32, #tpu.memory_space<vmem>>, %arg23: memref<1x32xf32, #tpu.memory_space<vmem>>, %arg24: memref<32x8xf32, #tpu.memory_space<vmem>>, %arg25: memref<16x8xf32, #tpu.memory_space<vmem>>, %arg26: memref<1x8xf32, #tpu.memory_space<vmem>>, %arg27: memref<32x8xf32, #tpu.memory_space<vmem>>, %arg28: memref<16x8xf32, #tpu.memory_space<vmem>>, %arg29: memref<1x8xf32, #tpu.memory_space<vmem>>, %arg30: memref<32x8xf32, #tpu.memory_space<vmem>>, %arg31: memref<16x8xf32, #tpu.memory_space<vmem>>, %arg32: memref<1x8xf32, #tpu.memory_space<vmem>>, %arg33: memref<8x8xf32, #tpu.memory_space<vmem>>, %arg34: memref<16x8xf32, #tpu.memory_space<vmem>>, %arg35: memref<1x8xf32, #tpu.memory_space<vmem>>, %arg36: memref<8x32xf32, #tpu.memory_space<vmem>>, %arg37: memref<16x32xf32, #tpu.memory_space<vmem>>, %arg38: memref<1x32xf32, #tpu.memory_space<vmem>>, %arg39: memref<32x32xf32, #tpu.memory_space<vmem>>, %arg40: memref<16x32xf32, #tpu.memory_space<vmem>>, %arg41: memref<1x32xf32, #tpu.memory_space<vmem>>, %arg42: memref<32x8xf32, #tpu.memory_space<vmem>>, %arg43: memref<16x8xf32, #tpu.memory_space<vmem>>, %arg44: memref<1x8xf32, #tpu.memory_space<vmem>>, %arg45: memref<64x8xf32, #tpu.memory_space<vmem>>, %arg46: memref<64x1xf32, #tpu.memory_space<vmem>>) attributes {dimension_semantics = [#tpu.dimension_semantics<parallel>], iteration_bounds = array<i64: 1>, scalar_prefetch = 0 : i64, scratch_operands = 0 : i64, tpu.core_type = #tpu.core_type<tc>, window_params = [{transform_indices = @transform_0, window_bounds = array<i64: 64, 8>}, {transform_indices = @transform_1, window_bounds = array<i64: 64, 16>}, {transform_indices = @transform_2, window_bounds = array<i64: 64, 16>}, {transform_indices = @transform_3, window_bounds = array<i64: 64, 8>}, {pipeline_mode = #tpu.pipeline_mode<synchronous>, transform_indices = @transform_4, window_bounds = array<i64: 8, 32>}, {pipeline_mode = #tpu.pipeline_mode<synchronous>, transform_indices = @transform_5, window_bounds = array<i64: 16, 32>}, {pipeline_mode = #tpu.pipeline_mode<synchronous>, transform_indices = @transform_6, window_bounds = array<i64: 16, 32>}, {pipeline_mode = #tpu.pipeline_mode<synchronous>, transform_indices = @transform_7, window_bounds = array<i64: 1, 32>}, {pipeline_mode = #tpu.pipeline_mode<synchronous>, transform_indices = @transform_8, window_bounds = array<i64: 32, 32>}, {pipeline_mode = #tpu.pipeline_mode<synchronous>, transform_indices = @transform_9, window_bounds = array<i64: 16, 32>}, {pipeline_mode = #tpu.pipeline_mode<synchronous>, transform_indices = @transform_10, window_bounds = array<i64: 1, 32>}, {pipeline_mode = #tpu.pipeline_mode<synchronous>, transform_indices = @transform_11, window_bounds = array<i64: 32, 8>}, {pipeline_mode = #tpu.pipeline_mode<synchronous>, transform_indices = @transform_12, window_bounds = array<i64: 16, 8>}, {pipeline_mode = #tpu.pipeline_mode<synchronous>, transform_indices = @transform_13, window_bounds = array<i64: 1, 8>}, {pipeline_mode = #tpu.pipeline_mode<synchronous>, transform_indices = @transform_14, window_bounds = array<i64: 32, 8>}, {pipeline_mode = #tpu.pipeline_mode<synchronous>, transform_indices = @transform_15, window_bounds = array<i64: 16, 8>}, {pipeline_mode = #tpu.pipeline_mode<synchronous>, transform_indices = @transform_16, window_bounds = array<i64: 1, 8>}, {pipeline_mode = #tpu.pipeline_mode<synchronous>, transform_indices = @transform_17, window_bounds = array<i64: 8, 32>}, {pipeline_mode = #tpu.pipeline_mode<synchronous>, transform_indices = @transform_18, window_bounds = array<i64: 16, 32>}, {pipeline_mode = #tpu.pipeline_mode<synchronous>, transform_indices = @transform_19, window_bounds = array<i64: 1, 32>}, {pipeline_mode = #tpu.pipeline_mode<synchronous>, transform_indices = @transform_20, window_bounds = array<i64: 32, 32>}, {pipeline_mode = #tpu.pipeline_mode<synchronous>, transform_indices = @transform_21, window_bounds = array<i64: 16, 32>}, {pipeline_mode = #tpu.pipeline_mode<synchronous>, transform_indices = @transform_22, window_bounds = array<i64: 1, 32>}, {pipeline_mode = #tpu.pipeline_mode<synchronous>, transform_indices = @transform_23, window_bounds = array<i64: 32, 8>}, {pipeline_mode = #tpu.pipeline_mode<synchronous>, transform_indices = @transform_24, window_bounds = array<i64: 16, 8>}, {pipeline_mode = #tpu.pipeline_mode<synchronous>, transform_indices = @transform_25, window_bounds = array<i64: 1, 8>}, {pipeline_mode = #tpu.pipeline_mode<synchronous>, transform_indices = @transform_26, window_bounds = array<i64: 32, 8>}, {pipeline_mode = #tpu.pipeline_mode<synchronous>, transform_indices = @transform_27, window_bounds = array<i64: 16, 8>}, {pipeline_mode = #tpu.pipeline_mode<synchronous>, transform_indices = @transform_28, window_bounds = array<i64: 1, 8>}, {pipeline_mode = #tpu.pipeline_mode<synchronous>, transform_indices = @transform_29, window_bounds = array<i64: 32, 8>}, {pipeline_mode = #tpu.pipeline_mode<synchronous>, transform_indices = @transform_30, window_bounds = array<i64: 16, 8>}, {pipeline_mode = #tpu.pipeline_mode<synchronous>, transform_indices = @transform_31, window_bounds = array<i64: 1, 8>}, {pipeline_mode = #tpu.pipeline_mode<synchronous>, transform_indices = @transform_32, window_bounds = array<i64: 8, 8>}, {pipeline_mode = #tpu.pipeline_mode<synchronous>, transform_indices = @transform_33, window_bounds = array<i64: 16, 8>}, {pipeline_mode = #tpu.pipeline_mode<synchronous>, transform_indices = @transform_34, window_bounds = array<i64: 1, 8>}, {pipeline_mode = #tpu.pipeline_mode<synchronous>, transform_indices = @transform_35, window_bounds = array<i64: 8, 32>}, {pipeline_mode = #tpu.pipeline_mode<synchronous>, transform_indices = @transform_36, window_bounds = array<i64: 16, 32>}, {pipeline_mode = #tpu.pipeline_mode<synchronous>, transform_indices = @transform_37, window_bounds = array<i64: 1, 32>}, {pipeline_mode = #tpu.pipeline_mode<synchronous>, transform_indices = @transform_38, window_bounds = array<i64: 32, 32>}, {pipeline_mode = #tpu.pipeline_mode<synchronous>, transform_indices = @transform_39, window_bounds = array<i64: 16, 32>}, {pipeline_mode = #tpu.pipeline_mode<synchronous>, transform_indices = @transform_40, window_bounds = array<i64: 1, 32>}, {pipeline_mode = #tpu.pipeline_mode<synchronous>, transform_indices = @transform_41, window_bounds = array<i64: 32, 8>}, {pipeline_mode = #tpu.pipeline_mode<synchronous>, transform_indices = @transform_42, window_bounds = array<i64: 16, 8>}, {pipeline_mode = #tpu.pipeline_mode<synchronous>, transform_indices = @transform_43, window_bounds = array<i64: 1, 8>}, {transform_indices = @transform_44, window_bounds = array<i64: 64, 8>}, {transform_indices = @transform_45, window_bounds = array<i64: 64, 1>}]} {
    %c0 = arith.constant 0 : index
    %c0_0 = arith.constant 0 : index
    %0 = vector.load %arg1[%c0, %c0_0] : memref<64x8xf32, #tpu.memory_space<vmem>>, vector<64x8xf32>
    %c0_1 = arith.constant 0 : index
    %c0_2 = arith.constant 0 : index
    %1 = vector.load %arg2[%c0_1, %c0_2] : memref<64x16xf32, #tpu.memory_space<vmem>>, vector<64x16xf32>
    %c0_3 = arith.constant 0 : index
    %c0_4 = arith.constant 0 : index
    %2 = vector.load %arg3[%c0_3, %c0_4] : memref<64x16xf32, #tpu.memory_space<vmem>>, vector<64x16xf32>
    %c0_5 = arith.constant 0 : index
    %c0_6 = arith.constant 0 : index
    %3 = vector.load %arg5[%c0_5, %c0_6] : memref<8x32xf32, #tpu.memory_space<vmem>>, vector<8x32xf32>
    %cst = arith.constant dense<0.000000e+00> : vector<64x32xf32>
    %4 = tpu.matmul %0, %3, %cst {dimension_numbers = #tpu.dot_dimension_numbers<[1], [0], [0], [1], [0, 0, 1, 1], [], []>} : vector<64x8xf32>, vector<8x32xf32>, vector<64x32xf32> -> vector<64x32xf32>
    %c0_7 = arith.constant 0 : index
    %c0_8 = arith.constant 0 : index
    %5 = vector.load %arg6[%c0_7, %c0_8] : memref<16x32xf32, #tpu.memory_space<vmem>>, vector<16x32xf32>
    %cst_9 = arith.constant dense<0.000000e+00> : vector<64x32xf32>
    %6 = tpu.matmul %1, %5, %cst_9 {dimension_numbers = #tpu.dot_dimension_numbers<[1], [0], [0], [1], [0, 0, 1, 1], [], []>} : vector<64x16xf32>, vector<16x32xf32>, vector<64x32xf32> -> vector<64x32xf32>
    %7 = arith.addf %4, %6 : vector<64x32xf32>
    %c0_10 = arith.constant 0 : index
    %c0_11 = arith.constant 0 : index
    %8 = vector.load %arg7[%c0_10, %c0_11] : memref<16x32xf32, #tpu.memory_space<vmem>>, vector<16x32xf32>
    %cst_12 = arith.constant dense<0.000000e+00> : vector<64x32xf32>
    %9 = tpu.matmul %2, %8, %cst_12 {dimension_numbers = #tpu.dot_dimension_numbers<[1], [0], [0], [1], [0, 0, 1, 1], [], []>} : vector<64x16xf32>, vector<16x32xf32>, vector<64x32xf32> -> vector<64x32xf32>
    %10 = arith.addf %7, %9 : vector<64x32xf32>
    %c0_13 = arith.constant 0 : index
    %c0_14 = arith.constant 0 : index
    %11 = vector.load %arg8[%c0_13, %c0_14] : memref<1x32xf32, #tpu.memory_space<vmem>>, vector<1x32xf32>
    %12 = vector.broadcast %11 : vector<1x32xf32> to vector<64x32xf32>
    %13 = arith.addf %10, %12 : vector<64x32xf32>
    %14 = arith.negf %13 : vector<64x32xf32>
    %15 = math.exp %14 : vector<64x32xf32>
    %cst_15 = arith.constant 1.000000e+00 : f32
    %16 = vector.broadcast %cst_15 : f32 to vector<64x32xf32>
    %17 = arith.addf %16, %15 : vector<64x32xf32>
    %18 = arith.divf %16, %17 : vector<64x32xf32>
    %19 = arith.mulf %13, %18 : vector<64x32xf32>
    %c0_16 = arith.constant 0 : index
    %c0_17 = arith.constant 0 : index
    %20 = vector.load %arg9[%c0_16, %c0_17] : memref<32x32xf32, #tpu.memory_space<vmem>>, vector<32x32xf32>
    %cst_18 = arith.constant dense<0.000000e+00> : vector<64x32xf32>
    %21 = tpu.matmul %19, %20, %cst_18 {dimension_numbers = #tpu.dot_dimension_numbers<[1], [0], [0], [1], [0, 0, 1, 1], [], []>} : vector<64x32xf32>, vector<32x32xf32>, vector<64x32xf32> -> vector<64x32xf32>
    %c0_19 = arith.constant 0 : index
    %c0_20 = arith.constant 0 : index
    %22 = vector.load %arg10[%c0_19, %c0_20] : memref<16x32xf32, #tpu.memory_space<vmem>>, vector<16x32xf32>
    %cst_21 = arith.constant dense<0.000000e+00> : vector<64x32xf32>
    %23 = tpu.matmul %2, %22, %cst_21 {dimension_numbers = #tpu.dot_dimension_numbers<[1], [0], [0], [1], [0, 0, 1, 1], [], []>} : vector<64x16xf32>, vector<16x32xf32>, vector<64x32xf32> -> vector<64x32xf32>
    %24 = arith.addf %21, %23 : vector<64x32xf32>
    %c0_22 = arith.constant 0 : index
    %c0_23 = arith.constant 0 : index
    %25 = vector.load %arg11[%c0_22, %c0_23] : memref<1x32xf32, #tpu.memory_space<vmem>>, vector<1x32xf32>
    %26 = vector.broadcast %25 : vector<1x32xf32> to vector<64x32xf32>
    %27 = arith.addf %24, %26 : vector<64x32xf32>
    %28 = arith.negf %27 : vector<64x32xf32>
    %29 = math.exp %28 : vector<64x32xf32>
    %cst_24 = arith.constant 1.000000e+00 : f32
    %30 = vector.broadcast %cst_24 : f32 to vector<64x32xf32>
    %31 = arith.addf %30, %29 : vector<64x32xf32>
    %32 = arith.divf %30, %31 : vector<64x32xf32>
    %33 = arith.mulf %27, %32 : vector<64x32xf32>
    %c0_25 = arith.constant 0 : index
    %c0_26 = arith.constant 0 : index
    %34 = vector.load %arg12[%c0_25, %c0_26] : memref<32x8xf32, #tpu.memory_space<vmem>>, vector<32x8xf32>
    %cst_27 = arith.constant dense<0.000000e+00> : vector<64x8xf32>
    %35 = tpu.matmul %33, %34, %cst_27 {dimension_numbers = #tpu.dot_dimension_numbers<[1], [0], [0], [1], [0, 0, 1, 1], [], []>} : vector<64x32xf32>, vector<32x8xf32>, vector<64x8xf32> -> vector<64x8xf32>
    %c0_28 = arith.constant 0 : index
    %c0_29 = arith.constant 0 : index
    %36 = vector.load %arg13[%c0_28, %c0_29] : memref<16x8xf32, #tpu.memory_space<vmem>>, vector<16x8xf32>
    %cst_30 = arith.constant dense<0.000000e+00> : vector<64x8xf32>
    %37 = tpu.matmul %2, %36, %cst_30 {dimension_numbers = #tpu.dot_dimension_numbers<[1], [0], [0], [1], [0, 0, 1, 1], [], []>} : vector<64x16xf32>, vector<16x8xf32>, vector<64x8xf32> -> vector<64x8xf32>
    %38 = arith.addf %35, %37 : vector<64x8xf32>
    %c0_31 = arith.constant 0 : index
    %c0_32 = arith.constant 0 : index
    %39 = vector.load %arg14[%c0_31, %c0_32] : memref<1x8xf32, #tpu.memory_space<vmem>>, vector<1x8xf32>
    %40 = vector.broadcast %39 : vector<1x8xf32> to vector<64x8xf32>
    %41 = arith.addf %38, %40 : vector<64x8xf32>
    %42 = arith.negf %41 : vector<64x8xf32>
    %43 = math.exp %42 : vector<64x8xf32>
    %cst_33 = arith.constant 1.000000e+00 : f32
    %44 = vector.broadcast %cst_33 : f32 to vector<64x8xf32>
    %45 = arith.addf %44, %43 : vector<64x8xf32>
    %46 = arith.divf %44, %45 : vector<64x8xf32>
    %47 = arith.mulf %41, %46 : vector<64x8xf32>
    %c0_34 = arith.constant 0 : index
    %c0_35 = arith.constant 0 : index
    %48 = vector.load %arg15[%c0_34, %c0_35] : memref<32x8xf32, #tpu.memory_space<vmem>>, vector<32x8xf32>
    %cst_36 = arith.constant dense<0.000000e+00> : vector<64x8xf32>
    %49 = tpu.matmul %33, %48, %cst_36 {dimension_numbers = #tpu.dot_dimension_numbers<[1], [0], [0], [1], [0, 0, 1, 1], [], []>} : vector<64x32xf32>, vector<32x8xf32>, vector<64x8xf32> -> vector<64x8xf32>
    %c0_37 = arith.constant 0 : index
    %c0_38 = arith.constant 0 : index
    %50 = vector.load %arg16[%c0_37, %c0_38] : memref<16x8xf32, #tpu.memory_space<vmem>>, vector<16x8xf32>
    %cst_39 = arith.constant dense<0.000000e+00> : vector<64x8xf32>
    %51 = tpu.matmul %2, %50, %cst_39 {dimension_numbers = #tpu.dot_dimension_numbers<[1], [0], [0], [1], [0, 0, 1, 1], [], []>} : vector<64x16xf32>, vector<16x8xf32>, vector<64x8xf32> -> vector<64x8xf32>
    %52 = arith.addf %49, %51 : vector<64x8xf32>
    %c0_40 = arith.constant 0 : index
    %c0_41 = arith.constant 0 : index
    %53 = vector.load %arg17[%c0_40, %c0_41] : memref<1x8xf32, #tpu.memory_space<vmem>>, vector<1x8xf32>
    %54 = vector.broadcast %53 : vector<1x8xf32> to vector<64x8xf32>
    %55 = arith.addf %52, %54 : vector<64x8xf32>
    %56 = arith.negf %55 : vector<64x8xf32>
    %57 = math.exp %56 : vector<64x8xf32>
    %cst_42 = arith.constant 1.000000e+00 : f32
    %58 = vector.broadcast %cst_42 : f32 to vector<64x8xf32>
    %59 = arith.addf %58, %57 : vector<64x8xf32>
    %60 = arith.divf %58, %59 : vector<64x8xf32>
    %61 = arith.mulf %55, %60 : vector<64x8xf32>
    %c0_43 = arith.constant 0 : index
    %c0_44 = arith.constant 0 : index
    %62 = vector.load %arg18[%c0_43, %c0_44] : memref<8x32xf32, #tpu.memory_space<vmem>>, vector<8x32xf32>
    %cst_45 = arith.constant dense<0.000000e+00> : vector<64x32xf32>
    %63 = tpu.matmul %0, %62, %cst_45 {dimension_numbers = #tpu.dot_dimension_numbers<[1], [0], [0], [1], [0, 0, 1, 1], [], []>} : vector<64x8xf32>, vector<8x32xf32>, vector<64x32xf32> -> vector<64x32xf32>
    %c0_46 = arith.constant 0 : index
    %c0_47 = arith.constant 0 : index
    %64 = vector.load %arg19[%c0_46, %c0_47] : memref<16x32xf32, #tpu.memory_space<vmem>>, vector<16x32xf32>
    %cst_48 = arith.constant dense<0.000000e+00> : vector<64x32xf32>
    %65 = tpu.matmul %2, %64, %cst_48 {dimension_numbers = #tpu.dot_dimension_numbers<[1], [0], [0], [1], [0, 0, 1, 1], [], []>} : vector<64x16xf32>, vector<16x32xf32>, vector<64x32xf32> -> vector<64x32xf32>
    %66 = arith.addf %63, %65 : vector<64x32xf32>
    %c0_49 = arith.constant 0 : index
    %c0_50 = arith.constant 0 : index
    %67 = vector.load %arg20[%c0_49, %c0_50] : memref<1x32xf32, #tpu.memory_space<vmem>>, vector<1x32xf32>
    %68 = vector.broadcast %67 : vector<1x32xf32> to vector<64x32xf32>
    %69 = arith.addf %66, %68 : vector<64x32xf32>
    %70 = arith.negf %69 : vector<64x32xf32>
    %71 = math.exp %70 : vector<64x32xf32>
    %cst_51 = arith.constant 1.000000e+00 : f32
    %72 = vector.broadcast %cst_51 : f32 to vector<64x32xf32>
    %73 = arith.addf %72, %71 : vector<64x32xf32>
    %74 = arith.divf %72, %73 : vector<64x32xf32>
    %75 = arith.mulf %69, %74 : vector<64x32xf32>
    %c0_52 = arith.constant 0 : index
    %c0_53 = arith.constant 0 : index
    %76 = vector.load %arg21[%c0_52, %c0_53] : memref<32x32xf32, #tpu.memory_space<vmem>>, vector<32x32xf32>
    %cst_54 = arith.constant dense<0.000000e+00> : vector<64x32xf32>
    %77 = tpu.matmul %75, %76, %cst_54 {dimension_numbers = #tpu.dot_dimension_numbers<[1], [0], [0], [1], [0, 0, 1, 1], [], []>} : vector<64x32xf32>, vector<32x32xf32>, vector<64x32xf32> -> vector<64x32xf32>
    %c0_55 = arith.constant 0 : index
    %c0_56 = arith.constant 0 : index
    %78 = vector.load %arg22[%c0_55, %c0_56] : memref<16x32xf32, #tpu.memory_space<vmem>>, vector<16x32xf32>
    %cst_57 = arith.constant dense<0.000000e+00> : vector<64x32xf32>
    %79 = tpu.matmul %2, %78, %cst_57 {dimension_numbers = #tpu.dot_dimension_numbers<[1], [0], [0], [1], [0, 0, 1, 1], [], []>} : vector<64x16xf32>, vector<16x32xf32>, vector<64x32xf32> -> vector<64x32xf32>
    %80 = arith.addf %77, %79 : vector<64x32xf32>
    %c0_58 = arith.constant 0 : index
    %c0_59 = arith.constant 0 : index
    %81 = vector.load %arg23[%c0_58, %c0_59] : memref<1x32xf32, #tpu.memory_space<vmem>>, vector<1x32xf32>
    %82 = vector.broadcast %81 : vector<1x32xf32> to vector<64x32xf32>
    %83 = arith.addf %80, %82 : vector<64x32xf32>
    %84 = arith.negf %83 : vector<64x32xf32>
    %85 = math.exp %84 : vector<64x32xf32>
    %cst_60 = arith.constant 1.000000e+00 : f32
    %86 = vector.broadcast %cst_60 : f32 to vector<64x32xf32>
    %87 = arith.addf %86, %85 : vector<64x32xf32>
    %88 = arith.divf %86, %87 : vector<64x32xf32>
    %89 = arith.mulf %83, %88 : vector<64x32xf32>
    %c0_61 = arith.constant 0 : index
    %c0_62 = arith.constant 0 : index
    %90 = vector.load %arg24[%c0_61, %c0_62] : memref<32x8xf32, #tpu.memory_space<vmem>>, vector<32x8xf32>
    %cst_63 = arith.constant dense<0.000000e+00> : vector<64x8xf32>
    %91 = tpu.matmul %89, %90, %cst_63 {dimension_numbers = #tpu.dot_dimension_numbers<[1], [0], [0], [1], [0, 0, 1, 1], [], []>} : vector<64x32xf32>, vector<32x8xf32>, vector<64x8xf32> -> vector<64x8xf32>
    %c0_64 = arith.constant 0 : index
    %c0_65 = arith.constant 0 : index
    %92 = vector.load %arg25[%c0_64, %c0_65] : memref<16x8xf32, #tpu.memory_space<vmem>>, vector<16x8xf32>
    %cst_66 = arith.constant dense<0.000000e+00> : vector<64x8xf32>
    %93 = tpu.matmul %2, %92, %cst_66 {dimension_numbers = #tpu.dot_dimension_numbers<[1], [0], [0], [1], [0, 0, 1, 1], [], []>} : vector<64x16xf32>, vector<16x8xf32>, vector<64x8xf32> -> vector<64x8xf32>
    %94 = arith.addf %91, %93 : vector<64x8xf32>
    %c0_67 = arith.constant 0 : index
    %c0_68 = arith.constant 0 : index
    %95 = vector.load %arg26[%c0_67, %c0_68] : memref<1x8xf32, #tpu.memory_space<vmem>>, vector<1x8xf32>
    %96 = vector.broadcast %95 : vector<1x8xf32> to vector<64x8xf32>
    %97 = arith.addf %94, %96 : vector<64x8xf32>
    %98 = arith.negf %97 : vector<64x8xf32>
    %99 = math.exp %98 : vector<64x8xf32>
    %cst_69 = arith.constant 1.000000e+00 : f32
    %100 = vector.broadcast %cst_69 : f32 to vector<64x8xf32>
    %101 = arith.addf %100, %99 : vector<64x8xf32>
    %102 = arith.divf %100, %101 : vector<64x8xf32>
    %103 = arith.mulf %97, %102 : vector<64x8xf32>
    %c0_70 = arith.constant 0 : index
    %c0_71 = arith.constant 0 : index
    %104 = vector.load %arg27[%c0_70, %c0_71] : memref<32x8xf32, #tpu.memory_space<vmem>>, vector<32x8xf32>
    %cst_72 = arith.constant dense<0.000000e+00> : vector<64x8xf32>
    %105 = tpu.matmul %89, %104, %cst_72 {dimension_numbers = #tpu.dot_dimension_numbers<[1], [0], [0], [1], [0, 0, 1, 1], [], []>} : vector<64x32xf32>, vector<32x8xf32>, vector<64x8xf32> -> vector<64x8xf32>
    %c0_73 = arith.constant 0 : index
    %c0_74 = arith.constant 0 : index
    %106 = vector.load %arg28[%c0_73, %c0_74] : memref<16x8xf32, #tpu.memory_space<vmem>>, vector<16x8xf32>
    %cst_75 = arith.constant dense<0.000000e+00> : vector<64x8xf32>
    %107 = tpu.matmul %2, %106, %cst_75 {dimension_numbers = #tpu.dot_dimension_numbers<[1], [0], [0], [1], [0, 0, 1, 1], [], []>} : vector<64x16xf32>, vector<16x8xf32>, vector<64x8xf32> -> vector<64x8xf32>
    %108 = arith.addf %105, %107 : vector<64x8xf32>
    %c0_76 = arith.constant 0 : index
    %c0_77 = arith.constant 0 : index
    %109 = vector.load %arg29[%c0_76, %c0_77] : memref<1x8xf32, #tpu.memory_space<vmem>>, vector<1x8xf32>
    %110 = vector.broadcast %109 : vector<1x8xf32> to vector<64x8xf32>
    %111 = arith.addf %108, %110 : vector<64x8xf32>
    %112 = arith.negf %111 : vector<64x8xf32>
    %113 = math.exp %112 : vector<64x8xf32>
    %cst_78 = arith.constant 1.000000e+00 : f32
    %114 = vector.broadcast %cst_78 : f32 to vector<64x8xf32>
    %115 = arith.addf %114, %113 : vector<64x8xf32>
    %116 = arith.divf %114, %115 : vector<64x8xf32>
    %117 = arith.mulf %111, %116 : vector<64x8xf32>
    %c0_79 = arith.constant 0 : index
    %c0_80 = arith.constant 0 : index
    %118 = vector.load %arg30[%c0_79, %c0_80] : memref<32x8xf32, #tpu.memory_space<vmem>>, vector<32x8xf32>
    %cst_81 = arith.constant dense<0.000000e+00> : vector<64x8xf32>
    %119 = tpu.matmul %89, %118, %cst_81 {dimension_numbers = #tpu.dot_dimension_numbers<[1], [0], [0], [1], [0, 0, 1, 1], [], []>} : vector<64x32xf32>, vector<32x8xf32>, vector<64x8xf32> -> vector<64x8xf32>
    %c0_82 = arith.constant 0 : index
    %c0_83 = arith.constant 0 : index
    %120 = vector.load %arg31[%c0_82, %c0_83] : memref<16x8xf32, #tpu.memory_space<vmem>>, vector<16x8xf32>
    %cst_84 = arith.constant dense<0.000000e+00> : vector<64x8xf32>
    %121 = tpu.matmul %2, %120, %cst_84 {dimension_numbers = #tpu.dot_dimension_numbers<[1], [0], [0], [1], [0, 0, 1, 1], [], []>} : vector<64x16xf32>, vector<16x8xf32>, vector<64x8xf32> -> vector<64x8xf32>
    %122 = arith.addf %119, %121 : vector<64x8xf32>
    %c0_85 = arith.constant 0 : index
    %c0_86 = arith.constant 0 : index
    %123 = vector.load %arg32[%c0_85, %c0_86] : memref<1x8xf32, #tpu.memory_space<vmem>>, vector<1x8xf32>
    %124 = vector.broadcast %123 : vector<1x8xf32> to vector<64x8xf32>
    %125 = arith.addf %122, %124 : vector<64x8xf32>
    %126 = arith.negf %125 : vector<64x8xf32>
    %127 = math.exp %126 : vector<64x8xf32>
    %cst_87 = arith.constant 1.000000e+00 : f32
    %128 = vector.broadcast %cst_87 : f32 to vector<64x8xf32>
    %129 = arith.addf %128, %127 : vector<64x8xf32>
    %130 = arith.divf %128, %129 : vector<64x8xf32>
    %131 = arith.mulf %125, %130 : vector<64x8xf32>
    %cst_88 = arith.constant 5.000000e-01 : f32
    %132 = vector.broadcast %cst_88 : f32 to vector<64x8xf32>
    %133 = arith.mulf %132, %61 : vector<64x8xf32>
    %134 = math.exp %133 : vector<64x8xf32>
    %c0_89 = arith.constant 0 : index
    %c0_90 = arith.constant 0 : index
    %135 = vector.load %arg4[%c0_89, %c0_90] : memref<64x8xf32, #tpu.memory_space<vmem>>, vector<64x8xf32>
    %136 = arith.mulf %134, %135 : vector<64x8xf32>
    %137 = arith.addf %47, %136 : vector<64x8xf32>
    %c0_91 = arith.constant 0 : index
    %c0_92 = arith.constant 0 : index
    %138 = vector.load %arg33[%c0_91, %c0_92] : memref<8x8xf32, #tpu.memory_space<vmem>>, vector<8x8xf32>
    %cst_93 = arith.constant dense<0.000000e+00> : vector<64x8xf32>
    %139 = tpu.matmul %137, %138, %cst_93 {dimension_numbers = #tpu.dot_dimension_numbers<[1], [0], [0], [1], [0, 0, 1, 1], [], []>} : vector<64x8xf32>, vector<8x8xf32>, vector<64x8xf32> -> vector<64x8xf32>
    %c0_94 = arith.constant 0 : index
    %c0_95 = arith.constant 0 : index
    %140 = vector.load %arg34[%c0_94, %c0_95] : memref<16x8xf32, #tpu.memory_space<vmem>>, vector<16x8xf32>
    %cst_96 = arith.constant dense<0.000000e+00> : vector<64x8xf32>
    %141 = tpu.matmul %2, %140, %cst_96 {dimension_numbers = #tpu.dot_dimension_numbers<[1], [0], [0], [1], [0, 0, 1, 1], [], []>} : vector<64x16xf32>, vector<16x8xf32>, vector<64x8xf32> -> vector<64x8xf32>
    %142 = arith.addf %139, %141 : vector<64x8xf32>
    %c0_97 = arith.constant 0 : index
    %c0_98 = arith.constant 0 : index
    %143 = vector.load %arg35[%c0_97, %c0_98] : memref<1x8xf32, #tpu.memory_space<vmem>>, vector<1x8xf32>
    %144 = vector.broadcast %143 : vector<1x8xf32> to vector<64x8xf32>
    %145 = arith.addf %142, %144 : vector<64x8xf32>
    %146 = arith.addf %0, %103 : vector<64x8xf32>
    %147 = arith.addf %146, %145 : vector<64x8xf32>
    %c0_99 = arith.constant 0 : index
    %c0_100 = arith.constant 0 : index
    %148 = vector.load %arg36[%c0_99, %c0_100] : memref<8x32xf32, #tpu.memory_space<vmem>>, vector<8x32xf32>
    %cst_101 = arith.constant dense<0.000000e+00> : vector<64x32xf32>
    %149 = tpu.matmul %147, %148, %cst_101 {dimension_numbers = #tpu.dot_dimension_numbers<[1], [0], [0], [1], [0, 0, 1, 1], [], []>} : vector<64x8xf32>, vector<8x32xf32>, vector<64x32xf32> -> vector<64x32xf32>
    %c0_102 = arith.constant 0 : index
    %c0_103 = arith.constant 0 : index
    %150 = vector.load %arg37[%c0_102, %c0_103] : memref<16x32xf32, #tpu.memory_space<vmem>>, vector<16x32xf32>
    %cst_104 = arith.constant dense<0.000000e+00> : vector<64x32xf32>
    %151 = tpu.matmul %2, %150, %cst_104 {dimension_numbers = #tpu.dot_dimension_numbers<[1], [0], [0], [1], [0, 0, 1, 1], [], []>} : vector<64x16xf32>, vector<16x32xf32>, vector<64x32xf32> -> vector<64x32xf32>
    %152 = arith.addf %149, %151 : vector<64x32xf32>
    %c0_105 = arith.constant 0 : index
    %c0_106 = arith.constant 0 : index
    %153 = vector.load %arg38[%c0_105, %c0_106] : memref<1x32xf32, #tpu.memory_space<vmem>>, vector<1x32xf32>
    %154 = vector.broadcast %153 : vector<1x32xf32> to vector<64x32xf32>
    %155 = arith.addf %152, %154 : vector<64x32xf32>
    %156 = arith.negf %155 : vector<64x32xf32>
    %157 = math.exp %156 : vector<64x32xf32>
    %cst_107 = arith.constant 1.000000e+00 : f32
    %158 = vector.broadcast %cst_107 : f32 to vector<64x32xf32>
    %159 = arith.addf %158, %157 : vector<64x32xf32>
    %160 = arith.divf %158, %159 : vector<64x32xf32>
    %161 = arith.mulf %155, %160 : vector<64x32xf32>
    %c0_108 = arith.constant 0 : index
    %c0_109 = arith.constant 0 : index
    %162 = vector.load %arg39[%c0_108, %c0_109] : memref<32x32xf32, #tpu.memory_space<vmem>>, vector<32x32xf32>
    %cst_110 = arith.constant dense<0.000000e+00> : vector<64x32xf32>
    %163 = tpu.matmul %161, %162, %cst_110 {dimension_numbers = #tpu.dot_dimension_numbers<[1], [0], [0], [1], [0, 0, 1, 1], [], []>} : vector<64x32xf32>, vector<32x32xf32>, vector<64x32xf32> -> vector<64x32xf32>
    %c0_111 = arith.constant 0 : index
    %c0_112 = arith.constant 0 : index
    %164 = vector.load %arg40[%c0_111, %c0_112] : memref<16x32xf32, #tpu.memory_space<vmem>>, vector<16x32xf32>
    %cst_113 = arith.constant dense<0.000000e+00> : vector<64x32xf32>
    %165 = tpu.matmul %2, %164, %cst_113 {dimension_numbers = #tpu.dot_dimension_numbers<[1], [0], [0], [1], [0, 0, 1, 1], [], []>} : vector<64x16xf32>, vector<16x32xf32>, vector<64x32xf32> -> vector<64x32xf32>
    %166 = arith.addf %163, %165 : vector<64x32xf32>
    %c0_114 = arith.constant 0 : index
    %c0_115 = arith.constant 0 : index
    %167 = vector.load %arg41[%c0_114, %c0_115] : memref<1x32xf32, #tpu.memory_space<vmem>>, vector<1x32xf32>
    %168 = vector.broadcast %167 : vector<1x32xf32> to vector<64x32xf32>
    %169 = arith.addf %166, %168 : vector<64x32xf32>
    %170 = arith.negf %169 : vector<64x32xf32>
    %171 = math.exp %170 : vector<64x32xf32>
    %cst_116 = arith.constant 1.000000e+00 : f32
    %172 = vector.broadcast %cst_116 : f32 to vector<64x32xf32>
    %173 = arith.addf %172, %171 : vector<64x32xf32>
    %174 = arith.divf %172, %173 : vector<64x32xf32>
    %175 = arith.mulf %169, %174 : vector<64x32xf32>
    %c0_117 = arith.constant 0 : index
    %c0_118 = arith.constant 0 : index
    %176 = vector.load %arg42[%c0_117, %c0_118] : memref<32x8xf32, #tpu.memory_space<vmem>>, vector<32x8xf32>
    %cst_119 = arith.constant dense<0.000000e+00> : vector<64x8xf32>
    %177 = tpu.matmul %175, %176, %cst_119 {dimension_numbers = #tpu.dot_dimension_numbers<[1], [0], [0], [1], [0, 0, 1, 1], [], []>} : vector<64x32xf32>, vector<32x8xf32>, vector<64x8xf32> -> vector<64x8xf32>
    %c0_120 = arith.constant 0 : index
    %c0_121 = arith.constant 0 : index
    %178 = vector.load %arg43[%c0_120, %c0_121] : memref<16x8xf32, #tpu.memory_space<vmem>>, vector<16x8xf32>
    %cst_122 = arith.constant dense<0.000000e+00> : vector<64x8xf32>
    %179 = tpu.matmul %2, %178, %cst_122 {dimension_numbers = #tpu.dot_dimension_numbers<[1], [0], [0], [1], [0, 0, 1, 1], [], []>} : vector<64x16xf32>, vector<16x8xf32>, vector<64x8xf32> -> vector<64x8xf32>
    %180 = arith.addf %177, %179 : vector<64x8xf32>
    %c0_123 = arith.constant 0 : index
    %c0_124 = arith.constant 0 : index
    %181 = vector.load %arg44[%c0_123, %c0_124] : memref<1x8xf32, #tpu.memory_space<vmem>>, vector<1x8xf32>
    %182 = vector.broadcast %181 : vector<1x8xf32> to vector<64x8xf32>
    %183 = arith.addf %180, %182 : vector<64x8xf32>
    %184 = arith.negf %183 : vector<64x8xf32>
    %185 = math.exp %184 : vector<64x8xf32>
    %cst_125 = arith.constant 1.000000e+00 : f32
    %186 = vector.broadcast %cst_125 : f32 to vector<64x8xf32>
    %187 = arith.addf %186, %185 : vector<64x8xf32>
    %188 = arith.divf %186, %187 : vector<64x8xf32>
    %189 = arith.mulf %183, %188 : vector<64x8xf32>
    %190 = arith.addf %189, %147 : vector<64x8xf32>
    %c0_126 = arith.constant 0 : index
    %c0_127 = arith.constant 0 : index
    %191 = vector.load %arg45[%c0_126, %c0_127] : memref<64x8xf32, #tpu.memory_space<vmem>>, vector<64x8xf32>
    tpu.vector_store %arg45[%c0_126, %c0_127], %190 {strides = array<i32>} : memref<64x8xf32, #tpu.memory_space<vmem>>, vector<64x8xf32>,
    %192 = arith.subf %131, %61 : vector<64x8xf32>
    %cst_128 = arith.constant 5.000000e-01 : f32
    %193 = vector.broadcast %cst_128 : f32 to vector<64x8xf32>
    %194 = arith.mulf %193, %192 : vector<64x8xf32>
    %195 = math.exp %61 : vector<64x8xf32>
    %196 = arith.subf %47, %117 : vector<64x8xf32>
    %197 = arith.mulf %196, %196 : vector<64x8xf32>
    %198 = arith.addf %195, %197 : vector<64x8xf32>
    %199 = math.exp %131 : vector<64x8xf32>
    %cst_129 = arith.constant 2.000000e+00 : f32
    %200 = vector.broadcast %cst_129 : f32 to vector<64x8xf32>
    %201 = arith.mulf %200, %199 : vector<64x8xf32>
    %202 = arith.divf %198, %201 : vector<64x8xf32>
    %203 = arith.addf %194, %202 : vector<64x8xf32>
    %cst_130 = arith.constant 5.000000e-01 : f32
    %204 = vector.broadcast %cst_130 : f32 to vector<64x8xf32>
    %205 = arith.subf %203, %204 : vector<64x8xf32>
    %cst_131 = arith.constant dense<0.000000e+00> : vector<64xf32>
    %206 = vector.multi_reduction <add>, %205, %cst_131 [1] : vector<64x8xf32> to vector<64xf32>
    %207 = vector.shape_cast %206 : vector<64xf32> to vector<64x1xf32>
    %c0_132 = arith.constant 0 : index
    %c0_133 = arith.constant 0 : index
    %208 = vector.load %arg46[%c0_132, %c0_133] : memref<64x1xf32, #tpu.memory_space<vmem>>, vector<64x1xf32>
    tpu.vector_store %arg46[%c0_132, %c0_133], %207 {strides = array<i32>} : memref<64x1xf32, #tpu.memory_space<vmem>>, vector<64x1xf32>,
    return
  }
  func.func @transform_0(%arg0: i32) -> (i32, i32) {
    %c0_i32 = arith.constant 0 : i32
    %c0_i32_0 = arith.constant 0 : i32
    return %arg0, %c0_i32 : i32, i32
  }
  func.func @transform_1(%arg0: i32) -> (i32, i32) {
    %c0_i32 = arith.constant 0 : i32
    %c0_i32_0 = arith.constant 0 : i32
    return %arg0, %c0_i32 : i32, i32
  }
  func.func @transform_2(%arg0: i32) -> (i32, i32) {
    %c0_i32 = arith.constant 0 : i32
    %c0_i32_0 = arith.constant 0 : i32
    return %arg0, %c0_i32 : i32, i32
  }
  func.func @transform_3(%arg0: i32) -> (i32, i32) {
    %c0_i32 = arith.constant 0 : i32
    %c0_i32_0 = arith.constant 0 : i32
    return %arg0, %c0_i32 : i32, i32
  }
  func.func @transform_4(%arg0: i32) -> (i32, i32) {
    %c0_i32 = arith.constant 0 : i32
    %c0_i32_0 = arith.constant 0 : i32
    %c0_i32_1 = arith.constant 0 : i32
    return %c0_i32, %c0_i32_0 : i32, i32
  }
  func.func @transform_5(%arg0: i32) -> (i32, i32) {
    %c0_i32 = arith.constant 0 : i32
    %c0_i32_0 = arith.constant 0 : i32
    %c0_i32_1 = arith.constant 0 : i32
    return %c0_i32, %c0_i32_0 : i32, i32
  }
  func.func @transform_6(%arg0: i32) -> (i32, i32) {
    %c0_i32 = arith.constant 0 : i32
    %c0_i32_0 = arith.constant 0 : i32
    %c0_i32_1 = arith.constant 0 : i32
    return %c0_i32, %c0_i32_0 : i32, i32
  }
  func.func @transform_7(%arg0: i32) -> (i32, i32) {
    %c0_i32 = arith.constant 0 : i32
    %c0_i32_0 = arith.constant 0 : i32
    %c0_i32_1 = arith.constant 0 : i32
    return %c0_i32, %c0_i32_0 : i32, i32
  }
  func.func @transform_8(%arg0: i32) -> (i32, i32) {
    %c0_i32 = arith.constant 0 : i32
    %c0_i32_0 = arith.constant 0 : i32
    %c0_i32_1 = arith.constant 0 : i32
    return %c0_i32, %c0_i32_0 : i32, i32
  }
  func.func @transform_9(%arg0: i32) -> (i32, i32) {
    %c0_i32 = arith.constant 0 : i32
    %c0_i32_0 = arith.constant 0 : i32
    %c0_i32_1 = arith.constant 0 : i32
    return %c0_i32, %c0_i32_0 : i32, i32
  }
  func.func @transform_10(%arg0: i32) -> (i32, i32) {
    %c0_i32 = arith.constant 0 : i32
    %c0_i32_0 = arith.constant 0 : i32
    %c0_i32_1 = arith.constant 0 : i32
    return %c0_i32, %c0_i32_0 : i32, i32
  }
  func.func @transform_11(%arg0: i32) -> (i32, i32) {
    %c0_i32 = arith.constant 0 : i32
    %c0_i32_0 = arith.constant 0 : i32
    %c0_i32_1 = arith.constant 0 : i32
    return %c0_i32, %c0_i32_0 : i32, i32
  }
  func.func @transform_12(%arg0: i32) -> (i32, i32) {
    %c0_i32 = arith.constant 0 : i32
    %c0_i32_0 = arith.constant 0 : i32
    %c0_i32_1 = arith.constant 0 : i32
    return %c0_i32, %c0_i32_0 : i32, i32
  }
  func.func @transform_13(%arg0: i32) -> (i32, i32) {
    %c0_i32 = arith.constant 0 : i32
    %c0_i32_0 = arith.constant 0 : i32
    %c0_i32_1 = arith.constant 0 : i32
    return %c0_i32, %c0_i32_0 : i32, i32
  }
  func.func @transform_14(%arg0: i32) -> (i32, i32) {
    %c0_i32 = arith.constant 0 : i32
    %c0_i32_0 = arith.constant 0 : i32
    %c0_i32_1 = arith.constant 0 : i32
    return %c0_i32, %c0_i32_0 : i32, i32
  }
  func.func @transform_15(%arg0: i32) -> (i32, i32) {
    %c0_i32 = arith.constant 0 : i32
    %c0_i32_0 = arith.constant 0 : i32
    %c0_i32_1 = arith.constant 0 : i32
    return %c0_i32, %c0_i32_0 : i32, i32
  }
  func.func @transform_16(%arg0: i32) -> (i32, i32) {
    %c0_i32 = arith.constant 0 : i32
    %c0_i32_0 = arith.constant 0 : i32
    %c0_i32_1 = arith.constant 0 : i32
    return %c0_i32, %c0_i32_0 : i32, i32
  }
  func.func @transform_17(%arg0: i32) -> (i32, i32) {
    %c0_i32 = arith.constant 0 : i32
    %c0_i32_0 = arith.constant 0 : i32
    %c0_i32_1 = arith.constant 0 : i32
    return %c0_i32, %c0_i32_0 : i32, i32
  }
  func.func @transform_18(%arg0: i32) -> (i32, i32) {
    %c0_i32 = arith.constant 0 : i32
    %c0_i32_0 = arith.constant 0 : i32
    %c0_i32_1 = arith.constant 0 : i32
    return %c0_i32, %c0_i32_0 : i32, i32
  }
  func.func @transform_19(%arg0: i32) -> (i32, i32) {
    %c0_i32 = arith.constant 0 : i32
    %c0_i32_0 = arith.constant 0 : i32
    %c0_i32_1 = arith.constant 0 : i32
    return %c0_i32, %c0_i32_0 : i32, i32
  }
  func.func @transform_20(%arg0: i32) -> (i32, i32) {
    %c0_i32 = arith.constant 0 : i32
    %c0_i32_0 = arith.constant 0 : i32
    %c0_i32_1 = arith.constant 0 : i32
    return %c0_i32, %c0_i32_0 : i32, i32
  }
  func.func @transform_21(%arg0: i32) -> (i32, i32) {
    %c0_i32 = arith.constant 0 : i32
    %c0_i32_0 = arith.constant 0 : i32
    %c0_i32_1 = arith.constant 0 : i32
    return %c0_i32, %c0_i32_0 : i32, i32
  }
  func.func @transform_22(%arg0: i32) -> (i32, i32) {
    %c0_i32 = arith.constant 0 : i32
    %c0_i32_0 = arith.constant 0 : i32
    %c0_i32_1 = arith.constant 0 : i32
    return %c0_i32, %c0_i32_0 : i32, i32
  }
  func.func @transform_23(%arg0: i32) -> (i32, i32) {
    %c0_i32 = arith.constant 0 : i32
    %c0_i32_0 = arith.constant 0 : i32
    %c0_i32_1 = arith.constant 0 : i32
    return %c0_i32, %c0_i32_0 : i32, i32
  }
  func.func @transform_24(%arg0: i32) -> (i32, i32) {
    %c0_i32 = arith.constant 0 : i32
    %c0_i32_0 = arith.constant 0 : i32
    %c0_i32_1 = arith.constant 0 : i32
    return %c0_i32, %c0_i32_0 : i32, i32
  }
  func.func @transform_25(%arg0: i32) -> (i32, i32) {
    %c0_i32 = arith.constant 0 : i32
    %c0_i32_0 = arith.constant 0 : i32
    %c0_i32_1 = arith.constant 0 : i32
    return %c0_i32, %c0_i32_0 : i32, i32
  }
  func.func @transform_26(%arg0: i32) -> (i32, i32) {
    %c0_i32 = arith.constant 0 : i32
    %c0_i32_0 = arith.constant 0 : i32
    %c0_i32_1 = arith.constant 0 : i32
    return %c0_i32, %c0_i32_0 : i32, i32
  }
  func.func @transform_27(%arg0: i32) -> (i32, i32) {
    %c0_i32 = arith.constant 0 : i32
    %c0_i32_0 = arith.constant 0 : i32
    %c0_i32_1 = arith.constant 0 : i32
    return %c0_i32, %c0_i32_0 : i32, i32
  }
  func.func @transform_28(%arg0: i32) -> (i32, i32) {
    %c0_i32 = arith.constant 0 : i32
    %c0_i32_0 = arith.constant 0 : i32
    %c0_i32_1 = arith.constant 0 : i32
    return %c0_i32, %c0_i32_0 : i32, i32
  }
  func.func @transform_29(%arg0: i32) -> (i32, i32) {
    %c0_i32 = arith.constant 0 : i32
    %c0_i32_0 = arith.constant 0 : i32
    %c0_i32_1 = arith.constant 0 : i32
    return %c0_i32, %c0_i32_0 : i32, i32
  }
  func.func @transform_30(%arg0: i32) -> (i32, i32) {
    %c0_i32 = arith.constant 0 : i32
    %c0_i32_0 = arith.constant 0 : i32
    %c0_i32_1 = arith.constant 0 : i32
    return %c0_i32, %c0_i32_0 : i32, i32
  }
  func.func @transform_31(%arg0: i32) -> (i32, i32) {
    %c0_i32 = arith.constant 0 : i32
    %c0_i32_0 = arith.constant 0 : i32
    %c0_i32_1 = arith.constant 0 : i32
    return %c0_i32, %c0_i32_0 : i32, i32
  }
  func.func @transform_32(%arg0: i32) -> (i32, i32) {
    %c0_i32 = arith.constant 0 : i32
    %c0_i32_0 = arith.constant 0 : i32
    %c0_i32_1 = arith.constant 0 : i32
    return %c0_i32, %c0_i32_0 : i32, i32
  }
  func.func @transform_33(%arg0: i32) -> (i32, i32) {
    %c0_i32 = arith.constant 0 : i32
    %c0_i32_0 = arith.constant 0 : i32
    %c0_i32_1 = arith.constant 0 : i32
    return %c0_i32, %c0_i32_0 : i32, i32
  }
  func.func @transform_34(%arg0: i32) -> (i32, i32) {
    %c0_i32 = arith.constant 0 : i32
    %c0_i32_0 = arith.constant 0 : i32
    %c0_i32_1 = arith.constant 0 : i32
    return %c0_i32, %c0_i32_0 : i32, i32
  }
  func.func @transform_35(%arg0: i32) -> (i32, i32) {
    %c0_i32 = arith.constant 0 : i32
    %c0_i32_0 = arith.constant 0 : i32
    %c0_i32_1 = arith.constant 0 : i32
    return %c0_i32, %c0_i32_0 : i32, i32
  }
  func.func @transform_36(%arg0: i32) -> (i32, i32) {
    %c0_i32 = arith.constant 0 : i32
    %c0_i32_0 = arith.constant 0 : i32
    %c0_i32_1 = arith.constant 0 : i32
    return %c0_i32, %c0_i32_0 : i32, i32
  }
  func.func @transform_37(%arg0: i32) -> (i32, i32) {
    %c0_i32 = arith.constant 0 : i32
    %c0_i32_0 = arith.constant 0 : i32
    %c0_i32_1 = arith.constant 0 : i32
    return %c0_i32, %c0_i32_0 : i32, i32
  }
  func.func @transform_38(%arg0: i32) -> (i32, i32) {
    %c0_i32 = arith.constant 0 : i32
    %c0_i32_0 = arith.constant 0 : i32
    %c0_i32_1 = arith.constant 0 : i32
    return %c0_i32, %c0_i32_0 : i32, i32
  }
  func.func @transform_39(%arg0: i32) -> (i32, i32) {
    %c0_i32 = arith.constant 0 : i32
    %c0_i32_0 = arith.constant 0 : i32
    %c0_i32_1 = arith.constant 0 : i32
    return %c0_i32, %c0_i32_0 : i32, i32
  }
  func.func @transform_40(%arg0: i32) -> (i32, i32) {
    %c0_i32 = arith.constant 0 : i32
    %c0_i32_0 = arith.constant 0 : i32
    %c0_i32_1 = arith.constant 0 : i32
    return %c0_i32, %c0_i32_0 : i32, i32
  }
  func.func @transform_41(%arg0: i32) -> (i32, i32) {
    %c0_i32 = arith.constant 0 : i32
    %c0_i32_0 = arith.constant 0 : i32
    %c0_i32_1 = arith.constant 0 : i32
    return %c0_i32, %c0_i32_0 : i32, i32
  }
  func.func @transform_42(%arg0: i32) -> (i32, i32) {
    %c0_i32 = arith.constant 0 : i32
    %c0_i32_0 = arith.constant 0 : i32
    %c0_i32_1 = arith.constant 0 : i32
    return %c0_i32, %c0_i32_0 : i32, i32
  }
  func.func @transform_43(%arg0: i32) -> (i32, i32) {
    %c0_i32 = arith.constant 0 : i32
    %c0_i32_0 = arith.constant 0 : i32
    %c0_i32_1 = arith.constant 0 : i32
    return %c0_i32, %c0_i32_0 : i32, i32
  }
  func.func @transform_44(%arg0: i32) -> (i32, i32) {
    %c0_i32 = arith.constant 0 : i32
    %c0_i32_0 = arith.constant 0 : i32
    return %arg0, %c0_i32 : i32, i32
  }
  func.func @transform_45(%arg0: i32) -> (i32, i32) {
    %c0_i32 = arith.constant 0 : i32
    %c0_i32_0 = arith.constant 0 : i32
    return %arg0, %c0_i32 : i32, i32
  }
}

module attributes {stable_mosaic.version = 11 : i64} {
  func.func @_xhead_kernel(%arg0: i32, %arg1: memref<64x8xf32, #tpu.memory_space<vmem>>, %arg2: memref<64x16xf32, #tpu.memory_space<vmem>>, %arg3: memref<64x3xf32, #tpu.memory_space<vmem>>, %arg4: memref<8x32xf32, #tpu.memory_space<vmem>>, %arg5: memref<16x32xf32, #tpu.memory_space<vmem>>, %arg6: memref<1x32xf32, #tpu.memory_space<vmem>>, %arg7: memref<32x32xf32, #tpu.memory_space<vmem>>, %arg8: memref<16x32xf32, #tpu.memory_space<vmem>>, %arg9: memref<1x32xf32, #tpu.memory_space<vmem>>, %arg10: memref<32x3xf32, #tpu.memory_space<vmem>>, %arg11: memref<16x3xf32, #tpu.memory_space<vmem>>, %arg12: memref<1x3xf32, #tpu.memory_space<vmem>>, %arg13: memref<32x3xf32, #tpu.memory_space<vmem>>, %arg14: memref<16x3xf32, #tpu.memory_space<vmem>>, %arg15: memref<1x3xf32, #tpu.memory_space<vmem>>, %arg16: memref<64x3xf32, #tpu.memory_space<vmem>>, %arg17: memref<64x3xf32, #tpu.memory_space<vmem>>, %arg18: memref<64x3xf32, #tpu.memory_space<vmem>>) attributes {dimension_semantics = [#tpu.dimension_semantics<parallel>], iteration_bounds = array<i64: 1>, scalar_prefetch = 0 : i64, scratch_operands = 0 : i64, tpu.core_type = #tpu.core_type<tc>, window_params = [{transform_indices = @transform_0, window_bounds = array<i64: 64, 8>}, {transform_indices = @transform_1, window_bounds = array<i64: 64, 16>}, {transform_indices = @transform_2, window_bounds = array<i64: 64, 3>}, {pipeline_mode = #tpu.pipeline_mode<synchronous>, transform_indices = @transform_3, window_bounds = array<i64: 8, 32>}, {pipeline_mode = #tpu.pipeline_mode<synchronous>, transform_indices = @transform_4, window_bounds = array<i64: 16, 32>}, {pipeline_mode = #tpu.pipeline_mode<synchronous>, transform_indices = @transform_5, window_bounds = array<i64: 1, 32>}, {pipeline_mode = #tpu.pipeline_mode<synchronous>, transform_indices = @transform_6, window_bounds = array<i64: 32, 32>}, {pipeline_mode = #tpu.pipeline_mode<synchronous>, transform_indices = @transform_7, window_bounds = array<i64: 16, 32>}, {pipeline_mode = #tpu.pipeline_mode<synchronous>, transform_indices = @transform_8, window_bounds = array<i64: 1, 32>}, {pipeline_mode = #tpu.pipeline_mode<synchronous>, transform_indices = @transform_9, window_bounds = array<i64: 32, 3>}, {pipeline_mode = #tpu.pipeline_mode<synchronous>, transform_indices = @transform_10, window_bounds = array<i64: 16, 3>}, {pipeline_mode = #tpu.pipeline_mode<synchronous>, transform_indices = @transform_11, window_bounds = array<i64: 1, 3>}, {pipeline_mode = #tpu.pipeline_mode<synchronous>, transform_indices = @transform_12, window_bounds = array<i64: 32, 3>}, {pipeline_mode = #tpu.pipeline_mode<synchronous>, transform_indices = @transform_13, window_bounds = array<i64: 16, 3>}, {pipeline_mode = #tpu.pipeline_mode<synchronous>, transform_indices = @transform_14, window_bounds = array<i64: 1, 3>}, {transform_indices = @transform_15, window_bounds = array<i64: 64, 3>}, {transform_indices = @transform_16, window_bounds = array<i64: 64, 3>}, {transform_indices = @transform_17, window_bounds = array<i64: 64, 3>}]} {
    %c0 = arith.constant 0 : index
    %c0_0 = arith.constant 0 : index
    %0 = vector.load %arg1[%c0, %c0_0] : memref<64x8xf32, #tpu.memory_space<vmem>>, vector<64x8xf32>
    %c0_1 = arith.constant 0 : index
    %c0_2 = arith.constant 0 : index
    %1 = vector.load %arg2[%c0_1, %c0_2] : memref<64x16xf32, #tpu.memory_space<vmem>>, vector<64x16xf32>
    %c0_3 = arith.constant 0 : index
    %c0_4 = arith.constant 0 : index
    %2 = vector.load %arg4[%c0_3, %c0_4] : memref<8x32xf32, #tpu.memory_space<vmem>>, vector<8x32xf32>
    %cst = arith.constant dense<0.000000e+00> : vector<64x32xf32>
    %3 = tpu.matmul %0, %2, %cst {dimension_numbers = #tpu.dot_dimension_numbers<[1], [0], [0], [1], [0, 0, 1, 1], [], []>} : vector<64x8xf32>, vector<8x32xf32>, vector<64x32xf32> -> vector<64x32xf32>
    %c0_5 = arith.constant 0 : index
    %c0_6 = arith.constant 0 : index
    %4 = vector.load %arg5[%c0_5, %c0_6] : memref<16x32xf32, #tpu.memory_space<vmem>>, vector<16x32xf32>
    %cst_7 = arith.constant dense<0.000000e+00> : vector<64x32xf32>
    %5 = tpu.matmul %1, %4, %cst_7 {dimension_numbers = #tpu.dot_dimension_numbers<[1], [0], [0], [1], [0, 0, 1, 1], [], []>} : vector<64x16xf32>, vector<16x32xf32>, vector<64x32xf32> -> vector<64x32xf32>
    %6 = arith.addf %3, %5 : vector<64x32xf32>
    %c0_8 = arith.constant 0 : index
    %c0_9 = arith.constant 0 : index
    %7 = vector.load %arg6[%c0_8, %c0_9] : memref<1x32xf32, #tpu.memory_space<vmem>>, vector<1x32xf32>
    %8 = vector.broadcast %7 : vector<1x32xf32> to vector<64x32xf32>
    %9 = arith.addf %6, %8 : vector<64x32xf32>
    %10 = arith.negf %9 : vector<64x32xf32>
    %11 = math.exp %10 : vector<64x32xf32>
    %cst_10 = arith.constant 1.000000e+00 : f32
    %12 = vector.broadcast %cst_10 : f32 to vector<64x32xf32>
    %13 = arith.addf %12, %11 : vector<64x32xf32>
    %14 = arith.divf %12, %13 : vector<64x32xf32>
    %15 = arith.mulf %9, %14 : vector<64x32xf32>
    %c0_11 = arith.constant 0 : index
    %c0_12 = arith.constant 0 : index
    %16 = vector.load %arg7[%c0_11, %c0_12] : memref<32x32xf32, #tpu.memory_space<vmem>>, vector<32x32xf32>
    %cst_13 = arith.constant dense<0.000000e+00> : vector<64x32xf32>
    %17 = tpu.matmul %15, %16, %cst_13 {dimension_numbers = #tpu.dot_dimension_numbers<[1], [0], [0], [1], [0, 0, 1, 1], [], []>} : vector<64x32xf32>, vector<32x32xf32>, vector<64x32xf32> -> vector<64x32xf32>
    %c0_14 = arith.constant 0 : index
    %c0_15 = arith.constant 0 : index
    %18 = vector.load %arg8[%c0_14, %c0_15] : memref<16x32xf32, #tpu.memory_space<vmem>>, vector<16x32xf32>
    %cst_16 = arith.constant dense<0.000000e+00> : vector<64x32xf32>
    %19 = tpu.matmul %1, %18, %cst_16 {dimension_numbers = #tpu.dot_dimension_numbers<[1], [0], [0], [1], [0, 0, 1, 1], [], []>} : vector<64x16xf32>, vector<16x32xf32>, vector<64x32xf32> -> vector<64x32xf32>
    %20 = arith.addf %17, %19 : vector<64x32xf32>
    %c0_17 = arith.constant 0 : index
    %c0_18 = arith.constant 0 : index
    %21 = vector.load %arg9[%c0_17, %c0_18] : memref<1x32xf32, #tpu.memory_space<vmem>>, vector<1x32xf32>
    %22 = vector.broadcast %21 : vector<1x32xf32> to vector<64x32xf32>
    %23 = arith.addf %20, %22 : vector<64x32xf32>
    %24 = arith.negf %23 : vector<64x32xf32>
    %25 = math.exp %24 : vector<64x32xf32>
    %cst_19 = arith.constant 1.000000e+00 : f32
    %26 = vector.broadcast %cst_19 : f32 to vector<64x32xf32>
    %27 = arith.addf %26, %25 : vector<64x32xf32>
    %28 = arith.divf %26, %27 : vector<64x32xf32>
    %29 = arith.mulf %23, %28 : vector<64x32xf32>
    %c0_20 = arith.constant 0 : index
    %c0_21 = arith.constant 0 : index
    %30 = vector.load %arg10[%c0_20, %c0_21] : memref<32x3xf32, #tpu.memory_space<vmem>>, vector<32x3xf32>
    %cst_22 = arith.constant dense<0.000000e+00> : vector<64x3xf32>
    %31 = tpu.matmul %29, %30, %cst_22 {dimension_numbers = #tpu.dot_dimension_numbers<[1], [0], [0], [1], [0, 0, 1, 1], [], []>} : vector<64x32xf32>, vector<32x3xf32>, vector<64x3xf32> -> vector<64x3xf32>
    %c0_23 = arith.constant 0 : index
    %c0_24 = arith.constant 0 : index
    %32 = vector.load %arg11[%c0_23, %c0_24] : memref<16x3xf32, #tpu.memory_space<vmem>>, vector<16x3xf32>
    %cst_25 = arith.constant dense<0.000000e+00> : vector<64x3xf32>
    %33 = tpu.matmul %1, %32, %cst_25 {dimension_numbers = #tpu.dot_dimension_numbers<[1], [0], [0], [1], [0, 0, 1, 1], [], []>} : vector<64x16xf32>, vector<16x3xf32>, vector<64x3xf32> -> vector<64x3xf32>
    %34 = arith.addf %31, %33 : vector<64x3xf32>
    %c0_26 = arith.constant 0 : index
    %c0_27 = arith.constant 0 : index
    %35 = vector.load %arg12[%c0_26, %c0_27] : memref<1x3xf32, #tpu.memory_space<vmem>>, vector<1x3xf32>
    %36 = vector.broadcast %35 : vector<1x3xf32> to vector<64x3xf32>
    %37 = arith.addf %34, %36 : vector<64x3xf32>
    %38 = arith.negf %37 : vector<64x3xf32>
    %39 = math.exp %38 : vector<64x3xf32>
    %cst_28 = arith.constant 1.000000e+00 : f32
    %40 = vector.broadcast %cst_28 : f32 to vector<64x3xf32>
    %41 = arith.addf %40, %39 : vector<64x3xf32>
    %42 = arith.divf %40, %41 : vector<64x3xf32>
    %43 = arith.mulf %37, %42 : vector<64x3xf32>
    %c0_29 = arith.constant 0 : index
    %c0_30 = arith.constant 0 : index
    %44 = vector.load %arg13[%c0_29, %c0_30] : memref<32x3xf32, #tpu.memory_space<vmem>>, vector<32x3xf32>
    %cst_31 = arith.constant dense<0.000000e+00> : vector<64x3xf32>
    %45 = tpu.matmul %29, %44, %cst_31 {dimension_numbers = #tpu.dot_dimension_numbers<[1], [0], [0], [1], [0, 0, 1, 1], [], []>} : vector<64x32xf32>, vector<32x3xf32>, vector<64x3xf32> -> vector<64x3xf32>
    %c0_32 = arith.constant 0 : index
    %c0_33 = arith.constant 0 : index
    %46 = vector.load %arg14[%c0_32, %c0_33] : memref<16x3xf32, #tpu.memory_space<vmem>>, vector<16x3xf32>
    %cst_34 = arith.constant dense<0.000000e+00> : vector<64x3xf32>
    %47 = tpu.matmul %1, %46, %cst_34 {dimension_numbers = #tpu.dot_dimension_numbers<[1], [0], [0], [1], [0, 0, 1, 1], [], []>} : vector<64x16xf32>, vector<16x3xf32>, vector<64x3xf32> -> vector<64x3xf32>
    %48 = arith.addf %45, %47 : vector<64x3xf32>
    %c0_35 = arith.constant 0 : index
    %c0_36 = arith.constant 0 : index
    %49 = vector.load %arg15[%c0_35, %c0_36] : memref<1x3xf32, #tpu.memory_space<vmem>>, vector<1x3xf32>
    %50 = vector.broadcast %49 : vector<1x3xf32> to vector<64x3xf32>
    %51 = arith.addf %48, %50 : vector<64x3xf32>
    %52 = arith.negf %51 : vector<64x3xf32>
    %53 = math.exp %52 : vector<64x3xf32>
    %cst_37 = arith.constant 1.000000e+00 : f32
    %54 = vector.broadcast %cst_37 : f32 to vector<64x3xf32>
    %55 = arith.addf %54, %53 : vector<64x3xf32>
    %56 = arith.divf %54, %55 : vector<64x3xf32>
    %57 = arith.mulf %51, %56 : vector<64x3xf32>
    %cst_38 = arith.constant 5.000000e-01 : f32
    %58 = vector.broadcast %cst_38 : f32 to vector<64x3xf32>
    %59 = arith.mulf %58, %57 : vector<64x3xf32>
    %60 = math.exp %59 : vector<64x3xf32>
    %c0_39 = arith.constant 0 : index
    %c0_40 = arith.constant 0 : index
    %61 = vector.load %arg3[%c0_39, %c0_40] : memref<64x3xf32, #tpu.memory_space<vmem>>, vector<64x3xf32>
    %62 = arith.mulf %60, %61 : vector<64x3xf32>
    %63 = arith.addf %43, %62 : vector<64x3xf32>
    %c0_41 = arith.constant 0 : index
    %c0_42 = arith.constant 0 : index
    %64 = vector.load %arg16[%c0_41, %c0_42] : memref<64x3xf32, #tpu.memory_space<vmem>>, vector<64x3xf32>
    tpu.vector_store %arg16[%c0_41, %c0_42], %43 {strides = array<i32>} : memref<64x3xf32, #tpu.memory_space<vmem>>, vector<64x3xf32>,
    %c0_43 = arith.constant 0 : index
    %c0_44 = arith.constant 0 : index
    %65 = vector.load %arg17[%c0_43, %c0_44] : memref<64x3xf32, #tpu.memory_space<vmem>>, vector<64x3xf32>
    tpu.vector_store %arg17[%c0_43, %c0_44], %57 {strides = array<i32>} : memref<64x3xf32, #tpu.memory_space<vmem>>, vector<64x3xf32>,
    %c0_45 = arith.constant 0 : index
    %c0_46 = arith.constant 0 : index
    %66 = vector.load %arg18[%c0_45, %c0_46] : memref<64x3xf32, #tpu.memory_space<vmem>>, vector<64x3xf32>
    tpu.vector_store %arg18[%c0_45, %c0_46], %63 {strides = array<i32>} : memref<64x3xf32, #tpu.memory_space<vmem>>, vector<64x3xf32>,
    return
  }
  func.func @transform_0(%arg0: i32) -> (i32, i32) {
    %c0_i32 = arith.constant 0 : i32
    %c0_i32_0 = arith.constant 0 : i32
    return %arg0, %c0_i32 : i32, i32
  }
  func.func @transform_1(%arg0: i32) -> (i32, i32) {
    %c0_i32 = arith.constant 0 : i32
    %c0_i32_0 = arith.constant 0 : i32
    return %arg0, %c0_i32 : i32, i32
  }
  func.func @transform_2(%arg0: i32) -> (i32, i32) {
    %c0_i32 = arith.constant 0 : i32
    %c0_i32_0 = arith.constant 0 : i32
    return %arg0, %c0_i32 : i32, i32
  }
  func.func @transform_3(%arg0: i32) -> (i32, i32) {
    %c0_i32 = arith.constant 0 : i32
    %c0_i32_0 = arith.constant 0 : i32
    %c0_i32_1 = arith.constant 0 : i32
    return %c0_i32, %c0_i32_0 : i32, i32
  }
  func.func @transform_4(%arg0: i32) -> (i32, i32) {
    %c0_i32 = arith.constant 0 : i32
    %c0_i32_0 = arith.constant 0 : i32
    %c0_i32_1 = arith.constant 0 : i32
    return %c0_i32, %c0_i32_0 : i32, i32
  }
  func.func @transform_5(%arg0: i32) -> (i32, i32) {
    %c0_i32 = arith.constant 0 : i32
    %c0_i32_0 = arith.constant 0 : i32
    %c0_i32_1 = arith.constant 0 : i32
    return %c0_i32, %c0_i32_0 : i32, i32
  }
  func.func @transform_6(%arg0: i32) -> (i32, i32) {
    %c0_i32 = arith.constant 0 : i32
    %c0_i32_0 = arith.constant 0 : i32
    %c0_i32_1 = arith.constant 0 : i32
    return %c0_i32, %c0_i32_0 : i32, i32
  }
  func.func @transform_7(%arg0: i32) -> (i32, i32) {
    %c0_i32 = arith.constant 0 : i32
    %c0_i32_0 = arith.constant 0 : i32
    %c0_i32_1 = arith.constant 0 : i32
    return %c0_i32, %c0_i32_0 : i32, i32
  }
  func.func @transform_8(%arg0: i32) -> (i32, i32) {
    %c0_i32 = arith.constant 0 : i32
    %c0_i32_0 = arith.constant 0 : i32
    %c0_i32_1 = arith.constant 0 : i32
    return %c0_i32, %c0_i32_0 : i32, i32
  }
  func.func @transform_9(%arg0: i32) -> (i32, i32) {
    %c0_i32 = arith.constant 0 : i32
    %c0_i32_0 = arith.constant 0 : i32
    %c0_i32_1 = arith.constant 0 : i32
    return %c0_i32, %c0_i32_0 : i32, i32
  }
  func.func @transform_10(%arg0: i32) -> (i32, i32) {
    %c0_i32 = arith.constant 0 : i32
    %c0_i32_0 = arith.constant 0 : i32
    %c0_i32_1 = arith.constant 0 : i32
    return %c0_i32, %c0_i32_0 : i32, i32
  }
  func.func @transform_11(%arg0: i32) -> (i32, i32) {
    %c0_i32 = arith.constant 0 : i32
    %c0_i32_0 = arith.constant 0 : i32
    %c0_i32_1 = arith.constant 0 : i32
    return %c0_i32, %c0_i32_0 : i32, i32
  }
  func.func @transform_12(%arg0: i32) -> (i32, i32) {
    %c0_i32 = arith.constant 0 : i32
    %c0_i32_0 = arith.constant 0 : i32
    %c0_i32_1 = arith.constant 0 : i32
    return %c0_i32, %c0_i32_0 : i32, i32
  }
  func.func @transform_13(%arg0: i32) -> (i32, i32) {
    %c0_i32 = arith.constant 0 : i32
    %c0_i32_0 = arith.constant 0 : i32
    %c0_i32_1 = arith.constant 0 : i32
    return %c0_i32, %c0_i32_0 : i32, i32
  }
  func.func @transform_14(%arg0: i32) -> (i32, i32) {
    %c0_i32 = arith.constant 0 : i32
    %c0_i32_0 = arith.constant 0 : i32
    %c0_i32_1 = arith.constant 0 : i32
    return %c0_i32, %c0_i32_0 : i32, i32
  }
  func.func @transform_15(%arg0: i32) -> (i32, i32) {
    %c0_i32 = arith.constant 0 : i32
    %c0_i32_0 = arith.constant 0 : i32
    return %arg0, %c0_i32 : i32, i32
  }
  func.func @transform_16(%arg0: i32) -> (i32, i32) {
    %c0_i32 = arith.constant 0 : i32
    %c0_i32_0 = arith.constant 0 : i32
    return %arg0, %c0_i32 : i32, i32
  }
  func.func @transform_17(%arg0: i32) -> (i32, i32) {
    %c0_i32 = arith.constant 0 : i32
    %c0_i32_0 = arith.constant 0 : i32
    return %arg0, %c0_i32 : i32, i32
  }
}

</mosaic_0001>

<bundles_post_ra>
// kernel: decoder_forward.7
= control target key start
LH: loop header
LB: loop body
LE: loop exit
PB: predicated region body
PF: predicated region fallthrough
CT: control target
= control target key end

     0   :  { %vm72_vm0 = vcmask 130048   ;;  %vm202_vm1 = vcmask 64512   ;;  %vm514_vm2 = vcmask 261120   ;;  %vm1361_vm3 = vcmask 23552   ;;  %s2490_s4 = inlined_call_operand.vmem [shape: f32[16,32], index: 4, kind: input, shape index: {}]   ;;  %s2491_s1 = inlined_call_operand.vmem [shape: f32[64,16], index: 1, kind: input, shape index: {}]   ;;  %s2492_s3 = inlined_call_operand.vmem [shape: f32[8,32], index: 3, kind: input, shape index: {}]   ;;  %s2493_s0 = inlined_call_operand.vmem [shape: f32[64,8], index: 0, kind: input, shape index: {}]   ;;  %s2494_s7 = inlined_call_operand.vmem [shape: f32[16,32], index: 7, kind: input, shape index: {}]   ;;  %s2495_s6 = inlined_call_operand.vmem [shape: f32[32,32], index: 6, kind: input, shape index: {}]   ;;  %s2496_s5 = inlined_call_operand.vmem [shape: f32[1,32], index: 5, kind: input, shape index: {}]   ;;  %s2497_s13 = inlined_call_operand.vmem [shape: f32[16,3], index: 13, kind: input, shape index: {}]   ;;  %s2498_s10 = inlined_call_operand.vmem [shape: f32[16,3], index: 10, kind: input, shape index: {}]   ;;  %s2499_s12 = inlined_call_operand.vmem [shape: f32[32,3], index: 12, kind: input, shape index: {}]   ;;  %s2500_s9 = inlined_call_operand.vmem [shape: f32[32,3], index: 9, kind: input, shape index: {}]   ;;  %s2501_s8 = inlined_call_operand.vmem [shape: f32[1,32], index: 8, kind: input, shape index: {}]   ;;  %s2502_s11 = inlined_call_operand.vmem [shape: f32[1,3], index: 11, kind: input, shape index: {}]   ;;  %s2503_s14 = inlined_call_operand.vmem [shape: f32[1,3], index: 14, kind: input, shape index: {}]   ;;  %s2504_s15 = inlined_call_operand.vmem [shape: f32[64,3], index: 15, kind: output, shape index: {0}]   ;;  %s2505_s16 = inlined_call_operand.vmem [shape: f32[64,3], index: 16, kind: output, shape index: {1}]   ;;  %s2506_s2 = inlined_call_operand.vmem [shape: f32[64,3], index: 2, kind: input, shape index: {}]   ;;  %s2507_s17 = inlined_call_operand.vmem [shape: f32[64,3], index: 17, kind: output, shape index: {2}]  }
   0x1   :  { %2510 = sst [smem:[#allocation2_spill]] %s2490_s4  ;;  %v69_v4 = vld [vmem:[%s2492_s3] sm:$0xff]  ;;  %v54_v13 = vld [vmem:[%s2493_s0 + $0x8] sm:$0xff]  ;;  %v55_v14 = vld [vmem:[%s2493_s0 + $0x10] sm:$0xff] }
   0x2   :  { %2511 = sst [smem:[#allocation3_spill]] %s2491_s1  ;;  %s2512_s26 = sld [smem:[#allocation2_spill]]  ;;  %v53_v12 = vld [vmem:[%s2493_s0] sm:$0xff]  ;;  %v56_v15 = vld [vmem:[%s2493_s0 + $0x18] sm:$0xff]  ;;  %v58_v17 = vld [vmem:[%s2493_s0 + $0x28] sm:$0xff] }
   0x3   :  { %s2513_s30 = sld [smem:[#allocation3_spill]]  ;;  %v57_v16 = vld [vmem:[%s2493_s0 + $0x20] sm:$0xff]  ;;  %v59_v18 = vld [vmem:[%s2493_s0 + $0x30] sm:$0xff]  ;;  %v60_v19 = vld [vmem:[%s2493_s0 + $0x38] sm:$0xff] }
   0x4   :  { %v407_v20 = vld [vmem:[%s2494_s7] sm:$0xff]  ;;  %v408_v21 = vld [vmem:[%s2494_s7 + $0x8] sm:$0xff]  ;;  %v405_v26 = vld [vmem:[%s2495_s6 + $0x10] sm:$0xff] }
   0x5   :  { %v1725_v22 = vpack.c.bf16 %v408_v21, %v407_v20  ;;  %v403_v23 = vld [vmem:[%s2495_s6] sm:$0xff]  ;;  %v404_v24 = vld [vmem:[%s2495_s6 + $0x8] sm:$0xff]  ;;  %v406_v27 = vld [vmem:[%s2495_s6 + $0x18] sm:$0xff] }
   0x6   :  { %v1729_v25 = vpack.c.bf16 %v404_v24, %v403_v23  ;;  %v1733_v28 = vpack.c.bf16 %v406_v27, %v405_v26  ;;  %v1414_v29 = vld [vmem:[%s2496_s5] ss:$0 sm:$0xff] }
   0x7   :  { %1726 = vmatprep.subr.bf16.mxu1 %v1725_v22 }
   0x8   :  { %v70_v0 = vld [vmem:[%s2512_s26] sm:$0xff]  ;;  %v71_v1 = vld [vmem:[%s2512_s26 + $0x8] sm:$0xff]  ;;  %1728 = vmatpush3.bf16.msra.mxu1 %v1725_v22 }
   0x9   :  { %v2036_v2 = vld [vmem:[%s2513_s30] sm:$0xff]  ;;  %v1721_v3 = vpack.c.bf16 %v71_v1, %v70_v0  ;;  %v2048_v5 = vld [vmem:[%s2513_s30 + $0x8] sm:$0xff]  ;;  %v2053_v6 = vld [vmem:[%s2513_s30 + $0x10] sm:$0xff]  ;;  %1730 = vmatprep.subr.bf16.mxu1 %v1729_v25 }
   0xa   :  { %1587 = vmatprep.mubr.msk.f32.mxu0 %vm72_vm0, %v2036_v2  ;;  %1617 = vmatprep.mubr.msk.f32.mxu1 %vm72_vm0, %v2036_v2  ;;  %v2062_v7 = vld [vmem:[%s2513_s30 + $0x18] sm:$0xff]  ;;  %v2067_v8 = vld [vmem:[%s2513_s30 + $0x20] sm:$0xff]  ;;  %v2076_v9 = vld [vmem:[%s2513_s30 + $0x28] sm:$0xff] }
   0xb   :  { %1722 = vmatprep.subr.bf16.mxu0 %v1721_v3  ;;  %v2081_v10 = vld [vmem:[%s2513_s30 + $0x30] sm:$0xff]  ;;  %v2090_v11 = vld [vmem:[%s2513_s30 + $0x38] sm:$0xff]  ;;  %1618 = vmatmul.mubr.msk.f32.vlgmr.msra.gmra.mrb[0].mxu1 %vm72_vm0, %v2048_v5 }
   0xc   :  { %1724 = vmatpush3.bf16.msra.mxu0 %v1721_v3  ;;  %1620 = vmatprep.mubr.msk.f32.mxu1 %vm72_vm0, %v2053_v6 }
   0xd   :  { %1599 = vmatprep.subr.mxu0 %v69_v4  ;;  %1732 = vmatpush3.bf16.msra.mxu1 %v1729_v25 }
   0xe   :  { %1734 = vmatprep.subr.bf16.mxu1 %v1733_v28 }
   0xf   :  { %1588 = vmatmul.mubr.msk.f32.vlgmr.msra.gmra.mrb[0].mxu0 %vm72_vm0, %v2048_v5  ;;  %1621 = vmatmul.mubr.msk.f32.gmra.mrb[2].mxu1 %vm72_vm0, %v2062_v7 }
  0x10   :  { %1600 = vmatpush3.msra.mxu0 %v69_v4  ;;  %1590 = vmatprep.mubr.msk.f32.mxu0 %vm72_vm0, %v2053_v6 }
  0x11   :  { %1623 = vmatprep.mubr.msk.f32.mxu1 %vm72_vm0, %v2067_v8  ;;  %1736 = vmatpush3.bf16.msra.mxu1 %v1733_v28 }
  0x13   :  { %1591 = vmatmul.mubr.msk.f32.gmra.mrb[2].mxu0 %vm72_vm0, %v2062_v7  ;;  %1624 = vmatmul.mubr.msk.f32.gmra.mrb[4].mxu1 %vm72_vm0, %v2076_v9 }
  0x14   :  { %1593 = vmatprep.mubr.msk.f32.mxu0 %vm72_vm0, %v2067_v8  ;;  %1626 = vmatprep.mubr.msk.f32.mxu1 %vm72_vm0, %v2081_v10 }
  0x17   :  { %1594 = vmatmul.mubr.msk.f32.gmra.mrb[4].mxu0 %vm72_vm0, %v2076_v9  ;;  %1627 = vmatmul.mubr.msk.f32.gmra.mrb[6].mxu1 %vm72_vm0, %v2090_v11 }
  0x18   :  { %1596 = vmatprep.mubr.msk.f32.mxu0 %vm72_vm0, %v2081_v10 }
  0x1b   :  { %1597 = vmatmul.mubr.msk.f32.gmra.mrb[6].mxu0 %vm72_vm0, %v2090_v11 }
  0x1c   :  { %1601 = vmatprep.mubr.msk.f32.mxu0 %vm202_vm1, %v53_v12 }
  0x1f   :  { %1602 = vmatmul.mubr.msk.f32.vlgmr.msra.gmra.mrb[0].mxu0 %vm202_vm1, %v54_v13 }
  0x20   :  { %1604 = vmatprep.mubr.msk.f32.mxu0 %vm202_vm1, %v55_v14 }
  0x23   :  { %1605 = vmatmul.mubr.msk.f32.gmra.mrb[2].mxu0 %vm202_vm1, %v56_v15 }
  0x24   :  { %1607 = vmatprep.mubr.msk.f32.mxu0 %vm202_vm1, %v57_v16 }
  0x27   :  { %1608 = vmatmul.mubr.msk.f32.gmra.mrb[4].mxu0 %vm202_vm1, %v58_v17 }
  0x28   :  { %1610 = vmatprep.mubr.msk.f32.mxu0 %vm202_vm1, %v59_v18 }
  0x2b   :  { %1611 = vmatmul.mubr.msk.f32.gmra.mrb[6].mxu0 %vm202_vm1, %v60_v19 }
  0x2c   :  { %1653 = vmatprep.mubr.msk.f32.mxu0 %vm72_vm0, %v2036_v2 }
  0xf2   :  { %v1603_v30 = vpop.f32.mrb[0].mxu0 }
  0xf3   :  { %v340_v31 = vadd.f32 %v1603_v30, %v1414_v29  ;;  %v293_v32 = vpop.f32.mrb[1].mxu0  ;;  %v1030_v30 = vld [vmem:[%s2497_s13] sm:$0xff] }
  0xf4   :  { %v339_v33 = vadd.f32 %v1414_v29, %v293_v32 }
  0xf5   :  { %v1416_v34 = vmul.f32 -1.442695, %v340_v31 }
  0xf6   :  { %v1415_v35 = vmul.f32 -1.442695, %v339_v33  ;;  %v1606_v36 = vpop.f32.mrb[2].mxu0 }
  0xf7   :  { %1793 = vpow2.f32 %v1416_v34  ;;  %v342_v37 = vadd.f32 %v1606_v36, %v1414_v29  ;;  %v303_v38 = vpop.f32.mrb[3].mxu0  ;;  %v720_v34 = vld [vmem:[%s2498_s10 + $0x8] sm:$0xff] }
  0xf8   :  { %1795 = vpow2.f32 %v1415_v35  ;;  %v341_v39 = vadd.f32 %v1414_v29, %v303_v38  ;;  %v1029_v38 = vld [vmem:[%s2499_s12 + $0x18] sm:$0xff] }
  0xf9   :  { %v1418_v40 = vmul.f32 -1.442695, %v342_v37 }
  0xfa   :  { %v1417_v41 = vmul.f32 -1.442695, %v341_v39  ;;  %v1609_v42 = vpop.f32.mrb[4].mxu0 }
  0xfb   :  { %1797 = vpow2.f32 %v1418_v40  ;;  %v344_v43 = vadd.f32 %v1609_v42, %v1414_v29  ;;  %v313_v44 = vpop.f32.mrb[5].mxu0  ;;  %v1439_v42 = vld [vmem:[%s2501_s8] ss:$0 sm:$0xff] }
  0xfc   :  { %1799 = vpow2.f32 %v1417_v41  ;;  %v343_v45 = vadd.f32 %v1414_v29, %v313_v44 }
  0xfd   :  { %v1420_v46 = vmul.f32 -1.442695, %v344_v43 }
  0xfe   :  { %v1419_v47 = vmul.f32 -1.442695, %v343_v45  ;;  %v1612_v48 = vpop.f32.mrb[6].mxu0 }
  0xff   :  { %1801 = vpow2.f32 %v1420_v46  ;;  %v346_v49 = vadd.f32 %v1612_v48, %v1414_v29  ;;  %v323_v50 = vpop.f32.mrb[7].mxu0 }
 0x100   :  { %1803 = vpow2.f32 %v1419_v47  ;;  %v345_v51 = vadd.f32 %v1414_v29, %v323_v50 }
 0x101   :  { %v1794_v52 = vpop.eup %1793  ;;  %v1422_v53 = vmul.f32 -1.442695, %v346_v49 }
 0x102   :  { %v1796_v54 = vpop.eup %1795  ;;  %v372_v55 = vadd.f32 1.0, %v1794_v52  ;;  %v1421_v56 = vmul.f32 -1.442695, %v345_v51 }
 0x103   :  { %v371_v57 = vadd.f32 1.0, %v1796_v54  ;;  %1805 = vpow2.f32 %v1422_v53 }
 0x104   :  { %1807 = vrcp.f32 %v372_v55 }
 0x105   :  { %v1798_v58 = vpop.eup %1797  ;;  %1809 = vrcp.f32 %v371_v57 }
 0x106   :  { %v1800_v59 = vpop.eup %1799  ;;  %v374_v60 = vadd.f32 1.0, %v1798_v58  ;;  %1811 = vpow2.f32 %v1421_v56 }
 0x107   :  { %v373_v61 = vadd.f32 1.0, %v1800_v59 }
 0x108   :  { %1813 = vrcp.f32 %v374_v60 }
 0x109   :  { %v1802_v62 = vpop.eup %1801  ;;  %1815 = vrcp.f32 %v373_v61 }
 0x10a   :  { %v1804_v63 = vpop.eup %1803  ;;  %v376_v0 = vadd.f32 1.0, %v1802_v62 }
 0x10b   :  { %v375_v1 = vadd.f32 1.0, %v1804_v63 }
 0x10c   :  { %1817 = vrcp.f32 %v376_v0 }
 0x10d   :  { %v1806_v3 = vpop.eup %1805  ;;  %1819 = vrcp.f32 %v375_v1 }
 0x10e   :  { %v1808_v4 = vpop.eup %1807  ;;  %v378_v12 = vadd.f32 1.0, %v1806_v3 }
 0x10f   :  { %v1810_v13 = vpop.eup %1809  ;;  %v396_v16 = vmul.f32 %v1808_v4, %v340_v31  ;;  %v1031_v31 = vld [vmem:[%s2497_s13 + $0x8] sm:$0xff] }
 0x110   :  { %v1812_v14 = vpop.eup %1811  ;;  %v395_v15 = vmul.f32 %v1810_v13, %v339_v33  ;;  %1821 = vrcp.f32 %v378_v12  ;;  %v1749_v32 = vpack.c.bf16 %v1031_v31, %v1030_v30  ;;  %v719_v33 = vld [vmem:[%s2498_s10] sm:$0xff] }
 0x111   :  { %v377_v17 = vadd.f32 1.0, %v1812_v14  ;;  %v1737_v35 = vpack.c.bf16 %v720_v34, %v719_v33 }
 0x112   :  { %v1814_v18 = vpop.eup %1813  ;;  %1637 = vmatprep.mubr.msk.f32.mxu1 %vm514_vm2, %v395_v15  ;;  %1750 = vmatprep.subr.bf16.mxu1 %v1749_v32 }
 0x113   :  { %v1816_v19 = vpop.eup %1815  ;;  %1823 = vrcp.f32 %v377_v17  ;;  %1638 = vmatmul.mubr.msk.f32.vlgmr.msra.gmra.mrb[0].mxu1 %vm514_vm2, %v396_v16  ;;  %v398_v21 = vmul.f32 %v1814_v18, %v342_v37  ;;  %1738 = vmatprep.subr.bf16.mxu0 %v1737_v35 }
 0x114   :  { %v397_v20 = vmul.f32 %v1816_v19, %v341_v39  ;;  %1752 = vmatpush3.bf16.msra.mxu1 %v1749_v32  ;;  %1740 = vmatpush3.bf16.msra.mxu0 %v1737_v35  ;;  %v717_v39 = vld [vmem:[%s2500_s9 + $0x10] sm:$0xff] }
 0x116   :  { %v1818_v22 = vpop.eup %1817  ;;  %1640 = vmatprep.mubr.msk.f32.mxu1 %vm514_vm2, %v397_v20 }
 0x117   :  { %v1820_v23 = vpop.eup %1819  ;;  %1641 = vmatmul.mubr.msk.f32.gmra.mrb[2].mxu1 %vm514_vm2, %v398_v21  ;;  %v400_v25 = vmul.f32 %v1818_v22, %v344_v43  ;;  %1654 = vmatmul.mubr.msk.f32.vlgmr.msra.gmra.mrb[8].mxu0 %vm72_vm0, %v2048_v5 }
 0x118   :  { %v399_v24 = vmul.f32 %v1820_v23, %v343_v45  ;;  %1656 = vmatprep.mubr.msk.f32.mxu0 %vm72_vm0, %v2053_v6 }
 0x11a   :  { %1643 = vmatprep.mubr.msk.f32.mxu1 %vm514_vm2, %v399_v24  ;;  %v1822_v26 = vpop.eup %1821 }
 0x11b   :  { %1644 = vmatmul.mubr.msk.f32.gmra.mrb[4].mxu1 %vm514_vm2, %v400_v25  ;;  %v402_v29 = vmul.f32 %v1822_v26, %v346_v49  ;;  %1657 = vmatmul.mubr.msk.f32.gmra.mrb[10].mxu0 %vm72_vm0, %v2062_v7 }
 0x11c   :  { %1659 = vmatprep.mubr.msk.f32.mxu0 %vm72_vm0, %v2067_v8 }
 0x11d   :  { %v1824_v27 = vpop.eup %1823 }
 0x11e   :  { %v401_v28 = vmul.f32 %v1824_v27, %v345_v51 }
 0x11f   :  { %1660 = vmatmul.mubr.msk.f32.gmra.mrb[12].mxu0 %vm72_vm0, %v2076_v9 }
 0x120   :  { %1646 = vmatprep.mubr.msk.f32.mxu1 %vm514_vm2, %v401_v28  ;;  %1662 = vmatprep.mubr.msk.f32.mxu0 %vm72_vm0, %v2081_v10 }
 0x121   :  { %1647 = vmatmul.mubr.msk.f32.gmra.mrb[6].mxu1 %vm514_vm2, %v402_v29 }
 0x122   :  { %1689 = vmatprep.mubr.msk.f32.mxu1 %vm72_vm0, %v2036_v2  ;;  %v1026_v2 = vld [vmem:[%s2499_s12] sm:$0xff] }
 0x123   :  { %1663 = vmatmul.mubr.msk.f32.gmra.mrb[14].mxu0 %vm72_vm0, %v2090_v11 }
 0x125   :  { %1690 = vmatmul.mubr.msk.f32.vlgmr.msra.gmra.mrb[8].mxu1 %vm72_vm0, %v2048_v5  ;;  %v1027_v5 = vld [vmem:[%s2499_s12 + $0x8] sm:$0xff] }
 0x126   :  { %1692 = vmatprep.mubr.msk.f32.mxu1 %vm72_vm0, %v2053_v6  ;;  %v715_v6 = vld [vmem:[%s2500_s9] sm:$0xff]  ;;  %v1753_v36 = vpack.c.bf16 %v1027_v5, %v1026_v2 }
 0x128   :  { %1754 = vmatprep.subr.bf16.mxu1 %v1753_v36 }
 0x129   :  { %1693 = vmatmul.mubr.msk.f32.gmra.mrb[10].mxu1 %vm72_vm0, %v2062_v7  ;;  %v716_v7 = vld [vmem:[%s2500_s9 + $0x8] sm:$0xff] }
 0x12a   :  { %1695 = vmatprep.mubr.msk.f32.mxu1 %vm72_vm0, %v2067_v8  ;;  %v1741_v37 = vpack.c.bf16 %v716_v7, %v715_v6  ;;  %1756 = vmatpush3.bf16.msra.mxu1 %v1753_v36  ;;  %v1028_v8 = vld [vmem:[%s2499_s12 + $0x10] sm:$0xff] }
 0x12b   :  { %v1757_v40 = vpack.c.bf16 %v1029_v38, %v1028_v8  ;;  %v2264_v8 = vld [vmem:[%s2503_s14] ss:$0 sm:$0xff] }
 0x12c   :  { %1742 = vmatprep.subr.bf16.mxu0 %v1741_v37 }
 0x12d   :  { %1696 = vmatmul.mubr.msk.f32.gmra.mrb[12].mxu1 %vm72_vm0, %v2076_v9  ;;  %1744 = vmatpush3.bf16.msra.mxu0 %v1741_v37  ;;  %v718_v9 = vld [vmem:[%s2500_s9 + $0x18] sm:$0xff]  ;;  %v2259_v37 = vld [vmem:[%s2502_s11] ss:$0 sm:$0xff] }
 0x12e   :  { %1698 = vmatprep.mubr.msk.f32.mxu1 %vm72_vm0, %v2081_v10  ;;  %v1745_v41 = vpack.c.bf16 %v718_v9, %v717_v39  ;;  %1758 = vmatprep.subr.bf16.mxu1 %v1757_v40 }
 0x12f   :  { %1760 = vmatpush3.bf16.msra.mxu1 %v1757_v40 }
 0x130   :  { %1746 = vmatprep.subr.bf16.mxu0 %v1745_v41 }
 0x131   :  { %1699 = vmatmul.mubr.msk.f32.gmra.mrb[14].mxu1 %vm72_vm0, %v2090_v11  ;;  %1748 = vmatpush3.bf16.msra.mxu0 %v1745_v41 }
 0x1e6   :  { %v1639_v43 = vpop.f32.mrb[0].mxu1 }
 0x1e7   :  { %v652_v44 = vadd.f32 %v1639_v43, %v1439_v42  ;;  %v605_v45 = vpop.f32.mrb[1].mxu1 }
 0x1e8   :  { %v651_v46 = vadd.f32 %v1439_v42, %v605_v45 }
 0x1e9   :  { %v1441_v10 = vmul.f32 -1.442695, %v652_v44 }
 0x1ea   :  { %v1440_v47 = vmul.f32 -1.442695, %v651_v46  ;;  %v1642_v48 = vpop.f32.mrb[2].mxu1 }
 0x1eb   :  { %1825 = vpow2.f32 %v1441_v10  ;;  %v654_v49 = vadd.f32 %v1642_v48, %v1439_v42  ;;  %v615_v50 = vpop.f32.mrb[3].mxu1 }
 0x1ec   :  { %1827 = vpow2.f32 %v1440_v47  ;;  %v653_v51 = vadd.f32 %v1439_v42, %v615_v50 }
 0x1ed   :  { %v1443_v52 = vmul.f32 -1.442695, %v654_v49 }
 0x1ee   :  { %v1442_v53 = vmul.f32 -1.442695, %v653_v51  ;;  %v1645_v11 = vpop.f32.mrb[4].mxu1 }
 0x1ef   :  { %1829 = vpow2.f32 %v1443_v52  ;;  %v656_v54 = vadd.f32 %v1645_v11, %v1439_v42  ;;  %v625_v55 = vpop.f32.mrb[5].mxu1 }
 0x1f0   :  { %1831 = vpow2.f32 %v1442_v53  ;;  %v655_v56 = vadd.f32 %v1439_v42, %v625_v55 }
 0x1f1   :  { %v1445_v57 = vmul.f32 -1.442695, %v656_v54 }
 0x1f2   :  { %v1444_v58 = vmul.f32 -1.442695, %v655_v56 }
 0x1f3   :  { %1833 = vpow2.f32 %v1445_v57 }
 0x1f4   :  { %1835 = vpow2.f32 %v1444_v58  ;;  %v1648_v59 = vpop.f32.mrb[6].mxu1 }
 0x1f5   :  { %v1826_v60 = vpop.eup %1825  ;;  %v658_v61 = vadd.f32 %v1648_v59, %v1439_v42  ;;  %v635_v62 = vpop.f32.mrb[7].mxu1 }
 0x1f6   :  { %v1828_v63 = vpop.eup %1827  ;;  %v684_v0 = vadd.f32 1.0, %v1826_v60  ;;  %v657_v1 = vadd.f32 %v1439_v42, %v635_v62 }
 0x1f7   :  { %v683_v3 = vadd.f32 1.0, %v1828_v63  ;;  %v1447_v4 = vmul.f32 -1.442695, %v658_v61 }
 0x1f8   :  { %1837 = vrcp.f32 %v684_v0  ;;  %v1446_v12 = vmul.f32 -1.442695, %v657_v1 }
 0x1f9   :  { %v1830_v13 = vpop.eup %1829  ;;  %1839 = vrcp.f32 %v683_v3 }
 0x1fa   :  { %v1832_v14 = vpop.eup %1831  ;;  %v686_v15 = vadd.f32 1.0, %v1830_v13  ;;  %1841 = vpow2.f32 %v1447_v4 }
 0x1fb   :  { %v685_v16 = vadd.f32 1.0, %v1832_v14  ;;  %1843 = vpow2.f32 %v1446_v12 }
 0x1fc   :  { %1845 = vrcp.f32 %v686_v15 }
 0x1fd   :  { %v1834_v17 = vpop.eup %1833  ;;  %1847 = vrcp.f32 %v685_v16 }
 0x1fe   :  { %v1836_v18 = vpop.eup %1835  ;;  %v688_v19 = vadd.f32 1.0, %v1834_v17 }
 0x1ff   :  { %v687_v20 = vadd.f32 1.0, %v1836_v18 }
 0x200   :  { %1849 = vrcp.f32 %v688_v19 }
 0x201   :  { %1851 = vrcp.f32 %v687_v20 }
 0x202   :  { %v1838_v21 = vpop.eup %1837 }
 0x203   :  { %v1840_v22 = vpop.eup %1839  ;;  %v708_v26 = vmul.f32 %v1838_v21, %v652_v44 }
 0x204   :  { %v1842_v23 = vpop.eup %1841  ;;  %v707_v24 = vmul.f32 %v1840_v22, %v651_v46 }
 0x205   :  { %v1844_v25 = vpop.eup %1843  ;;  %v690_v27 = vadd.f32 1.0, %v1842_v23 }
 0x206   :  { %v1846_v28 = vpop.eup %1845  ;;  %v689_v29 = vadd.f32 1.0, %v1844_v25  ;;  %1673 = vmatprep.mubr.msk.f32.mxu0 %vm514_vm2, %v707_v24  ;;  %1709 = vmatprep.mubr.msk.f32.mxu1 %vm514_vm2, %v707_v24 }
 0x207   :  { %v1848_v30 = vpop.eup %1847  ;;  %1853 = vrcp.f32 %v690_v27  ;;  %1674 = vmatmul.mubr.msk.f32.vlgmr.msra.gmra.mrb[8].mxu0 %vm514_vm2, %v708_v26  ;;  %1710 = vmatmul.mubr.msk.f32.vlgmr.msra.gmra.mrb[8].mxu1 %vm514_vm2, %v708_v26  ;;  %v710_v32 = vmul.f32 %v1846_v28, %v654_v49 }
 0x208   :  { %v709_v31 = vmul.f32 %v1848_v30, %v653_v51  ;;  %1855 = vrcp.f32 %v689_v29 }
 0x20a   :  { %v1850_v33 = vpop.eup %1849  ;;  %1676 = vmatprep.mubr.msk.f32.mxu0 %vm514_vm2, %v709_v31  ;;  %1712 = vmatprep.mubr.msk.f32.mxu1 %vm514_vm2, %v709_v31 }
 0x20b   :  { %v1852_v34 = vpop.eup %1851  ;;  %1677 = vmatmul.mubr.msk.f32.gmra.mrb[10].mxu0 %vm514_vm2, %v710_v32  ;;  %1713 = vmatmul.mubr.msk.f32.gmra.mrb[10].mxu1 %vm514_vm2, %v710_v32  ;;  %v712_v2 = vmul.f32 %v1850_v33, %v656_v54 }
 0x20c   :  { %v711_v35 = vmul.f32 %v1852_v34, %v655_v56 }
 0x20e   :  { %1679 = vmatprep.mubr.msk.f32.mxu0 %vm514_vm2, %v711_v35  ;;  %1715 = vmatprep.mubr.msk.f32.mxu1 %vm514_vm2, %v711_v35 }
 0x20f   :  { %1680 = vmatmul.mubr.msk.f32.gmra.mrb[12].mxu0 %vm514_vm2, %v712_v2  ;;  %1716 = vmatmul.mubr.msk.f32.gmra.mrb[12].mxu1 %vm514_vm2, %v712_v2 }
 0x211   :  { %v1854_v5 = vpop.eup %1853 }
 0x212   :  { %v1856_v6 = vpop.eup %1855  ;;  %v714_v7 = vmul.f32 %v1854_v5, %v658_v61 }
 0x213   :  { %v713_v36 = vmul.f32 %v1856_v6, %v657_v1 }
 0x215   :  { %1682 = vmatprep.mubr.msk.f32.mxu0 %vm514_vm2, %v713_v36  ;;  %1718 = vmatprep.mubr.msk.f32.mxu1 %vm514_vm2, %v713_v36 }
 0x216   :  { %1683 = vmatmul.mubr.msk.f32.gmra.mrb[14].mxu0 %vm514_vm2, %v714_v7  ;;  %1719 = vmatmul.mubr.msk.f32.gmra.mrb[14].mxu1 %vm514_vm2, %v714_v7 }
 0x2da   :  { %v1675_v38 = vpop.f32.mrb[8].mxu0  ;;  %v1711_v39 = vpop.f32.mrb[8].mxu1 }
 0x2db   :  { %v2267_v40 = vadd.f32 %v1675_v38, %v2259_v37  ;;  %v2270_v9 = vadd.f32 %v1711_v39, %v2264_v8  ;;  %v916_v41 = vpop.f32.mrb[9].mxu0  ;;  %v1203_v42 = vpop.f32.mrb[9].mxu1 }
 0x2dc   :  { %v2273_v43 = vadd.f32 %v2259_v37, %v916_v41  ;;  %v2276_v44 = vadd.f32 %v2264_v8, %v1203_v42 }
 0x2dd   :  { %v1466_v45 = vmul.f32 -1.442695, %v2267_v40  ;;  %v1491_v46 = vmul.f32 -1.442695, %v2270_v9 }
 0x2de   :  { %v1465_v10 = vmul.f32 -1.442695, %v2273_v43  ;;  %v1490_v47 = vmul.f32 -1.442695, %v2276_v44  ;;  %v1678_v48 = vpop.f32.mrb[10].mxu0  ;;  %v1714_v49 = vpop.f32.mrb[10].mxu1 }
 0x2df   :  { %1857 = vpow2.f32 %v1466_v45  ;;  %v2283_v50 = vadd.f32 %v1678_v48, %v2259_v37  ;;  %v2286_v51 = vadd.f32 %v1714_v49, %v2264_v8  ;;  %v926_v52 = vpop.f32.mrb[11].mxu0  ;;  %v1213_v53 = vpop.f32.mrb[11].mxu1 }
 0x2e0   :  { %1859 = vpow2.f32 %v1491_v46  ;;  %v2289_v11 = vadd.f32 %v2259_v37, %v926_v52  ;;  %v2292_v54 = vadd.f32 %v2264_v8, %v1213_v53 }
 0x2e1   :  { %1861 = vpow2.f32 %v1465_v10  ;;  %v1468_v55 = vmul.f32 -1.442695, %v2283_v50  ;;  %v1493_v56 = vmul.f32 -1.442695, %v2286_v51 }
 0x2e2   :  { %1863 = vpow2.f32 %v1490_v47  ;;  %v1467_v57 = vmul.f32 -1.442695, %v2289_v11  ;;  %v1492_v58 = vmul.f32 -1.442695, %v2292_v54  ;;  %v1681_v59 = vpop.f32.mrb[12].mxu0  ;;  %v1717_v60 = vpop.f32.mrb[12].mxu1 }
 0x2e3   :  { %1865 = vpow2.f32 %v1468_v55  ;;  %v2299_v61 = vadd.f32 %v1681_v59, %v2259_v37  ;;  %v2302_v62 = vadd.f32 %v1717_v60, %v2264_v8  ;;  %v936_v63 = vpop.f32.mrb[13].mxu0  ;;  %v1223_v0 = vpop.f32.mrb[13].mxu1 }
 0x2e4   :  { %1867 = vpow2.f32 %v1493_v56  ;;  %v2305_v1 = vadd.f32 %v2259_v37, %v936_v63  ;;  %v2308_v3 = vadd.f32 %v2264_v8, %v1223_v0 }
 0x2e5   :  { %1869 = vpow2.f32 %v1467_v57  ;;  %v1470_v4 = vmul.f32 -1.442695, %v2299_v61  ;;  %v1495_v12 = vmul.f32 -1.442695, %v2302_v62 }
 0x2e6   :  { %1871 = vpow2.f32 %v1492_v58  ;;  %v1469_v13 = vmul.f32 -1.442695, %v2305_v1  ;;  %v1494_v14 = vmul.f32 -1.442695, %v2308_v3 }
 0x2e7   :  { %1873 = vpow2.f32 %v1470_v4 }
 0x2e8   :  { %1875 = vpow2.f32 %v1495_v12 }
 0x2e9   :  { %v1858_v15 = vpop.eup %1857  ;;  %1877 = vpow2.f32 %v1469_v13  ;;  %v1684_v16 = vpop.f32.mrb[14].mxu0 }
 0x2ea   :  { %v1720_v17 = vpop.f32.mrb[14].mxu1  ;;  %v1860_v18 = vpop.eup %1859  ;;  %v995_v19 = vadd.f32 1.0, %v1858_v15  ;;  %1879 = vpow2.f32 %v1494_v14  ;;  %v2315_v34 = vadd.f32 %v1684_v16, %v2259_v37 }
 0x2eb   :  { %v946_v20 = vpop.f32.mrb[15].mxu0  ;;  %v1233_v21 = vpop.f32.mrb[15].mxu1  ;;  %v1282_v23 = vadd.f32 1.0, %v1860_v18  ;;  %v2318_v5 = vadd.f32 %v1720_v17, %v2264_v8 }
 0x2ec   :  { %v1862_v22 = vpop.eup %1861  ;;  %1881 = vrcp.f32 %v995_v19  ;;  %v2321_v7 = vadd.f32 %v2259_v37, %v946_v20  ;;  %v2324_v41 = vadd.f32 %v2264_v8, %v1233_v21  ;;  %v1472_v46 = vmul.f32 -1.442695, %v2315_v34 }
 0x2ed   :  { %v1864_v24 = vpop.eup %1863  ;;  %v994_v25 = vadd.f32 1.0, %v1862_v22  ;;  %1883 = vrcp.f32 %v1282_v23  ;;  %v1497_v47 = vmul.f32 -1.442695, %v2318_v5 }
 0x2ee   :  { %v1866_v26 = vpop.eup %1865  ;;  %v1281_v27 = vadd.f32 1.0, %v1864_v24  ;;  %v1471_v37 = vmul.f32 -1.442695, %v2321_v7  ;;  %v1496_v8 = vmul.f32 -1.442695, %v2324_v41 }
 0x2ef   :  { %v1868_v28 = vpop.eup %1867  ;;  %1885 = vrcp.f32 %v994_v25  ;;  %v997_v29 = vadd.f32 1.0, %v1866_v26 }
 0x2f0   :  { %v1870_v30 = vpop.eup %1869  ;;  %1887 = vrcp.f32 %v1281_v27  ;;  %v1284_v31 = vadd.f32 1.0, %v1868_v28 }
 0x2f1   :  { %v1872_v32 = vpop.eup %1871  ;;  %1889 = vrcp.f32 %v997_v29  ;;  %v996_v33 = vadd.f32 1.0, %v1870_v30  ;;  %v1338_v29 = vld [vmem:[%s2506_s2 + $0x8] sm:$0xff] }
 0x2f2   :  { %v1874_v35 = vpop.eup %1873  ;;  %1891 = vrcp.f32 %v1284_v31  ;;  %v1283_v2 = vadd.f32 1.0, %v1872_v32 }
 0x2f3   :  { %v1876_v6 = vpop.eup %1875  ;;  %1893 = vrcp.f32 %v996_v33  ;;  %v999_v36 = vadd.f32 1.0, %v1874_v35  ;;  %v1337_v33 = vld [vmem:[%s2506_s2] sm:$0xff] }
 0x2f4   :  { %v1878_v38 = vpop.eup %1877  ;;  %1895 = vrcp.f32 %v1283_v2  ;;  %v1286_v39 = vadd.f32 1.0, %v1876_v6  ;;  %v1340_v6 = vld [vmem:[%s2506_s2 + $0x18] sm:$0xff] }
 0x2f5   :  { %v1880_v42 = vpop.eup %1879  ;;  %1897 = vrcp.f32 %v999_v36  ;;  %v998_v45 = vadd.f32 1.0, %v1878_v38 }
 0x2f6   :  { %1899 = vrcp.f32 %v1286_v39  ;;  %v1285_v10 = vadd.f32 1.0, %v1880_v42  ;;  %v1882_v48 = vpop.eup %1881  ;;  %v1339_v42 = vld [vmem:[%s2506_s2 + $0x10] sm:$0xff] }
 0x2f7   :  { %1901 = vrcp.f32 %v998_v45  ;;  %v1884_v49 = vpop.eup %1883  ;;  %v2330_v52 = vmul.f32 %v1882_v48, %v2267_v40 }
 0x2f8   :  { %1903 = vrcp.f32 %v1285_v10  ;;  %v1306_v55 = vmul.f32 %v1884_v49, %v2270_v9 }
 0x2f9   :  { %v1886_v53 = vpop.eup %1885  ;;  %1905 = vpow2.f32 %v1472_v46  ;;  %1363 = vst.msk [vmem:[%s2504_s15 + $0x8] sm:$0xff] %vm1361_vm3, %v2330_v52 }
 0x2fa   :  { %v1888_v56 = vpop.eup %1887  ;;  %v2340_v57 = vmul.f32 %v1886_v53, %v2273_v43  ;;  %1907 = vpow2.f32 %v1497_v47  ;;  %v1314_v58 = vmul.f32 0.5, %v1306_v55  ;;  %1371 = vst.msk [vmem:[%s2505_s16 + $0x8] sm:$0xff] %vm1361_vm3, %v1306_v55  ;;  %v1342_v47 = vld [vmem:[%s2506_s2 + $0x28] sm:$0xff] }
 0x2fb   :  { %v1890_v40 = vpop.eup %1889  ;;  %v1305_v9 = vmul.f32 %v1888_v56, %v2276_v44  ;;  %1909 = vpow2.f32 %v1471_v37 }
 0x2fc   :  { %v1892_v59 = vpop.eup %1891  ;;  %1362 = vst.msk [vmem:[%s2504_s15] sm:$0xff] %vm1361_vm3, %v2340_v57  ;;  %v2353_v43 = vmul.f32 %v1890_v40, %v2283_v50  ;;  %1911 = vpow2.f32 %v1496_v8  ;;  %v1323_v63 = vmul.f32 1.442695, %v1314_v58  ;;  %v1341_v8 = vld [vmem:[%s2506_s2 + $0x20] sm:$0xff] }
 0x2fd   :  { %v1894_v60 = vpop.eup %1893  ;;  %v1313_v0 = vmul.f32 0.5, %v1305_v9  ;;  %1370 = vst.msk [vmem:[%s2505_s16] sm:$0xff] %vm1361_vm3, %v1305_v9  ;;  %v1308_v44 = vmul.f32 %v1892_v59, %v2286_v51 }
 0x2fe   :  { %v1896_v4 = vpop.eup %1895  ;;  %1365 = vst.msk [vmem:[%s2504_s15 + $0x18] sm:$0xff] %vm1361_vm3, %v2353_v43  ;;  %v2366_v50 = vmul.f32 %v1894_v60, %v2289_v11  ;;  %1913 = vpow2.f32 %v1323_v63 }
 0x2ff   :  { %v1898_v12 = vpop.eup %1897  ;;  %v1321_v13 = vmul.f32 1.442695, %v1313_v0  ;;  %v1316_v14 = vmul.f32 0.5, %v1308_v44  ;;  %1373 = vst.msk [vmem:[%s2505_s16 + $0x18] sm:$0xff] %vm1361_vm3, %v1308_v44  ;;  %v1307_v51 = vmul.f32 %v1896_v4, %v2292_v54 }
 0x300   :  { %v1900_v15 = vpop.eup %1899  ;;  %1364 = vst.msk [vmem:[%s2504_s15 + $0x10] sm:$0xff] %vm1361_vm3, %v2366_v50  ;;  %v2379_v11 = vmul.f32 %v1898_v12, %v2299_v61 }
 0x301   :  { %v1902_v16 = vpop.eup %1901  ;;  %1915 = vpow2.f32 %v1321_v13  ;;  %v1327_v17 = vmul.f32 1.442695, %v1316_v14  ;;  %v1315_v18 = vmul.f32 0.5, %v1307_v51  ;;  %1372 = vst.msk [vmem:[%s2505_s16 + $0x10] sm:$0xff] %vm1361_vm3, %v1307_v51  ;;  %v1310_v54 = vmul.f32 %v1900_v15, %v2302_v62  ;;  %v1343_v13 = vld [vmem:[%s2506_s2 + $0x30] sm:$0xff] }
 0x302   :  { %v1904_v19 = vpop.eup %1903  ;;  %1367 = vst.msk [vmem:[%s2504_s15 + $0x28] sm:$0xff] %vm1361_vm3, %v2379_v11  ;;  %v2392_v61 = vmul.f32 %v1902_v16, %v2305_v1 }
 0x303   :  { %v1906_v20 = vpop.eup %1905  ;;  %1917 = vpow2.f32 %v1327_v17  ;;  %v1325_v21 = vmul.f32 1.442695, %v1315_v18  ;;  %v1318_v22 = vmul.f32 0.5, %v1310_v54  ;;  %1375 = vst.msk [vmem:[%s2505_s16 + $0x28] sm:$0xff] %vm1361_vm3, %v1310_v54  ;;  %v1309_v62 = vmul.f32 %v1904_v19, %v2308_v3 }
 0x304   :  { %v1908_v23 = vpop.eup %1907  ;;  %1366 = vst.msk [vmem:[%s2504_s15 + $0x20] sm:$0xff] %vm1361_vm3, %v2392_v61  ;;  %v1001_v1 = vadd.f32 1.0, %v1906_v20 }
 0x305   :  { %v1910_v24 = vpop.eup %1909  ;;  %1919 = vpow2.f32 %v1325_v21  ;;  %v1331_v25 = vmul.f32 1.442695, %v1318_v22  ;;  %v1317_v26 = vmul.f32 0.5, %v1309_v62  ;;  %1374 = vst.msk [vmem:[%s2505_s16 + $0x20] sm:$0xff] %vm1361_vm3, %v1309_v62  ;;  %v1288_v27 = vadd.f32 1.0, %v1908_v23 }
 0x306   :  { %v1912_v28 = vpop.eup %1911  ;;  %1921 = vrcp.f32 %v1001_v1  ;;  %v1000_v3 = vadd.f32 1.0, %v1910_v24 }
 0x307   :  { %1923 = vpow2.f32 %v1331_v25  ;;  %v1329_v30 = vmul.f32 1.442695, %v1317_v26  ;;  %v1287_v31 = vadd.f32 1.0, %v1912_v28 }
 0x308   :  { %1925 = vrcp.f32 %v1288_v27  ;;  %v1914_v32 = vpop.eup %1913 }
 0x309   :  { %1927 = vpow2.f32 %v1329_v30  ;;  %v1346_v35 = vmul.f32 %v1914_v32, %v1338_v29 }
 0x30a   :  { %1929 = vrcp.f32 %v1000_v3 }
 0x30b   :  { %v1916_v2 = vpop.eup %1915  ;;  %1931 = vrcp.f32 %v1287_v31  ;;  %v1354_v36 = vadd.f32 %v1346_v35, %v2330_v52 }
 0x30c   :  { %v1345_v38 = vmul.f32 %v1916_v2, %v1337_v33 }
 0x30d   :  { %v1918_v39 = vpop.eup %1917  ;;  %1379 = vst.msk [vmem:[%s2507_s17 + $0x8] sm:$0xff] %vm1361_vm3, %v1354_v36 }
 0x30e   :  { %v1353_v45 = vadd.f32 %v1345_v38, %v2340_v57  ;;  %v1348_v46 = vmul.f32 %v1918_v39, %v1340_v6 }
 0x30f   :  { %v1920_v10 = vpop.eup %1919 }
 0x310   :  { %v1922_v48 = vpop.eup %1921  ;;  %1378 = vst.msk [vmem:[%s2507_s17] sm:$0xff] %vm1361_vm3, %v1353_v45  ;;  %v1356_v37 = vadd.f32 %v1348_v46, %v2353_v43  ;;  %v1347_v49 = vmul.f32 %v1920_v10, %v1339_v42 }
 0x311   :  { %v1924_v52 = vpop.eup %1923  ;;  %v1025_v53 = vmul.f32 %v1922_v48, %v2315_v34 }
 0x312   :  { %v1926_v55 = vpop.eup %1925  ;;  %1381 = vst.msk [vmem:[%s2507_s17 + $0x18] sm:$0xff] %vm1361_vm3, %v1356_v37  ;;  %v1355_v56 = vadd.f32 %v1347_v49, %v2366_v50  ;;  %v1350_v57 = vmul.f32 %v1924_v52, %v1342_v47 }
 0x313   :  { %v1928_v40 = vpop.eup %1927  ;;  %1369 = vst.msk [vmem:[%s2504_s15 + $0x38] sm:$0xff] %vm1361_vm3, %v1025_v53  ;;  %v1312_v58 = vmul.f32 %v1926_v55, %v2318_v5 }
 0x314   :  { %v1930_v9 = vpop.eup %1929  ;;  %1380 = vst.msk [vmem:[%s2507_s17 + $0x10] sm:$0xff] %vm1361_vm3, %v1355_v56  ;;  %v1358_v34 = vadd.f32 %v1350_v57, %v2379_v11  ;;  %v1349_v59 = vmul.f32 %v1928_v40, %v1341_v8 }
 0x315   :  { %v1932_v43 = vpop.eup %1931  ;;  %v1320_v60 = vmul.f32 0.5, %v1312_v58  ;;  %1377 = vst.msk [vmem:[%s2505_s16 + $0x38] sm:$0xff] %vm1361_vm3, %v1312_v58  ;;  %v1024_v63 = vmul.f32 %v1930_v9, %v2321_v7 }
 0x316   :  { %1383 = vst.msk [vmem:[%s2507_s17 + $0x28] sm:$0xff] %vm1361_vm3, %v1358_v34  ;;  %v1357_v5 = vadd.f32 %v1349_v59, %v2392_v61  ;;  %v1311_v0 = vmul.f32 %v1932_v43, %v2324_v41  ;;  %v1344_v41 = vld [vmem:[%s2506_s2 + $0x38] sm:$0xff] }
 0x317   :  { %v1335_v44 = vmul.f32 1.442695, %v1320_v60  ;;  %1368 = vst.msk [vmem:[%s2504_s15 + $0x30] sm:$0xff] %vm1361_vm3, %v1024_v63 }
 0x318   :  { %1382 = vst.msk [vmem:[%s2507_s17 + $0x20] sm:$0xff] %vm1361_vm3, %v1357_v5  ;;  %v1319_v7 = vmul.f32 0.5, %v1311_v0  ;;  %1376 = vst.msk [vmem:[%s2505_s16 + $0x30] sm:$0xff] %vm1361_vm3, %v1311_v0 }
 0x319   :  { %1933 = vpow2.f32 %v1335_v44 }
 0x31a   :  { %v1333_v4 = vmul.f32 1.442695, %v1319_v7 }
 0x31c   :  { %1935 = vpow2.f32 %v1333_v4 }
 0x323   :  { %v1934_v50 = vpop.eup %1933 }
 0x324   :  { %v1352_v12 = vmul.f32 %v1934_v50, %v1344_v41 }
 0x326   :  { %v1936_v14 = vpop.eup %1935  ;;  %v1360_v51 = vadd.f32 %v1352_v12, %v1025_v53 }
 0x327   :  { %v1351_v15 = vmul.f32 %v1936_v14, %v1343_v13 }
 0x328   :  { %1385 = vst.msk [vmem:[%s2507_s17 + $0x38] sm:$0xff] %vm1361_vm3, %v1360_v51 }
 0x329   :  { %v1359_v11 = vadd.f32 %v1351_v15, %v1024_v63 }
 0x32b   :  { %1384 = vst.msk [vmem:[%s2507_s17 + $0x30] sm:$0xff] %vm1361_vm3, %v1359_v11 }

// kernel: decoder_forward.4
= control target key start
LH: loop header
LB: loop body
LE: loop exit
PB: predicated region body
PF: predicated region fallthrough
CT: control target
= control target key end

     0   :  { %vm108_vm0 = vcmask 130048   ;;  %vm549_vm1 = vcmask 261120   ;;  %vm1504_vm2 = vcmask 64512   ;;  %vm2683_vm3 = vcmask 7168   ;;  %s4596_s4 = inlined_call_operand.vmem [shape: f32[16,32], index: 4, kind: input, shape index: {}]   ;;  %s4597_s1 = inlined_call_operand.vmem [shape: f32[64,16], index: 1, kind: input, shape index: {}]   ;;  %s4598_s3 = inlined_call_operand.vmem [shape: f32[16,32], index: 3, kind: input, shape index: {}]   ;;  %s4599_s0 = inlined_call_operand.vmem [shape: f32[64,16], index: 0, kind: input, shape index: {}]   ;;  %s4600_s7 = inlined_call_operand.vmem [shape: f32[16,32], index: 7, kind: input, shape index: {}]   ;;  %s4601_s6 = inlined_call_operand.vmem [shape: f32[32,32], index: 6, kind: input, shape index: {}]   ;;  %s4602_s5 = inlined_call_operand.vmem [shape: f32[1,32], index: 5, kind: input, shape index: {}]   ;;  %s4603_s13 = inlined_call_operand.vmem [shape: f32[16,8], index: 13, kind: input, shape index: {}]   ;;  %s4604_s10 = inlined_call_operand.vmem [shape: f32[16,8], index: 10, kind: input, shape index: {}]   ;;  %s4605_s12 = inlined_call_operand.vmem [shape: f32[32,8], index: 12, kind: input, shape index: {}]   ;;  %s4606_s9 = inlined_call_operand.vmem [shape: f32[32,8], index: 9, kind: input, shape index: {}]   ;;  %s4607_s8 = inlined_call_operand.vmem [shape: f32[1,32], index: 8, kind: input, shape index: {}]   ;;  %s4608_s16 = inlined_call_operand.vmem [shape: f32[16,8], index: 16, kind: input, shape index: {}]   ;;  %s4609_s15 = inlined_call_operand.vmem [shape: f32[8,8], index: 15, kind: input, shape index: {}]   ;;  %s4610_s11 = inlined_call_operand.vmem [shape: f32[1,8], index: 11, kind: input, shape index: {}]   ;;  %s4611_s14 = inlined_call_operand.vmem [shape: f32[1,8], index: 14, kind: input, shape index: {}]   ;;  %s4612_s2 = inlined_call_operand.vmem [shape: f32[64,8], index: 2, kind: input, shape index: {}]   ;;  %s4613_s19 = inlined_call_operand.vmem [shape: f32[16,32], index: 19, kind: input, shape index: {}]   ;;  %s4614_s18 = inlined_call_operand.vmem [shape: f32[8,32], index: 18, kind: input, shape index: {}]   ;;  %s4615_s28 = inlined_call_operand.vmem [shape: f32[64,1], index: 28, kind: output, shape index: {1}]   ;;  %s4616_s17 = inlined_call_operand.vmem [shape: f32[1,8], index: 17, kind: input, shape index: {}]   ;;  %s4617_s22 = inlined_call_operand.vmem [shape: f32[16,32], index: 22, kind: input, shape index: {}]   ;;  %s4618_s21 = inlined_call_operand.vmem [shape: f32[32,32], index: 21, kind: input, shape index: {}]   ;;  %s4619_s20 = inlined_call_operand.vmem [shape: f32[1,32], index: 20, kind: input, shape index: {}]   ;;  %s4620_s25 = inlined_call_operand.vmem [shape: f32[16,8], index: 25, kind: input, shape index: {}]   ;;  %s4621_s24 = inlined_call_operand.vmem [shape: f32[32,8], index: 24, kind: input, shape index: {}]   ;;  %s4622_s23 = inlined_call_operand.vmem [shape: f32[1,32], index: 23, kind: input, shape index: {}]   ;;  %s4623_s26 = inlined_call_operand.vmem [shape: f32[1,8], index: 26, kind: input, shape index: {}]   ;;  %s4624_s27 = inlined_call_operand.vmem [shape: f32[64,8], index: 27, kind: output, shape index: {0}]  }
   0x1   :  { %4636 = sst [smem:[#allocation2_spill]] %s4596_s4 }
   0x2   :  { %4637 = sst [smem:[#allocation3_spill]] %s4597_s1 }
   0x3   :  { %4638 = sst [smem:[#allocation4_spill]] %s4598_s3  ;;  %s4650_s1 = sld [smem:[#allocation3_spill]] }
   0x4   :  { %4639 = sst [smem:[#allocation5_spill]] %s4599_s0  ;;  %s4651_s3 = sld [smem:[#allocation4_spill]] }
   0x5   :  { %4640 = sst [smem:[#allocation6_spill]] %s4600_s7 }
   0x6   :  { %4641 = sst [smem:[#allocation7_spill]] %s4601_s6  ;;  %s4653_s4 = sld [smem:[#allocation6_spill]] }
   0x7   :  { %4642 = sst [smem:[#allocation8_spill]] %s4602_s5  ;;  %s4654_s29 = sld [smem:[#allocation7_spill]] }
   0x8   :  { %4643 = sst [smem:[#allocation9_spill]] %s4603_s13 }
   0x9   :  { %4644 = sst [smem:[#allocation10_spill]] %s4604_s10  ;;  %v3898_v2 = vld [vmem:[%s4650_s1] sm:$0xff]  ;;  %v3913_v7 = vld [vmem:[%s4650_s1 + $0x8] sm:$0xff]  ;;  %v3918_v8 = vld [vmem:[%s4650_s1 + $0x10] sm:$0xff]  ;;  %s4652_s10 = sld [smem:[#allocation5_spill]] }
   0xa   :  { %4645 = sst [smem:[#allocation11_spill]] %s4605_s12  ;;  %s4649_s12 = sld [smem:[#allocation2_spill]]  ;;  %3072 = vmatprep.mubr.msk.f32.mxu0 %vm108_vm0, %v3898_v2  ;;  %v104_v4 = vld [vmem:[%s4651_s3] sm:$0xff]  ;;  %v105_v5 = vld [vmem:[%s4651_s3 + $0x8] sm:$0xff]  ;;  %3104 = vmatprep.mubr.msk.f32.mxu1 %vm108_vm0, %v3898_v2  ;;  %v3927_v9 = vld [vmem:[%s4650_s1 + $0x18] sm:$0xff] }
   0xb   :  { %4646 = sst [smem:[#allocation12_spill]] %s4606_s9  ;;  %v3344_v6 = vpack.c.bf16 %v105_v5, %v104_v4  ;;  %v3932_v10 = vld [vmem:[%s4650_s1 + $0x20] sm:$0xff]  ;;  %v3941_v11 = vld [vmem:[%s4650_s1 + $0x28] sm:$0xff]  ;;  %v3946_v12 = vld [vmem:[%s4650_s1 + $0x30] sm:$0xff]  ;;  %s4658_s30 = sld [smem:[#allocation11_spill]] }
   0xc   :  { %4647 = sst [smem:[#allocation13_spill]] %s4607_s8  ;;  %v3955_v13 = vld [vmem:[%s4650_s1 + $0x38] sm:$0xff]  ;;  %v442_v22 = vld [vmem:[%s4653_s4] sm:$0xff]  ;;  %v443_v23 = vld [vmem:[%s4653_s4 + $0x8] sm:$0xff]  ;;  %s4655_s4 = sld [smem:[#allocation8_spill]] }
   0xd   :  { %4648 = sst [smem:[#allocation14_spill]] %s4608_s16  ;;  %v3348_v24 = vpack.c.bf16 %v443_v23, %v442_v22  ;;  %v438_v25 = vld [vmem:[%s4654_s29] sm:$0xff]  ;;  %v439_v26 = vld [vmem:[%s4654_s29 + $0x8] sm:$0xff]  ;;  %v440_v28 = vld [vmem:[%s4654_s29 + $0x10] sm:$0xff]  ;;  %s4657_s16 = sld [smem:[#allocation10_spill]] }
   0xe   :  { %v3352_v27 = vpack.c.bf16 %v439_v26, %v438_v25  ;;  %v441_v29 = vld [vmem:[%s4654_s29 + $0x18] sm:$0xff]  ;;  %s4659_s8 = sld [smem:[#allocation12_spill]]  ;;  %s4661_s3 = sld [smem:[#allocation14_spill]] }
   0xf   :  { %v96_v14 = vld [vmem:[%s4652_s10] sm:$0xff]  ;;  %v97_v15 = vld [vmem:[%s4652_s10 + $0x8] sm:$0xff]  ;;  %v98_v16 = vld [vmem:[%s4652_s10 + $0x10] sm:$0xff]  ;;  %3349 = vmatprep.subr.bf16.mxu1 %v3348_v24  ;;  %v3356_v30 = vpack.c.bf16 %v441_v29, %v440_v28 }
  0x10   :  { %v106_v0 = vld [vmem:[%s4649_s12] sm:$0xff]  ;;  %v107_v1 = vld [vmem:[%s4649_s12 + $0x8] sm:$0xff]  ;;  %v99_v17 = vld [vmem:[%s4652_s10 + $0x18] sm:$0xff]  ;;  %3351 = vmatpush3.bf16.msra.mxu1 %v3348_v24 }
  0x11   :  { %v3340_v3 = vpack.c.bf16 %v107_v1, %v106_v0  ;;  %v100_v18 = vld [vmem:[%s4652_s10 + $0x20] sm:$0xff]  ;;  %v101_v19 = vld [vmem:[%s4652_s10 + $0x28] sm:$0xff]  ;;  %v102_v20 = vld [vmem:[%s4652_s10 + $0x30] sm:$0xff]  ;;  %3353 = vmatprep.subr.bf16.mxu1 %v3352_v27 }
  0x12   :  { %v103_v21 = vld [vmem:[%s4652_s10 + $0x38] sm:$0xff]  ;;  %v2716_v31 = vld [vmem:[%s4655_s4] ss:$0 sm:$0xff]  ;;  %s4656_s10 = sld [smem:[#allocation9_spill]] }
  0x13   :  { %3341 = vmatprep.subr.bf16.mxu0 %v3340_v3  ;;  %3105 = vmatmul.mubr.msk.f32.vlgmr.msra.gmra.mrb[0].mxu1 %vm108_vm0, %v3913_v7 }
  0x14   :  { %3343 = vmatpush3.bf16.msra.mxu0 %v3340_v3  ;;  %3107 = vmatprep.mubr.msk.f32.mxu1 %vm108_vm0, %v3918_v8 }
  0x15   :  { %3345 = vmatprep.subr.bf16.mxu0 %v3344_v6  ;;  %3355 = vmatpush3.bf16.msra.mxu1 %v3352_v27 }
  0x16   :  { %3357 = vmatprep.subr.bf16.mxu1 %v3356_v30 }
  0x17   :  { %3073 = vmatmul.mubr.msk.f32.vlgmr.msra.gmra.mrb[0].mxu0 %vm108_vm0, %v3913_v7  ;;  %3108 = vmatmul.mubr.msk.f32.gmra.mrb[2].mxu1 %vm108_vm0, %v3927_v9 }
  0x18   :  { %3347 = vmatpush3.bf16.msra.mxu0 %v3344_v6  ;;  %3075 = vmatprep.mubr.msk.f32.mxu0 %vm108_vm0, %v3918_v8 }
  0x19   :  { %3110 = vmatprep.mubr.msk.f32.mxu1 %vm108_vm0, %v3932_v10  ;;  %3359 = vmatpush3.bf16.msra.mxu1 %v3356_v30 }
  0x1b   :  { %3076 = vmatmul.mubr.msk.f32.gmra.mrb[2].mxu0 %vm108_vm0, %v3927_v9  ;;  %3111 = vmatmul.mubr.msk.f32.gmra.mrb[4].mxu1 %vm108_vm0, %v3941_v11 }
  0x1c   :  { %3078 = vmatprep.mubr.msk.f32.mxu0 %vm108_vm0, %v3932_v10  ;;  %3113 = vmatprep.mubr.msk.f32.mxu1 %vm108_vm0, %v3946_v12 }
  0x1f   :  { %3079 = vmatmul.mubr.msk.f32.gmra.mrb[4].mxu0 %vm108_vm0, %v3941_v11  ;;  %3114 = vmatmul.mubr.msk.f32.gmra.mrb[6].mxu1 %vm108_vm0, %v3955_v13 }
  0x20   :  { %3081 = vmatprep.mubr.msk.f32.mxu0 %vm108_vm0, %v3946_v12 }
  0x23   :  { %3082 = vmatmul.mubr.msk.f32.gmra.mrb[6].mxu0 %vm108_vm0, %v3955_v13 }
  0x24   :  { %3088 = vmatprep.mubr.msk.f32.mxu0 %vm108_vm0, %v96_v14 }
  0x27   :  { %3089 = vmatmul.mubr.msk.f32.vlgmr.msra.gmra.mrb[0].mxu0 %vm108_vm0, %v97_v15 }
  0x28   :  { %3091 = vmatprep.mubr.msk.f32.mxu0 %vm108_vm0, %v98_v16 }
  0x2b   :  { %3092 = vmatmul.mubr.msk.f32.gmra.mrb[2].mxu0 %vm108_vm0, %v99_v17 }
  0x2c   :  { %3094 = vmatprep.mubr.msk.f32.mxu0 %vm108_vm0, %v100_v18 }
  0x2f   :  { %3095 = vmatmul.mubr.msk.f32.gmra.mrb[4].mxu0 %vm108_vm0, %v101_v19 }
  0x30   :  { %3097 = vmatprep.mubr.msk.f32.mxu0 %vm108_vm0, %v102_v20 }
  0x33   :  { %3098 = vmatmul.mubr.msk.f32.gmra.mrb[6].mxu0 %vm108_vm0, %v103_v21 }
  0x34   :  { %3140 = vmatprep.mubr.msk.f32.mxu0 %vm108_vm0, %v3898_v2 }
  0xfa   :  { %v3090_v32 = vpop.f32.mrb[0].mxu0 }
  0xfb   :  { %v375_v33 = vadd.f32 %v3090_v32, %v2716_v31  ;;  %v328_v34 = vpop.f32.mrb[1].mxu0  ;;  %v1065_v32 = vld [vmem:[%s4656_s10] sm:$0xff] }
  0xfc   :  { %v374_v35 = vadd.f32 %v2716_v31, %v328_v34 }
  0xfd   :  { %v2718_v36 = vmul.f32 -1.442695, %v375_v33 }
  0xfe   :  { %v2717_v37 = vmul.f32 -1.442695, %v374_v35  ;;  %v3093_v38 = vpop.f32.mrb[2].mxu0 }
  0xff   :  { %3480 = vpow2.f32 %v2718_v36  ;;  %v377_v39 = vadd.f32 %v3093_v38, %v2716_v31  ;;  %v338_v40 = vpop.f32.mrb[3].mxu0  ;;  %v755_v36 = vld [vmem:[%s4657_s16 + $0x8] sm:$0xff]  ;;  %v1061_v38 = vld [vmem:[%s4658_s30] sm:$0xff] }
 0x100   :  { %3482 = vpow2.f32 %v2717_v37  ;;  %v376_v41 = vadd.f32 %v2716_v31, %v338_v40  ;;  %v750_v40 = vld [vmem:[%s4659_s8] sm:$0xff] }
 0x101   :  { %v2720_v42 = vmul.f32 -1.442695, %v377_v39 }
 0x102   :  { %v2719_v43 = vmul.f32 -1.442695, %v376_v41  ;;  %v3096_v44 = vpop.f32.mrb[4].mxu0 }
 0x103   :  { %3484 = vpow2.f32 %v2720_v42  ;;  %v379_v45 = vadd.f32 %v3096_v44, %v2716_v31  ;;  %v348_v46 = vpop.f32.mrb[5].mxu0  ;;  %v751_v42 = vld [vmem:[%s4659_s8 + $0x8] sm:$0xff]  ;;  %v1063_v44 = vld [vmem:[%s4658_s30 + $0x10] sm:$0xff] }
 0x104   :  { %3486 = vpow2.f32 %v2719_v43  ;;  %v378_v47 = vadd.f32 %v2716_v31, %v348_v46  ;;  %v3364_v43 = vpack.c.bf16 %v751_v42, %v750_v40  ;;  %v752_v46 = vld [vmem:[%s4659_s8 + $0x10] sm:$0xff] }
 0x105   :  { %v2722_v48 = vmul.f32 -1.442695, %v379_v45 }
 0x106   :  { %v2721_v49 = vmul.f32 -1.442695, %v378_v47  ;;  %v3099_v50 = vpop.f32.mrb[6].mxu0 }
 0x107   :  { %3488 = vpow2.f32 %v2722_v48  ;;  %v381_v51 = vadd.f32 %v3099_v50, %v2716_v31  ;;  %v358_v52 = vpop.f32.mrb[7].mxu0  ;;  %v753_v48 = vld [vmem:[%s4659_s8 + $0x18] sm:$0xff] }
 0x108   :  { %3490 = vpow2.f32 %v2721_v49  ;;  %v380_v53 = vadd.f32 %v2716_v31, %v358_v52  ;;  %v3368_v49 = vpack.c.bf16 %v753_v48, %v752_v46 }
 0x109   :  { %v3481_v54 = vpop.eup %3480  ;;  %v2724_v55 = vmul.f32 -1.442695, %v381_v51 }
 0x10a   :  { %v3483_v56 = vpop.eup %3482  ;;  %v407_v57 = vadd.f32 1.0, %v3481_v54  ;;  %v2723_v58 = vmul.f32 -1.442695, %v380_v53 }
 0x10b   :  { %v406_v59 = vadd.f32 1.0, %v3483_v56  ;;  %3492 = vpow2.f32 %v2724_v55 }
 0x10c   :  { %3494 = vrcp.f32 %v407_v57 }
 0x10d   :  { %v3485_v60 = vpop.eup %3484  ;;  %3496 = vrcp.f32 %v406_v59 }
 0x10e   :  { %v3487_v61 = vpop.eup %3486  ;;  %v409_v62 = vadd.f32 1.0, %v3485_v60  ;;  %3498 = vpow2.f32 %v2723_v58 }
 0x10f   :  { %v408_v63 = vadd.f32 1.0, %v3487_v61 }
 0x110   :  { %3500 = vrcp.f32 %v409_v62 }
 0x111   :  { %v3489_v0 = vpop.eup %3488  ;;  %3502 = vrcp.f32 %v408_v63 }
 0x112   :  { %v3491_v1 = vpop.eup %3490  ;;  %v411_v3 = vadd.f32 1.0, %v3489_v0 }
 0x113   :  { %v410_v4 = vadd.f32 1.0, %v3491_v1 }
 0x114   :  { %3504 = vrcp.f32 %v411_v3 }
 0x115   :  { %v3493_v5 = vpop.eup %3492  ;;  %3506 = vrcp.f32 %v410_v4 }
 0x116   :  { %v3495_v6 = vpop.eup %3494  ;;  %v413_v14 = vadd.f32 1.0, %v3493_v5 }
 0x117   :  { %v3497_v15 = vpop.eup %3496  ;;  %v431_v18 = vmul.f32 %v3495_v6, %v375_v33  ;;  %v1066_v33 = vld [vmem:[%s4656_s10 + $0x8] sm:$0xff]  ;;  %s4660_s10 = sld [smem:[#allocation13_spill]] }
 0x118   :  { %v3499_v16 = vpop.eup %3498  ;;  %v430_v17 = vmul.f32 %v3497_v15, %v374_v35  ;;  %3508 = vrcp.f32 %v413_v14  ;;  %v3372_v34 = vpack.c.bf16 %v1066_v33, %v1065_v32  ;;  %v754_v35 = vld [vmem:[%s4657_s16] sm:$0xff] }
 0x119   :  { %v412_v19 = vadd.f32 1.0, %v3499_v16  ;;  %v3360_v37 = vpack.c.bf16 %v755_v36, %v754_v35 }
 0x11a   :  { %v3501_v20 = vpop.eup %3500  ;;  %3124 = vmatprep.mubr.msk.f32.mxu1 %vm549_vm1, %v430_v17  ;;  %3373 = vmatprep.subr.bf16.mxu1 %v3372_v34 }
 0x11b   :  { %v3503_v21 = vpop.eup %3502  ;;  %3510 = vrcp.f32 %v412_v19  ;;  %3125 = vmatmul.mubr.msk.f32.vlgmr.msra.gmra.mrb[0].mxu1 %vm549_vm1, %v431_v18  ;;  %v433_v23 = vmul.f32 %v3501_v20, %v377_v39  ;;  %3361 = vmatprep.subr.bf16.mxu0 %v3360_v37  ;;  %v1062_v39 = vld [vmem:[%s4658_s30 + $0x8] sm:$0xff] }
 0x11c   :  { %v432_v22 = vmul.f32 %v3503_v21, %v376_v41  ;;  %3375 = vmatpush3.bf16.msra.mxu1 %v3372_v34  ;;  %3363 = vmatpush3.bf16.msra.mxu0 %v3360_v37  ;;  %v3376_v41 = vpack.c.bf16 %v1062_v39, %v1061_v38 }
 0x11d   :  { %3365 = vmatprep.subr.bf16.mxu0 %v3364_v43  ;;  %v2741_v50 = vld [vmem:[%s4660_s10] ss:$0 sm:$0xff] }
 0x11e   :  { %v3505_v24 = vpop.eup %3504  ;;  %3127 = vmatprep.mubr.msk.f32.mxu1 %vm549_vm1, %v432_v22  ;;  %3377 = vmatprep.subr.bf16.mxu1 %v3376_v41 }
 0x11f   :  { %v3507_v25 = vpop.eup %3506  ;;  %3128 = vmatmul.mubr.msk.f32.gmra.mrb[2].mxu1 %vm549_vm1, %v433_v23  ;;  %v435_v27 = vmul.f32 %v3505_v24, %v379_v45  ;;  %3141 = vmatmul.mubr.msk.f32.vlgmr.msra.gmra.mrb[8].mxu0 %vm108_vm0, %v3913_v7  ;;  %v1064_v45 = vld [vmem:[%s4658_s30 + $0x18] sm:$0xff] }
 0x120   :  { %v434_v26 = vmul.f32 %v3507_v25, %v378_v47  ;;  %3143 = vmatprep.mubr.msk.f32.mxu0 %vm108_vm0, %v3918_v8  ;;  %v3380_v47 = vpack.c.bf16 %v1064_v45, %v1063_v44  ;;  %3367 = vmatpush3.bf16.msra.mxu0 %v3364_v43 }
 0x121   :  { %3369 = vmatprep.subr.bf16.mxu0 %v3368_v49 }
 0x122   :  { %3130 = vmatprep.mubr.msk.f32.mxu1 %vm549_vm1, %v434_v26  ;;  %v3509_v28 = vpop.eup %3508 }
 0x123   :  { %3131 = vmatmul.mubr.msk.f32.gmra.mrb[4].mxu1 %vm549_vm1, %v435_v27  ;;  %v437_v31 = vmul.f32 %v3509_v28, %v381_v51  ;;  %3144 = vmatmul.mubr.msk.f32.gmra.mrb[10].mxu0 %vm108_vm0, %v3927_v9 }
 0x124   :  { %3146 = vmatprep.mubr.msk.f32.mxu0 %vm108_vm0, %v3932_v10  ;;  %3371 = vmatpush3.bf16.msra.mxu0 %v3368_v49 }
 0x125   :  { %v3511_v29 = vpop.eup %3510 }
 0x126   :  { %v436_v30 = vmul.f32 %v3511_v29, %v380_v53 }
 0x127   :  { %3147 = vmatmul.mubr.msk.f32.gmra.mrb[12].mxu0 %vm108_vm0, %v3941_v11 }
 0x128   :  { %3133 = vmatprep.mubr.msk.f32.mxu1 %vm549_vm1, %v436_v30  ;;  %3149 = vmatprep.mubr.msk.f32.mxu0 %vm108_vm0, %v3946_v12 }
 0x129   :  { %3134 = vmatmul.mubr.msk.f32.gmra.mrb[6].mxu1 %vm549_vm1, %v437_v31 }
 0x12a   :  { %3176 = vmatprep.mubr.msk.f32.mxu1 %vm108_vm0, %v3898_v2 }
 0x12b   :  { %3150 = vmatmul.mubr.msk.f32.gmra.mrb[14].mxu0 %vm108_vm0, %v3955_v13 }
 0x12d   :  { %3177 = vmatmul.mubr.msk.f32.vlgmr.msra.gmra.mrb[8].mxu1 %vm108_vm0, %v3913_v7 }
 0x12e   :  { %3179 = vmatprep.mubr.msk.f32.mxu1 %vm108_vm0, %v3918_v8  ;;  %3379 = vmatpush3.bf16.msra.mxu1 %v3376_v41 }
 0x12f   :  { %3381 = vmatprep.subr.bf16.mxu1 %v3380_v47 }
 0x131   :  { %3180 = vmatmul.mubr.msk.f32.gmra.mrb[10].mxu1 %vm108_vm0, %v3927_v9 }
 0x132   :  { %3182 = vmatprep.mubr.msk.f32.mxu1 %vm108_vm0, %v3932_v10  ;;  %3383 = vmatpush3.bf16.msra.mxu1 %v3380_v47 }
 0x135   :  { %3183 = vmatmul.mubr.msk.f32.gmra.mrb[12].mxu1 %vm108_vm0, %v3941_v11 }
 0x136   :  { %3185 = vmatprep.mubr.msk.f32.mxu1 %vm108_vm0, %v3946_v12 }
 0x139   :  { %3186 = vmatmul.mubr.msk.f32.gmra.mrb[14].mxu1 %vm108_vm0, %v3955_v13 }
 0x1ee   :  { %v3126_v51 = vpop.f32.mrb[0].mxu1 }
 0x1ef   :  { %v687_v52 = vadd.f32 %v3126_v51, %v2741_v50  ;;  %v640_v53 = vpop.f32.mrb[1].mxu1  ;;  %v1397_v51 = vld [vmem:[%s4661_s3] sm:$0xff] }
 0x1f0   :  { %v686_v54 = vadd.f32 %v2741_v50, %v640_v53 }
 0x1f1   :  { %v2743_v55 = vmul.f32 -1.442695, %v687_v52 }
 0x1f2   :  { %v2742_v56 = vmul.f32 -1.442695, %v686_v54  ;;  %v3129_v57 = vpop.f32.mrb[2].mxu1 }
 0x1f3   :  { %3512 = vpow2.f32 %v2743_v55  ;;  %v689_v58 = vadd.f32 %v3129_v57, %v2741_v50  ;;  %v650_v59 = vpop.f32.mrb[3].mxu1 }
 0x1f4   :  { %3514 = vpow2.f32 %v2742_v56  ;;  %v688_v60 = vadd.f32 %v2741_v50, %v650_v59 }
 0x1f5   :  { %v2745_v61 = vmul.f32 -1.442695, %v689_v58 }
 0x1f6   :  { %v2744_v62 = vmul.f32 -1.442695, %v688_v60  ;;  %v3132_v63 = vpop.f32.mrb[4].mxu1 }
 0x1f7   :  { %3516 = vpow2.f32 %v2745_v61  ;;  %v691_v0 = vadd.f32 %v3132_v63, %v2741_v50  ;;  %v660_v1 = vpop.f32.mrb[5].mxu1 }
 0x1f8   :  { %3518 = vpow2.f32 %v2744_v62  ;;  %v690_v3 = vadd.f32 %v2741_v50, %v660_v1 }
 0x1f9   :  { %v2747_v4 = vmul.f32 -1.442695, %v691_v0 }
 0x1fa   :  { %v2746_v5 = vmul.f32 -1.442695, %v690_v3 }
 0x1fb   :  { %3520 = vpow2.f32 %v2747_v4 }
 0x1fc   :  { %3522 = vpow2.f32 %v2746_v5  ;;  %v3135_v6 = vpop.f32.mrb[6].mxu1 }
 0x1fd   :  { %v3513_v14 = vpop.eup %3512  ;;  %v693_v15 = vadd.f32 %v3135_v6, %v2741_v50  ;;  %v670_v16 = vpop.f32.mrb[7].mxu1 }
 0x1fe   :  { %v3515_v17 = vpop.eup %3514  ;;  %v719_v18 = vadd.f32 1.0, %v3513_v14  ;;  %v692_v19 = vadd.f32 %v2741_v50, %v670_v16 }
 0x1ff   :  { %v718_v20 = vadd.f32 1.0, %v3515_v17  ;;  %v2749_v21 = vmul.f32 -1.442695, %v693_v15 }
 0x200   :  { %3524 = vrcp.f32 %v719_v18  ;;  %v2748_v22 = vmul.f32 -1.442695, %v692_v19 }
 0x201   :  { %v3517_v23 = vpop.eup %3516  ;;  %3526 = vrcp.f32 %v718_v20 }
 0x202   :  { %v3519_v24 = vpop.eup %3518  ;;  %v721_v25 = vadd.f32 1.0, %v3517_v23  ;;  %3528 = vpow2.f32 %v2749_v21 }
 0x203   :  { %v720_v26 = vadd.f32 1.0, %v3519_v24  ;;  %3530 = vpow2.f32 %v2748_v22 }
 0x204   :  { %3532 = vrcp.f32 %v721_v25 }
 0x205   :  { %v3521_v27 = vpop.eup %3520  ;;  %3534 = vrcp.f32 %v720_v26 }
 0x206   :  { %v3523_v28 = vpop.eup %3522  ;;  %v723_v29 = vadd.f32 1.0, %v3521_v27 }
 0x207   :  { %v722_v30 = vadd.f32 1.0, %v3523_v28 }
 0x208   :  { %3536 = vrcp.f32 %v723_v29 }
 0x209   :  { %3538 = vrcp.f32 %v722_v30 }
 0x20a   :  { %v3525_v31 = vpop.eup %3524 }
 0x20b   :  { %v3527_v32 = vpop.eup %3526  ;;  %v743_v36 = vmul.f32 %v3525_v31, %v687_v52  ;;  %v1398_v52 = vld [vmem:[%s4661_s3 + $0x8] sm:$0xff] }
 0x20c   :  { %v3529_v33 = vpop.eup %3528  ;;  %v742_v34 = vmul.f32 %v3527_v32, %v686_v54  ;;  %v3384_v53 = vpack.c.bf16 %v1398_v52, %v1397_v51 }
 0x20d   :  { %v3531_v35 = vpop.eup %3530  ;;  %v725_v37 = vadd.f32 1.0, %v3529_v33 }
 0x20e   :  { %v3533_v38 = vpop.eup %3532  ;;  %v724_v39 = vadd.f32 1.0, %v3531_v35  ;;  %3160 = vmatprep.mubr.msk.f32.mxu0 %vm549_vm1, %v742_v34  ;;  %3196 = vmatprep.mubr.msk.f32.mxu1 %vm549_vm1, %v742_v34 }
 0x20f   :  { %v3535_v40 = vpop.eup %3534  ;;  %3540 = vrcp.f32 %v725_v37  ;;  %3161 = vmatmul.mubr.msk.f32.vlgmr.msra.gmra.mrb[8].mxu0 %vm549_vm1, %v743_v36  ;;  %3197 = vmatmul.mubr.msk.f32.vlgmr.msra.gmra.mrb[8].mxu1 %vm549_vm1, %v743_v36  ;;  %v745_v42 = vmul.f32 %v3533_v38, %v689_v58 }
 0x210   :  { %v744_v41 = vmul.f32 %v3535_v40, %v688_v60  ;;  %3542 = vrcp.f32 %v724_v39  ;;  %3385 = vmatprep.subr.bf16.mxu0 %v3384_v53 }
 0x211   :  { %3387 = vmatpush3.bf16.msra.mxu0 %v3384_v53 }
 0x212   :  { %v3537_v43 = vpop.eup %3536  ;;  %3163 = vmatprep.mubr.msk.f32.mxu0 %vm549_vm1, %v744_v41  ;;  %3199 = vmatprep.mubr.msk.f32.mxu1 %vm549_vm1, %v744_v41 }
 0x213   :  { %v3539_v44 = vpop.eup %3538  ;;  %3164 = vmatmul.mubr.msk.f32.gmra.mrb[10].mxu0 %vm549_vm1, %v745_v42  ;;  %3200 = vmatmul.mubr.msk.f32.gmra.mrb[10].mxu1 %vm549_vm1, %v745_v42  ;;  %v747_v46 = vmul.f32 %v3537_v43, %v691_v0 }
 0x214   :  { %v746_v45 = vmul.f32 %v3539_v44, %v690_v3 }
 0x216   :  { %3166 = vmatprep.mubr.msk.f32.mxu0 %vm549_vm1, %v746_v45  ;;  %3202 = vmatprep.mubr.msk.f32.mxu1 %vm549_vm1, %v746_v45 }
 0x217   :  { %3167 = vmatmul.mubr.msk.f32.gmra.mrb[12].mxu0 %vm549_vm1, %v747_v46  ;;  %3203 = vmatmul.mubr.msk.f32.gmra.mrb[12].mxu1 %vm549_vm1, %v747_v46 }
 0x219   :  { %v3541_v47 = vpop.eup %3540 }
 0x21a   :  { %v3543_v48 = vpop.eup %3542  ;;  %v749_v50 = vmul.f32 %v3541_v47, %v693_v15 }
 0x21b   :  { %v748_v49 = vmul.f32 %v3543_v48, %v692_v19 }
 0x21d   :  { %3169 = vmatprep.mubr.msk.f32.mxu0 %vm549_vm1, %v748_v49  ;;  %3205 = vmatprep.mubr.msk.f32.mxu1 %vm549_vm1, %v748_v49 }
 0x21e   :  { %3170 = vmatmul.mubr.msk.f32.gmra.mrb[14].mxu0 %vm549_vm1, %v749_v50  ;;  %3206 = vmatmul.mubr.msk.f32.gmra.mrb[14].mxu1 %vm549_vm1, %v749_v50 }
 0x21f   :  { %3212 = vmatprep.mubr.msk.f32.mxu0 %vm108_vm0, %v3898_v2  ;;  %3242 = vmatprep.mubr.msk.f32.mxu1 %vm108_vm0, %v3898_v2  ;;  %v1396_v2 = vld [vmem:[%s4609_s15] sm:$0xff] }
 0x220   :  { %3224 = vmatprep.subr.mxu0 %v1396_v2 }
 0x222   :  { %3213 = vmatmul.mubr.msk.f32.vlgmr.msra.gmra.mrb[16].mxu0 %vm108_vm0, %v3913_v7  ;;  %v4151_v7 = vld [vmem:[%s4610_s11] ss:$0 sm:$0xff] }
 0x223   :  { %3215 = vmatprep.mubr.msk.f32.mxu0 %vm108_vm0, %v3918_v8  ;;  %3225 = vmatpush3.msra.mxu0 %v1396_v2  ;;  %v4156_v8 = vld [vmem:[%s4611_s14] ss:$0 sm:$0xff] }
 0x226   :  { %3216 = vmatmul.mubr.msk.f32.gmra.mrb[18].mxu0 %vm108_vm0, %v3927_v9 }
 0x227   :  { %3218 = vmatprep.mubr.msk.f32.mxu0 %vm108_vm0, %v3932_v10 }
 0x22a   :  { %3219 = vmatmul.mubr.msk.f32.gmra.mrb[20].mxu0 %vm108_vm0, %v3941_v11 }
 0x22b   :  { %3221 = vmatprep.mubr.msk.f32.mxu0 %vm108_vm0, %v3946_v12 }
 0x22e   :  { %3222 = vmatmul.mubr.msk.f32.gmra.mrb[22].mxu0 %vm108_vm0, %v3955_v13 }
 0x2e2   :  { %v3162_v9 = vpop.f32.mrb[8].mxu0  ;;  %v3198_v10 = vpop.f32.mrb[8].mxu1 }
 0x2e3   :  { %v4159_v11 = vadd.f32 %v3162_v9, %v4151_v7  ;;  %v4162_v12 = vadd.f32 %v3198_v10, %v4156_v8  ;;  %v951_v13 = vpop.f32.mrb[9].mxu0  ;;  %v1238_v54 = vpop.f32.mrb[9].mxu1 }
 0x2e4   :  { %v4165_v55 = vadd.f32 %v4151_v7, %v951_v13  ;;  %v4168_v56 = vadd.f32 %v4156_v8, %v1238_v54 }
 0x2e5   :  { %v2768_v57 = vmul.f32 -1.442695, %v4159_v11  ;;  %v2793_v58 = vmul.f32 -1.442695, %v4162_v12 }
 0x2e6   :  { %v2767_v59 = vmul.f32 -1.442695, %v4165_v55  ;;  %v2792_v60 = vmul.f32 -1.442695, %v4168_v56  ;;  %v3165_v61 = vpop.f32.mrb[10].mxu0  ;;  %v3201_v62 = vpop.f32.mrb[10].mxu1 }
 0x2e7   :  { %3544 = vpow2.f32 %v2768_v57  ;;  %v4175_v63 = vadd.f32 %v3165_v61, %v4151_v7  ;;  %v4178_v0 = vadd.f32 %v3201_v62, %v4156_v8  ;;  %v961_v1 = vpop.f32.mrb[11].mxu0  ;;  %v1248_v3 = vpop.f32.mrb[11].mxu1 }
 0x2e8   :  { %3546 = vpow2.f32 %v2793_v58  ;;  %v4181_v4 = vadd.f32 %v4151_v7, %v961_v1  ;;  %v4184_v5 = vadd.f32 %v4156_v8, %v1248_v3 }
 0x2e9   :  { %3548 = vpow2.f32 %v2767_v59  ;;  %v2770_v6 = vmul.f32 -1.442695, %v4175_v63  ;;  %v2795_v14 = vmul.f32 -1.442695, %v4178_v0 }
 0x2ea   :  { %3550 = vpow2.f32 %v2792_v60  ;;  %v2769_v15 = vmul.f32 -1.442695, %v4181_v4  ;;  %v2794_v16 = vmul.f32 -1.442695, %v4184_v5  ;;  %v3168_v17 = vpop.f32.mrb[12].mxu0  ;;  %v3204_v18 = vpop.f32.mrb[12].mxu1 }
 0x2eb   :  { %3552 = vpow2.f32 %v2770_v6  ;;  %v4191_v19 = vadd.f32 %v3168_v17, %v4151_v7  ;;  %v4194_v20 = vadd.f32 %v3204_v18, %v4156_v8  ;;  %v971_v21 = vpop.f32.mrb[13].mxu0  ;;  %v1258_v22 = vpop.f32.mrb[13].mxu1 }
 0x2ec   :  { %3554 = vpow2.f32 %v2795_v14  ;;  %v4197_v23 = vadd.f32 %v4151_v7, %v971_v21  ;;  %v4200_v24 = vadd.f32 %v4156_v8, %v1258_v22 }
 0x2ed   :  { %3556 = vpow2.f32 %v2769_v15  ;;  %v2772_v25 = vmul.f32 -1.442695, %v4191_v19  ;;  %v2797_v26 = vmul.f32 -1.442695, %v4194_v20 }
 0x2ee   :  { %3558 = vpow2.f32 %v2794_v16  ;;  %v2771_v27 = vmul.f32 -1.442695, %v4197_v23  ;;  %v2796_v28 = vmul.f32 -1.442695, %v4200_v24 }
 0x2ef   :  { %3560 = vpow2.f32 %v2772_v25 }
 0x2f0   :  { %3562 = vpow2.f32 %v2797_v26 }
 0x2f1   :  { %v3545_v29 = vpop.eup %3544  ;;  %3564 = vpow2.f32 %v2771_v27  ;;  %v3171_v30 = vpop.f32.mrb[14].mxu0 }
 0x2f2   :  { %v3207_v31 = vpop.f32.mrb[14].mxu1  ;;  %v3547_v32 = vpop.eup %3546  ;;  %v1030_v33 = vadd.f32 1.0, %v3545_v29  ;;  %3566 = vpow2.f32 %v2796_v28  ;;  %v4210_v53 = vadd.f32 %v3171_v30, %v4151_v7 }
 0x2f3   :  { %v981_v34 = vpop.f32.mrb[15].mxu0  ;;  %v1268_v35 = vpop.f32.mrb[15].mxu1  ;;  %v1317_v37 = vadd.f32 1.0, %v3547_v32  ;;  %v4207_v50 = vadd.f32 %v3207_v31, %v4156_v8 }
 0x2f4   :  { %v3549_v36 = vpop.eup %3548  ;;  %v4213_v10 = vadd.f32 %v4156_v8, %v1268_v35  ;;  %v4217_v59 = vadd.f32 %v4151_v7, %v981_v34  ;;  %v2774_v60 = vmul.f32 -1.442695, %v4210_v53 }
 0x2f5   :  { %v3551_v38 = vpop.eup %3550  ;;  %v1029_v39 = vadd.f32 1.0, %v3549_v36  ;;  %3568 = vrcp.f32 %v1317_v37  ;;  %v2799_v58 = vmul.f32 -1.442695, %v4207_v50 }
 0x2f6   :  { %v3553_v40 = vpop.eup %3552  ;;  %v1316_v41 = vadd.f32 1.0, %v3551_v38  ;;  %3570 = vrcp.f32 %v1030_v33  ;;  %v2798_v62 = vmul.f32 -1.442695, %v4213_v10  ;;  %v2773_v6 = vmul.f32 -1.442695, %v4217_v59 }
 0x2f7   :  { %v3555_v42 = vpop.eup %3554  ;;  %v1032_v43 = vadd.f32 1.0, %v3553_v40 }
 0x2f8   :  { %v3557_v44 = vpop.eup %3556  ;;  %3572 = vrcp.f32 %v1316_v41  ;;  %v1319_v45 = vadd.f32 1.0, %v3555_v42 }
 0x2f9   :  { %v3559_v46 = vpop.eup %3558  ;;  %3574 = vrcp.f32 %v1029_v39  ;;  %v1031_v47 = vadd.f32 1.0, %v3557_v44 }
 0x2fa   :  { %v3561_v48 = vpop.eup %3560  ;;  %3576 = vrcp.f32 %v1319_v45  ;;  %v1318_v49 = vadd.f32 1.0, %v3559_v46 }
 0x2fb   :  { %v3563_v51 = vpop.eup %3562  ;;  %3578 = vrcp.f32 %v1032_v43  ;;  %v1034_v52 = vadd.f32 1.0, %v3561_v48 }
 0x2fc   :  { %v3565_v2 = vpop.eup %3564  ;;  %3580 = vrcp.f32 %v1318_v49  ;;  %v1321_v9 = vadd.f32 1.0, %v3563_v51 }
 0x2fd   :  { %v3567_v13 = vpop.eup %3566  ;;  %3582 = vrcp.f32 %v1031_v47  ;;  %v1033_v54 = vadd.f32 1.0, %v3565_v2 }
 0x2fe   :  { %3584 = vrcp.f32 %v1321_v9  ;;  %v1320_v57 = vadd.f32 1.0, %v3567_v13 }
 0x2ff   :  { %3586 = vrcp.f32 %v1034_v52  ;;  %v3569_v61 = vpop.eup %3568 }
 0x300   :  { %3588 = vrcp.f32 %v1320_v57  ;;  %v3571_v1 = vpop.eup %3570  ;;  %v4222_v8 = vmul.f32 %v3569_v61, %v4162_v12 }
 0x301   :  { %3590 = vrcp.f32 %v1033_v54  ;;  %v4236_v28 = vmul.f32 %v3571_v1, %v4159_v11 }
 0x302   :  { %v3573_v3 = vpop.eup %3572  ;;  %3592 = vpow2.f32 %v2799_v58  ;;  %v1349_v7 = vmul.f32 0.5, %v4222_v8  ;;  %v2605_v15 = vmul.f32 1.442695, %v4222_v8  ;;  %v1372_v58 = vld [vmem:[%s4612_s2] sm:$0xff] }
 0x303   :  { %v3575_v14 = vpop.eup %3574  ;;  %v4228_v16 = vmul.f32 %v3573_v3, %v4168_v56  ;;  %3594 = vpow2.f32 %v2774_v60  ;;  %v2620_v37 = vmul.f32 %v4236_v28, %v4236_v28 }
 0x304   :  { %v3577_v17 = vpop.eup %3576  ;;  %3596 = vpow2.f32 %v2798_v62  ;;  %v1358_v21 = vmul.f32 1.442695, %v1349_v7  ;;  %v1053_v41 = vmul.f32 %v3575_v14, %v4165_v55 }
 0x305   :  { %v3579_v18 = vpop.eup %3578  ;;  %3598 = vpow2.f32 %v2605_v15  ;;  %v1348_v12 = vmul.f32 0.5, %v4228_v16  ;;  %v2603_v22 = vmul.f32 1.442695, %v4228_v16  ;;  %v4233_v26 = vmul.f32 %v3577_v17, %v4178_v0 }
 0x306   :  { %v3581_v25 = vpop.eup %3580  ;;  %3600 = vpow2.f32 %v2773_v6  ;;  %v2619_v13 = vmul.f32 %v1053_v41, %v1053_v41  ;;  %v2595_v3 = vmul.f32 -0.5, %v4228_v16 }
 0x307   :  { %v3583_v27 = vpop.eup %3582  ;;  %3602 = vpow2.f32 %v1358_v21  ;;  %v1356_v56 = vmul.f32 1.442695, %v1348_v12  ;;  %v4239_v29 = vmul.f32 %v3581_v25, %v4184_v5  ;;  %v1351_v31 = vmul.f32 0.5, %v4233_v26 }
 0x308   :  { %v3585_v30 = vpop.eup %3584  ;;  %3604 = vpow2.f32 %v2603_v22  ;;  %v2609_v32 = vmul.f32 1.442695, %v4233_v26  ;;  %v1375_v22 = vld [vmem:[%s4612_s2 + $0x18] sm:$0xff] }
 0x309   :  { %v3587_v33 = vpop.eup %3586  ;;  %3606 = vpow2.f32 %v1356_v56  ;;  %v1350_v0 = vmul.f32 0.5, %v4239_v29  ;;  %v2607_v34 = vmul.f32 1.442695, %v4239_v29  ;;  %v1362_v11 = vmul.f32 1.442695, %v1351_v31 }
 0x30a   :  { %v3589_v35 = vpop.eup %3588  ;;  %3608 = vpow2.f32 %v2609_v32  ;;  %v4246_v36 = vmul.f32 %v3585_v30, %v4194_v20  ;;  %v4257_v20 = vmul.f32 %v3579_v18, %v4175_v63  ;;  %v4265_v55 = vmul.f32 %v3587_v33, %v4191_v19  ;;  %v1373_v63 = vld [vmem:[%s4612_s2 + $0x8] sm:$0xff] }
 0x30b   :  { %v3591_v5 = vpop.eup %3590  ;;  %v1360_v38 = vmul.f32 1.442695, %v1350_v0  ;;  %3610 = vpow2.f32 %v2607_v34  ;;  %v4251_v39 = vmul.f32 %v3589_v35, %v4200_v24  ;;  %v4262_v24 = vmul.f32 %v3583_v27, %v4181_v4  ;;  %v1374_v27 = vld [vmem:[%s4612_s2 + $0x10] sm:$0xff] }
 0x30c   :  { %v3593_v40 = vpop.eup %3592  ;;  %3612 = vpow2.f32 %v1362_v11  ;;  %v1353_v42 = vmul.f32 0.5, %v4246_v36  ;;  %v2613_v43 = vmul.f32 1.442695, %v4246_v36  ;;  %v4271_v51 = vmul.f32 %v3591_v5, %v4197_v23 }
 0x30d   :  { %v3595_v44 = vpop.eup %3594  ;;  %3614 = vpow2.f32 %v1360_v38  ;;  %v1352_v45 = vmul.f32 0.5, %v4251_v39  ;;  %v2611_v46 = vmul.f32 1.442695, %v4251_v39  ;;  %v1323_v2 = vadd.f32 1.0, %v3593_v40 }
 0x30e   :  { %v3597_v47 = vpop.eup %3596  ;;  %v1366_v48 = vmul.f32 1.442695, %v1353_v42  ;;  %3616 = vpow2.f32 %v2613_v43  ;;  %v2622_v54 = vmul.f32 %v4257_v20, %v4257_v20  ;;  %v2596_v23 = vmul.f32 -0.5, %v4222_v8 }
 0x30f   :  { %v3599_v49 = vpop.eup %3598  ;;  %v1364_v52 = vmul.f32 1.442695, %v1352_v45  ;;  %3618 = vpow2.f32 %v2611_v46  ;;  %v1322_v57 = vadd.f32 1.0, %v3597_v47  ;;  %v2621_v62 = vmul.f32 %v4262_v24, %v4262_v24  ;;  %v1376_v47 = vld [vmem:[%s4612_s2 + $0x20] sm:$0xff] }
 0x310   :  { %v3601_v9 = vpop.eup %3600  ;;  %3620 = vpow2.f32 %v1366_v48  ;;  %v2628_v4 = vadd.f32 %v3599_v49, %v2620_v37  ;;  %v2624_v14 = vmul.f32 %v4265_v55, %v4265_v55  ;;  %v2623_v7 = vmul.f32 %v4271_v51, %v4271_v51 }
 0x311   :  { %v3603_v19 = vpop.eup %3602  ;;  %3622 = vpow2.f32 %v1364_v52  ;;  %v1036_v18 = vadd.f32 1.0, %v3595_v44  ;;  %v1035_v25 = vadd.f32 1.0, %v3601_v9  ;;  %v2598_v0 = vmul.f32 -0.5, %v4233_v26 }
 0x312   :  { %v3605_v60 = vpop.eup %3604  ;;  %v1381_v61 = vmul.f32 %v3603_v19, %v1373_v63  ;;  %v2636_v1 = vmul.f32 0.5, %v2628_v4  ;;  %3624 = vrcp.f32 %v1323_v2  ;;  %v2597_v37 = vmul.f32 -0.5, %v4239_v29 }
 0x313   :  { %v3607_v6 = vpop.eup %3606  ;;  %v2627_v15 = vadd.f32 %v3605_v60, %v2619_v13  ;;  %3626 = vrcp.f32 %v1322_v57  ;;  %v2599_v26 = vmul.f32 -0.5, %v4251_v39  ;;  %v2600_v4 = vmul.f32 -0.5, %v4246_v36 }
 0x314   :  { %v3609_v17 = vpop.eup %3608  ;;  %v1380_v8 = vmul.f32 %v3607_v6, %v1372_v58  ;;  %v1389_v21 = vadd.f32 %v1381_v61, %v4236_v28  ;;  %v2644_v12 = vadd.f32 %v2636_v1, %v2596_v23  ;;  %3628 = vrcp.f32 %v1036_v18 }
 0x315   :  { %v3611_v16 = vpop.eup %3610  ;;  %v2635_v56 = vmul.f32 0.5, %v2627_v15  ;;  %v2630_v30 = vadd.f32 %v3609_v17, %v2622_v54  ;;  %3630 = vrcp.f32 %v1035_v25 }
 0x316   :  { %v3613_v31 = vpop.eup %3612  ;;  %v1388_v32 = vadd.f32 %v1380_v8, %v1053_v41  ;;  %v2893_v33 = vadd.f32 -0.5, %v2644_v12  ;;  %v2629_v28 = vadd.f32 %v3611_v16, %v2621_v62  ;;  %v1377_v41 = vld [vmem:[%s4612_s2 + $0x28] sm:$0xff] }
 0x317   :  { %v3615_v34 = vpop.eup %3614  ;;  %v1383_v35 = vmul.f32 %v3613_v31, %v1375_v22  ;;  %v2643_v11 = vadd.f32 %v2635_v56, %v2595_v3  ;;  %v2638_v5 = vmul.f32 0.5, %v2630_v30  ;;  %v1379_v30 = vld [vmem:[%s4612_s2 + $0x38] sm:$0xff] }
 0x318   :  { %v3617_v38 = vpop.eup %3616  ;;  %3226 = vmatprep.mubr.msk.f32.mxu0 %vm1504_vm2, %v1388_v32  ;;  %v2662_v40 = vsel %vm1504_vm2, %v2893_v33, 0.0  ;;  %v1382_v42 = vmul.f32 %v3615_v34, %v1374_v27  ;;  %v2637_v43 = vmul.f32 0.5, %v2629_v28 }
 0x319   :  { %v3619_v44 = vpop.eup %3618  ;;  %3227 = vmatmul.mubr.msk.f32.vlgmr.msra.gmra.mrb[16].mxu0 %vm1504_vm2, %v1389_v21  ;;  %2663 = vadd.xlane.f32.xlu0 %v2662_v40  ;;  %v1391_v45 = vadd.f32 %v1383_v35, %v4257_v20  ;;  %v2892_v29 = vadd.f32 -0.5, %v2643_v11  ;;  %v2646_v46 = vadd.f32 %v2638_v5, %v2598_v0  ;;  %v2632_v48 = vadd.f32 %v3617_v38, %v2624_v14  ;;  %v1378_v0 = vld [vmem:[%s4612_s2 + $0x30] sm:$0xff] }
 0x31a   :  { %v3621_v49 = vpop.eup %3620  ;;  %v1390_v63 = vadd.f32 %v1382_v42, %v4262_v24  ;;  %v2645_v52 = vadd.f32 %v2637_v43, %v2597_v37  ;;  %v2631_v2 = vadd.f32 %v3619_v44, %v2623_v7 }
 0x31b   :  { %v3623_v39 = vpop.eup %3622  ;;  %v2895_v9 = vadd.f32 -0.5, %v2646_v46  ;;  %v1385_v13 = vmul.f32 %v3621_v49, %v1377_v41  ;;  %v2640_v19 = vmul.f32 0.5, %v2632_v48  ;;  %v2659_v20 = vsel %vm1504_vm2, %v2892_v29, 0.0  ;;  %v4335_v29 = vld [vmem:[%s4650_s1] sm:$0xff]  ;;  %v1651_v48 = vld [vmem:[%s4613_s19 + $0x8] sm:$0xff] }
 0x31c   :  { %3229 = vmatprep.mubr.msk.f32.mxu0 %vm1504_vm2, %v1390_v63  ;;  %v1384_v54 = vmul.f32 %v3623_v39, %v1376_v47  ;;  %v2639_v57 = vmul.f32 0.5, %v2631_v2  ;;  %v3625_v58 = vpop.eup %3624  ;;  %v2894_v60 = vadd.f32 -0.5, %v2645_v52  ;;  %v1650_v47 = vld [vmem:[%s4613_s19] sm:$0xff]  ;;  %v4352_v52 = vld [vmem:[%s4650_s1 + $0x8] sm:$0xff]  ;;  %v4359_v2 = vld [vmem:[%s4650_s1 + $0x10] sm:$0xff] }
 0x31d   :  { %3230 = vmatmul.mubr.msk.f32.gmra.mrb[18].mxu0 %vm1504_vm2, %v1391_v45  ;;  %2660 = vadd.xlane.f32.xlu0 %v2659_v20  ;;  %v2668_v24 = vsel %vm1504_vm2, %v2895_v9, 0.0  ;;  %v1393_v23 = vadd.f32 %v1385_v13, %v4265_v55  ;;  %v2648_v61 = vadd.f32 %v2640_v19, %v2600_v4  ;;  %v1347_v36 = vmul.f32 %v3625_v58, %v4207_v50  ;;  %v3627_v3 = vpop.eup %3626  ;;  %v1649_v63 = vld [vmem:[%s4614_s18] sm:$0xff]  ;;  %v4366_v39 = vld [vmem:[%s4650_s1 + $0x18] sm:$0xff]  ;;  %v4380_v13 = vld [vmem:[%s4650_s1 + $0x28] sm:$0xff] }
 0x31e   :  { %2669 = vadd.xlane.f32.xlu1 %v2668_v24  ;;  %v1392_v62 = vadd.f32 %v1384_v54, %v4271_v51  ;;  %v2647_v1 = vadd.f32 %v2639_v57, %v2599_v26  ;;  %v1346_v7 = vmul.f32 %v3627_v3, %v4213_v10  ;;  %v2665_v55 = vsel %vm1504_vm2, %v2894_v60, 0.0  ;;  %v3629_v21 = vpop.eup %3628  ;;  %v4373_v9 = vld [vmem:[%s4650_s1 + $0x20] sm:$0xff]  ;;  %v4387_v4 = vld [vmem:[%s4650_s1 + $0x30] sm:$0xff]  ;;  %v4394_v19 = vld [vmem:[%s4650_s1 + $0x38] sm:$0xff] }
 0x31f   :  { %v1355_v6 = vmul.f32 0.5, %v1347_v36  ;;  %v2617_v14 = vmul.f32 1.442695, %v1347_v36  ;;  %v2897_v17 = vadd.f32 -0.5, %v2648_v61  ;;  %v3631_v22 = vpop.eup %3630  ;;  %v1060_v16 = vmul.f32 %v3629_v21, %v4210_v53 }
 0x320   :  { %3232 = vmatprep.mubr.msk.f32.mxu0 %vm1504_vm2, %v1392_v62  ;;  %v2896_v15 = vadd.f32 -0.5, %v2647_v1  ;;  %v1354_v50 = vmul.f32 0.5, %v1346_v7  ;;  %v2615_v8 = vmul.f32 1.442695, %v1346_v7  ;;  %v1059_v25 = vmul.f32 %v3631_v22, %v4217_v59  ;;  %v1961_v22 = vld [vmem:[%s4617_s22] sm:$0xff] }
 0x321   :  { %3233 = vmatmul.mubr.msk.f32.gmra.mrb[20].mxu0 %vm1504_vm2, %v1393_v23  ;;  %v1370_v18 = vmul.f32 1.442695, %v1355_v6  ;;  %3632 = vpow2.f32 %v2617_v14  ;;  %v2674_v10 = vsel %vm1504_vm2, %v2897_v17, 0.0  ;;  %v2626_v27 = vmul.f32 %v1060_v16, %v1060_v16 }
 0x322   :  { %2666 = vadd.xlane.f32.xlu1 %v2665_v55  ;;  %v2671_v51 = vsel %vm1504_vm2, %v2896_v15, 0.0  ;;  %v1368_v12 = vmul.f32 1.442695, %v1354_v50  ;;  %v2625_v33 = vmul.f32 %v1059_v25, %v1059_v25  ;;  %v2602_v35 = vmul.f32 -0.5, %v1347_v36  ;;  %v2816_v36 = vld [vmem:[%s4616_s17] ss:$0 sm:$0xff] }
 0x323   :  { %3634 = vpow2.f32 %v1370_v18  ;;  %2672 = vadd.xlane.f32.xlu0 %v2671_v51  ;;  %v2601_v40 = vmul.f32 -0.5, %v1346_v7  ;;  %v3388_v49 = vpack.c.bf16 %v1651_v48, %v1650_v47 }
 0x324   :  { %3636 = vpow2.f32 %v2615_v8 }
 0x325   :  { %3638 = vpow2.f32 %v1368_v12  ;;  %3389 = vmatprep.subr.bf16.mxu1 %v3388_v49 }
 0x326   :  { %2675 = vadd.xlane.f32.xlu1 %v2674_v10  ;;  %3391 = vmatpush3.bf16.msra.mxu1 %v3388_v49 }
 0x327   :  { %3254 = vmatprep.subr.mxu1 %v1649_v63 }
 0x329   :  { %3243 = vmatmul.mubr.msk.f32.vlgmr.msra.gmra.mrb[16].mxu1 %vm108_vm0, %v4352_v52 }
 0x32a   :  { %3255 = vmatpush3.msra.mxu1 %v1649_v63  ;;  %3245 = vmatprep.mubr.msk.f32.mxu1 %vm108_vm0, %v4359_v2 }
 0x32b   :  { %v3633_v56 = vpop.eup %3632 }
 0x32c   :  { %v2634_v31 = vadd.f32 %v3633_v56, %v2626_v27  ;;  %v1957_v27 = vld [vmem:[%s4618_s21] sm:$0xff]  ;;  %v1958_v56 = vld [vmem:[%s4618_s21 + $0x8] sm:$0xff] }
 0x32d   :  { %v3635_v32 = vpop.eup %3634  ;;  %3246 = vmatmul.mubr.msk.f32.gmra.mrb[18].mxu1 %vm108_vm0, %v4366_v39 }
 0x32e   :  { %v3637_v28 = vpop.eup %3636  ;;  %v1387_v34 = vmul.f32 %v3635_v32, %v1379_v30  ;;  %v2642_v11 = vmul.f32 0.5, %v2634_v31  ;;  %3248 = vmatprep.mubr.msk.f32.mxu1 %vm108_vm0, %v4373_v9  ;;  %v3396_v30 = vpack.c.bf16 %v1958_v56, %v1957_v27  ;;  %v1959_v31 = vld [vmem:[%s4618_s21 + $0x10] sm:$0xff]  ;;  %v1960_v32 = vld [vmem:[%s4618_s21 + $0x18] sm:$0xff] }
 0x32f   :  { %v3639_v53 = vpop.eup %3638  ;;  %v2633_v5 = vadd.f32 %v3637_v28, %v2625_v33  ;;  %v3400_v33 = vpack.c.bf16 %v1960_v32, %v1959_v31 }
 0x330   :  { %v1386_v59 = vmul.f32 %v3639_v53, %v1378_v0  ;;  %v1395_v37 = vadd.f32 %v1387_v34, %v1060_v16  ;;  %v2650_v38 = vadd.f32 %v2642_v11, %v2602_v35  ;;  %v1962_v16 = vld [vmem:[%s4617_s22 + $0x8] sm:$0xff]  ;;  %v2833_v0 = vld [vmem:[%s4619_s20] ss:$0 sm:$0xff] }
 0x331   :  { %v2641_v42 = vmul.f32 0.5, %v2633_v5  ;;  %3249 = vmatmul.mubr.msk.f32.gmra.mrb[20].mxu1 %vm108_vm0, %v4380_v13 }
 0x332   :  { %v1394_v41 = vadd.f32 %v1386_v59, %v1059_v25  ;;  %v2899_v43 = vadd.f32 -0.5, %v2650_v38  ;;  %3251 = vmatprep.mubr.msk.f32.mxu1 %vm108_vm0, %v4387_v4  ;;  %v3392_v25 = vpack.c.bf16 %v1962_v16, %v1961_v22 }
 0x333   :  { %v2649_v26 = vadd.f32 %v2641_v42, %v2601_v40 }
 0x334   :  { %3235 = vmatprep.mubr.msk.f32.mxu0 %vm1504_vm2, %v1394_v41  ;;  %v2680_v44 = vsel %vm1504_vm2, %v2899_v43, 0.0  ;;  %3393 = vmatprep.subr.bf16.mxu0 %v3392_v25 }
 0x335   :  { %3236 = vmatmul.mubr.msk.f32.gmra.mrb[22].mxu0 %vm1504_vm2, %v1395_v37  ;;  %v2898_v45 = vadd.f32 -0.5, %v2649_v26  ;;  %2681 = vadd.xlane.f32.xlu1 %v2680_v44 }
 0x336   :  { %3272 = vmatprep.mubr.msk.f32.mxu0 %vm108_vm0, %v4335_v29  ;;  %3252 = vmatmul.mubr.msk.f32.gmra.mrb[22].mxu1 %vm108_vm0, %v4394_v19 }
 0x337   :  { %v2677_v46 = vsel %vm1504_vm2, %v2898_v45, 0.0  ;;  %3395 = vmatpush3.bf16.msra.mxu0 %v3392_v25 }
 0x338   :  { %2678 = vadd.xlane.f32.xlu0 %v2677_v46  ;;  %3397 = vmatprep.subr.bf16.mxu0 %v3396_v30 }
 0x33a   :  { %3273 = vmatmul.mubr.msk.f32.vlgmr.msra.gmra.mrb[24].mxu0 %vm108_vm0, %v4352_v52 }
 0x33b   :  { %3275 = vmatprep.mubr.msk.f32.mxu0 %vm108_vm0, %v4359_v2  ;;  %3399 = vmatpush3.bf16.msra.mxu0 %v3396_v30 }
 0x33c   :  { %3401 = vmatprep.subr.bf16.mxu0 %v3400_v33 }
 0x33e   :  { %3276 = vmatmul.mubr.msk.f32.gmra.mrb[26].mxu0 %vm108_vm0, %v4366_v39 }
 0x33f   :  { %3278 = vmatprep.mubr.msk.f32.mxu0 %vm108_vm0, %v4373_v9  ;;  %3403 = vmatpush3.bf16.msra.mxu0 %v3400_v33 }
 0x342   :  { %3279 = vmatmul.mubr.msk.f32.gmra.mrb[28].mxu0 %vm108_vm0, %v4380_v13 }
 0x343   :  { %3281 = vmatprep.mubr.msk.f32.mxu0 %vm108_vm0, %v4387_v4 }
 0x346   :  { %3282 = vmatmul.mubr.msk.f32.gmra.mrb[30].mxu0 %vm108_vm0, %v4394_v19 }
 0x3a6   :  { %v2664_v20 = vpop.xlane.xlu0 %2663 }
 0x3a7   :  { %2685 = vst.msk [vmem:[%s4615_s28 + $0x8] sm:$0xff] %vm2683_vm3, %v2664_v20 }
 0x3aa   :  { %v2661_v54 = vpop.xlane.xlu0 %2660 }
 0x3ab   :  { %2684 = vst.msk [vmem:[%s4615_s28] sm:$0xff] %vm2683_vm3, %v2661_v54  ;;  %v2670_v57 = vpop.xlane.xlu1 %2669 }
 0x3ac   :  { %2687 = vst.msk [vmem:[%s4615_s28 + $0x18] sm:$0xff] %vm2683_vm3, %v2670_v57 }
 0x3af   :  { %v2667_v58 = vpop.xlane.xlu1 %2666 }
 0x3b0   :  { %2686 = vst.msk [vmem:[%s4615_s28 + $0x10] sm:$0xff] %vm2683_vm3, %v2667_v58  ;;  %v2673_v24 = vpop.xlane.xlu0 %2672 }
 0x3b1   :  { %2688 = vst.msk [vmem:[%s4615_s28 + $0x20] sm:$0xff] %vm2683_vm3, %v2673_v24 }
 0x3b3   :  { %v2676_v23 = vpop.xlane.xlu1 %2675 }
 0x3b4   :  { %2689 = vst.msk [vmem:[%s4615_s28 + $0x28] sm:$0xff] %vm2683_vm3, %v2676_v23 }
 0x3c2   :  { %v2682_v60 = vpop.xlane.xlu1 %2681 }
 0x3c3   :  { %2691 = vst.msk [vmem:[%s4615_s28 + $0x38] sm:$0xff] %vm2683_vm3, %v2682_v60 }
 0x3c5   :  { %v2679_v61 = vpop.xlane.xlu0 %2678 }
 0x3c6   :  { %2690 = vst.msk [vmem:[%s4615_s28 + $0x30] sm:$0xff] %vm2683_vm3, %v2679_v61 }
 0x3ec   :  { %v3228_v62 = vpop.f32.mrb[16].mxu0 }
 0x3ed   :  { %v1595_v1 = vpop.f32.mrb[17].mxu0  ;;  %v4435_v6 = vadd.f32 %v3228_v62, %v2816_v36 }
 0x3ee   :  { %v4433_v3 = vadd.f32 %v2816_v36, %v1595_v1 }
 0x3f0   :  { %v3231_v14 = vpop.f32.mrb[18].mxu0  ;;  %3256 = vmatprep.mubr.msk.f32.mxu1 %vm1504_vm2, %v4433_v3 }
 0x3f1   :  { %v1605_v7 = vpop.f32.mrb[19].mxu0  ;;  %3257 = vmatmul.mubr.msk.f32.vlgmr.msra.gmra.mrb[16].mxu1 %vm1504_vm2, %v4435_v6  ;;  %v4443_v55 = vadd.f32 %v3231_v14, %v2816_v36 }
 0x3f2   :  { %v4441_v15 = vadd.f32 %v2816_v36, %v1605_v7 }
 0x3f4   :  { %v3234_v17 = vpop.f32.mrb[20].mxu0  ;;  %3259 = vmatprep.mubr.msk.f32.mxu1 %vm1504_vm2, %v4441_v15 }
 0x3f5   :  { %v1615_v18 = vpop.f32.mrb[21].mxu0  ;;  %3260 = vmatmul.mubr.msk.f32.gmra.mrb[18].mxu1 %vm1504_vm2, %v4443_v55  ;;  %v4451_v8 = vadd.f32 %v3234_v17, %v2816_v36 }
 0x3f6   :  { %v4449_v50 = vadd.f32 %v2816_v36, %v1615_v18 }
 0x3f8   :  { %3262 = vmatprep.mubr.msk.f32.mxu1 %vm1504_vm2, %v4449_v50 }
 0x3f9   :  { %3263 = vmatmul.mubr.msk.f32.gmra.mrb[20].mxu1 %vm1504_vm2, %v4451_v8 }
 0x408   :  { %v3237_v51 = vpop.f32.mrb[22].mxu0 }
 0x409   :  { %v1625_v21 = vpop.f32.mrb[23].mxu0  ;;  %v4459_v10 = vadd.f32 %v3237_v51, %v2816_v36 }
 0x40a   :  { %v4457_v12 = vadd.f32 %v2816_v36, %v1625_v21 }
 0x40c   :  { %3265 = vmatprep.mubr.msk.f32.mxu1 %vm1504_vm2, %v4457_v12 }
 0x40d   :  { %3266 = vmatmul.mubr.msk.f32.gmra.mrb[22].mxu1 %vm1504_vm2, %v4459_v10 }
 0x40e   :  { %3308 = vmatprep.mubr.msk.f32.mxu1 %vm108_vm0, %v4335_v29 }
 0x4c4   :  { %v3258_v28 = vpop.f32.mrb[16].mxu1 }
 0x4c5   :  { %v1894_v34 = vadd.f32 %v3258_v28, %v2833_v0  ;;  %v1847_v35 = vpop.f32.mrb[17].mxu1 }
 0x4c6   :  { %v1893_v11 = vadd.f32 %v2833_v0, %v1847_v35 }
 0x4c7   :  { %v2835_v53 = vmul.f32 -1.442695, %v1894_v34 }
 0x4c8   :  { %v2834_v5 = vmul.f32 -1.442695, %v1893_v11  ;;  %v3261_v59 = vpop.f32.mrb[18].mxu1 }
 0x4c9   :  { %3640 = vpow2.f32 %v2835_v53  ;;  %v1896_v37 = vadd.f32 %v3261_v59, %v2833_v0  ;;  %v1857_v38 = vpop.f32.mrb[19].mxu1 }
 0x4ca   :  { %3642 = vpow2.f32 %v2834_v5  ;;  %v1895_v40 = vadd.f32 %v2833_v0, %v1857_v38  ;;  %v2273_v38 = vld [vmem:[%s4620_s25 + $0x8] sm:$0xff] }
 0x4cb   :  { %v2837_v42 = vmul.f32 -1.442695, %v1896_v37 }
 0x4cc   :  { %v2836_v41 = vmul.f32 -1.442695, %v1895_v40  ;;  %v3264_v43 = vpop.f32.mrb[20].mxu1 }
 0x4cd   :  { %3644 = vpow2.f32 %v2837_v42  ;;  %v1898_v26 = vadd.f32 %v3264_v43, %v2833_v0  ;;  %v1867_v44 = vpop.f32.mrb[21].mxu1  ;;  %v2268_v42 = vld [vmem:[%s4621_s24] sm:$0xff] }
 0x4ce   :  { %3646 = vpow2.f32 %v2836_v41  ;;  %v1897_v45 = vadd.f32 %v2833_v0, %v1867_v44  ;;  %v2269_v41 = vld [vmem:[%s4621_s24 + $0x8] sm:$0xff] }
 0x4cf   :  { %v2839_v29 = vmul.f32 -1.442695, %v1898_v26  ;;  %v3408_v43 = vpack.c.bf16 %v2269_v41, %v2268_v42 }
 0x4d0   :  { %v2838_v46 = vmul.f32 -1.442695, %v1897_v45 }
 0x4d1   :  { %3648 = vpow2.f32 %v2839_v29 }
 0x4d2   :  { %3650 = vpow2.f32 %v2838_v46 }
 0x4d3   :  { %v3641_v47 = vpop.eup %3640 }
 0x4d4   :  { %v3643_v48 = vpop.eup %3642  ;;  %v1926_v49 = vadd.f32 1.0, %v3641_v47 }
 0x4d5   :  { %v1925_v63 = vadd.f32 1.0, %v3643_v48 }
 0x4d6   :  { %3652 = vrcp.f32 %v1926_v49 }
 0x4d7   :  { %v3645_v20 = vpop.eup %3644  ;;  %3654 = vrcp.f32 %v1925_v63 }
 0x4d8   :  { %v3647_v54 = vpop.eup %3646  ;;  %v1928_v57 = vadd.f32 1.0, %v3645_v20 }
 0x4d9   :  { %v1927_v58 = vadd.f32 1.0, %v3647_v54 }
 0x4da   :  { %3656 = vrcp.f32 %v1928_v57 }
 0x4db   :  { %v3649_v24 = vpop.eup %3648  ;;  %3658 = vrcp.f32 %v1927_v58 }
 0x4dc   :  { %v3651_v23 = vpop.eup %3650  ;;  %v1930_v60 = vadd.f32 1.0, %v3649_v24 }
 0x4dd   :  { %v1929_v61 = vadd.f32 1.0, %v3651_v23 }
 0x4de   :  { %3660 = vrcp.f32 %v1930_v60 }
 0x4df   :  { %3662 = vrcp.f32 %v1929_v61 }
 0x4e0   :  { %v3653_v36 = vpop.eup %3652  ;;  %v3267_v1 = vpop.f32.mrb[22].mxu1 }
 0x4e1   :  { %v3655_v62 = vpop.eup %3654  ;;  %v1900_v7 = vadd.f32 %v3267_v1, %v2833_v0  ;;  %v1877_v17 = vpop.f32.mrb[23].mxu1  ;;  %v1950_v18 = vmul.f32 %v3653_v36, %v1894_v34 }
 0x4e2   :  { %v1949_v14 = vmul.f32 %v3655_v62, %v1893_v11  ;;  %v1899_v51 = vadd.f32 %v2833_v0, %v1877_v17 }
 0x4e3   :  { %v2841_v22 = vmul.f32 -1.442695, %v1900_v7 }
 0x4e4   :  { %v3657_v21 = vpop.eup %3656  ;;  %3292 = vmatprep.mubr.msk.f32.mxu0 %vm549_vm1, %v1949_v14  ;;  %v2840_v25 = vmul.f32 -1.442695, %v1899_v51 }
 0x4e5   :  { %v3659_v16 = vpop.eup %3658  ;;  %3293 = vmatmul.mubr.msk.f32.vlgmr.msra.gmra.mrb[24].mxu0 %vm549_vm1, %v1950_v18  ;;  %3664 = vpow2.f32 %v2841_v22  ;;  %v1952_v56 = vmul.f32 %v3657_v21, %v1896_v37  ;;  %v2272_v37 = vld [vmem:[%s4620_s25] sm:$0xff] }
 0x4e6   :  { %v1951_v27 = vmul.f32 %v3659_v16, %v1895_v40  ;;  %3666 = vpow2.f32 %v2840_v25  ;;  %v3404_v40 = vpack.c.bf16 %v2273_v38, %v2272_v37 }
 0x4e8   :  { %v3661_v30 = vpop.eup %3660  ;;  %3295 = vmatprep.mubr.msk.f32.mxu0 %vm549_vm1, %v1951_v27  ;;  %3405 = vmatprep.subr.bf16.mxu1 %v3404_v40 }
 0x4e9   :  { %v3663_v31 = vpop.eup %3662  ;;  %3296 = vmatmul.mubr.msk.f32.gmra.mrb[26].mxu0 %vm549_vm1, %v1952_v56  ;;  %v1954_v33 = vmul.f32 %v3661_v30, %v1898_v26  ;;  %3407 = vmatpush3.bf16.msra.mxu1 %v3404_v40 }
 0x4ea   :  { %v1953_v32 = vmul.f32 %v3663_v31, %v1897_v45  ;;  %3409 = vmatprep.subr.bf16.mxu1 %v3408_v43 }
 0x4ec   :  { %3298 = vmatprep.mubr.msk.f32.mxu0 %vm549_vm1, %v1953_v32  ;;  %3309 = vmatmul.mubr.msk.f32.vlgmr.msra.gmra.mrb[24].mxu1 %vm108_vm0, %v4352_v52  ;;  %v2270_v52 = vld [vmem:[%s4621_s24 + $0x10] sm:$0xff] }
 0x4ed   :  { %3299 = vmatmul.mubr.msk.f32.gmra.mrb[28].mxu0 %vm549_vm1, %v1954_v33  ;;  %3311 = vmatprep.mubr.msk.f32.mxu1 %vm108_vm0, %v4359_v2  ;;  %v2271_v2 = vld [vmem:[%s4621_s24 + $0x18] sm:$0xff] }
 0x4ee   :  { %3411 = vmatpush3.bf16.msra.mxu1 %v3408_v43 }
 0x4ef   :  { %v3665_v0 = vpop.eup %3664 }
 0x4f0   :  { %v3667_v28 = vpop.eup %3666  ;;  %v1932_v34 = vadd.f32 1.0, %v3665_v0  ;;  %3312 = vmatmul.mubr.msk.f32.gmra.mrb[26].mxu1 %vm108_vm0, %v4366_v39  ;;  %v3412_v39 = vpack.c.bf16 %v2271_v2, %v2270_v52 }
 0x4f1   :  { %v1931_v35 = vadd.f32 1.0, %v3667_v28  ;;  %3314 = vmatprep.mubr.msk.f32.mxu1 %vm108_vm0, %v4373_v9  ;;  %v2858_v9 = vld [vmem:[%s4622_s23] ss:$0 sm:$0xff] }
 0x4f2   :  { %3668 = vrcp.f32 %v1932_v34  ;;  %3413 = vmatprep.subr.bf16.mxu1 %v3412_v39 }
 0x4f3   :  { %3670 = vrcp.f32 %v1931_v35  ;;  %3415 = vmatpush3.bf16.msra.mxu1 %v3412_v39 }
 0x4f4   :  { %3315 = vmatmul.mubr.msk.f32.gmra.mrb[28].mxu1 %vm108_vm0, %v4380_v13 }
 0x4f5   :  { %3317 = vmatprep.mubr.msk.f32.mxu1 %vm108_vm0, %v4387_v4 }
 0x4f8   :  { %3318 = vmatmul.mubr.msk.f32.gmra.mrb[30].mxu1 %vm108_vm0, %v4394_v19 }
 0x4fc   :  { %v3669_v11 = vpop.eup %3668 }
 0x4fd   :  { %v3671_v53 = vpop.eup %3670  ;;  %v1956_v59 = vmul.f32 %v3669_v11, %v1900_v7 }
 0x4fe   :  { %v1955_v5 = vmul.f32 %v3671_v53, %v1899_v51 }
 0x500   :  { %3301 = vmatprep.mubr.msk.f32.mxu0 %vm549_vm1, %v1955_v5 }
 0x501   :  { %3302 = vmatmul.mubr.msk.f32.gmra.mrb[30].mxu0 %vm549_vm1, %v1956_v59 }
 0x5b8   :  { %v3294_v13 = vpop.f32.mrb[24].mxu0 }
 0x5b9   :  { %v2205_v26 = vadd.f32 %v3294_v13, %v2858_v9  ;;  %v2158_v44 = vpop.f32.mrb[25].mxu0  ;;  %v2883_v13 = vld [vmem:[%s4623_s26] ss:$0 sm:$0xff] }
 0x5ba   :  { %v2204_v45 = vadd.f32 %v2858_v9, %v2158_v44 }
 0x5bb   :  { %v2860_v29 = vmul.f32 -1.442695, %v2205_v26 }
 0x5bc   :  { %v2859_v46 = vmul.f32 -1.442695, %v2204_v45  ;;  %v3297_v47 = vpop.f32.mrb[26].mxu0 }
 0x5bd   :  { %3672 = vpow2.f32 %v2860_v29  ;;  %v2207_v48 = vadd.f32 %v3297_v47, %v2858_v9  ;;  %v2168_v4 = vpop.f32.mrb[27].mxu0 }
 0x5be   :  { %3674 = vpow2.f32 %v2859_v46  ;;  %v2206_v49 = vadd.f32 %v2858_v9, %v2168_v4 }
 0x5bf   :  { %v2862_v63 = vmul.f32 -1.442695, %v2207_v48 }
 0x5c0   :  { %v2861_v20 = vmul.f32 -1.442695, %v2206_v49  ;;  %v3300_v19 = vpop.f32.mrb[28].mxu0 }
 0x5c1   :  { %3676 = vpow2.f32 %v2862_v63  ;;  %v2209_v54 = vadd.f32 %v3300_v19, %v2858_v9  ;;  %v2178_v57 = vpop.f32.mrb[29].mxu0 }
 0x5c2   :  { %3678 = vpow2.f32 %v2861_v20  ;;  %v2208_v58 = vadd.f32 %v2858_v9, %v2178_v57 }
 0x5c3   :  { %v2864_v24 = vmul.f32 -1.442695, %v2209_v54 }
 0x5c4   :  { %v2863_v23 = vmul.f32 -1.442695, %v2208_v58 }
 0x5c5   :  { %3680 = vpow2.f32 %v2864_v24 }
 0x5c6   :  { %3682 = vpow2.f32 %v2863_v23 }
 0x5c7   :  { %v3673_v60 = vpop.eup %3672 }
 0x5c8   :  { %v3675_v61 = vpop.eup %3674  ;;  %v2237_v36 = vadd.f32 1.0, %v3673_v60 }
 0x5c9   :  { %v2236_v62 = vadd.f32 1.0, %v3675_v61 }
 0x5ca   :  { %3684 = vrcp.f32 %v2237_v36 }
 0x5cb   :  { %v3677_v1 = vpop.eup %3676  ;;  %3686 = vrcp.f32 %v2236_v62 }
 0x5cc   :  { %v3679_v14 = vpop.eup %3678  ;;  %v2239_v7 = vadd.f32 1.0, %v3677_v1 }
 0x5cd   :  { %v2238_v17 = vadd.f32 1.0, %v3679_v14 }
 0x5ce   :  { %3688 = vrcp.f32 %v2239_v7 }
 0x5cf   :  { %v3681_v18 = vpop.eup %3680  ;;  %3690 = vrcp.f32 %v2238_v17 }
 0x5d0   :  { %v3683_v51 = vpop.eup %3682  ;;  %v2241_v21 = vadd.f32 1.0, %v3681_v18 }
 0x5d1   :  { %v2240_v22 = vadd.f32 1.0, %v3683_v51 }
 0x5d2   :  { %3692 = vrcp.f32 %v2241_v21 }
 0x5d3   :  { %3694 = vrcp.f32 %v2240_v22 }
 0x5d4   :  { %v3685_v16 = vpop.eup %3684  ;;  %v3303_v27 = vpop.f32.mrb[30].mxu0 }
 0x5d5   :  { %v3687_v25 = vpop.eup %3686  ;;  %v2211_v30 = vadd.f32 %v3303_v27, %v2858_v9  ;;  %v2188_v31 = vpop.f32.mrb[31].mxu0  ;;  %v2261_v32 = vmul.f32 %v3685_v16, %v2205_v26 }
 0x5d6   :  { %v2260_v56 = vmul.f32 %v3687_v25, %v2204_v45  ;;  %v2210_v33 = vadd.f32 %v2858_v9, %v2188_v31 }
 0x5d7   :  { %v2866_v28 = vmul.f32 -1.442695, %v2211_v30 }
 0x5d8   :  { %v3689_v0 = vpop.eup %3688  ;;  %3328 = vmatprep.mubr.msk.f32.mxu1 %vm549_vm1, %v2260_v56  ;;  %v2865_v35 = vmul.f32 -1.442695, %v2210_v33 }
 0x5d9   :  { %v3691_v34 = vpop.eup %3690  ;;  %3329 = vmatmul.mubr.msk.f32.vlgmr.msra.gmra.mrb[24].mxu1 %vm549_vm1, %v2261_v32  ;;  %3696 = vpow2.f32 %v2866_v28  ;;  %v2263_v53 = vmul.f32 %v3689_v0, %v2207_v48 }
 0x5da   :  { %v2262_v11 = vmul.f32 %v3691_v34, %v2206_v49  ;;  %3698 = vpow2.f32 %v2865_v35 }
 0x5dc   :  { %v3693_v5 = vpop.eup %3692  ;;  %3331 = vmatprep.mubr.msk.f32.mxu1 %vm549_vm1, %v2262_v11 }
 0x5dd   :  { %v3695_v59 = vpop.eup %3694  ;;  %3332 = vmatmul.mubr.msk.f32.gmra.mrb[26].mxu1 %vm549_vm1, %v2263_v53  ;;  %v2265_v38 = vmul.f32 %v3693_v5, %v2209_v54 }
 0x5de   :  { %v2264_v37 = vmul.f32 %v3695_v59, %v2208_v58 }
 0x5e0   :  { %3334 = vmatprep.mubr.msk.f32.mxu1 %vm549_vm1, %v2264_v37 }
 0x5e1   :  { %3335 = vmatmul.mubr.msk.f32.gmra.mrb[28].mxu1 %vm549_vm1, %v2265_v38 }
 0x5e3   :  { %v3697_v40 = vpop.eup %3696 }
 0x5e4   :  { %v3699_v42 = vpop.eup %3698  ;;  %v2243_v41 = vadd.f32 1.0, %v3697_v40 }
 0x5e5   :  { %v2242_v43 = vadd.f32 1.0, %v3699_v42 }
 0x5e6   :  { %3700 = vrcp.f32 %v2243_v41 }
 0x5e7   :  { %3702 = vrcp.f32 %v2242_v43 }
 0x5f0   :  { %v3701_v52 = vpop.eup %3700 }
 0x5f1   :  { %v3703_v2 = vpop.eup %3702  ;;  %v2267_v9 = vmul.f32 %v3701_v52, %v2211_v30 }
 0x5f2   :  { %v2266_v39 = vmul.f32 %v3703_v2, %v2210_v33 }
 0x5f4   :  { %3337 = vmatprep.mubr.msk.f32.mxu1 %vm549_vm1, %v2266_v39 }
 0x5f5   :  { %3338 = vmatmul.mubr.msk.f32.gmra.mrb[30].mxu1 %vm549_vm1, %v2267_v9 }
 0x6ac   :  { %v3330_v26 = vpop.f32.mrb[24].mxu1 }
 0x6ad   :  { %v2516_v44 = vadd.f32 %v3330_v26, %v2883_v13  ;;  %v2469_v45 = vpop.f32.mrb[25].mxu1 }
 0x6ae   :  { %v2515_v29 = vadd.f32 %v2883_v13, %v2469_v45 }
 0x6af   :  { %v2885_v46 = vmul.f32 -1.442695, %v2516_v44 }
 0x6b0   :  { %v2884_v47 = vmul.f32 -1.442695, %v2515_v29  ;;  %v3333_v48 = vpop.f32.mrb[26].mxu1 }
 0x6b1   :  { %3704 = vpow2.f32 %v2885_v46  ;;  %v2518_v4 = vadd.f32 %v3333_v48, %v2883_v13  ;;  %v2479_v49 = vpop.f32.mrb[27].mxu1 }
 0x6b2   :  { %3706 = vpow2.f32 %v2884_v47  ;;  %v2517_v63 = vadd.f32 %v2883_v13, %v2479_v49 }
 0x6b3   :  { %v2887_v20 = vmul.f32 -1.442695, %v2518_v4 }
 0x6b4   :  { %v2886_v19 = vmul.f32 -1.442695, %v2517_v63  ;;  %v3336_v54 = vpop.f32.mrb[28].mxu1 }
 0x6b5   :  { %3708 = vpow2.f32 %v2887_v20  ;;  %v2520_v57 = vadd.f32 %v3336_v54, %v2883_v13  ;;  %v2489_v58 = vpop.f32.mrb[29].mxu1 }
 0x6b6   :  { %3710 = vpow2.f32 %v2886_v19  ;;  %v2519_v24 = vadd.f32 %v2883_v13, %v2489_v58 }
 0x6b7   :  { %v2889_v23 = vmul.f32 -1.442695, %v2520_v57 }
 0x6b8   :  { %v2888_v60 = vmul.f32 -1.442695, %v2519_v24 }
 0x6b9   :  { %3712 = vpow2.f32 %v2889_v23 }
 0x6ba   :  { %3714 = vpow2.f32 %v2888_v60 }
 0x6bb   :  { %v3705_v61 = vpop.eup %3704 }
 0x6bc   :  { %v3707_v36 = vpop.eup %3706  ;;  %v2548_v62 = vadd.f32 1.0, %v3705_v61 }
 0x6bd   :  { %v2547_v1 = vadd.f32 1.0, %v3707_v36 }
 0x6be   :  { %3716 = vrcp.f32 %v2548_v62 }
 0x6bf   :  { %v3709_v14 = vpop.eup %3708  ;;  %3718 = vrcp.f32 %v2547_v1 }
 0x6c0   :  { %v3711_v7 = vpop.eup %3710  ;;  %v2550_v17 = vadd.f32 1.0, %v3709_v14 }
 0x6c1   :  { %v2549_v18 = vadd.f32 1.0, %v3711_v7 }
 0x6c2   :  { %3720 = vrcp.f32 %v2550_v17 }
 0x6c3   :  { %v3713_v51 = vpop.eup %3712  ;;  %3722 = vrcp.f32 %v2549_v18 }
 0x6c4   :  { %v3715_v21 = vpop.eup %3714  ;;  %v2552_v22 = vadd.f32 1.0, %v3713_v51 }
 0x6c5   :  { %v2551_v16 = vadd.f32 1.0, %v3715_v21 }
 0x6c6   :  { %3724 = vrcp.f32 %v2552_v22 }
 0x6c7   :  { %3726 = vrcp.f32 %v2551_v16 }
 0x6c8   :  { %v3717_v25 = vpop.eup %3716  ;;  %v3339_v30 = vpop.f32.mrb[30].mxu1 }
 0x6c9   :  { %v3719_v27 = vpop.eup %3718  ;;  %v2572_v56 = vmul.f32 %v3717_v25, %v2516_v44  ;;  %v2522_v32 = vadd.f32 %v3339_v30, %v2883_v13  ;;  %v2499_v33 = vpop.f32.mrb[31].mxu1 }
 0x6ca   :  { %v2571_v31 = vmul.f32 %v3719_v27, %v2515_v29  ;;  %v2521_v28 = vadd.f32 %v2883_v13, %v2499_v33 }
 0x6cb   :  { %v2580_v0 = vadd.f32 %v2572_v56, %v4435_v6  ;;  %v2891_v11 = vmul.f32 -1.442695, %v2522_v32 }
 0x6cc   :  { %v3721_v34 = vpop.eup %3720  ;;  %v2579_v35 = vadd.f32 %v2571_v31, %v4433_v3  ;;  %v2890_v59 = vmul.f32 -1.442695, %v2521_v28 }
 0x6cd   :  { %v3723_v53 = vpop.eup %3722  ;;  %2588 = vst.msk [vmem:[%s4624_s27 + $0x8] sm:$0xff] %vm1504_vm2, %v2580_v0  ;;  %v2574_v5 = vmul.f32 %v3721_v34, %v2518_v4  ;;  %3728 = vpow2.f32 %v2891_v11 }
 0x6ce   :  { %2587 = vst.msk [vmem:[%s4624_s27] sm:$0xff] %vm1504_vm2, %v2579_v35  ;;  %v2573_v37 = vmul.f32 %v3723_v53, %v2517_v63  ;;  %3730 = vpow2.f32 %v2890_v59 }
 0x6cf   :  { %v2582_v6 = vadd.f32 %v2574_v5, %v4443_v55 }
 0x6d0   :  { %v3725_v3 = vpop.eup %3724  ;;  %v2581_v38 = vadd.f32 %v2573_v37, %v4441_v15 }
 0x6d1   :  { %v3727_v40 = vpop.eup %3726  ;;  %2590 = vst.msk [vmem:[%s4624_s27 + $0x18] sm:$0xff] %vm1504_vm2, %v2582_v6  ;;  %v2576_v42 = vmul.f32 %v3725_v3, %v2520_v57 }
 0x6d2   :  { %2589 = vst.msk [vmem:[%s4624_s27 + $0x10] sm:$0xff] %vm1504_vm2, %v2581_v38  ;;  %v2575_v41 = vmul.f32 %v3727_v40, %v2519_v24 }
 0x6d3   :  { %v2584_v43 = vadd.f32 %v2576_v42, %v4451_v8 }
 0x6d4   :  { %v2583_v55 = vadd.f32 %v2575_v41, %v4449_v50 }
 0x6d5   :  { %2592 = vst.msk [vmem:[%s4624_s27 + $0x28] sm:$0xff] %vm1504_vm2, %v2584_v43 }
 0x6d6   :  { %2591 = vst.msk [vmem:[%s4624_s27 + $0x20] sm:$0xff] %vm1504_vm2, %v2583_v55 }
 0x6d7   :  { %v3729_v15 = vpop.eup %3728 }
 0x6d8   :  { %v3731_v52 = vpop.eup %3730  ;;  %v2554_v2 = vadd.f32 1.0, %v3729_v15 }
 0x6d9   :  { %v2553_v39 = vadd.f32 1.0, %v3731_v52 }
 0x6da   :  { %3732 = vrcp.f32 %v2554_v2 }
 0x6db   :  { %3734 = vrcp.f32 %v2553_v39 }
 0x6e4   :  { %v3733_v9 = vpop.eup %3732 }
 0x6e5   :  { %v3735_v8 = vpop.eup %3734  ;;  %v2578_v13 = vmul.f32 %v3733_v9, %v2522_v32 }
 0x6e6   :  { %v2577_v50 = vmul.f32 %v3735_v8, %v2521_v28 }
 0x6e7   :  { %v2586_v26 = vadd.f32 %v2578_v13, %v4459_v10 }
 0x6e8   :  { %v2585_v44 = vadd.f32 %v2577_v50, %v4457_v12 }
 0x6e9   :  { %2594 = vst.msk [vmem:[%s4624_s27 + $0x38] sm:$0xff] %vm1504_vm2, %v2586_v26 }
 0x6ea   :  { %2593 = vst.msk [vmem:[%s4624_s27 + $0x30] sm:$0xff] %vm1504_vm2, %v2585_v44 }

// kernel: decoder_forward.5
= control target key start
LH: loop header
LB: loop body
LE: loop exit
PB: predicated region body
PF: predicated region fallthrough
CT: control target
= control target key end

     0   :  { %s6367_s3 = smov 5   ;;  %s6368_s7 = smov 1   ;;  %vm212_vm0 = vcmask 130048   ;;  %vm342_vm1 = vcmask 64512   ;;  %vm793_vm2 = vcmask 261120   ;;  %vm4470_vm3 = vcmask 7168   ;;  %s7601_s0 = inlined_call_operand.smem [shape: u32[46], index: -1, kind: input, shape index: {}] }
   0x1   :  { %s4491_s6 = sld [smem:[%s7601_s0 + %s6367_s3]]   ;;  %s6369_s11 = smov 4  }
   0x2   :  { %s6423_s10 = sld [smem:[%s7601_s0 + %s6368_s7]]   ;;  %s6370_s15 = smov 6  }
   0x3   :  { %s4490_s14 = sld [smem:[%s7601_s0 + %s6369_s11]]   ;;  %s6371_s19 = smov 2  }
   0x4   :  { %s4492_s18 = sld [smem:[%s7601_s0 + %s6370_s15]]   ;;  %s6372_s26 = smov 9  }
   0x5   :  { %s6436_s22 = sld [smem:[%s7601_s0 + %s6371_s19]]   ;;  %s6373_s30 = smov 8  }
   0x6   :  { %s6450_s25 = sld [smem:[%s7601_s0]]   ;;  %s6374_s4 = smov 7  }
   0x7   :  { %v210_v0 = vld [vmem:[%s4491_s6] sm:$0xff]  ;;  %v211_v1 = vld [vmem:[%s4491_s6 + $0x8] sm:$0xff]  ;;  %s4495_s29 = sld [smem:[%s7601_s0 + %s6372_s26]]   ;;  %s6375_s8 = smov 12  }
   0x8   :  { %v193_v2 = vld [vmem:[%s6423_s10] sm:$0xff]  ;;  %v5609_v3 = vpack.c.bf16 %v211_v1, %v210_v0  ;;  %v194_v5 = vld [vmem:[%s6423_s10 + $0x8] sm:$0xff]  ;;  %v195_v8 = vld [vmem:[%s6423_s10 + $0x10] sm:$0xff]  ;;  %s4494_s3 = sld [smem:[%s7601_s0 + %s6373_s30]]   ;;  %s6376_s12 = smov 15  }
   0x9   :  { %5153 = vmatprep.mubr.msk.f32.mxu0 %vm212_vm0, %v193_v2  ;;  %v209_v4 = vld [vmem:[%s4490_s14] sm:$0xff]  ;;  %v196_v10 = vld [vmem:[%s6423_s10 + $0x18] sm:$0xff]  ;;  %v198_v13 = vld [vmem:[%s6423_s10 + $0x28] sm:$0xff]  ;;  %s4493_s7 = sld [smem:[%s7601_s0 + %s6374_s4]]   ;;  %s6377_s16 = smov 11  }
   0xa   :  { %5610 = vmatprep.subr.bf16.mxu0 %v5609_v3  ;;  %v472_v6 = vld [vmem:[%s4492_s18] sm:$0xff]  ;;  %v473_v7 = vld [vmem:[%s4492_s18 + $0x8] sm:$0xff]  ;;  %v199_v14 = vld [vmem:[%s6423_s10 + $0x30] sm:$0xff]  ;;  %s4498_s11 = sld [smem:[%s7601_s0 + %s6375_s8]]   ;;  %s6378_s20 = smov 14  }
   0xb   :  { %5612 = vmatpush3.bf16.msra.mxu0 %v5609_v3  ;;  %v5613_v9 = vpack.c.bf16 %v473_v7, %v472_v6  ;;  %v6444_v11 = vld [vmem:[%s6436_s22 + $0x20] sm:$0xff]  ;;  %v200_v15 = vld [vmem:[%s6423_s10 + $0x38] sm:$0xff]  ;;  %v6508_v25 = vld [vmem:[%s6436_s22 + $0x8] sm:$0xff]  ;;  %s4501_s15 = sld [smem:[%s7601_s0 + %s6376_s12]]   ;;  %s6379_s26 = smov 18  }
   0xc   :  { %5165 = vmatprep.subr.mxu0 %v209_v4  ;;  %v197_v12 = vld [vmem:[%s6423_s10 + $0x20] sm:$0xff]  ;;  %5205 = vmatprep.mubr.msk.f32.mxu1 %vm212_vm0, %v6444_v11  ;;  %v6468_v17 = vld [vmem:[%s6450_s25 + $0x8] sm:$0xff]  ;;  %v6471_v18 = vld [vmem:[%s6450_s25 + $0x10] sm:$0xff]  ;;  %s4497_s19 = sld [smem:[%s7601_s0 + %s6377_s16]]   ;;  %s6380_s30 = smov 10  }
   0xd   :  { %v6462_v16 = vld [vmem:[%s6450_s25] sm:$0xff]  ;;  %v6478_v19 = vld [vmem:[%s6450_s25 + $0x18] sm:$0xff]  ;;  %v6488_v21 = vld [vmem:[%s6450_s25 + $0x28] sm:$0xff]  ;;  %s4500_s24 = sld [smem:[%s7601_s0 + %s6378_s20]]   ;;  %s6381_s4 = smov 17  }
   0xe   :  { %5154 = vmatmul.mubr.msk.f32.vlgmr.msra.gmra.mrb[0].mxu0 %vm212_vm0, %v194_v5  ;;  %v6481_v20 = vld [vmem:[%s6450_s25 + $0x20] sm:$0xff]  ;;  %v6491_v22 = vld [vmem:[%s6450_s25 + $0x30] sm:$0xff]  ;;  %v6498_v23 = vld [vmem:[%s6450_s25 + $0x38] sm:$0xff]  ;;  %s6382_s8 = smov 21   ;;  %s6383_s12 = smov 20  }
   0xf   :  { %5166 = vmatpush3.msra.mxu0 %v209_v4  ;;  %5156 = vmatprep.mubr.msk.f32.mxu0 %vm212_vm0, %v195_v8  ;;  %v6501_v24 = vld [vmem:[%s6436_s22] sm:$0xff]  ;;  %v6511_v26 = vld [vmem:[%s6436_s22 + $0x10] sm:$0xff]  ;;  %v6518_v27 = vld [vmem:[%s6436_s22 + $0x18] sm:$0xff]  ;;  %s6384_s16 = smov 19   ;;  %s6385_s20 = smov 27  }
  0x10   :  { %5614 = vmatprep.subr.bf16.mxu0 %v5613_v9  ;;  %v6525_v28 = vld [vmem:[%s6436_s22 + $0x28] sm:$0xff]  ;;  %v6528_v29 = vld [vmem:[%s6436_s22 + $0x30] sm:$0xff]  ;;  %v6535_v30 = vld [vmem:[%s6436_s22 + $0x38] sm:$0xff]  ;;  %s6407_s23 = smov 42   ;;  %s6408_s28 = smov 41  }
  0x11   :  { %v686_v31 = vld [vmem:[%s4495_s29] sm:$0xff]  ;;  %v687_v32 = vld [vmem:[%s4495_s29 + $0x8] sm:$0xff]  ;;  %v684_v37 = vld [vmem:[%s4494_s3 + $0x10] sm:$0xff]  ;;  %s4504_s29 = sld [smem:[%s7601_s0 + %s6379_s26]]   ;;  %s6386_s26 = smov 24  }
  0x12   :  { %5157 = vmatmul.mubr.msk.f32.gmra.mrb[2].mxu0 %vm212_vm0, %v196_v10  ;;  %v5617_v33 = vpack.c.bf16 %v687_v32, %v686_v31  ;;  %v682_v34 = vld [vmem:[%s4494_s3] sm:$0xff]  ;;  %v683_v35 = vld [vmem:[%s4494_s3 + $0x8] sm:$0xff]  ;;  %v685_v38 = vld [vmem:[%s4494_s3 + $0x18] sm:$0xff]  ;;  %s4496_s3 = sld [smem:[%s7601_s0 + %s6380_s30]]   ;;  %s6387_s30 = smov 26  }
  0x13   :  { %5159 = vmatprep.mubr.msk.f32.mxu0 %vm212_vm0, %v197_v12  ;;  %v5621_v36 = vpack.c.bf16 %v683_v35, %v682_v34  ;;  %v5625_v39 = vpack.c.bf16 %v685_v38, %v684_v37  ;;  %v4556_v40 = vld [vmem:[%s4493_s7] ss:$0 sm:$0xff]  ;;  %s4503_s7 = sld [smem:[%s7601_s0 + %s6381_s4]]   ;;  %s6388_s4 = smov 23  }
  0x14   :  { %5737 = vmatprep.subr.bf16.mxu1 %v5617_v33  ;;  %s4528_s27 = sld [smem:[%s7601_s0 + %s6407_s23]]   ;;  %s6409_s2 = smov 40  }
  0x15   :  { %5738 = vmatpush3.bf16.msra.mxu1 %v5617_v33  ;;  %s4527_s1 = sld [smem:[%s7601_s0 + %s6408_s28]]   ;;  %s6410_s6 = smov 43  }
  0x16   :  { %5160 = vmatmul.mubr.msk.f32.gmra.mrb[4].mxu0 %vm212_vm0, %v198_v13  ;;  %5622 = vmatprep.subr.bf16.mxu1 %v5621_v36  ;;  %s4526_s5 = sld [smem:[%s7601_s0 + %s6409_s2]]   ;;  %s6411_s9 = smov 44  }
  0x17   :  { %5162 = vmatprep.mubr.msk.f32.mxu0 %vm212_vm0, %v199_v14 }
  0x18   :  { %5206 = vmatmul.mubr.msk.f32.vlgmr.msra.gmra.mrb[0].mxu1 %vm212_vm0, %v6525_v28 }
  0x19   :  { %5624 = vmatpush3.bf16.msra.mxu1 %v5621_v36  ;;  %5208 = vmatprep.mubr.msk.f32.mxu1 %vm212_vm0, %v6528_v29 }
  0x1a   :  { %5163 = vmatmul.mubr.msk.f32.gmra.mrb[6].mxu0 %vm212_vm0, %v200_v15  ;;  %5626 = vmatprep.subr.bf16.mxu1 %v5625_v39 }
  0x1b   :  { %5167 = vmatprep.mubr.msk.f32.mxu0 %vm342_vm1, %v6462_v16 }
  0x1c   :  { %5209 = vmatmul.mubr.msk.f32.gmra.mrb[2].mxu1 %vm212_vm0, %v6535_v30 }
  0x1d   :  { %5628 = vmatpush3.bf16.msra.mxu1 %v5625_v39 }
  0x1e   :  { %5168 = vmatmul.mubr.msk.f32.vlgmr.msra.gmra.mrb[0].mxu0 %vm342_vm1, %v6468_v17 }
  0x1f   :  { %5616 = vmatpush3.bf16.msra.mxu0 %v5613_v9  ;;  %5170 = vmatprep.mubr.msk.f32.mxu0 %vm342_vm1, %v6471_v18 }
  0x20   :  { %5618 = vmatprep.subr.bf16.mxu0 %v5617_v33 }
  0x22   :  { %5171 = vmatmul.mubr.msk.f32.gmra.mrb[2].mxu0 %vm342_vm1, %v6478_v19 }
  0x23   :  { %5173 = vmatprep.mubr.msk.f32.mxu0 %vm342_vm1, %v6481_v20 }
  0x26   :  { %5174 = vmatmul.mubr.msk.f32.gmra.mrb[4].mxu0 %vm342_vm1, %v6488_v21 }
  0x27   :  { %5176 = vmatprep.mubr.msk.f32.mxu0 %vm342_vm1, %v6491_v22 }
  0x2a   :  { %5177 = vmatmul.mubr.msk.f32.gmra.mrb[6].mxu0 %vm342_vm1, %v6498_v23 }
  0x2b   :  { %5183 = vmatprep.mubr.msk.f32.mxu0 %vm212_vm0, %v6501_v24 }
  0x2e   :  { %5184 = vmatmul.mubr.msk.f32.vlgmr.msra.gmra.mrb[0].mxu0 %vm212_vm0, %v6508_v25 }
  0x2f   :  { %5186 = vmatprep.mubr.msk.f32.mxu0 %vm212_vm0, %v6511_v26  ;;  %5620 = vmatpush3.bf16.msra.mxu0 %v5617_v33 }
  0x32   :  { %5187 = vmatmul.mubr.msk.f32.gmra.mrb[2].mxu0 %vm212_vm0, %v6518_v27 }
  0x33   :  { %5189 = vmatprep.mubr.msk.f32.mxu0 %vm212_vm0, %v6444_v11 }
  0x36   :  { %5190 = vmatmul.mubr.msk.f32.gmra.mrb[4].mxu0 %vm212_vm0, %v6525_v28 }
  0x37   :  { %5192 = vmatprep.mubr.msk.f32.mxu0 %vm212_vm0, %v6528_v29 }
  0x3a   :  { %5193 = vmatmul.mubr.msk.f32.gmra.mrb[6].mxu0 %vm212_vm0, %v6535_v30 }
  0x3b   :  { %5199 = vmatprep.mubr.msk.f32.mxu0 %vm212_vm0, %v6501_v24 }
  0x3e   :  { %5200 = vmatmul.mubr.msk.f32.vlgmr.msra.gmra.mrb[8].mxu0 %vm212_vm0, %v6508_v25 }
  0x3f   :  { %5202 = vmatprep.mubr.msk.f32.mxu0 %vm212_vm0, %v6511_v26 }
  0x42   :  { %5203 = vmatmul.mubr.msk.f32.gmra.mrb[10].mxu0 %vm212_vm0, %v6518_v27 }
  0x43   :  { %5271 = vmatprep.mubr.msk.f32.mxu0 %vm212_vm0, %v6501_v24 }
 0x101   :  { %v5185_v41 = vpop.f32.mrb[0].mxu0 }
 0x102   :  { %v619_v42 = vadd.f32 %v5185_v41, %v4556_v40  ;;  %v564_v43 = vpop.f32.mrb[1].mxu0 }
 0x103   :  { %v618_v44 = vadd.f32 %v4556_v40, %v564_v43 }
 0x104   :  { %v4558_v45 = vmul.f32 -1.442695, %v619_v42 }
 0x105   :  { %v4557_v46 = vmul.f32 -1.442695, %v618_v44  ;;  %v5188_v47 = vpop.f32.mrb[2].mxu0 }
 0x106   :  { %5896 = vpow2.f32 %v4558_v45  ;;  %v621_v48 = vadd.f32 %v5188_v47, %v4556_v40  ;;  %v574_v49 = vpop.f32.mrb[3].mxu0 }
 0x107   :  { %5898 = vpow2.f32 %v4557_v46  ;;  %v620_v50 = vadd.f32 %v4556_v40, %v574_v49 }
 0x108   :  { %v4560_v51 = vmul.f32 -1.442695, %v621_v48 }
 0x109   :  { %v4559_v52 = vmul.f32 -1.442695, %v620_v50  ;;  %v5191_v53 = vpop.f32.mrb[4].mxu0 }
 0x10a   :  { %5900 = vpow2.f32 %v4560_v51  ;;  %v623_v54 = vadd.f32 %v5191_v53, %v4556_v40  ;;  %v584_v55 = vpop.f32.mrb[5].mxu0  ;;  %v998_v53 = vld [vmem:[%s4498_s11] sm:$0xff] }
 0x10b   :  { %5902 = vpow2.f32 %v4559_v52  ;;  %v622_v56 = vadd.f32 %v4556_v40, %v584_v55 }
 0x10c   :  { %v4562_v57 = vmul.f32 -1.442695, %v623_v54 }
 0x10d   :  { %v4561_v58 = vmul.f32 -1.442695, %v622_v56  ;;  %v5194_v59 = vpop.f32.mrb[6].mxu0 }
 0x10e   :  { %5904 = vpow2.f32 %v4562_v57  ;;  %v625_v60 = vadd.f32 %v5194_v59, %v4556_v40  ;;  %v594_v61 = vpop.f32.mrb[7].mxu0  ;;  %v1310_v57 = vld [vmem:[%s4501_s15 + $0x8] sm:$0xff]  ;;  %v994_v59 = vld [vmem:[%s4497_s19] sm:$0xff] }
 0x10f   :  { %5906 = vpow2.f32 %v4561_v58  ;;  %v624_v62 = vadd.f32 %v4556_v40, %v594_v61  ;;  %v1305_v61 = vld [vmem:[%s4500_s24] sm:$0xff] }
 0x110   :  { %v5897_v63 = vpop.eup %5896  ;;  %v4564_v0 = vmul.f32 -1.442695, %v625_v60 }
 0x111   :  { %v5899_v1 = vpop.eup %5898  ;;  %v651_v2 = vadd.f32 1.0, %v5897_v63  ;;  %v4563_v3 = vmul.f32 -1.442695, %v624_v62  ;;  %v1306_v63 = vld [vmem:[%s4500_s24 + $0x8] sm:$0xff] }
 0x112   :  { %v650_v4 = vadd.f32 1.0, %v5899_v1  ;;  %5908 = vpow2.f32 %v4564_v0  ;;  %v5645_v0 = vpack.c.bf16 %v1306_v63, %v1305_v61  ;;  %v996_v1 = vld [vmem:[%s4497_s19 + $0x10] sm:$0xff] }
 0x113   :  { %5910 = vrcp.f32 %v651_v2  ;;  %v997_v2 = vld [vmem:[%s4497_s19 + $0x18] sm:$0xff] }
 0x114   :  { %v5901_v5 = vpop.eup %5900  ;;  %5912 = vrcp.f32 %v650_v4  ;;  %v5637_v4 = vpack.c.bf16 %v997_v2, %v996_v1 }
 0x115   :  { %v5903_v6 = vpop.eup %5902  ;;  %v653_v7 = vadd.f32 1.0, %v5901_v5  ;;  %5914 = vpow2.f32 %v4563_v3  ;;  %v1307_v3 = vld [vmem:[%s4500_s24 + $0x10] sm:$0xff]  ;;  %v1308_v5 = vld [vmem:[%s4500_s24 + $0x18] sm:$0xff]  ;;  %s4513_s24 = sld [smem:[%s7601_s0 + %s6385_s20]]   ;;  %s6392_s20 = smov 13  }
 0x116   :  { %v652_v8 = vadd.f32 1.0, %v5903_v6  ;;  %v5649_v6 = vpack.c.bf16 %v1308_v5, %v1307_v3 }
 0x117   :  { %5916 = vrcp.f32 %v653_v7  ;;  %v1593_v7 = vld [vmem:[%s4504_s29] sm:$0xff] }
 0x118   :  { %v5905_v9 = vpop.eup %5904  ;;  %5918 = vrcp.f32 %v652_v8  ;;  %v1594_v8 = vld [vmem:[%s4504_s29 + $0x8] sm:$0xff]  ;;  %s4510_s29 = sld [smem:[%s7601_s0 + %s6386_s26]]   ;;  %s6393_s26 = smov 22  }
 0x119   :  { %v5907_v10 = vpop.eup %5906  ;;  %v655_v12 = vadd.f32 1.0, %v5905_v9  ;;  %v6625_v9 = vpack.c.bf16 %v1594_v8, %v1593_v7 }
 0x11a   :  { %v654_v13 = vadd.f32 1.0, %v5907_v10 }
 0x11b   :  { %5920 = vrcp.f32 %v655_v12  ;;  %v4581_v12 = vld [vmem:[%s4496_s3] ss:$0 sm:$0xff]  ;;  %s4512_s3 = sld [smem:[%s7601_s0 + %s6387_s30]]   ;;  %s6394_s30 = smov 29  }
 0x11c   :  { %v5909_v14 = vpop.eup %5908  ;;  %5922 = vrcp.f32 %v654_v13 }
 0x11d   :  { %v5911_v15 = vpop.eup %5910  ;;  %v657_v31 = vadd.f32 1.0, %v5909_v14 }
 0x11e   :  { %v5913_v32 = vpop.eup %5912  ;;  %v675_v35 = vmul.f32 %v5911_v15, %v619_v42 }
 0x11f   :  { %v5915_v33 = vpop.eup %5914  ;;  %v674_v34 = vmul.f32 %v5913_v32, %v618_v44  ;;  %5924 = vrcp.f32 %v657_v31 }
 0x120   :  { %v656_v36 = vadd.f32 1.0, %v5915_v33 }
 0x121   :  { %v5917_v37 = vpop.eup %5916  ;;  %5219 = vmatprep.mubr.msk.f32.mxu1 %vm793_vm2, %v674_v34 }
 0x122   :  { %v5919_v38 = vpop.eup %5918  ;;  %5926 = vrcp.f32 %v656_v36  ;;  %5220 = vmatmul.mubr.msk.f32.vlgmr.msra.gmra.mrb[4].mxu1 %vm793_vm2, %v675_v35  ;;  %v677_v40 = vmul.f32 %v5917_v37, %v621_v48  ;;  %v6574_v48 = vpop.f32.mrb[8].mxu0 }
 0x123   :  { %v676_v39 = vmul.f32 %v5919_v38, %v620_v50  ;;  %v6576_v50 = vpop.f32.mrb[9].mxu0 }
 0x124   :  { %v6578_v51 = vpop.f32.mrb[10].mxu0 }
 0x125   :  { %v5921_v41 = vpop.eup %5920  ;;  %5222 = vmatprep.mubr.msk.f32.mxu1 %vm793_vm2, %v676_v39  ;;  %v6580_v52 = vpop.f32.mrb[11].mxu0 }
 0x126   :  { %v5923_v43 = vpop.eup %5922  ;;  %5223 = vmatmul.mubr.msk.f32.gmra.mrb[6].mxu1 %vm793_vm2, %v677_v40  ;;  %v679_v44 = vmul.f32 %v5921_v41, %v623_v54  ;;  %v999_v54 = vld [vmem:[%s4498_s11 + $0x8] sm:$0xff]  ;;  %s4507_s11 = sld [smem:[%s7601_s0 + %s6382_s8]]   ;;  %s6389_s8 = smov 33  }
 0x127   :  { %v678_v45 = vmul.f32 %v5923_v43, %v622_v56  ;;  %v5629_v55 = vpack.c.bf16 %v999_v54, %v998_v53  ;;  %v1309_v56 = vld [vmem:[%s4501_s15] sm:$0xff]  ;;  %s4506_s15 = sld [smem:[%s7601_s0 + %s6383_s12]]   ;;  %s6390_s12 = smov 30  }
 0x128   :  { %v5641_v58 = vpack.c.bf16 %v1310_v57, %v1309_v56 }
 0x129   :  { %5225 = vmatprep.mubr.msk.f32.mxu1 %vm793_vm2, %v678_v45  ;;  %v5925_v42 = vpop.eup %5924  ;;  %5630 = vmatprep.subr.bf16.mxu1 %v5629_v55 }
 0x12a   :  { %5226 = vmatmul.mubr.msk.f32.gmra.mrb[0].mxu1 %vm793_vm2, %v679_v44  ;;  %v681_v49 = vmul.f32 %v5925_v42, %v625_v60  ;;  %5642 = vmatprep.subr.bf16.mxu0 %v5641_v58  ;;  %v995_v60 = vld [vmem:[%s4497_s19 + $0x8] sm:$0xff]  ;;  %s4505_s19 = sld [smem:[%s7601_s0 + %s6384_s16]]   ;;  %s6391_s16 = smov 16  }
 0x12b   :  { %5632 = vmatpush3.bf16.msra.mxu1 %v5629_v55  ;;  %5644 = vmatpush3.bf16.msra.mxu0 %v5641_v58 }
 0x12c   :  { %v5927_v46 = vpop.eup %5926  ;;  %5646 = vmatprep.subr.bf16.mxu0 %v5645_v0 }
 0x12d   :  { %v680_v47 = vmul.f32 %v5927_v46, %v624_v62  ;;  %v5633_v62 = vpack.c.bf16 %v995_v60, %v994_v59 }
 0x12e   :  { %5272 = vmatmul.mubr.msk.f32.vlgmr.msra.gmra.mrb[12].mxu0 %vm212_vm0, %v6508_v25 }
 0x12f   :  { %5228 = vmatprep.mubr.msk.f32.mxu1 %vm793_vm2, %v680_v47  ;;  %5274 = vmatprep.mubr.msk.f32.mxu0 %vm212_vm0, %v6511_v26 }
 0x130   :  { %5229 = vmatmul.mubr.msk.f32.gmra.mrb[2].mxu1 %vm793_vm2, %v681_v49  ;;  %5634 = vmatprep.subr.bf16.mxu1 %v5633_v62 }
 0x131   :  { %5235 = vmatprep.mubr.msk.f32.mxu1 %vm212_vm0, %v6501_v24  ;;  %5648 = vmatpush3.bf16.msra.mxu0 %v5645_v0 }
 0x132   :  { %5275 = vmatmul.mubr.msk.f32.gmra.mrb[14].mxu0 %vm212_vm0, %v6518_v27  ;;  %5650 = vmatprep.subr.bf16.mxu0 %v5649_v6 }
 0x133   :  { %5277 = vmatprep.mubr.msk.f32.mxu0 %vm212_vm0, %v6444_v11 }
 0x134   :  { %5236 = vmatmul.mubr.msk.f32.vlgmr.msra.gmra.mrb[8].mxu1 %vm212_vm0, %v6508_v25 }
 0x135   :  { %5238 = vmatprep.mubr.msk.f32.mxu1 %vm212_vm0, %v6511_v26  ;;  %5636 = vmatpush3.bf16.msra.mxu1 %v5633_v62 }
 0x136   :  { %5278 = vmatmul.mubr.msk.f32.gmra.mrb[16].mxu0 %vm212_vm0, %v6525_v28  ;;  %5638 = vmatprep.subr.bf16.mxu1 %v5637_v4 }
 0x137   :  { %5280 = vmatprep.mubr.msk.f32.mxu0 %vm212_vm0, %v6528_v29  ;;  %5652 = vmatpush3.bf16.msra.mxu0 %v5649_v6 }
 0x138   :  { %5239 = vmatmul.mubr.msk.f32.gmra.mrb[10].mxu1 %vm212_vm0, %v6518_v27 }
 0x139   :  { %5241 = vmatprep.mubr.msk.f32.mxu1 %vm212_vm0, %v6444_v11  ;;  %5640 = vmatpush3.bf16.msra.mxu1 %v5637_v4 }
 0x13a   :  { %5281 = vmatmul.mubr.msk.f32.gmra.mrb[18].mxu0 %vm212_vm0, %v6535_v30  ;;  %5654 = vmatprep.subr.bf16.mxu1 %v6625_v9 }
 0x13c   :  { %5242 = vmatmul.mubr.msk.f32.gmra.mrb[12].mxu1 %vm212_vm0, %v6525_v28 }
 0x13d   :  { %5244 = vmatprep.mubr.msk.f32.mxu1 %vm212_vm0, %v6528_v29 }
 0x140   :  { %5245 = vmatmul.mubr.msk.f32.gmra.mrb[14].mxu1 %vm212_vm0, %v6535_v30 }
 0x1f5   :  { %v5221_v10 = vpop.f32.mrb[4].mxu1 }
 0x1f6   :  { %v890_v13 = vadd.f32 %v5221_v10, %v6574_v48  ;;  %v884_v14 = vpop.f32.mrb[5].mxu1 }
 0x1f7   :  { %v885_v15 = vadd.f32 %v884_v14, %v6576_v50  ;;  %v1592_v14 = vld [vmem:[%s4503_s7] sm:$0xff]  ;;  %s4509_s7 = sld [smem:[%s7601_s0 + %s6388_s4]]   ;;  %s6395_s4 = smov 32  }
 0x1f8   :  { %v931_v31 = vadd.f32 %v4581_v12, %v890_v13 }
 0x1f9   :  { %v930_v32 = vadd.f32 %v4581_v12, %v885_v15  ;;  %v5224_v33 = vpop.f32.mrb[6].mxu1 }
 0x1fa   :  { %v4583_v34 = vmul.f32 -1.442695, %v931_v31  ;;  %v900_v35 = vadd.f32 %v5224_v33, %v6578_v51  ;;  %v894_v36 = vpop.f32.mrb[7].mxu1 }
 0x1fb   :  { %v4582_v37 = vmul.f32 -1.442695, %v930_v32  ;;  %v895_v38 = vadd.f32 %v894_v36, %v6580_v52 }
 0x1fc   :  { %5928 = vpow2.f32 %v4583_v34  ;;  %v6635_v39 = vadd.f32 %v4581_v12, %v900_v35 }
 0x1fd   :  { %5930 = vpow2.f32 %v4582_v37  ;;  %v932_v40 = vadd.f32 %v4581_v12, %v895_v38  ;;  %v5227_v41 = vpop.f32.mrb[0].mxu1 }
 0x1fe   :  { %v4585_v43 = vmul.f32 -1.442695, %v6635_v39  ;;  %v6638_v45 = vadd.f32 %v5227_v41, %v4581_v12  ;;  %v904_v44 = vpop.f32.mrb[1].mxu1 }
 0x1ff   :  { %v4584_v42 = vmul.f32 -1.442695, %v932_v40  ;;  %v934_v46 = vadd.f32 %v4581_v12, %v904_v44 }
 0x200   :  { %5932 = vpow2.f32 %v4585_v43  ;;  %v4587_v47 = vmul.f32 -1.442695, %v6638_v45 }
 0x201   :  { %5934 = vpow2.f32 %v4584_v42  ;;  %v4586_v49 = vmul.f32 -1.442695, %v934_v46 }
 0x202   :  { %5936 = vpow2.f32 %v4587_v47 }
 0x203   :  { %5938 = vpow2.f32 %v4586_v49  ;;  %v5230_v48 = vpop.f32.mrb[2].mxu1 }
 0x204   :  { %v6641_v50 = vadd.f32 %v5230_v48, %v4581_v12  ;;  %v914_v51 = vpop.f32.mrb[3].mxu1 }
 0x205   :  { %v936_v52 = vadd.f32 %v4581_v12, %v914_v51 }
 0x206   :  { %v5929_v53 = vpop.eup %5928  ;;  %v4589_v54 = vmul.f32 -1.442695, %v6641_v50 }
 0x207   :  { %v5931_v55 = vpop.eup %5930  ;;  %v963_v56 = vadd.f32 1.0, %v5929_v53  ;;  %v4588_v57 = vmul.f32 -1.442695, %v936_v52 }
 0x208   :  { %v962_v58 = vadd.f32 1.0, %v5931_v55  ;;  %5940 = vpow2.f32 %v4589_v54 }
 0x209   :  { %5942 = vrcp.f32 %v963_v56 }
 0x20a   :  { %v5933_v59 = vpop.eup %5932  ;;  %5944 = vrcp.f32 %v962_v58 }
 0x20b   :  { %v5935_v60 = vpop.eup %5934  ;;  %v965_v61 = vadd.f32 1.0, %v5933_v59  ;;  %5946 = vpow2.f32 %v4588_v57 }
 0x20c   :  { %v5937_v62 = vpop.eup %5936  ;;  %v964_v63 = vadd.f32 1.0, %v5935_v60 }
 0x20d   :  { %v5939_v0 = vpop.eup %5938  ;;  %5948 = vrcp.f32 %v965_v61  ;;  %v967_v1 = vadd.f32 1.0, %v5937_v62  ;;  %v4656_v61 = vld [vmem:[%s4505_s19] ss:$0 sm:$0xff]  ;;  %s4502_s19 = sld [smem:[%s7601_s0 + %s6391_s16]]   ;;  %s6398_s16 = smov 35  }
 0x20e   :  { %5950 = vrcp.f32 %v964_v63  ;;  %v966_v2 = vadd.f32 1.0, %v5939_v0 }
 0x210   :  { %5952 = vrcp.f32 %v966_v2 }
 0x211   :  { %5954 = vrcp.f32 %v967_v1 }
 0x212   :  { %v5941_v3 = vpop.eup %5940 }
 0x213   :  { %v5943_v4 = vpop.eup %5942  ;;  %v969_v5 = vadd.f32 1.0, %v5941_v3 }
 0x214   :  { %v5945_v6 = vpop.eup %5944  ;;  %v987_v10 = vmul.f32 %v5943_v4, %v931_v31 }
 0x215   :  { %v5947_v7 = vpop.eup %5946  ;;  %v986_v8 = vmul.f32 %v5945_v6, %v930_v32  ;;  %5956 = vrcp.f32 %v969_v5 }
 0x216   :  { %v968_v12 = vadd.f32 1.0, %v5947_v7 }
 0x217   :  { %v5949_v13 = vpop.eup %5948  ;;  %5255 = vmatprep.mubr.msk.f32.mxu1 %vm793_vm2, %v986_v8  ;;  %5291 = vmatprep.mubr.msk.f32.mxu0 %vm793_vm2, %v986_v8 }
 0x218   :  { %v5951_v15 = vpop.eup %5950  ;;  %5958 = vrcp.f32 %v968_v12  ;;  %5256 = vmatmul.mubr.msk.f32.vlgmr.msra.gmra.mrb[8].mxu1 %vm793_vm2, %v987_v10  ;;  %5292 = vmatmul.mubr.msk.f32.vlgmr.msra.gmra.mrb[12].mxu0 %vm793_vm2, %v987_v10  ;;  %v989_v31 = vmul.f32 %v5949_v13, %v6635_v39 }
 0x219   :  { %v988_v33 = vmul.f32 %v5951_v15, %v932_v40  ;;  %5656 = vmatpush3.bf16.msra.mxu1 %v6625_v9 }
 0x21a   :  { %v5953_v34 = vpop.eup %5952  ;;  %5319 = vmatprep.subr.mxu1 %v1592_v14 }
 0x21b   :  { %v5955_v32 = vpop.eup %5954  ;;  %v990_v35 = vmul.f32 %v5953_v34, %v934_v46  ;;  %5258 = vmatprep.mubr.msk.f32.mxu1 %vm793_vm2, %v988_v33  ;;  %5294 = vmatprep.mubr.msk.f32.mxu0 %vm793_vm2, %v988_v33 }
 0x21c   :  { %5259 = vmatmul.mubr.msk.f32.gmra.mrb[10].mxu1 %vm793_vm2, %v989_v31  ;;  %5295 = vmatmul.mubr.msk.f32.gmra.mrb[14].mxu0 %vm793_vm2, %v989_v31  ;;  %v991_v9 = vmul.f32 %v5955_v32, %v6638_v45 }
 0x21d   :  { %5261 = vmatprep.mubr.msk.f32.mxu1 %vm793_vm2, %v990_v35  ;;  %5297 = vmatprep.mubr.msk.f32.mxu0 %vm793_vm2, %v990_v35 }
 0x21f   :  { %v5957_v36 = vpop.eup %5956 }
 0x220   :  { %5262 = vmatmul.mubr.msk.f32.gmra.mrb[12].mxu1 %vm793_vm2, %v991_v9  ;;  %5298 = vmatmul.mubr.msk.f32.gmra.mrb[16].mxu0 %vm793_vm2, %v991_v9  ;;  %v993_v39 = vmul.f32 %v5957_v36, %v6641_v50 }
 0x222   :  { %v5959_v37 = vpop.eup %5958 }
 0x223   :  { %v992_v38 = vmul.f32 %v5959_v37, %v936_v52 }
 0x225   :  { %5264 = vmatprep.mubr.msk.f32.mxu1 %vm793_vm2, %v992_v38  ;;  %5300 = vmatprep.mubr.msk.f32.mxu0 %vm793_vm2, %v992_v38 }
 0x226   :  { %5265 = vmatmul.mubr.msk.f32.gmra.mrb[14].mxu1 %vm793_vm2, %v993_v39  ;;  %5301 = vmatmul.mubr.msk.f32.gmra.mrb[18].mxu0 %vm793_vm2, %v993_v39 }
 0x227   :  { %5307 = vmatprep.mubr.msk.f32.mxu1 %vm212_vm0, %v6501_v24  ;;  %5337 = vmatprep.mubr.msk.f32.mxu0 %vm212_vm0, %v6501_v24 }
 0x22a   :  { %5308 = vmatmul.mubr.msk.f32.vlgmr.msra.gmra.mrb[16].mxu1 %vm212_vm0, %v6508_v25 }
 0x22b   :  { %5320 = vmatpush3.msra.mxu1 %v1592_v14  ;;  %5310 = vmatprep.mubr.msk.f32.mxu1 %vm212_vm0, %v6511_v26 }
 0x22e   :  { %5311 = vmatmul.mubr.msk.f32.gmra.mrb[18].mxu1 %vm212_vm0, %v6518_v27 }
 0x22f   :  { %5313 = vmatprep.mubr.msk.f32.mxu1 %vm212_vm0, %v6444_v11 }
 0x232   :  { %5314 = vmatmul.mubr.msk.f32.gmra.mrb[20].mxu1 %vm212_vm0, %v6525_v28 }
 0x233   :  { %5316 = vmatprep.mubr.msk.f32.mxu1 %vm212_vm0, %v6528_v29 }
 0x236   :  { %5317 = vmatmul.mubr.msk.f32.gmra.mrb[22].mxu1 %vm212_vm0, %v6535_v30 }
 0x237   :  { %5321 = vmatprep.mubr.msk.f32.mxu1 %vm342_vm1, %v6462_v16  ;;  %v1880_v16 = vld [vmem:[%s4507_s11] sm:$0xff] }
 0x23a   :  { %5322 = vmatmul.mubr.msk.f32.vlgmr.msra.gmra.mrb[16].mxu1 %vm342_vm1, %v6468_v17  ;;  %v1881_v17 = vld [vmem:[%s4507_s11 + $0x8] sm:$0xff]  ;;  %s4519_s11 = sld [smem:[%s7601_s0 + %s6389_s8]]   ;;  %s6396_s8 = smov 3  }
 0x23b   :  { %5324 = vmatprep.mubr.msk.f32.mxu1 %vm342_vm1, %v6471_v18  ;;  %v5657_v18 = vpack.c.bf16 %v1881_v17, %v1880_v16 }
 0x23d   :  { %5658 = vmatprep.subr.bf16.mxu0 %v5657_v18 }
 0x23e   :  { %5325 = vmatmul.mubr.msk.f32.gmra.mrb[18].mxu1 %vm342_vm1, %v6478_v19  ;;  %5660 = vmatpush3.bf16.msra.mxu0 %v5657_v18  ;;  %v1876_v19 = vld [vmem:[%s4506_s15] sm:$0xff] }
 0x23f   :  { %5327 = vmatprep.mubr.msk.f32.mxu1 %vm342_vm1, %v6481_v20  ;;  %v1877_v20 = vld [vmem:[%s4506_s15 + $0x8] sm:$0xff] }
 0x241   :  { %5338 = vmatmul.mubr.msk.f32.vlgmr.msra.gmra.mrb[20].mxu0 %vm212_vm0, %v6508_v25 }
 0x242   :  { %5328 = vmatmul.mubr.msk.f32.gmra.mrb[20].mxu1 %vm342_vm1, %v6488_v21  ;;  %5340 = vmatprep.mubr.msk.f32.mxu0 %vm212_vm0, %v6511_v26  ;;  %v5661_v21 = vpack.c.bf16 %v1877_v20, %v1876_v19 }
 0x243   :  { %5330 = vmatprep.mubr.msk.f32.mxu1 %vm342_vm1, %v6491_v22  ;;  %v1878_v22 = vld [vmem:[%s4506_s15 + $0x10] sm:$0xff] }
 0x244   :  { %5662 = vmatprep.subr.bf16.mxu0 %v5661_v21 }
 0x245   :  { %5341 = vmatmul.mubr.msk.f32.gmra.mrb[22].mxu0 %vm212_vm0, %v6518_v27 }
 0x246   :  { %5331 = vmatmul.mubr.msk.f32.gmra.mrb[22].mxu1 %vm342_vm1, %v6498_v23  ;;  %5343 = vmatprep.mubr.msk.f32.mxu0 %vm212_vm0, %v6444_v11  ;;  %v1879_v23 = vld [vmem:[%s4506_s15 + $0x18] sm:$0xff]  ;;  %s4516_s15 = sld [smem:[%s7601_s0 + %s6390_s12]]   ;;  %s6397_s12 = smov 36  }
 0x247   :  { %5373 = vmatprep.mubr.msk.f32.mxu1 %vm212_vm0, %v6501_v24  ;;  %5664 = vmatpush3.bf16.msra.mxu0 %v5661_v21  ;;  %v5665_v40 = vpack.c.bf16 %v1879_v23, %v1878_v22 }
 0x249   :  { %5344 = vmatmul.mubr.msk.f32.gmra.mrb[24].mxu0 %vm212_vm0, %v6525_v28  ;;  %5666 = vmatprep.subr.bf16.mxu0 %v5665_v40 }
 0x24a   :  { %5346 = vmatprep.mubr.msk.f32.mxu0 %vm212_vm0, %v6528_v29 }
 0x24b   :  { %5668 = vmatpush3.bf16.msra.mxu0 %v5665_v40 }
 0x24d   :  { %5347 = vmatmul.mubr.msk.f32.gmra.mrb[26].mxu0 %vm212_vm0, %v6535_v30 }
 0x2eb   :  { %v6723_v41 = vpop.f32.mrb[8].mxu1  ;;  %v6725_v43 = vpop.f32.mrb[12].mxu0 }
 0x2ec   :  { %v6727_v45 = vpop.f32.mrb[9].mxu1  ;;  %v6729_v44 = vpop.f32.mrb[13].mxu0 }
 0x2ef   :  { %v6731_v42 = vpop.f32.mrb[10].mxu1  ;;  %v6733_v46 = vpop.f32.mrb[14].mxu0 }
 0x2f0   :  { %v6735_v47 = vpop.f32.mrb[11].mxu1  ;;  %v6737_v49 = vpop.f32.mrb[15].mxu0 }
 0x2f3   :  { %v6739_v48 = vpop.f32.mrb[12].mxu1  ;;  %v6741_v50 = vpop.f32.mrb[16].mxu0 }
 0x2f4   :  { %v6743_v51 = vpop.f32.mrb[13].mxu1  ;;  %v6745_v52 = vpop.f32.mrb[17].mxu0 }
 0x2f9   :  { %v6747_v53 = vpop.f32.mrb[14].mxu1  ;;  %v6749_v54 = vpop.f32.mrb[18].mxu0 }
 0x2fa   :  { %v6751_v55 = vpop.f32.mrb[15].mxu1  ;;  %v6753_v56 = vpop.f32.mrb[19].mxu0 }
 0x30d   :  { %v5323_v57 = vpop.f32.mrb[16].mxu1 }
 0x30e   :  { %v1766_v58 = vpop.f32.mrb[17].mxu1  ;;  %v1813_v63 = vadd.f32 %v5323_v57, %v4656_v61 }
 0x30f   :  { %v1812_v1 = vadd.f32 %v4656_v61, %v1766_v58 }
 0x310   :  { %v4658_v5 = vmul.f32 -1.442695, %v1813_v63 }
 0x311   :  { %v5326_v59 = vpop.f32.mrb[18].mxu1  ;;  %v4657_v7 = vmul.f32 -1.442695, %v1812_v1 }
 0x312   :  { %v1776_v60 = vpop.f32.mrb[19].mxu1  ;;  %v1815_v2 = vadd.f32 %v5326_v59, %v4656_v61  ;;  %5960 = vpow2.f32 %v4658_v5 }
 0x313   :  { %v1814_v3 = vadd.f32 %v4656_v61, %v1776_v60  ;;  %5962 = vpow2.f32 %v4657_v7 }
 0x314   :  { %v4660_v10 = vmul.f32 -1.442695, %v1815_v2 }
 0x315   :  { %v5329_v62 = vpop.f32.mrb[20].mxu1  ;;  %v4659_v13 = vmul.f32 -1.442695, %v1814_v3 }
 0x316   :  { %v1786_v0 = vpop.f32.mrb[21].mxu1  ;;  %v1817_v12 = vadd.f32 %v5329_v62, %v4656_v61  ;;  %5964 = vpow2.f32 %v4660_v10 }
 0x317   :  { %v1816_v8 = vadd.f32 %v4656_v61, %v1786_v0  ;;  %5966 = vpow2.f32 %v4659_v13 }
 0x318   :  { %v4662_v33 = vmul.f32 -1.442695, %v1817_v12 }
 0x319   :  { %v5332_v4 = vpop.f32.mrb[22].mxu1  ;;  %v4661_v15 = vmul.f32 -1.442695, %v1816_v8 }
 0x31a   :  { %v1796_v6 = vpop.f32.mrb[23].mxu1  ;;  %v1819_v34 = vadd.f32 %v5332_v4, %v4656_v61 }
 0x31b   :  { %v1818_v14 = vadd.f32 %v4656_v61, %v1796_v6  ;;  %5968 = vpow2.f32 %v4661_v15 }
 0x31c   :  { %5970 = vpow2.f32 %v4662_v33  ;;  %v4664_v32 = vmul.f32 -1.442695, %v1819_v34  ;;  %v5961_v35 = vpop.eup %5960  ;;  %v2192_v33 = vld [vmem:[%s4510_s29 + $0x8] sm:$0xff] }
 0x31d   :  { %v4663_v31 = vmul.f32 -1.442695, %v1818_v14  ;;  %v5963_v9 = vpop.eup %5962  ;;  %v1845_v37 = vadd.f32 1.0, %v5961_v35 }
 0x31e   :  { %v1844_v39 = vadd.f32 1.0, %v5963_v9 }
 0x31f   :  { %5972 = vpow2.f32 %v4663_v31  ;;  %v2499_v31 = vld [vmem:[%s4512_s3 + $0x8] sm:$0xff] }
 0x320   :  { %5974 = vpow2.f32 %v4664_v32  ;;  %v5965_v36 = vpop.eup %5964  ;;  %v2187_v32 = vld [vmem:[%s4509_s7] sm:$0xff] }
 0x321   :  { %v5967_v38 = vpop.eup %5966  ;;  %5976 = vrcp.f32 %v1845_v37  ;;  %v1847_v19 = vadd.f32 1.0, %v5965_v36  ;;  %v2501_v36 = vld [vmem:[%s4512_s3 + $0x18] sm:$0xff]  ;;  %v2189_v37 = vld [vmem:[%s4509_s7 + $0x10] sm:$0xff] }
 0x322   :  { %v1846_v17 = vadd.f32 1.0, %v5967_v38  ;;  %5978 = vrcp.f32 %v1844_v39  ;;  %v2190_v38 = vld [vmem:[%s4509_s7 + $0x18] sm:$0xff]  ;;  %v2789_v39 = vld [vmem:[%s4516_s15] sm:$0xff] }
 0x324   :  { %5980 = vrcp.f32 %v1846_v17  ;;  %v2790_v17 = vld [vmem:[%s4516_s15 + $0x8] sm:$0xff]  ;;  %s4522_s15 = sld [smem:[%s7601_s0 + %s6397_s12]]  }
 0x325   :  { %v5969_v16 = vpop.eup %5968  ;;  %5982 = vrcp.f32 %v1847_v19  ;;  %s7575_s12 = sld [smem:[%s7601_s0 + %s6411_s9]]  }
 0x326   :  { %v5971_v18 = vpop.eup %5970  ;;  %v1848_v21 = vadd.f32 1.0, %v5969_v16 }
 0x327   :  { %v1849_v23 = vadd.f32 1.0, %v5971_v18  ;;  %v6816_v18 = vpack.c.bf16 %v2790_v17, %v2789_v39 }
 0x328   :  { %5984 = vrcp.f32 %v1848_v21 }
 0x329   :  { %v5973_v20 = vpop.eup %5972 }
 0x32a   :  { %v1850_v22 = vadd.f32 1.0, %v5973_v20  ;;  %v5975_v40 = vpop.eup %5974 }
 0x32b   :  { %v1851_v57 = vadd.f32 1.0, %v5975_v40  ;;  %v5977_v58 = vpop.eup %5976 }
 0x32c   :  { %5986 = vrcp.f32 %v1850_v22  ;;  %v5979_v59 = vpop.eup %5978  ;;  %v1869_v62 = vmul.f32 %v5977_v58, %v1813_v63 }
 0x32d   :  { %5988 = vrcp.f32 %v1849_v23  ;;  %v1868_v60 = vmul.f32 %v5979_v59, %v1812_v1 }
 0x32e   :  { %5990 = vrcp.f32 %v1851_v57  ;;  %v5981_v61 = vpop.eup %5980 }
 0x32f   :  { %v5983_v0 = vpop.eup %5982  ;;  %v1870_v4 = vmul.f32 %v5981_v61, %v1814_v3  ;;  %5357 = vmatprep.mubr.msk.f32.mxu0 %vm793_vm2, %v1868_v60 }
 0x330   :  { %5358 = vmatmul.mubr.msk.f32.vlgmr.msra.gmra.mrb[20].mxu0 %vm793_vm2, %v1869_v62  ;;  %v1871_v10 = vmul.f32 %v5983_v0, %v1815_v2  ;;  %v2502_v2 = vld [vmem:[%s4513_s24] sm:$0xff] }
 0x331   :  { %5360 = vmatprep.mubr.msk.f32.mxu0 %vm793_vm2, %v1870_v4 }
 0x332   :  { %v5985_v5 = vpop.eup %5984 }
 0x333   :  { %v1872_v6 = vmul.f32 %v5985_v5, %v1816_v8  ;;  %v2503_v8 = vld [vmem:[%s4513_s24 + $0x8] sm:$0xff]  ;;  %s4499_s24 = sld [smem:[%s7601_s0 + %s6392_s20]]   ;;  %s6399_s20 = smov 25  }
 0x334   :  { %5361 = vmatmul.mubr.msk.f32.gmra.mrb[22].mxu0 %vm793_vm2, %v1871_v10 }
 0x335   :  { %5363 = vmatprep.mubr.msk.f32.mxu0 %vm793_vm2, %v1872_v6 }
 0x336   :  { %v5987_v7 = vpop.eup %5986 }
 0x337   :  { %v5989_v13 = vpop.eup %5988  ;;  %v1874_v15 = vmul.f32 %v5987_v7, %v1818_v14  ;;  %v5681_v14 = vpack.c.bf16 %v2503_v8, %v2502_v2 }
 0x338   :  { %v1873_v1 = vmul.f32 %v5989_v13, %v1817_v12  ;;  %v5991_v63 = vpop.eup %5990  ;;  %v2191_v12 = vld [vmem:[%s4510_s29] sm:$0xff]  ;;  %s4508_s29 = sld [smem:[%s7601_s0 + %s6393_s26]]   ;;  %s6400_s26 = smov 28  }
 0x339   :  { %v1875_v3 = vmul.f32 %v5991_v63, %v1819_v34  ;;  %v5669_v34 = vpack.c.bf16 %v2192_v33, %v2191_v12  ;;  %5682 = vmatprep.subr.bf16.mxu0 %v5681_v14  ;;  %v6832_v20 = vld [vmem:[%s4499_s24] ss:$0 sm:$0xff]  ;;  %s4511_s24 = sld [smem:[%s7601_s0 + %s6399_s20]]  }
 0x33a   :  { %5364 = vmatmul.mubr.msk.f32.gmra.mrb[24].mxu0 %vm793_vm2, %v1873_v1  ;;  %v6836_v21 = vadd.f32 %v6723_v41, %v6832_v20 }
 0x33b   :  { %5366 = vmatprep.mubr.msk.f32.mxu0 %vm793_vm2, %v1874_v15  ;;  %5684 = vmatpush3.bf16.msra.mxu0 %v5681_v14 }
 0x33c   :  { %5670 = vmatprep.subr.bf16.mxu1 %v5669_v34 }
 0x33d   :  { %5672 = vmatpush3.bf16.msra.mxu1 %v5669_v34 }
 0x33e   :  { %5367 = vmatmul.mubr.msk.f32.gmra.mrb[26].mxu0 %vm793_vm2, %v1875_v3  ;;  %v4681_v57 = vld [vmem:[%s4508_s29] ss:$0 sm:$0xff]  ;;  %s4514_s29 = sld [smem:[%s7601_s0 + %s6400_s26]]  }
 0x33f   :  { %5409 = vmatprep.mubr.msk.f32.mxu0 %vm212_vm0, %v6501_v24  ;;  %v2498_v24 = vld [vmem:[%s4512_s3] sm:$0xff] }
 0x340   :  { %5374 = vmatmul.mubr.msk.f32.vlgmr.msra.gmra.mrb[24].mxu1 %vm212_vm0, %v6508_v25  ;;  %v5685_v35 = vpack.c.bf16 %v2499_v31, %v2498_v24 }
 0x341   :  { %5376 = vmatprep.mubr.msk.f32.mxu1 %vm212_vm0, %v6511_v26 }
 0x342   :  { %5410 = vmatmul.mubr.msk.f32.vlgmr.msra.gmra.mrb[28].mxu0 %vm212_vm0, %v6508_v25  ;;  %v2188_v25 = vld [vmem:[%s4509_s7 + $0x8] sm:$0xff]  ;;  %5686 = vmatprep.subr.bf16.mxu0 %v5685_v35  ;;  %s6906_s7 = sld [smem:[%s7601_s0 + %s6395_s4]]   ;;  %s6402_s4 = smov 34  }
 0x343   :  { %5412 = vmatprep.mubr.msk.f32.mxu0 %vm212_vm0, %v6511_v26  ;;  %v5673_v9 = vpack.c.bf16 %v2188_v25, %v2187_v32  ;;  %5688 = vmatpush3.bf16.msra.mxu0 %v5685_v35  ;;  %v2500_v26 = vld [vmem:[%s4512_s3 + $0x10] sm:$0xff]  ;;  %s6897_s3 = sld [smem:[%s7601_s0 + %s6394_s30]]   ;;  %s6401_s30 = smov 31  }
 0x344   :  { %5377 = vmatmul.mubr.msk.f32.gmra.mrb[26].mxu1 %vm212_vm0, %v6518_v27 }
 0x345   :  { %5379 = vmatprep.mubr.msk.f32.mxu1 %vm212_vm0, %v6444_v11  ;;  %5674 = vmatprep.subr.bf16.mxu1 %v5673_v9 }
 0x346   :  { %5413 = vmatmul.mubr.msk.f32.gmra.mrb[30].mxu0 %vm212_vm0, %v6518_v27  ;;  %5676 = vmatpush3.bf16.msra.mxu1 %v5673_v9  ;;  %v5689_v27 = vpack.c.bf16 %v2501_v36, %v2500_v26 }
 0x347   :  { %5415 = vmatprep.mubr.msk.f32.mxu0 %vm212_vm0, %v6444_v11  ;;  %v5677_v11 = vpack.c.bf16 %v2190_v38, %v2189_v37 }
 0x348   :  { %5380 = vmatmul.mubr.msk.f32.gmra.mrb[28].mxu1 %vm212_vm0, %v6525_v28  ;;  %5690 = vmatprep.subr.bf16.mxu0 %v5689_v27 }
 0x349   :  { %5382 = vmatprep.mubr.msk.f32.mxu1 %vm212_vm0, %v6528_v29  ;;  %5692 = vmatpush3.bf16.msra.mxu0 %v5689_v27 }
 0x34a   :  { %5416 = vmatmul.mubr.msk.f32.gmra.mrb[32].mxu0 %vm212_vm0, %v6525_v28  ;;  %5678 = vmatprep.subr.bf16.mxu1 %v5677_v11  ;;  %v3121_v28 = vld [vmem:[%s4519_s11] sm:$0xff] }
 0x34b   :  { %5418 = vmatprep.mubr.msk.f32.mxu0 %vm212_vm0, %v6528_v29  ;;  %5680 = vmatpush3.bf16.msra.mxu1 %v5677_v11  ;;  %v3122_v29 = vld [vmem:[%s4519_s11 + $0x8] sm:$0xff]  ;;  %s7032_s11 = sld [smem:[%s7601_s0 + %s6396_s8]]  }
 0x34c   :  { %5383 = vmatmul.mubr.msk.f32.gmra.mrb[30].mxu1 %vm212_vm0, %v6535_v30  ;;  %v6814_v16 = vpack.c.bf16 %v3122_v29, %v3121_v28  ;;  %5694 = vmatprep.subr.bf16.mxu1 %v6816_v18  ;;  %s4529_s8 = sld [smem:[%s7601_s0 + %s6410_s6]]  }
 0x34e   :  { %5419 = vmatmul.mubr.msk.f32.gmra.mrb[34].mxu0 %vm212_vm0, %v6535_v30  ;;  %5706 = vmatprep.subr.bf16.mxu0 %v6814_v16  ;;  %v4631_v30 = vld [vmem:[%s4502_s19] ss:$0 sm:$0xff]  ;;  %s4521_s19 = sld [smem:[%s7601_s0 + %s6398_s16]]  }
 0x34f   :  { %v6827_v19 = vadd.f32 %v4631_v30, %v6729_v44  ;;  %v6840_v23 = vadd.f32 %v6725_v43, %v4631_v30  ;;  %v6843_v40 = vadd.f32 %v6733_v46, %v4631_v30  ;;  %v4608_v44 = vmul.f32 -1.442695, %v6836_v21 }
 0x350   :  { %v6848_v59 = vadd.f32 %v4631_v30, %v6737_v49  ;;  %v6852_v60 = vadd.f32 %v6741_v50, %v4631_v30  ;;  %v6860_v4 = vadd.f32 %v4631_v30, %v6745_v52  ;;  %v6865_v50 = vadd.f32 %v4631_v30, %v6753_v56 }
 0x351   :  { %v4632_v22 = vmul.f32 -1.442695, %v6827_v19  ;;  %v4633_v58 = vmul.f32 -1.442695, %v6840_v23  ;;  %v4635_v41 = vmul.f32 -1.442695, %v6843_v40  ;;  %v6875_v56 = vadd.f32 %v6749_v54, %v4631_v30 }
 0x352   :  { %v4634_v0 = vmul.f32 -1.442695, %v6848_v59  ;;  %v4637_v5 = vmul.f32 -1.442695, %v6852_v60  ;;  %v4636_v52 = vmul.f32 -1.442695, %v6860_v4 }
 0x353   :  { %5992 = vpow2.f32 %v4632_v22  ;;  %v4638_v3 = vmul.f32 -1.442695, %v6865_v50  ;;  %v4639_v54 = vmul.f32 -1.442695, %v6875_v56 }
 0x354   :  { %5994 = vpow2.f32 %v4608_v44 }
 0x355   :  { %5996 = vpow2.f32 %v4633_v58 }
 0x356   :  { %5998 = vpow2.f32 %v4635_v41 }
 0x35d   :  { %v5993_v63 = vpop.eup %5992 }
 0x35e   :  { %v1560_v34 = vadd.f32 1.0, %v5993_v63  ;;  %v6884_v31 = vpop.eup %5994  ;;  %v6911_v63 = vadd.f32 %v6832_v20, %v6735_v47 }
 0x35f   :  { %v5997_v25 = vpop.eup %5996 }
 0x360   :  { %v5999_v36 = vpop.eup %5998  ;;  %v1561_v17 = vadd.f32 1.0, %v5997_v25  ;;  %v4609_v47 = vmul.f32 -1.442695, %v6911_v63 }
 0x403   :  { %v5359_v61 = vpop.f32.mrb[20].mxu0 }
 0x404   :  { %v6854_v43 = vadd.f32 %v5359_v61, %v4681_v57  ;;  %v2077_v62 = vpop.f32.mrb[21].mxu0 }
 0x405   :  { %v6856_v46 = vadd.f32 %v4681_v57, %v2077_v62  ;;  %v6901_v62 = vadd.f32 %v6832_v20, %v6727_v45 }
 0x406   :  { %v4683_v49 = vmul.f32 -1.442695, %v6854_v43 }
 0x407   :  { %v4682_v6 = vmul.f32 -1.442695, %v6856_v46  ;;  %v5362_v7 = vpop.f32.mrb[22].mxu0 }
 0x408   :  { %6000 = vpow2.f32 %v4683_v49  ;;  %v6868_v10 = vadd.f32 %v5362_v7, %v4681_v57  ;;  %v2087_v13 = vpop.f32.mrb[23].mxu0 }
 0x409   :  { %6002 = vpow2.f32 %v4682_v6  ;;  %v6870_v15 = vadd.f32 %v4681_v57, %v2087_v13 }
 0x40a   :  { %6004 = vpow2.f32 %v4634_v0  ;;  %v4685_v1 = vmul.f32 -1.442695, %v6868_v10  ;;  %v1563_v0 = vadd.f32 1.0, %v5999_v36 }
 0x40b   :  { %6006 = vpow2.f32 %v4637_v5  ;;  %v4684_v2 = vmul.f32 -1.442695, %v6870_v15 }
 0x40c   :  { %6008 = vpow2.f32 %v4685_v1  ;;  %v4607_v1 = vmul.f32 -1.442695, %v6901_v62 }
 0x40d   :  { %v5365_v8 = vpop.f32.mrb[24].mxu0  ;;  %6010 = vpow2.f32 %v4684_v2 }
 0x40e   :  { %v6879_v12 = vadd.f32 %v5365_v8, %v4681_v57  ;;  %v2097_v14 = vpop.f32.mrb[25].mxu0  ;;  %6012 = vpow2.f32 %v4636_v52 }
 0x40f   :  { %v6881_v33 = vadd.f32 %v4681_v57, %v2097_v14  ;;  %6014 = vpow2.f32 %v4638_v3 }
 0x410   :  { %v4687_v24 = vmul.f32 -1.442695, %v6879_v12 }
 0x411   :  { %v4686_v32 = vmul.f32 -1.442695, %v6881_v33  ;;  %v5368_v35 = vpop.f32.mrb[26].mxu0 }
 0x412   :  { %6016 = vpow2.f32 %v4687_v24  ;;  %v6888_v9 = vadd.f32 %v5368_v35, %v4681_v57  ;;  %v2107_v26 = vpop.f32.mrb[27].mxu0  ;;  %v6001_v27 = vpop.eup %6000  ;;  %v2786_v35 = vld [vmem:[%s6897_s3 + $0x8] sm:$0xff] }
 0x413   :  { %6018 = vpow2.f32 %v4686_v32  ;;  %v6890_v37 = vadd.f32 %v4681_v57, %v2107_v26  ;;  %v6003_v11 = vpop.eup %6002  ;;  %v2156_v28 = vadd.f32 1.0, %v6001_v27  ;;  %v2785_v32 = vld [vmem:[%s6897_s3] sm:$0xff]  ;;  %v6917_v26 = vadd.f32 %v6731_v42, %v6832_v20 }
 0x414   :  { %6020 = vrcp.f32 %v1560_v34  ;;  %v4689_v38 = vmul.f32 -1.442695, %v6888_v9  ;;  %v6005_v39 = vpop.eup %6004  ;;  %v2155_v30 = vadd.f32 1.0, %v6003_v11  ;;  %v6922_v27 = vadd.f32 %v6832_v20, %v6743_v51  ;;  %v6940_v51 = vld [vmem:[%s6906_s7] sm:$0xff]  ;;  %s4520_s7 = sld [smem:[%s7601_s0 + %s6402_s4]]  }
 0x415   :  { %6022 = vpow2.f32 %v4639_v54  ;;  %v4688_v29 = vmul.f32 -1.442695, %v6890_v37  ;;  %v6007_v22 = vpop.eup %6006  ;;  %v1562_v57 = vadd.f32 1.0, %v6005_v39  ;;  %v6930_v39 = vpack.c.bf16 %v2786_v35, %v2785_v32 }
 0x416   :  { %6024 = vpow2.f32 %v4689_v38  ;;  %v6009_v44 = vpop.eup %6008  ;;  %v1565_v8 = vadd.f32 1.0, %v6007_v22  ;;  %v6945_v22 = vadd.f32 %v6739_v48, %v6832_v20 }
 0x417   :  { %6026 = vrcp.f32 %v2156_v28  ;;  %v6011_v58 = vpop.eup %6010  ;;  %v2158_v41 = vadd.f32 1.0, %v6009_v44  ;;  %v4611_v44 = vmul.f32 -1.442695, %v6922_v27 }
 0x418   :  { %6028 = vrcp.f32 %v2155_v30  ;;  %v6013_v61 = vpop.eup %6012  ;;  %v2157_v49 = vadd.f32 1.0, %v6011_v58  ;;  %v6954_v58 = vadd.f32 %v6832_v20, %v6751_v55 }
 0x419   :  { %6030 = vpow2.f32 %v4688_v29  ;;  %v6015_v5 = vpop.eup %6014  ;;  %v1564_v13 = vadd.f32 1.0, %v6013_v61  ;;  %v6966_v61 = vadd.f32 %v6747_v53, %v6832_v20  ;;  %v4612_v20 = vmul.f32 -1.442695, %v6945_v22 }
 0x41a   :  { %6032 = vrcp.f32 %v1561_v17  ;;  %v1566_v34 = vadd.f32 1.0, %v6015_v5 }
 0x41b   :  { %6034 = vrcp.f32 %v2158_v41 }
 0x41c   :  { %v6017_v6 = vpop.eup %6016  ;;  %6036 = vrcp.f32 %v2157_v49 }
 0x41d   :  { %v6019_v7 = vpop.eup %6018  ;;  %6038 = vrcp.f32 %v1562_v57  ;;  %v2160_v52 = vadd.f32 1.0, %v6017_v6 }
 0x41e   :  { %v6021_v45 = vpop.eup %6020  ;;  %6040 = vrcp.f32 %v1563_v0  ;;  %v2159_v3 = vadd.f32 1.0, %v6019_v7 }
 0x41f   :  { %v6023_v2 = vpop.eup %6022  ;;  %6042 = vrcp.f32 %v2160_v52  ;;  %v6933_v30 = vmul.f32 %v6021_v45, %v6827_v19 }
 0x420   :  { %v6025_v14 = vpop.eup %6024  ;;  %6044 = vrcp.f32 %v2159_v3  ;;  %v1567_v38 = vadd.f32 1.0, %v6023_v2 }
 0x421   :  { %v6027_v24 = vpop.eup %6026  ;;  %6046 = vrcp.f32 %v1564_v13  ;;  %v2162_v54 = vadd.f32 1.0, %v6025_v14 }
 0x422   :  { %v6029_v25 = vpop.eup %6028  ;;  %6048 = vpow2.f32 %v4607_v1  ;;  %v6928_v29 = vmul.f32 %v6027_v24, %v6854_v43  ;;  %v4610_v43 = vmul.f32 -1.442695, %v6917_v26 }
 0x423   :  { %v6031_v36 = vpop.eup %6030  ;;  %6050 = vrcp.f32 %v1565_v8  ;;  %v6925_v11 = vmul.f32 %v6029_v25, %v6856_v46 }
 0x424   :  { %v6033_v28 = vpop.eup %6032  ;;  %6052 = vrcp.f32 %v1566_v34  ;;  %v2161_v42 = vadd.f32 1.0, %v6031_v36 }
 0x425   :  { %v6035_v17 = vpop.eup %6034  ;;  %6054 = vrcp.f32 %v2162_v54  ;;  %5393 = vmatprep.mubr.msk.f32.mxu1 %vm793_vm2, %v6925_v11  ;;  %5429 = vmatprep.mubr.msk.f32.mxu0 %vm793_vm2, %v6925_v11  ;;  %v6962_v41 = vmul.f32 %v6033_v28, %v6840_v23 }
 0x426   :  { %v6037_v46 = vpop.eup %6036  ;;  %6056 = vrcp.f32 %v2161_v42  ;;  %5394 = vmatmul.mubr.msk.f32.vlgmr.msra.gmra.mrb[24].mxu1 %vm793_vm2, %v6928_v29  ;;  %5430 = vmatmul.mubr.msk.f32.vlgmr.msra.gmra.mrb[28].mxu0 %vm793_vm2, %v6928_v29  ;;  %v6969_v0 = vmul.f32 %v6035_v17, %v6868_v10  ;;  %v4613_v10 = vmul.f32 -1.442695, %v6954_v58  ;;  %v7045_v42 = vld [vmem:[%s6436_s22] sm:$0xff] }
 0x427   :  { %v6039_v19 = vpop.eup %6038  ;;  %6058 = vpow2.f32 %v4609_v47  ;;  %v6957_v57 = vmul.f32 %v6037_v46, %v6870_v15  ;;  %5708 = vmatpush3.bf16.msra.mxu0 %v6814_v16  ;;  %5696 = vmatpush3.bf16.msra.mxu1 %v6816_v18  ;;  %v3072_v16 = vmul.f32 0.5, %v6933_v30  ;;  %v3073_v5 = vmul.f32 0.5, %v6962_v41 }
 0x428   :  { %v6041_v48 = vpop.eup %6040  ;;  %6060 = vrcp.f32 %v1567_v38  ;;  %5493 = vmatprep.subr.mxu0 %v6940_v51  ;;  %5698 = vmatprep.subr.bf16.mxu1 %v6930_v39  ;;  %v6979_v53 = vmul.f32 %v6039_v19, %v6848_v59  ;;  %v4614_v59 = vmul.f32 -1.442695, %v6966_v61  ;;  %v1274_v47 = vadd.f32 1.0, %v6884_v31  ;;  %v2787_v31 = vld [vmem:[%s6897_s3 + $0x10] sm:$0xff] }
 0x429   :  { %v6043_v55 = vpop.eup %6042  ;;  %5396 = vmatprep.mubr.msk.f32.mxu1 %vm793_vm2, %v6957_v57  ;;  %5432 = vmatprep.mubr.msk.f32.mxu0 %vm793_vm2, %v6957_v57  ;;  %6062 = vpow2.f32 %v4610_v43  ;;  %v3080_v13 = vmul.f32 1.442695, %v3072_v16  ;;  %v6996_v52 = vmul.f32 %v6041_v48, %v6843_v40  ;;  %v3082_v3 = vmul.f32 1.442695, %v3073_v5  ;;  %v7053_v48 = vld [vmem:[%s6436_s22 + $0x8] sm:$0xff] }
 0x42a   :  { %v6045_v18 = vpop.eup %6044  ;;  %5397 = vmatmul.mubr.msk.f32.gmra.mrb[26].mxu1 %vm793_vm2, %v6969_v0  ;;  %5433 = vmatmul.mubr.msk.f32.gmra.mrb[30].mxu0 %vm793_vm2, %v6969_v0  ;;  %6064 = vpow2.f32 %v4611_v44  ;;  %v6993_v6 = vmul.f32 %v6043_v55, %v6879_v12  ;;  %v3074_v45 = vmul.f32 0.5, %v6979_v53 }
 0x42b   :  { %v6047_v23 = vpop.eup %6046  ;;  %v6988_v15 = vmul.f32 %v6045_v18, %v6881_v33  ;;  %6066 = vpow2.f32 %v4612_v20  ;;  %v3075_v14 = vmul.f32 0.5, %v6996_v52  ;;  %v7062_v20 = vld [vmem:[%s6436_s22 + $0x10] sm:$0xff] }
 0x42c   :  { %v6049_v49 = vpop.eup %6048  ;;  %v7004_v1 = vmul.f32 %v6047_v23, %v6860_v4  ;;  %6068 = vpow2.f32 %v4613_v10  ;;  %v3084_v54 = vmul.f32 1.442695, %v3074_v45 }
 0x42d   :  { %v6051_v7 = vpop.eup %6050  ;;  %5399 = vmatprep.mubr.msk.f32.mxu1 %vm793_vm2, %v6988_v15  ;;  %5435 = vmatprep.mubr.msk.f32.mxu0 %vm793_vm2, %v6988_v15  ;;  %v1273_v2 = vadd.f32 1.0, %v6049_v49  ;;  %6070 = vpow2.f32 %v4614_v59  ;;  %v3086_v36 = vmul.f32 1.442695, %v3075_v14  ;;  %v7070_v59 = vld [vmem:[%s6436_s22 + $0x18] sm:$0xff]  ;;  %v3098_v14 = vld [vmem:[%s7032_s11 + $0x10] sm:$0xff] }
 0x42e   :  { %v6053_v33 = vpop.eup %6052  ;;  %5400 = vmatmul.mubr.msk.f32.gmra.mrb[28].mxu1 %vm793_vm2, %v6993_v6  ;;  %5436 = vmatmul.mubr.msk.f32.gmra.mrb[32].mxu0 %vm793_vm2, %v6993_v6  ;;  %6072 = vpow2.f32 %v3080_v13  ;;  %v7012_v34 = vmul.f32 %v6051_v7, %v6852_v60  ;;  %v3076_v32 = vmul.f32 0.5, %v7004_v1  ;;  %v3096_v7 = vld [vmem:[%s7032_s11] sm:$0xff] }
 0x42f   :  { %v6055_v40 = vpop.eup %6054  ;;  %v7019_v35 = vmul.f32 %v6053_v33, %v6865_v50  ;;  %6074 = vrcp.f32 %v1273_v2 }
 0x430   :  { %v6057_v12 = vpop.eup %6056  ;;  %v7022_v25 = vmul.f32 %v6055_v40, %v6888_v9  ;;  %v2788_v9 = vld [vmem:[%s6897_s3 + $0x18] sm:$0xff]  ;;  %6076 = vpow2.f32 %v3082_v3  ;;  %v3077_v38 = vmul.f32 0.5, %v7012_v34  ;;  %v3088_v17 = vmul.f32 1.442695, %v3076_v32  ;;  %v3097_v40 = vld [vmem:[%s7032_s11 + $0x8] sm:$0xff]  ;;  %v7097_v32 = vld [vmem:[%s6436_s22 + $0x30] sm:$0xff]  ;;  %s4517_s3 = sld [smem:[%s7601_s0 + %s6401_s30]]  }
 0x431   :  { %v6059_v8 = vpop.eup %6058  ;;  %v7015_v4 = vmul.f32 %v6057_v12, %v6890_v37  ;;  %6078 = vpow2.f32 %v3084_v54  ;;  %v3078_v46 = vmul.f32 0.5, %v7019_v35  ;;  %v5701_v19 = vpack.c.bf16 %v2788_v9, %v2787_v31 }
 0x432   :  { %v6061_v24 = vpop.eup %6060  ;;  %v1275_v50 = vadd.f32 1.0, %v6059_v8  ;;  %6080 = vrcp.f32 %v1274_v47  ;;  %v3090_v16 = vmul.f32 1.442695, %v3077_v38  ;;  %v7086_v8 = vld [vmem:[%s6436_s22 + $0x28] sm:$0xff]  ;;  %v7109_v38 = vld [vmem:[%s6436_s22 + $0x38] sm:$0xff] }
 0x433   :  { %5402 = vmatprep.mubr.msk.f32.mxu1 %vm793_vm2, %v7015_v4  ;;  %5438 = vmatprep.mubr.msk.f32.mxu0 %vm793_vm2, %v7015_v4  ;;  %v6063_v60 = vpop.eup %6062  ;;  %v7042_v28 = vmul.f32 %v6061_v24, %v6875_v56  ;;  %v3092_v10 = vmul.f32 1.442695, %v3078_v46 }
 0x434   :  { %5403 = vmatmul.mubr.msk.f32.gmra.mrb[30].mxu1 %vm793_vm2, %v7022_v25  ;;  %5439 = vmatmul.mubr.msk.f32.gmra.mrb[34].mxu0 %vm793_vm2, %v7022_v25  ;;  %v6065_v37 = vpop.eup %6064  ;;  %v1276_v43 = vadd.f32 1.0, %v6063_v60  ;;  %6082 = vrcp.f32 %v1275_v50 }
 0x435   :  { %5445 = vmatprep.mubr.msk.f32.mxu1 %vm212_vm0, %v7045_v42  ;;  %5481 = vmatprep.mubr.msk.f32.mxu0 %vm212_vm0, %v7045_v42  ;;  %v6067_v44 = vpop.eup %6066  ;;  %v1277_v56 = vadd.f32 1.0, %v6065_v37  ;;  %6084 = vpow2.f32 %v3086_v36  ;;  %v3079_v18 = vmul.f32 0.5, %v7042_v28  ;;  %v3099_v37 = vld [vmem:[%s7032_s11 + $0x18] sm:$0xff] }
 0x436   :  { %v6069_v55 = vpop.eup %6068  ;;  %6086 = vpow2.f32 %v3088_v17  ;;  %v1278_v5 = vadd.f32 1.0, %v6067_v44  ;;  %v3100_v17 = vld [vmem:[%s7032_s11 + $0x20] sm:$0xff] }
 0x437   :  { %v6071_v23 = vpop.eup %6070  ;;  %6088 = vrcp.f32 %v1276_v43  ;;  %v3094_v13 = vmul.f32 1.442695, %v3079_v18  ;;  %v3101_v18 = vld [vmem:[%s7032_s11 + $0x28] sm:$0xff] }
 0x438   :  { %5446 = vmatmul.mubr.msk.f32.vlgmr.msra.gmra.mrb[32].mxu1 %vm212_vm0, %v7053_v48  ;;  %5482 = vmatmul.mubr.msk.f32.vlgmr.msra.gmra.mrb[36].mxu0 %vm212_vm0, %v7053_v48  ;;  %v6073_v49 = vpop.eup %6072  ;;  %6090 = vrcp.f32 %v1277_v56  ;;  %v1280_v12 = vadd.f32 1.0, %v6071_v23 }
 0x439   :  { %5494 = vmatpush3.msra.mxu0 %v6940_v51  ;;  %5448 = vmatprep.mubr.msk.f32.mxu1 %vm212_vm0, %v7062_v20  ;;  %v1279_v51 = vadd.f32 1.0, %v6069_v55  ;;  %6092 = vpow2.f32 %v3090_v16  ;;  %v6075_v33 = vpop.eup %6074  ;;  %v3104_v3 = vmul.f32 %v6073_v49, %v3096_v7 }
 0x43a   :  { %5484 = vmatprep.mubr.msk.f32.mxu0 %vm212_vm0, %v7062_v20  ;;  %5700 = vmatpush3.bf16.msra.mxu1 %v6930_v39  ;;  %v7078_v39 = vld [vmem:[%s6436_s22 + $0x20] sm:$0xff]  ;;  %6094 = vpow2.f32 %v3092_v10  ;;  %v6077_v45 = vpop.eup %6076  ;;  %v7094_v54 = vmul.f32 %v6075_v33, %v6901_v62  ;;  %v3103_v33 = vld [vmem:[%s7032_s11 + $0x38] sm:$0xff] }
 0x43b   :  { %5702 = vmatprep.subr.bf16.mxu1 %v5701_v19  ;;  %6096 = vrcp.f32 %v1278_v5  ;;  %v6079_v2 = vpop.eup %6078  ;;  %v3105_v60 = vmul.f32 %v6077_v45, %v3097_v40 }
 0x43c   :  { %5449 = vmatmul.mubr.msk.f32.gmra.mrb[34].mxu1 %vm212_vm0, %v7070_v59  ;;  %5485 = vmatmul.mubr.msk.f32.gmra.mrb[38].mxu0 %vm212_vm0, %v7070_v59  ;;  %6098 = vrcp.f32 %v1279_v51  ;;  %v6081_v24 = vpop.eup %6080  ;;  %v3112_v31 = vadd.f32 %v3104_v3, %v7094_v54  ;;  %v3106_v9 = vmul.f32 %v6079_v2, %v3098_v14 }
 0x43d   :  { %5451 = vmatprep.mubr.msk.f32.mxu1 %vm212_vm0, %v7078_v39  ;;  %5487 = vmatprep.mubr.msk.f32.mxu0 %vm212_vm0, %v7078_v39  ;;  %6100 = vpow2.f32 %v3094_v13  ;;  %v7106_v36 = vmul.f32 %v6081_v24, %v6836_v21 }
 0x43e   :  { %5704 = vmatpush3.bf16.msra.mxu1 %v5701_v19  ;;  %v6083_v47 = vpop.eup %6082  ;;  %6102 = vrcp.f32 %v1280_v12 }
 0x43f   :  { %v6085_v50 = vpop.eup %6084  ;;  %v7117_v43 = vmul.f32 %v6083_v47, %v6911_v63  ;;  %v3113_v19 = vadd.f32 %v3105_v60, %v7106_v36  ;;  %v3102_v63 = vld [vmem:[%s7032_s11 + $0x30] sm:$0xff]  ;;  %s6404_s11 = smov 38  }
 0x440   :  { %5452 = vmatmul.mubr.msk.f32.gmra.mrb[36].mxu1 %vm212_vm0, %v7086_v8  ;;  %5488 = vmatmul.mubr.msk.f32.gmra.mrb[40].mxu0 %vm212_vm0, %v7086_v8  ;;  %v6087_v62 = vpop.eup %6086  ;;  %v3107_v44 = vmul.f32 %v6085_v50, %v3099_v37  ;;  %s4524_s14 = sld [smem:[%s7601_s0 + %s6404_s11]]  }
 0x441   :  { %5454 = vmatprep.mubr.msk.f32.mxu1 %vm212_vm0, %v7097_v32  ;;  %5490 = vmatprep.mubr.msk.f32.mxu0 %vm212_vm0, %v7097_v32  ;;  %v6089_v46 = vpop.eup %6088  ;;  %v3114_v55 = vadd.f32 %v3106_v9, %v7117_v43  ;;  %v3108_v16 = vmul.f32 %v6087_v62, %v3100_v17 }
 0x442   :  { %v6091_v21 = vpop.eup %6090  ;;  %v7126_v10 = vmul.f32 %v6089_v46, %v6917_v26 }
 0x443   :  { %v6093_v56 = vpop.eup %6092  ;;  %v7133_v49 = vmul.f32 %v6091_v21, %v6922_v27 }
 0x444   :  { %5455 = vmatmul.mubr.msk.f32.gmra.mrb[38].mxu1 %vm212_vm0, %v7109_v38  ;;  %5491 = vmatmul.mubr.msk.f32.gmra.mrb[42].mxu0 %vm212_vm0, %v7109_v38  ;;  %v6095_v23 = vpop.eup %6094  ;;  %v3115_v51 = vadd.f32 %v3107_v44, %v7126_v10  ;;  %v3109_v26 = vmul.f32 %v6093_v56, %v3101_v18 }
 0x445   :  { %5465 = vmatprep.mubr.msk.f32.mxu1 %vm793_vm2, %v6925_v11  ;;  %5495 = vmatprep.mubr.msk.f32.mxu0 %vm342_vm1, %v3112_v31  ;;  %v6097_v11 = vpop.eup %6096  ;;  %v3116_v13 = vadd.f32 %v3108_v16, %v7133_v49 }
 0x446   :  { %v6099_v5 = vpop.eup %6098  ;;  %v7142_v45 = vmul.f32 %v6097_v11, %v6945_v22 }
 0x447   :  { %v6101_v7 = vpop.eup %6100 }
 0x448   :  { %5466 = vmatmul.mubr.msk.f32.vlgmr.msra.gmra.mrb[32].mxu1 %vm793_vm2, %v6928_v29  ;;  %5496 = vmatmul.mubr.msk.f32.vlgmr.msra.gmra.mrb[36].mxu0 %vm342_vm1, %v3113_v19  ;;  %v3110_v29 = vmul.f32 %v6095_v23, %v3102_v63  ;;  %v6103_v27 = vpop.eup %6102  ;;  %v3117_v40 = vadd.f32 %v3109_v26, %v7142_v45  ;;  %v3111_v12 = vmul.f32 %v6101_v7, %v3103_v33 }
 0x449   :  { %5468 = vmatprep.mubr.msk.f32.mxu1 %vm793_vm2, %v6957_v57  ;;  %5498 = vmatprep.mubr.msk.f32.mxu0 %vm342_vm1, %v3114_v55  ;;  %v7148_v57 = vmul.f32 %v6099_v5, %v6954_v58  ;;  %v7156_v3 = vmul.f32 %v6103_v27, %v6966_v61  ;;  %v3389_v61 = vld [vmem:[%s4522_s15] sm:$0xff] }
 0x44b   :  { %v3118_v22 = vadd.f32 %v3110_v29, %v7148_v57  ;;  %v3119_v58 = vadd.f32 %v3111_v12, %v7156_v3 }
 0x44c   :  { %5469 = vmatmul.mubr.msk.f32.gmra.mrb[34].mxu1 %vm793_vm2, %v6969_v0  ;;  %5499 = vmatmul.mubr.msk.f32.gmra.mrb[38].mxu0 %vm342_vm1, %v3115_v51  ;;  %v3390_v0 = vld [vmem:[%s4522_s15 + $0x8] sm:$0xff]  ;;  %s6405_s15 = smov 45  }
 0x44d   :  { %5471 = vmatprep.mubr.msk.f32.mxu1 %vm793_vm2, %v6988_v15  ;;  %5501 = vmatprep.mubr.msk.f32.mxu0 %vm342_vm1, %v3116_v13  ;;  %v5709_v15 = vpack.c.bf16 %v3390_v0, %v3389_v61  ;;  %v7243_v0 = vld [vmem:[%s4514_s29] ss:$0 sm:$0xff]  ;;  %s4531_s18 = sld [smem:[%s7601_s0 + %s6405_s15]]  }
 0x44f   :  { %5710 = vmatprep.subr.bf16.mxu1 %v5709_v15 }
 0x450   :  { %5472 = vmatmul.mubr.msk.f32.gmra.mrb[36].mxu1 %vm793_vm2, %v6993_v6  ;;  %5502 = vmatmul.mubr.msk.f32.gmra.mrb[40].mxu0 %vm342_vm1, %v3117_v40  ;;  %v3388_v6 = vld [vmem:[%s4521_s19] sm:$0xff]  ;;  %s6406_s19 = smov 37  }
 0x451   :  { %5474 = vmatprep.mubr.msk.f32.mxu1 %vm793_vm2, %v7015_v4  ;;  %5504 = vmatprep.mubr.msk.f32.mxu0 %vm342_vm1, %v3118_v22  ;;  %v4706_v4 = vld [vmem:[%s4511_s24] ss:$0 sm:$0xff] }
 0x452   :  { %5712 = vmatpush3.bf16.msra.mxu1 %v5709_v15 }
 0x453   :  { %5523 = vmatprep.subr.mxu1 %v3388_v6 }
 0x454   :  { %5475 = vmatmul.mubr.msk.f32.gmra.mrb[38].mxu1 %vm793_vm2, %v7022_v25  ;;  %5505 = vmatmul.mubr.msk.f32.gmra.mrb[42].mxu0 %vm342_vm1, %v3119_v58 }
 0x455   :  { %5511 = vmatprep.mubr.msk.f32.mxu1 %vm212_vm0, %v7045_v42  ;;  %5541 = vmatprep.mubr.msk.f32.mxu0 %vm212_vm0, %v7045_v42 }
 0x458   :  { %5512 = vmatmul.mubr.msk.f32.vlgmr.msra.gmra.mrb[40].mxu1 %vm212_vm0, %v7053_v48 }
 0x459   :  { %5514 = vmatprep.mubr.msk.f32.mxu1 %vm212_vm0, %v7062_v20  ;;  %5524 = vmatpush3.msra.mxu1 %v3388_v6 }
 0x45c   :  { %5515 = vmatmul.mubr.msk.f32.gmra.mrb[42].mxu1 %vm212_vm0, %v7070_v59 }
 0x45d   :  { %5517 = vmatprep.mubr.msk.f32.mxu1 %vm212_vm0, %v7078_v39 }
 0x460   :  { %5518 = vmatmul.mubr.msk.f32.gmra.mrb[44].mxu1 %vm212_vm0, %v7086_v8 }
 0x461   :  { %5520 = vmatprep.mubr.msk.f32.mxu1 %vm212_vm0, %v7097_v32 }
 0x464   :  { %5521 = vmatmul.mubr.msk.f32.gmra.mrb[46].mxu1 %vm212_vm0, %v7109_v38 }
 0x4f9   :  { %v5395_v25 = vpop.f32.mrb[24].mxu1  ;;  %v7195_v48 = vpop.f32.mrb[28].mxu0 }
 0x4fa   :  { %v7197_v20 = vadd.f32 %v5395_v25, %v4706_v4  ;;  %v2388_v59 = vpop.f32.mrb[25].mxu1  ;;  %v7199_v39 = vpop.f32.mrb[29].mxu0 }
 0x4fb   :  { %v7201_v2 = vadd.f32 %v4706_v4, %v2388_v59  ;;  %v4350_v59 = vmul.f32 1.442695, %v6933_v30 }
 0x4fc   :  { %v4708_v8 = vmul.f32 -1.442695, %v7197_v20 }
 0x4fd   :  { %v4707_v14 = vmul.f32 -1.442695, %v7201_v2  ;;  %v5398_v24 = vpop.f32.mrb[26].mxu1  ;;  %v7205_v32 = vpop.f32.mrb[30].mxu0 }
 0x4fe   :  { %6104 = vpow2.f32 %v4708_v8  ;;  %v7207_v47 = vadd.f32 %v5398_v24, %v4706_v4  ;;  %v2398_v60 = vpop.f32.mrb[27].mxu1  ;;  %v7209_v50 = vpop.f32.mrb[31].mxu0  ;;  %v7250_v8 = vadd.f32 %v7195_v48, %v7243_v0  ;;  %v4356_v24 = vmul.f32 1.442695, %v6996_v52 }
 0x4ff   :  { %v7211_v31 = vadd.f32 %v4706_v4, %v2398_v60  ;;  %6106 = vpow2.f32 %v4707_v14  ;;  %v7254_v60 = vld [vmem:[%s4517_s3] ss:$0 sm:$0xff] }
 0x500   :  { %v4710_v9 = vmul.f32 -1.442695, %v7207_v47 }
 0x501   :  { %v4709_v37 = vmul.f32 -1.442695, %v7211_v31  ;;  %v5401_v62 = vpop.f32.mrb[28].mxu1  ;;  %v7215_v38 = vpop.f32.mrb[32].mxu0 }
 0x502   :  { %6108 = vpow2.f32 %v4710_v9  ;;  %v7217_v17 = vadd.f32 %v5401_v62, %v4706_v4  ;;  %v2408_v46 = vpop.f32.mrb[29].mxu1  ;;  %v7219_v21 = vpop.f32.mrb[33].mxu0  ;;  %v7256_v9 = vld [vmem:[%s4520_s7] ss:$0 sm:$0xff] }
 0x503   :  { %v7221_v19 = vadd.f32 %v4706_v4, %v2408_v46  ;;  %6110 = vpow2.f32 %v4709_v37  ;;  %v4733_v46 = vmul.f32 -1.442695, %v7250_v8 }
 0x504   :  { %v4712_v44 = vmul.f32 -1.442695, %v7217_v17 }
 0x505   :  { %v4711_v56 = vmul.f32 -1.442695, %v7221_v19 }
 0x506   :  { %6112 = vpow2.f32 %v4712_v44 }
 0x507   :  { %v5404_v55 = vpop.f32.mrb[30].mxu1  ;;  %v7225_v16 = vpop.f32.mrb[34].mxu0  ;;  %6114 = vpow2.f32 %v4711_v56 }
 0x508   :  { %v6105_v18 = vpop.eup %6104  ;;  %v2418_v23 = vpop.f32.mrb[31].mxu1  ;;  %v7232_v29 = vadd.f32 %v5404_v55, %v4706_v4 }
 0x509   :  { %v7227_v63 = vpop.f32.mrb[35].mxu0  ;;  %v2467_v11 = vadd.f32 1.0, %v6105_v18  ;;  %v6107_v5 = vpop.eup %6106  ;;  %v7234_v12 = vadd.f32 %v4706_v4, %v2418_v23  ;;  %v4352_v4 = vmul.f32 1.442695, %v6962_v41  ;;  %v6352_v18 = vld [vmem:[%s6450_s25 + $0x8] sm:$0xff] }
 0x50a   :  { %v2466_v51 = vadd.f32 1.0, %v6107_v5  ;;  %v4714_v61 = vmul.f32 -1.442695, %v7232_v29 }
 0x50b   :  { %6116 = vrcp.f32 %v2467_v11  ;;  %v4713_v6 = vmul.f32 -1.442695, %v7234_v12 }
 0x50c   :  { %v6109_v26 = vpop.eup %6108  ;;  %6118 = vrcp.f32 %v2466_v51 }
 0x50d   :  { %v2469_v7 = vadd.f32 1.0, %v6109_v26  ;;  %v6111_v13 = vpop.eup %6110 }
 0x50e   :  { %v2468_v27 = vadd.f32 1.0, %v6111_v13 }
 0x50f   :  { %6120 = vrcp.f32 %v2469_v7 }
 0x510   :  { %v6113_v33 = vpop.eup %6112  ;;  %6122 = vrcp.f32 %v2468_v27 }
 0x511   :  { %v2471_v40 = vadd.f32 1.0, %v6113_v33  ;;  %v6115_v22 = vpop.eup %6114  ;;  %v6353_v33 = vld [vmem:[%s6450_s25] sm:$0xff] }
 0x512   :  { %v2470_v58 = vadd.f32 1.0, %v6115_v22  ;;  %v4354_v22 = vmul.f32 1.442695, %v6979_v53 }
 0x513   :  { %6124 = vrcp.f32 %v2471_v40 }
 0x514   :  { %6126 = vrcp.f32 %v2470_v58 }
 0x515   :  { %v6117_v15 = vpop.eup %6116  ;;  %6128 = vpow2.f32 %v4714_v61 }
 0x516   :  { %v6119_v25 = vpop.eup %6118  ;;  %v2491_v14 = vmul.f32 %v6117_v15, %v7197_v20  ;;  %6130 = vpow2.f32 %v4713_v6  ;;  %v7262_v20 = vadd.f32 %v7243_v0, %v7199_v39 }
 0x517   :  { %6132 = vpow2.f32 %v4352_v4  ;;  %v2490_v62 = vmul.f32 %v6119_v25, %v7201_v2 }
 0x518   :  { %6134 = vpow2.f32 %v4350_v59  ;;  %v3373_v23 = vadd.f32 %v6352_v18, %v2491_v14  ;;  %v4732_v4 = vmul.f32 -1.442695, %v7262_v20 }
 0x519   :  { %v6121_v37 = vpop.eup %6120  ;;  %6136 = vpow2.f32 %v4356_v24  ;;  %v3372_v27 = vadd.f32 %v6353_v33, %v2490_v62 }
 0x51a   :  { %v2493_v2 = vmul.f32 %v6121_v37, %v7207_v47  ;;  %v6123_v26 = vpop.eup %6122  ;;  %6138 = vpow2.f32 %v4733_v46  ;;  %v7281_v47 = vadd.f32 %v7205_v32, %v7243_v0  ;;  %v7293_v32 = vadd.f32 %v7243_v0, %v7209_v50  ;;  %v6354_v46 = vld [vmem:[%s6450_s25 + $0x18] sm:$0xff] }
 0x51b   :  { %v5467_v48 = vpop.f32.mrb[32].mxu1  ;;  %v5497_v44 = vpop.f32.mrb[36].mxu0  ;;  %v2492_v62 = vmul.f32 %v6123_v26, %v7211_v31 }
 0x51c   :  { %v7265_v56 = vadd.f32 %v5467_v48, %v7254_v60  ;;  %v3365_v55 = vadd.f32 %v5497_v44, %v7256_v9  ;;  %v2962_v11 = vpop.f32.mrb[33].mxu1  ;;  %v3318_v5 = vpop.f32.mrb[37].mxu0  ;;  %v3375_v48 = vadd.f32 %v6354_v46, %v2493_v2  ;;  %v4735_v31 = vmul.f32 -1.442695, %v7281_v47 }
 0x51d   :  { %v7271_v51 = vadd.f32 %v7254_v60, %v2962_v11  ;;  %v3364_v13 = vadd.f32 %v7256_v9, %v3318_v5  ;;  %v6125_v40 = vpop.eup %6124 }
 0x51e   :  { %v4758_v7 = vmul.f32 -1.442695, %v7265_v56  ;;  %v7274_v39 = vadd.f32 %v3373_v23, %v3365_v55  ;;  %v6127_v6 = vpop.eup %6126  ;;  %v2495_v44 = vmul.f32 %v6125_v40, %v7217_v17 }
 0x51f   :  { %v4757_v58 = vmul.f32 -1.442695, %v7271_v51  ;;  %v5470_v61 = vpop.f32.mrb[34].mxu1  ;;  %v5500_v15 = vpop.f32.mrb[38].mxu0  ;;  %v7285_v25 = vadd.f32 %v3372_v27, %v3364_v13  ;;  %v2494_v50 = vmul.f32 %v6127_v6, %v7221_v19 }
 0x520   :  { %6140 = vpow2.f32 %v4758_v7  ;;  %v7288_v59 = vadd.f32 %v5470_v61, %v7254_v60  ;;  %v2972_v14 = vpop.f32.mrb[35].mxu1  ;;  %v3328_v24 = vpop.f32.mrb[39].mxu0  ;;  %v3367_v18 = vadd.f32 %v5500_v15, %v7256_v9  ;;  %v6355_v61 = vld [vmem:[%s6450_s25 + $0x10] sm:$0xff] }
 0x521   :  { %v6129_v37 = vpop.eup %6128  ;;  %6142 = vpow2.f32 %v4757_v58  ;;  %v7299_v23 = vadd.f32 %v7254_v60, %v2972_v14  ;;  %5525 = vmatprep.mubr.msk.f32.mxu1 %vm342_vm1, %v7285_v25  ;;  %v3366_v5 = vadd.f32 %v7256_v9, %v3328_v24  ;;  %v3374_v15 = vadd.f32 %v6355_v61, %v2492_v62  ;;  %v6356_v24 = vld [vmem:[%s6450_s25 + $0x28] sm:$0xff] }
 0x522   :  { %v2473_v55 = vadd.f32 1.0, %v6129_v37  ;;  %v6131_v11 = vpop.eup %6130  ;;  %6144 = vpow2.f32 %v4354_v22  ;;  %5526 = vmatmul.mubr.msk.f32.vlgmr.msra.gmra.mrb[40].mxu1 %vm342_vm1, %v7274_v39  ;;  %v4760_v13 = vmul.f32 -1.442695, %v7288_v59  ;;  %v7311_v33 = vadd.f32 %v3375_v48, %v3367_v18 }
 0x523   :  { %v5473_v17 = vpop.f32.mrb[36].mxu1  ;;  %v5503_v2 = vpop.f32.mrb[40].mxu0  ;;  %v2472_v7 = vadd.f32 1.0, %v6131_v11  ;;  %v4734_v22 = vmul.f32 -1.442695, %v7293_v32  ;;  %v3377_v37 = vadd.f32 %v6356_v24, %v2495_v44  ;;  %v7325_v48 = vadd.f32 %v3374_v15, %v3366_v5 }
 0x524   :  { %v7308_v26 = vpop.eup %6132  ;;  %6146 = vrcp.f32 %v2473_v55  ;;  %v2982_v27 = vpop.f32.mrb[37].mxu1  ;;  %v4759_v58 = vmul.f32 -1.442695, %v7299_v23  ;;  %v7319_v6 = vadd.f32 %v5473_v17, %v7254_v60  ;;  %v3369_v14 = vadd.f32 %v5503_v2, %v7256_v9  ;;  %v6357_v2 = vld [vmem:[%s6450_s25 + $0x20] sm:$0xff] }
 0x525   :  { %v3338_v40 = vpop.f32.mrb[41].mxu0  ;;  %v7313_v19 = vpop.eup %6134  ;;  %6148 = vpow2.f32 %v4732_v4  ;;  %7605 = vst [vmem:[#allocation2_spill] sm:$0xff] %v7325_v48  ;;  %v7328_v4 = vadd.f32 %v7254_v60, %v2982_v27  ;;  %5528 = vmatprep.mubr.msk.f32.mxu1 %vm342_vm1, %v7325_v48 }
 0x526   :  { %6150 = vrcp.f32 %v2472_v7  ;;  %v7323_v46 = vpop.eup %6136  ;;  %v3368_v55 = vadd.f32 %v7256_v9, %v3338_v40  ;;  %v4762_v11 = vmul.f32 -1.442695, %v7319_v6  ;;  %v7332_v17 = vadd.f32 %v3377_v37, %v3369_v14  ;;  %5529 = vmatmul.mubr.msk.f32.gmra.mrb[42].mxu1 %vm342_vm1, %v7311_v33 }
 0x527   :  { %6152 = vpow2.f32 %v4735_v31  ;;  %v5476_v62 = vpop.f32.mrb[38].mxu1  ;;  %v5506_v18 = vpop.f32.mrb[42].mxu0  ;;  %v3376_v7 = vadd.f32 %v6357_v2, %v2494_v50  ;;  %v7337_v31 = vadd.f32 %v7215_v38, %v7243_v0  ;;  %v4761_v5 = vmul.f32 -1.442695, %v7328_v4 }
 0x528   :  { %6154 = vpow2.f32 %v4760_v13  ;;  %7606 = vst [vmem:[#allocation3_spill] sm:$0xff] %v7332_v17  ;;  %v2992_v44 = vpop.f32.mrb[39].mxu1  ;;  %v3348_v61 = vpop.f32.mrb[43].mxu0  ;;  %v7343_v13 = vadd.f32 %v5476_v62, %v7254_v60  ;;  %v7347_v50 = vadd.f32 %v7243_v0, %v7219_v21  ;;  %v7359_v37 = vadd.f32 %v7225_v16, %v7243_v0 }
 0x529   :  { %v6139_v24 = vpop.eup %6138  ;;  %6156 = vpow2.f32 %v4759_v58  ;;  %v7349_v40 = vadd.f32 %v3376_v7, %v3368_v55  ;;  %v7354_v38 = vadd.f32 %v7254_v60, %v2992_v44  ;;  %v4737_v60 = vmul.f32 -1.442695, %v7337_v31 }
 0x52a   :  { %v6141_v27 = vpop.eup %6140  ;;  %6158 = vpow2.f32 %v4762_v11  ;;  %v4764_v14 = vmul.f32 -1.442695, %v7343_v13  ;;  %v4736_v2 = vmul.f32 -1.442695, %v7347_v50  ;;  %v3371_v44 = vadd.f32 %v5506_v18, %v7256_v9 }
 0x52b   :  { %7607 = vst [vmem:[#allocation4_spill] sm:$0xff] %v7349_v40  ;;  %v6143_v58 = vpop.eup %6142  ;;  %v3041_v15 = vadd.f32 1.0, %v6141_v27  ;;  %6160 = vpow2.f32 %v4761_v5  ;;  %v4763_v55 = vmul.f32 -1.442695, %v7354_v38  ;;  %5531 = vmatprep.mubr.msk.f32.mxu1 %vm342_vm1, %v7349_v40  ;;  %v4739_v27 = vmul.f32 -1.442695, %v7359_v37 }
 0x52c   :  { %6162 = vpow2.f32 %v4734_v22  ;;  %v3040_v21 = vadd.f32 1.0, %v6143_v58  ;;  %v7364_v62 = vpop.eup %6144  ;;  %5532 = vmatmul.mubr.msk.f32.gmra.mrb[44].mxu1 %vm342_vm1, %v7332_v17  ;;  %v2754_v22 = vadd.f32 1.0, %v6139_v24  ;;  %v3370_v17 = vadd.f32 %v7256_v9, %v3348_v61 }
 0x52d   :  { %6164 = vrcp.f32 %v3041_v15 }
 0x52e   :  { %v6147_v11 = vpop.eup %6146  ;;  %6166 = vrcp.f32 %v3040_v21  ;;  %v6358_v21 = vld [vmem:[%s6450_s25 + $0x38] sm:$0xff] }
 0x52f   :  { %v6149_v16 = vpop.eup %6148  ;;  %v2497_v7 = vmul.f32 %v6147_v11, %v7232_v29  ;;  %6168 = vpow2.f32 %v4764_v14  ;;  %v7378_v29 = vadd.f32 %v7243_v0, %v7227_v63 }
 0x530   :  { %v6151_v5 = vpop.eup %6150  ;;  %6170 = vpow2.f32 %v4763_v55  ;;  %v6359_v55 = vld [vmem:[%s6450_s25 + $0x30] sm:$0xff]  ;;  %s6403_s25 = smov 39  }
 0x531   :  { %v6153_v58 = vpop.eup %6152  ;;  %6172 = vpow2.f32 %v4737_v60  ;;  %v2496_v15 = vmul.f32 %v6151_v5, %v7234_v12  ;;  %v3379_v40 = vadd.f32 %v6358_v21, %v2497_v7  ;;  %v2753_v7 = vadd.f32 1.0, %v6149_v16  ;;  %s4525_s10 = sld [smem:[%s7601_s0 + %s6403_s25]]  }
 0x532   :  { %v6155_v48 = vpop.eup %6154  ;;  %6174 = vpow2.f32 %v4736_v2  ;;  %v4738_v63 = vmul.f32 -1.442695, %v7378_v29 }
 0x533   :  { %v6157_v18 = vpop.eup %6156  ;;  %6176 = vrcp.f32 %v2754_v22  ;;  %v3043_v24 = vadd.f32 1.0, %v6155_v48  ;;  %v7380_v14 = vadd.f32 %v3379_v40, %v3371_v44  ;;  %v3378_v11 = vadd.f32 %v6359_v55, %v2496_v15 }
 0x534   :  { %v6159_v60 = vpop.eup %6158  ;;  %6178 = vpow2.f32 %v4739_v27  ;;  %v3042_v12 = vadd.f32 1.0, %v6157_v18  ;;  %v2756_v48 = vadd.f32 1.0, %v6153_v58  ;;  %v4360_v55 = vmul.f32 1.442695, %v7012_v34 }
 0x535   :  { %v6161_v5 = vpop.eup %6160  ;;  %6180 = vrcp.f32 %v3043_v24  ;;  %v3045_v9 = vadd.f32 1.0, %v6159_v60  ;;  %v7383_v61 = vadd.f32 %v3378_v11, %v3370_v17 }
 0x536   :  { %v6163_v2 = vpop.eup %6162  ;;  %6182 = vrcp.f32 %v3042_v12  ;;  %v3044_v0 = vadd.f32 1.0, %v6161_v5 }
 0x537   :  { %v6165_v22 = vpop.eup %6164  ;;  %6184 = vrcp.f32 %v3045_v9  ;;  %5534 = vmatprep.mubr.msk.f32.mxu1 %vm342_vm1, %v7383_v61 }
 0x538   :  { %v6167_v40 = vpop.eup %6166  ;;  %v7389_v44 = vmul.f32 %v6165_v22, %v7265_v56  ;;  %6186 = vrcp.f32 %v3044_v0  ;;  %5535 = vmatmul.mubr.msk.f32.gmra.mrb[46].mxu1 %vm342_vm1, %v7380_v14 }
 0x539   :  { %v6169_v17 = vpop.eup %6168  ;;  %6188 = vrcp.f32 %v2753_v7  ;;  %v7394_v16 = vmul.f32 %v6167_v40, %v7271_v51  ;;  %5577 = vmatprep.mubr.msk.f32.mxu1 %vm212_vm0, %v7045_v42  ;;  %v2755_v51 = vadd.f32 1.0, %v6163_v2 }
 0x53a   :  { %v6171_v27 = vpop.eup %6170  ;;  %6190 = vpow2.f32 %v4738_v63  ;;  %v4392_v58 = vmul.f32 1.442695, %v7389_v44  ;;  %v3047_v15 = vadd.f32 1.0, %v6169_v17 }
 0x53b   :  { %v6173_v21 = vpop.eup %6172  ;;  %6192 = vrcp.f32 %v2756_v48  ;;  %v4390_v56 = vmul.f32 1.442695, %v7394_v16  ;;  %v3046_v18 = vadd.f32 1.0, %v6171_v27 }
 0x53c   :  { %v6175_v24 = vpop.eup %6174  ;;  %6194 = vpow2.f32 %v4392_v58  ;;  %v2758_v12 = vadd.f32 1.0, %v6173_v21 }
 0x53d   :  { %v6177_v11 = vpop.eup %6176  ;;  %6196 = vpow2.f32 %v4390_v56  ;;  %v2757_v5 = vadd.f32 1.0, %v6175_v24 }
 0x53e   :  { %v6179_v60 = vpop.eup %6178  ;;  %6198 = vrcp.f32 %v3047_v15 }
 0x53f   :  { %v6181_v42 = vpop.eup %6180  ;;  %6200 = vrcp.f32 %v3046_v18  ;;  %v2760_v58 = vadd.f32 1.0, %v6179_v60  ;;  %v4358_v60 = vmul.f32 1.442695, %v7004_v1 }
 0x540   :  { %v6183_v7 = vpop.eup %6182  ;;  %6202 = vpow2.f32 %v4360_v55  ;;  %v7402_v9 = vmul.f32 %v6181_v42, %v7288_v59 }
 0x541   :  { %v6185_v63 = vpop.eup %6184  ;;  %6204 = vrcp.f32 %v2755_v51  ;;  %v7405_v0 = vmul.f32 %v6183_v7, %v7299_v23 }
 0x542   :  { %v6187_v22 = vpop.eup %6186  ;;  %6206 = vrcp.f32 %v2758_v12  ;;  %v4396_v2 = vmul.f32 1.442695, %v7402_v9  ;;  %v7409_v48 = vmul.f32 %v6185_v63, %v7319_v6  ;;  %v2778_v6 = vmul.f32 %v6177_v11, %v7250_v8 }
 0x543   :  { %v6189_v40 = vpop.eup %6188  ;;  %6208 = vrcp.f32 %v2757_v5  ;;  %v4394_v17 = vmul.f32 1.442695, %v7405_v0  ;;  %v7413_v27 = vmul.f32 %v6187_v22, %v7328_v4 }
 0x544   :  { %v6191_v59 = vpop.eup %6190  ;;  %6210 = vpow2.f32 %v4396_v2  ;;  %v4400_v23 = vmul.f32 1.442695, %v7409_v48  ;;  %v2777_v24 = vmul.f32 %v6189_v40, %v7262_v20  ;;  %v4367_v8 = vsub.f32 %v7106_v36, %v2778_v6 }
 0x545   :  { %v6193_v15 = vpop.eup %6192  ;;  %6212 = vpow2.f32 %v4394_v17  ;;  %v4398_v21 = vmul.f32 1.442695, %v7413_v27  ;;  %v2759_v55 = vadd.f32 1.0, %v6191_v59  ;;  %v4364_v40 = vmul.f32 1.442695, %v7042_v28 }
 0x546   :  { %v6195_v56 = vpop.eup %6194  ;;  %6214 = vpow2.f32 %v4400_v23  ;;  %v4366_v63 = vsub.f32 %v7094_v54, %v2777_v24 }
 0x547   :  { %v6197_v18 = vpop.eup %6196  ;;  %v4407_v51 = vmul.f32 2.0, %v6195_v56  ;;  %6216 = vpow2.f32 %v4398_v21 }
 0x548   :  { %v6199_v4 = vpop.eup %6198  ;;  %6218 = vrcp.f32 %v2760_v58  ;;  %v4406_v12 = vmul.f32 2.0, %v6197_v18  ;;  %v4375_v58 = vmul.f32 %v4367_v8, %v4367_v8  ;;  %v4374_v23 = vmul.f32 %v4366_v63, %v4366_v63 }
 0x549   :  { %v6201_v42 = vpop.eup %6200  ;;  %6220 = vrcp.f32 %v4407_v51  ;;  %v7421_v5 = vmul.f32 %v6199_v4, %v7343_v13  ;;  %v2780_v13 = vmul.f32 %v6193_v15, %v7281_v47  ;;  %v4335_v47 = vsub.f32 %v7389_v44, %v6962_v41 }
 0x54a   :  { %v7423_v7 = vpop.eup %6202  ;;  %6222 = vrcp.f32 %v4406_v12  ;;  %v7427_v20 = vmul.f32 %v6201_v42, %v7354_v38  ;;  %v4334_v51 = vsub.f32 %v7394_v16, %v6933_v30  ;;  %v4383_v12 = vadd.f32 %v7308_v26, %v4375_v58 }
 0x54b   :  { %v6205_v11 = vpop.eup %6204  ;;  %6224 = vrcp.f32 %v2759_v55  ;;  %v4404_v22 = vmul.f32 1.442695, %v7421_v5  ;;  %v4369_v18 = vsub.f32 %v7126_v10, %v2780_v13  ;;  %v4343_v30 = vmul.f32 0.5, %v4335_v47 }
 0x54c   :  { %v6207_v2 = vpop.eup %6206  ;;  %6226 = vpow2.f32 %v4358_v60  ;;  %v4402_v17 = vmul.f32 1.442695, %v7427_v20  ;;  %v2779_v54 = vmul.f32 %v6205_v11, %v7293_v32  ;;  %v4337_v58 = vsub.f32 %v7402_v9, %v6996_v52 }
 0x54d   :  { %v6209_v59 = vpop.eup %6208  ;;  %6228 = vpow2.f32 %v4404_v22  ;;  %v2782_v21 = vmul.f32 %v6207_v2, %v7337_v31  ;;  %v4362_v31 = vmul.f32 1.442695, %v7019_v35  ;;  %v4377_v11 = vmul.f32 %v4369_v18, %v4369_v18 }
 0x54e   :  { %v6211_v36 = vpop.eup %6210  ;;  %6230 = vpow2.f32 %v4402_v17  ;;  %v2781_v55 = vmul.f32 %v6209_v59, %v7347_v50  ;;  %v4368_v42 = vsub.f32 %v7117_v43, %v2779_v54  ;;  %v4382_v50 = vadd.f32 %v7313_v19, %v4374_v23 }
 0x54f   :  { %v6213_v38 = vpop.eup %6212  ;;  %v4409_v56 = vmul.f32 2.0, %v6211_v36  ;;  %6232 = vpow2.f32 %v4364_v40  ;;  %v4371_v41 = vsub.f32 %v7142_v45, %v2782_v21  ;;  %v4342_v22 = vmul.f32 0.5, %v4334_v51 }
 0x550   :  { %v6215_v6 = vpop.eup %6214  ;;  %v4408_v15 = vmul.f32 2.0, %v6213_v38  ;;  %v4370_v63 = vsub.f32 %v7133_v49, %v2781_v55  ;;  %v4376_v43 = vmul.f32 %v4368_v42, %v4368_v42  ;;  %v4336_v54 = vsub.f32 %v7405_v0, %v6979_v53 }
 0x551   :  { %v6217_v24 = vpop.eup %6216  ;;  %6234 = vrcp.f32 %v4409_v56  ;;  %v4411_v4 = vmul.f32 2.0, %v6215_v6  ;;  %v4379_v17 = vmul.f32 %v4371_v41, %v4371_v41  ;;  %v4385_v56 = vadd.f32 %v7323_v46, %v4377_v11 }
 0x552   :  { %v6219_v32 = vpop.eup %6218  ;;  %6236 = vrcp.f32 %v4408_v15  ;;  %v4410_v60 = vmul.f32 2.0, %v6217_v24  ;;  %v4378_v49 = vmul.f32 %v4370_v63, %v4370_v63  ;;  %v4338_v9 = vsub.f32 %v7413_v27, %v7004_v1 }
 0x553   :  { %v6221_v10 = vpop.eup %6220  ;;  %6238 = vrcp.f32 %v4411_v4  ;;  %v2784_v45 = vmul.f32 %v6219_v32, %v7359_v37  ;;  %v4339_v37 = vsub.f32 %v7409_v48, %v7012_v34  ;;  %v4384_v53 = vadd.f32 %v7364_v62, %v4376_v43 }
 0x554   :  { %v6223_v44 = vpop.eup %6222  ;;  %6240 = vrcp.f32 %v4410_v60  ;;  %v4417_v16 = vmul.f32 %v6221_v10, %v4383_v12  ;;  %v4345_v15 = vmul.f32 0.5, %v4337_v58  ;;  %v4387_v34 = vadd.f32 %v7423_v7, %v4379_v17 }
 0x555   :  { %v6225_v8 = vpop.eup %6224  ;;  %v4415_v2 = vmul.f32 %v6223_v44, %v4382_v50  ;;  %6242 = vpow2.f32 %v4362_v31  ;;  %v4373_v52 = vsub.f32 %v7156_v3, %v2784_v45  ;;  %v4344_v55 = vmul.f32 0.5, %v4336_v54 }
 0x556   :  { %v6227_v40 = vpop.eup %6226  ;;  %v4431_v26 = vadd.f32 %v4417_v16, %v4343_v30  ;;  %v2783_v36 = vmul.f32 %v6225_v8, %v7378_v29  ;;  %v4347_v1 = vmul.f32 0.5, %v4339_v37  ;;  %v4346_v12 = vmul.f32 0.5, %v4338_v9  ;;  %v3696_v37 = vld [vmem:[%s4524_s14] sm:$0xff]  ;;  %v3698_v9 = vld [vmem:[%s4524_s14 + $0x10] sm:$0xff] }
 0x557   :  { %v6229_v13 = vpop.eup %6228  ;;  %v4430_v59 = vadd.f32 %v4415_v2, %v4342_v22  ;;  %v4386_v4 = vadd.f32 %v6227_v40, %v4378_v49  ;;  %v4381_v60 = vmul.f32 %v4373_v52, %v4373_v52  ;;  %v4341_v7 = vsub.f32 %v7421_v5, %v7042_v28  ;;  %v3701_v49 = vld [vmem:[%s4525_s10 + $0x8] sm:$0xff] }
 0x558   :  { %v6231_v19 = vpop.eup %6230  ;;  %v4413_v38 = vmul.f32 2.0, %v6229_v13  ;;  %v4858_v23 = vadd.f32 -0.5, %v4431_v26  ;;  %v4372_v46 = vsub.f32 %v7148_v57, %v2783_v36  ;;  %v4340_v30 = vsub.f32 %v7427_v20, %v7019_v35  ;;  %v7502_v52 = vld [vmem:[%s6436_s22 + $0x28] sm:$0xff] }
 0x559   :  { %v4412_v21 = vmul.f32 2.0, %v6231_v19  ;;  %v6233_v6 = vpop.eup %6232  ;;  %v4857_v29 = vadd.f32 -0.5, %v4430_v59  ;;  %v4349_v13 = vmul.f32 0.5, %v4341_v7 }
 0x55a   :  { %6244 = vrcp.f32 %v4413_v38  ;;  %v4449_v18 = vsel %vm342_vm1, %v4858_v23, 0.0  ;;  %v4380_v42 = vmul.f32 %v4372_v46, %v4372_v46  ;;  %v4389_v63 = vadd.f32 %v6233_v6, %v4381_v60  ;;  %v3700_v23 = vld [vmem:[%s4525_s10] sm:$0xff]  ;;  %v7492_v6 = vld [vmem:[%s6436_s22 + $0x18] sm:$0xff] }
 0x55b   :  { %v6235_v47 = vpop.eup %6234  ;;  %6246 = vrcp.f32 %v4412_v21  ;;  %4450 = vadd.xlane.f32.xlu0 %v4449_v18  ;;  %v4446_v3 = vsel %vm342_vm1, %v4857_v29, 0.0  ;;  %v4348_v5 = vmul.f32 0.5, %v4340_v30  ;;  %v5713_v54 = vpack.c.bf16 %v3701_v49, %v3700_v23  ;;  %v7482_v21 = vld [vmem:[%s6436_s22 + $0x8] sm:$0xff]  ;;  %v7497_v29 = vld [vmem:[%s6436_s22 + $0x20] sm:$0xff] }
 0x55c   :  { %v6237_v0 = vpop.eup %6236  ;;  %v4421_v24 = vmul.f32 %v6235_v47, %v4385_v56  ;;  %v7487_v56 = vld [vmem:[%s6436_s22 + $0x10] sm:$0xff]  ;;  %v3697_v18 = vld [vmem:[%s4524_s14 + $0x8] sm:$0xff] }
 0x55d   :  { %v6239_v48 = vpop.eup %6238  ;;  %v4419_v51 = vmul.f32 %v6237_v0, %v4384_v53  ;;  %5714 = vmatprep.subr.bf16.mxu0 %v5713_v54  ;;  %v5717_v47 = vpack.c.bf16 %v3697_v18, %v3696_v37  ;;  %v3699_v53 = vld [vmem:[%s4524_s14 + $0x18] sm:$0xff]  ;;  %v7507_v0 = vld [vmem:[%s6436_s22 + $0x30] sm:$0xff] }
 0x55e   :  { %v6241_v32 = vpop.eup %6240  ;;  %v4433_v31 = vadd.f32 %v4421_v24, %v4345_v15  ;;  %v4425_v27 = vmul.f32 %v6239_v48, %v4387_v34  ;;  %5716 = vmatpush3.bf16.msra.mxu0 %v5713_v54  ;;  %v5721_v46 = vpack.c.bf16 %v3699_v53, %v3698_v9  ;;  %v7512_v15 = vld [vmem:[%s6436_s22 + $0x38] sm:$0xff]  ;;  %s4523_s22 = sld [smem:[%s7601_s0 + %s6406_s19]]  }
 0x55f   :  { %4447 = vadd.xlane.f32.xlu0 %v4446_v3  ;;  %v4432_v62 = vadd.f32 %v4419_v51, %v4344_v55  ;;  %v4423_v10 = vmul.f32 %v6241_v32, %v4386_v4  ;;  %v6243_v57 = vpop.eup %6242  ;;  %5718 = vmatprep.subr.bf16.mxu0 %v5717_v47 }
 0x560   :  { %v4860_v41 = vadd.f32 -0.5, %v4433_v31  ;;  %v4435_v50 = vadd.f32 %v4425_v27, %v4347_v1  ;;  %v4388_v2 = vadd.f32 %v6243_v57, %v4380_v42 }
 0x561   :  { %v4434_v44 = vadd.f32 %v4423_v10, %v4346_v12  ;;  %v4859_v8 = vadd.f32 -0.5, %v4432_v62  ;;  %5542 = vmatmul.mubr.msk.f32.vlgmr.msra.gmra.mrb[44].mxu0 %vm212_vm0, %v7482_v21 }
 0x562   :  { %v4455_v16 = vsel %vm342_vm1, %v4860_v41, 0.0  ;;  %v4862_v28 = vadd.f32 -0.5, %v4435_v50  ;;  %5544 = vmatprep.mubr.msk.f32.mxu0 %vm212_vm0, %v7487_v56  ;;  %5720 = vmatpush3.bf16.msra.mxu0 %v5717_v47 }
 0x563   :  { %4456 = vadd.xlane.f32.xlu1 %v4455_v16  ;;  %v4861_v11 = vadd.f32 -0.5, %v4434_v44  ;;  %v4452_v17 = vsel %vm342_vm1, %v4859_v8, 0.0  ;;  %5722 = vmatprep.subr.bf16.mxu0 %v5721_v46 }
 0x564   :  { %v6245_v22 = vpop.eup %6244  ;;  %v4461_v59 = vsel %vm342_vm1, %v4862_v28, 0.0  ;;  %v4798_v4 = vld [vmem:[%s4523_s22] ss:$0 sm:$0xff] }
 0x565   :  { %v6247_v40 = vpop.eup %6246  ;;  %v4458_v26 = vsel %vm342_vm1, %v4861_v11, 0.0  ;;  %v4429_v43 = vmul.f32 %v6245_v22, %v4389_v63  ;;  %5545 = vmatmul.mubr.msk.f32.gmra.mrb[46].mxu0 %vm212_vm0, %v7492_v6 }
 0x566   :  { %4459 = vadd.xlane.f32.xlu0 %v4458_v26  ;;  %v4427_v45 = vmul.f32 %v6247_v40, %v4388_v2  ;;  %5547 = vmatprep.mubr.msk.f32.mxu0 %vm212_vm0, %v7497_v29 }
 0x567   :  { %4453 = vadd.xlane.f32.xlu1 %v4452_v17  ;;  %v4437_v35 = vadd.f32 %v4429_v43, %v4349_v13  ;;  %5724 = vmatpush3.bf16.msra.mxu0 %v5721_v46 }
 0x568   :  { %v4436_v20 = vadd.f32 %v4427_v45, %v4348_v5 }
 0x569   :  { %v4864_v36 = vadd.f32 -0.5, %v4437_v35  ;;  %5548 = vmatmul.mubr.msk.f32.gmra.mrb[48].mxu0 %vm212_vm0, %v7502_v52 }
 0x56a   :  { %v4863_v19 = vadd.f32 -0.5, %v4436_v20  ;;  %5550 = vmatprep.mubr.msk.f32.mxu0 %vm212_vm0, %v7507_v0 }
 0x56b   :  { %4462 = vadd.xlane.f32.xlu1 %v4461_v59  ;;  %v4467_v38 = vsel %vm342_vm1, %v4864_v36, 0.0 }
 0x56c   :  { %v4464_v58 = vsel %vm342_vm1, %v4863_v19, 0.0 }
 0x56d   :  { %4465 = vadd.xlane.f32.xlu0 %v4464_v58  ;;  %5551 = vmatmul.mubr.msk.f32.gmra.mrb[50].mxu0 %vm212_vm0, %v7512_v15 }
 0x56f   :  { %4468 = vadd.xlane.f32.xlu1 %v4467_v38 }
 0x5e8   :  { %v4451_v24 = vpop.xlane.xlu0 %4450 }
 0x5e9   :  { %4472 = vst.msk [vmem:[%s4531_s18 + $0x8] sm:$0xff] %vm4470_vm3, %v4451_v24 }
 0x5ec   :  { %v4448_v34 = vpop.xlane.xlu0 %4447 }
 0x5ed   :  { %4471 = vst.msk [vmem:[%s4531_s18] sm:$0xff] %vm4470_vm3, %v4448_v34 }
 0x5f0   :  { %v4457_v48 = vpop.xlane.xlu1 %4456 }
 0x5f1   :  { %4474 = vst.msk [vmem:[%s4531_s18 + $0x18] sm:$0xff] %vm4470_vm3, %v4457_v48 }
 0x5f3   :  { %v4460_v55 = vpop.xlane.xlu0 %4459 }
 0x5f4   :  { %v4454_v51 = vpop.xlane.xlu1 %4453  ;;  %4475 = vst.msk [vmem:[%s4531_s18 + $0x20] sm:$0xff] %vm4470_vm3, %v4460_v55 }
 0x5f5   :  { %4473 = vst.msk [vmem:[%s4531_s18 + $0x10] sm:$0xff] %vm4470_vm3, %v4454_v51  ;;  %v5527_v32 = vpop.f32.mrb[40].mxu1 }
 0x5f6   :  { %v3633_v3 = vadd.f32 %v5527_v32, %v4798_v4  ;;  %v3586_v31 = vpop.f32.mrb[41].mxu1 }
 0x5f7   :  { %v3632_v27 = vadd.f32 %v4798_v4, %v3586_v31 }
 0x5f8   :  { %v4463_v1 = vpop.xlane.xlu1 %4462  ;;  %v4800_v60 = vmul.f32 -1.442695, %v3633_v3 }
 0x5f9   :  { %4476 = vst.msk [vmem:[%s4531_s18 + $0x28] sm:$0xff] %vm4470_vm3, %v4463_v1  ;;  %v4799_v12 = vmul.f32 -1.442695, %v3632_v27  ;;  %v5530_v57 = vpop.f32.mrb[42].mxu1 }
 0x5fa   :  { %v4466_v62 = vpop.xlane.xlu0 %4465  ;;  %6248 = vpow2.f32 %v4800_v60  ;;  %v3635_v42 = vadd.f32 %v5530_v57, %v4798_v4  ;;  %v3596_v41 = vpop.f32.mrb[43].mxu1 }
 0x5fb   :  { %4477 = vst.msk [vmem:[%s4531_s18 + $0x30] sm:$0xff] %vm4470_vm3, %v4466_v62  ;;  %6250 = vpow2.f32 %v4799_v12  ;;  %v3634_v50 = vadd.f32 %v4798_v4, %v3596_v41  ;;  %v4011_v12 = vld [vmem:[%s4528_s27] sm:$0xff]  ;;  %v4008_v41 = vld [vmem:[%s4527_s1 + $0x8] sm:$0xff] }
 0x5fc   :  { %v4469_v10 = vpop.xlane.xlu1 %4468  ;;  %v4802_v7 = vmul.f32 -1.442695, %v3635_v42 }
 0x5fd   :  { %4478 = vst.msk [vmem:[%s4531_s18 + $0x38] sm:$0xff] %vm4470_vm3, %v4469_v10  ;;  %v4801_v44 = vmul.f32 -1.442695, %v3634_v50  ;;  %v4012_v10 = vld [vmem:[%s4528_s27 + $0x8] sm:$0xff] }
 0x5fe   :  { %6252 = vpow2.f32 %v4802_v7  ;;  %v5725_v57 = vpack.c.bf16 %v4012_v10, %v4011_v12  ;;  %v4009_v7 = vld [vmem:[%s4527_s1 + $0x10] sm:$0xff] }
 0x5ff   :  { %v5533_v30 = vpop.f32.mrb[44].mxu1  ;;  %6254 = vpow2.f32 %v4801_v44  ;;  %v4010_v44 = vld [vmem:[%s4527_s1 + $0x18] sm:$0xff] }
 0x600   :  { %v3637_v16 = vadd.f32 %v5533_v30, %v4798_v4  ;;  %v3606_v8 = vpop.f32.mrb[45].mxu1  ;;  %5726 = vmatprep.subr.bf16.mxu1 %v5725_v57 }
 0x601   :  { %v3636_v11 = vadd.f32 %v4798_v4, %v3606_v8  ;;  %5728 = vmatpush3.bf16.msra.mxu1 %v5725_v57 }
 0x602   :  { %v4804_v63 = vmul.f32 -1.442695, %v3637_v16 }
 0x603   :  { %v4803_v2 = vmul.f32 -1.442695, %v3636_v11 }
 0x604   :  { %v6249_v22 = vpop.eup %6248  ;;  %6256 = vpow2.f32 %v4804_v63  ;;  %5578 = vmatmul.mubr.msk.f32.vlgmr.msra.gmra.mrb[48].mxu1 %vm212_vm0, %v7482_v21  ;;  %v5733_v21 = vpack.c.bf16 %v4010_v44, %v4009_v7  ;;  %v4848_v44 = vld [vmem:[%s4529_s8] ss:$0 sm:$0xff] }
 0x605   :  { %v6251_v40 = vpop.eup %6250  ;;  %v3665_v26 = vadd.f32 1.0, %v6249_v22  ;;  %6258 = vpow2.f32 %v4803_v2  ;;  %5580 = vmatprep.mubr.msk.f32.mxu1 %vm212_vm0, %v7487_v56  ;;  %v4823_v56 = vld [vmem:[%s4526_s5] ss:$0 sm:$0xff] }
 0x606   :  { %v3664_v13 = vadd.f32 1.0, %v6251_v40 }
 0x607   :  { %6260 = vrcp.f32 %v3665_v26 }
 0x608   :  { %6262 = vrcp.f32 %v3664_v13  ;;  %v6253_v17 = vpop.eup %6252  ;;  %5581 = vmatmul.mubr.msk.f32.gmra.mrb[50].mxu1 %vm212_vm0, %v7492_v6 }
 0x609   :  { %v6255_v45 = vpop.eup %6254  ;;  %v3667_v35 = vadd.f32 1.0, %v6253_v17  ;;  %5583 = vmatprep.mubr.msk.f32.mxu1 %vm212_vm0, %v7497_v29 }
 0x60a   :  { %v3666_v59 = vadd.f32 1.0, %v6255_v45 }
 0x60b   :  { %v5536_v43 = vpop.f32.mrb[46].mxu1  ;;  %6264 = vrcp.f32 %v3667_v35 }
 0x60c   :  { %v3639_v28 = vadd.f32 %v5536_v43, %v4798_v4  ;;  %v3616_v5 = vpop.f32.mrb[47].mxu1  ;;  %6266 = vrcp.f32 %v3666_v59  ;;  %5584 = vmatmul.mubr.msk.f32.gmra.mrb[52].mxu1 %vm212_vm0, %v7502_v52 }
 0x60d   :  { %v3638_v20 = vadd.f32 %v4798_v4, %v3616_v5  ;;  %5586 = vmatprep.mubr.msk.f32.mxu1 %vm212_vm0, %v7507_v0 }
 0x60e   :  { %v4806_v19 = vmul.f32 -1.442695, %v3639_v28  ;;  %v6257_v58 = vpop.eup %6256 }
 0x60f   :  { %v4805_v36 = vmul.f32 -1.442695, %v3638_v20  ;;  %v6259_v38 = vpop.eup %6258  ;;  %v3669_v23 = vadd.f32 1.0, %v6257_v58 }
 0x610   :  { %6268 = vpow2.f32 %v4806_v19  ;;  %v3668_v54 = vadd.f32 1.0, %v6259_v38  ;;  %5587 = vmatmul.mubr.msk.f32.gmra.mrb[54].mxu1 %vm212_vm0, %v7512_v15 }
 0x611   :  { %v6261_v49 = vpop.eup %6260  ;;  %6270 = vpow2.f32 %v4805_v36 }
 0x612   :  { %v6263_v37 = vpop.eup %6262  ;;  %6272 = vrcp.f32 %v3669_v23  ;;  %v3689_v47 = vmul.f32 %v6261_v49, %v3633_v3 }
 0x613   :  { %v3688_v18 = vmul.f32 %v6263_v37, %v3632_v27  ;;  %6274 = vrcp.f32 %v3668_v54 }
 0x615   :  { %5561 = vmatprep.mubr.msk.f32.mxu0 %vm793_vm2, %v3688_v18  ;;  %v6265_v9 = vpop.eup %6264 }
 0x616   :  { %5562 = vmatmul.mubr.msk.f32.vlgmr.msra.gmra.mrb[44].mxu0 %vm793_vm2, %v3689_v47  ;;  %v6267_v53 = vpop.eup %6266  ;;  %v3691_v48 = vmul.f32 %v6265_v9, %v3635_v42  ;;  %v4007_v42 = vld [vmem:[%s4527_s1] sm:$0xff] }
 0x617   :  { %v3690_v24 = vmul.f32 %v6267_v53, %v3634_v50  ;;  %v5729_v50 = vpack.c.bf16 %v4008_v41, %v4007_v42 }
 0x619   :  { %5564 = vmatprep.mubr.msk.f32.mxu0 %vm793_vm2, %v3690_v24  ;;  %5730 = vmatprep.subr.bf16.mxu1 %v5729_v50 }
 0x61a   :  { %v6269_v46 = vpop.eup %6268  ;;  %5565 = vmatmul.mubr.msk.f32.gmra.mrb[46].mxu0 %vm793_vm2, %v3691_v48  ;;  %5732 = vmatpush3.bf16.msra.mxu1 %v5729_v50 }
 0x61b   :  { %v6271_v34 = vpop.eup %6270  ;;  %v3671_v55 = vadd.f32 1.0, %v6269_v46  ;;  %5734 = vmatprep.subr.bf16.mxu1 %v5733_v21 }
 0x61c   :  { %v6273_v51 = vpop.eup %6272  ;;  %v3670_v4 = vadd.f32 1.0, %v6271_v34 }
 0x61d   :  { %v6275_v32 = vpop.eup %6274  ;;  %6276 = vrcp.f32 %v3671_v55  ;;  %v3693_v31 = vmul.f32 %v6273_v51, %v3637_v16 }
 0x61e   :  { %v3692_v3 = vmul.f32 %v6275_v32, %v3636_v11  ;;  %6278 = vrcp.f32 %v3670_v4  ;;  %5736 = vmatpush3.bf16.msra.mxu1 %v5733_v21 }
 0x620   :  { %5567 = vmatprep.mubr.msk.f32.mxu0 %vm793_vm2, %v3692_v3 }
 0x621   :  { %5568 = vmatmul.mubr.msk.f32.gmra.mrb[48].mxu0 %vm793_vm2, %v3693_v31 }
 0x627   :  { %v6277_v1 = vpop.eup %6276 }
 0x628   :  { %v6279_v27 = vpop.eup %6278  ;;  %v3695_v62 = vmul.f32 %v6277_v1, %v3639_v28 }
 0x629   :  { %v3694_v60 = vmul.f32 %v6279_v27, %v3638_v20 }
 0x62b   :  { %5570 = vmatprep.mubr.msk.f32.mxu0 %vm793_vm2, %v3694_v60 }
 0x62c   :  { %5571 = vmatmul.mubr.msk.f32.gmra.mrb[50].mxu0 %vm793_vm2, %v3695_v62 }
 0x6e9   :  { %v5563_v6 = vpop.f32.mrb[44].mxu0 }
 0x6ea   :  { %v3944_v29 = vadd.f32 %v5563_v6, %v4823_v56  ;;  %v3897_v52 = vpop.f32.mrb[45].mxu0 }
 0x6eb   :  { %v3943_v30 = vadd.f32 %v4823_v56, %v3897_v52 }
 0x6ec   :  { %v4825_v16 = vmul.f32 -1.442695, %v3944_v29 }
 0x6ed   :  { %v4824_v8 = vmul.f32 -1.442695, %v3943_v30  ;;  %v5566_v0 = vpop.f32.mrb[46].mxu0 }
 0x6ee   :  { %6280 = vpow2.f32 %v4825_v16  ;;  %v3946_v11 = vadd.f32 %v5566_v0, %v4823_v56  ;;  %v3907_v63 = vpop.f32.mrb[47].mxu0 }
 0x6ef   :  { %6282 = vpow2.f32 %v4824_v8  ;;  %v3945_v22 = vadd.f32 %v4823_v56, %v3907_v63 }
 0x6f0   :  { %v4827_v15 = vmul.f32 -1.442695, %v3946_v11 }
 0x6f1   :  { %v4826_v2 = vmul.f32 -1.442695, %v3945_v22 }
 0x6f2   :  { %6284 = vpow2.f32 %v4827_v15 }
 0x6f3   :  { %6286 = vpow2.f32 %v4826_v2 }
 0x6f4   :  { %v5569_v40 = vpop.f32.mrb[48].mxu0 }
 0x6f5   :  { %v3948_v26 = vadd.f32 %v5569_v40, %v4823_v56  ;;  %v3917_v13 = vpop.f32.mrb[49].mxu0 }
 0x6f6   :  { %v3947_v43 = vadd.f32 %v4823_v56, %v3917_v13 }
 0x6f7   :  { %v4829_v17 = vmul.f32 -1.442695, %v3948_v26 }
 0x6f8   :  { %v6281_v28 = vpop.eup %6280  ;;  %v4828_v5 = vmul.f32 -1.442695, %v3947_v43 }
 0x6f9   :  { %v6283_v45 = vpop.eup %6282  ;;  %v3976_v35 = vadd.f32 1.0, %v6281_v28  ;;  %6288 = vpow2.f32 %v4829_v17 }
 0x6fa   :  { %v3975_v20 = vadd.f32 1.0, %v6283_v45  ;;  %6290 = vpow2.f32 %v4828_v5 }
 0x6fb   :  { %6292 = vrcp.f32 %v3976_v35 }
 0x6fc   :  { %6294 = vrcp.f32 %v3975_v20  ;;  %v6285_v59 = vpop.eup %6284 }
 0x6fd   :  { %v6287_v36 = vpop.eup %6286  ;;  %v3978_v58 = vadd.f32 1.0, %v6285_v59 }
 0x6fe   :  { %v3977_v49 = vadd.f32 1.0, %v6287_v36 }
 0x6ff   :  { %v5572_v19 = vpop.f32.mrb[50].mxu0  ;;  %6296 = vrcp.f32 %v3978_v58 }
 0x700   :  { %v3950_v38 = vadd.f32 %v5572_v19, %v4823_v56  ;;  %v3927_v23 = vpop.f32.mrb[51].mxu0  ;;  %6298 = vrcp.f32 %v3977_v49 }
 0x701   :  { %v3949_v54 = vadd.f32 %v4823_v56, %v3927_v23 }
 0x702   :  { %v4831_v37 = vmul.f32 -1.442695, %v3950_v38 }
 0x703   :  { %v6289_v18 = vpop.eup %6288  ;;  %v4830_v47 = vmul.f32 -1.442695, %v3949_v54 }
 0x704   :  { %v6291_v9 = vpop.eup %6290  ;;  %v3980_v53 = vadd.f32 1.0, %v6289_v18  ;;  %6300 = vpow2.f32 %v4831_v37 }
 0x705   :  { %v6293_v46 = vpop.eup %6292  ;;  %v3979_v24 = vadd.f32 1.0, %v6291_v9  ;;  %6302 = vpow2.f32 %v4830_v47 }
 0x706   :  { %v6295_v34 = vpop.eup %6294  ;;  %6304 = vrcp.f32 %v3980_v53  ;;  %v4000_v55 = vmul.f32 %v6293_v46, %v3944_v29 }
 0x707   :  { %v3999_v48 = vmul.f32 %v6295_v34, %v3943_v30  ;;  %6306 = vrcp.f32 %v3979_v24 }
 0x709   :  { %5597 = vmatprep.mubr.msk.f32.mxu1 %vm793_vm2, %v3999_v48  ;;  %v6297_v51 = vpop.eup %6296 }
 0x70a   :  { %5598 = vmatmul.mubr.msk.f32.vlgmr.msra.gmra.mrb[48].mxu1 %vm793_vm2, %v4000_v55  ;;  %v6299_v4 = vpop.eup %6298  ;;  %v4002_v1 = vmul.f32 %v6297_v51, %v3946_v11 }
 0x70b   :  { %v4001_v3 = vmul.f32 %v6299_v4, %v3945_v22 }
 0x70d   :  { %5600 = vmatprep.mubr.msk.f32.mxu1 %vm793_vm2, %v4001_v3 }
 0x70e   :  { %v6301_v32 = vpop.eup %6300  ;;  %5601 = vmatmul.mubr.msk.f32.gmra.mrb[50].mxu1 %vm793_vm2, %v4002_v1 }
 0x70f   :  { %v6303_v31 = vpop.eup %6302  ;;  %v3982_v27 = vadd.f32 1.0, %v6301_v32 }
 0x710   :  { %v6305_v60 = vpop.eup %6304  ;;  %v3981_v62 = vadd.f32 1.0, %v6303_v31 }
 0x711   :  { %v6307_v12 = vpop.eup %6306  ;;  %6308 = vrcp.f32 %v3982_v27  ;;  %v4004_v57 = vmul.f32 %v6305_v60, %v3948_v26 }
 0x712   :  { %v4003_v10 = vmul.f32 %v6307_v12, %v3947_v43  ;;  %6310 = vrcp.f32 %v3981_v62  ;;  %v7608_v62 = vld [vmem:[#allocation2_spill] sm:$0xff] }
 0x714   :  { %5603 = vmatprep.mubr.msk.f32.mxu1 %vm793_vm2, %v4003_v10 }
 0x715   :  { %5604 = vmatmul.mubr.msk.f32.gmra.mrb[52].mxu1 %vm793_vm2, %v4004_v57 }
 0x71b   :  { %v6309_v42 = vpop.eup %6308 }
 0x71c   :  { %v6311_v41 = vpop.eup %6310  ;;  %v4006_v7 = vmul.f32 %v6309_v42, %v3950_v38 }
 0x71d   :  { %v4005_v50 = vmul.f32 %v6311_v41, %v3949_v54  ;;  %v7609_v41 = vld [vmem:[#allocation3_spill] sm:$0xff] }
 0x71f   :  { %5606 = vmatprep.mubr.msk.f32.mxu1 %vm793_vm2, %v4005_v50 }
 0x720   :  { %5607 = vmatmul.mubr.msk.f32.gmra.mrb[54].mxu1 %vm793_vm2, %v4006_v7  ;;  %v7610_v7 = vld [vmem:[#allocation4_spill] sm:$0xff] }
 0x7dd   :  { %v5599_v21 = vpop.f32.mrb[48].mxu1 }
 0x7de   :  { %v4255_v56 = vadd.f32 %v5599_v21, %v4848_v44  ;;  %v4208_v6 = vpop.f32.mrb[49].mxu1 }
 0x7df   :  { %v4254_v29 = vadd.f32 %v4848_v44, %v4208_v6 }
 0x7e0   :  { %v4850_v52 = vmul.f32 -1.442695, %v4255_v56 }
 0x7e1   :  { %v4849_v30 = vmul.f32 -1.442695, %v4254_v29  ;;  %v5602_v16 = vpop.f32.mrb[50].mxu1 }
 0x7e2   :  { %6312 = vpow2.f32 %v4850_v52  ;;  %v4257_v8 = vadd.f32 %v5602_v16, %v4848_v44  ;;  %v4218_v0 = vpop.f32.mrb[51].mxu1 }
 0x7e3   :  { %6314 = vpow2.f32 %v4849_v30  ;;  %v4256_v11 = vadd.f32 %v4848_v44, %v4218_v0 }
 0x7e4   :  { %v4852_v63 = vmul.f32 -1.442695, %v4257_v8 }
 0x7e5   :  { %v4851_v22 = vmul.f32 -1.442695, %v4256_v11 }
 0x7e6   :  { %6316 = vpow2.f32 %v4852_v63 }
 0x7e7   :  { %6318 = vpow2.f32 %v4851_v22 }
 0x7e8   :  { %v5605_v15 = vpop.f32.mrb[52].mxu1 }
 0x7e9   :  { %v4259_v2 = vadd.f32 %v5605_v15, %v4848_v44  ;;  %v4228_v40 = vpop.f32.mrb[53].mxu1 }
 0x7ea   :  { %v4258_v26 = vadd.f32 %v4848_v44, %v4228_v40 }
 0x7eb   :  { %v4854_v13 = vmul.f32 -1.442695, %v4259_v2 }
 0x7ec   :  { %v6313_v43 = vpop.eup %6312  ;;  %v4853_v17 = vmul.f32 -1.442695, %v4258_v26 }
 0x7ed   :  { %v6315_v28 = vpop.eup %6314  ;;  %v4287_v5 = vadd.f32 1.0, %v6313_v43  ;;  %6320 = vpow2.f32 %v4854_v13 }
 0x7ee   :  { %v4286_v45 = vadd.f32 1.0, %v6315_v28  ;;  %6322 = vpow2.f32 %v4853_v17 }
 0x7ef   :  { %6324 = vrcp.f32 %v4287_v5 }
 0x7f0   :  { %6326 = vrcp.f32 %v4286_v45  ;;  %v6317_v35 = vpop.eup %6316 }
 0x7f1   :  { %v6319_v59 = vpop.eup %6318  ;;  %v4289_v19 = vadd.f32 1.0, %v6317_v35 }
 0x7f2   :  { %v4288_v38 = vadd.f32 1.0, %v6319_v59 }
 0x7f3   :  { %v5608_v20 = vpop.f32.mrb[54].mxu1  ;;  %6328 = vrcp.f32 %v4289_v19 }
 0x7f4   :  { %v4261_v36 = vadd.f32 %v5608_v20, %v4848_v44  ;;  %v4238_v58 = vpop.f32.mrb[55].mxu1  ;;  %6330 = vrcp.f32 %v4288_v38 }
 0x7f5   :  { %v4260_v23 = vadd.f32 %v4848_v44, %v4238_v58 }
 0x7f6   :  { %v4856_v49 = vmul.f32 -1.442695, %v4261_v36 }
 0x7f7   :  { %v6321_v54 = vpop.eup %6320  ;;  %v4855_v37 = vmul.f32 -1.442695, %v4260_v23 }
 0x7f8   :  { %v6323_v18 = vpop.eup %6322  ;;  %v4291_v47 = vadd.f32 1.0, %v6321_v54  ;;  %6332 = vpow2.f32 %v4856_v49 }
 0x7f9   :  { %v6325_v9 = vpop.eup %6324  ;;  %v4290_v53 = vadd.f32 1.0, %v6323_v18  ;;  %6334 = vpow2.f32 %v4855_v37 }
 0x7fa   :  { %v6327_v46 = vpop.eup %6326  ;;  %v4311_v24 = vmul.f32 %v6325_v9, %v4255_v56  ;;  %6336 = vrcp.f32 %v4291_v47 }
 0x7fb   :  { %v4310_v34 = vmul.f32 %v6327_v46, %v4254_v29  ;;  %6338 = vrcp.f32 %v4290_v53 }
 0x7fc   :  { %v4319_v48 = vadd.f32 %v4311_v24, %v7274_v39 }
 0x7fd   :  { %v4318_v55 = vadd.f32 %v4310_v34, %v7285_v25  ;;  %v6329_v51 = vpop.eup %6328 }
 0x7fe   :  { %4327 = vst.msk [vmem:[%s7575_s12 + $0x8] sm:$0xff] %vm342_vm1, %v4319_v48  ;;  %v6331_v4 = vpop.eup %6330  ;;  %v4313_v32 = vmul.f32 %v6329_v51, %v4257_v8 }
 0x7ff   :  { %4326 = vst.msk [vmem:[%s7575_s12] sm:$0xff] %vm342_vm1, %v4318_v55  ;;  %v4312_v31 = vmul.f32 %v6331_v4, %v4256_v11 }
 0x800   :  { %v4321_v27 = vadd.f32 %v4313_v32, %v7311_v33 }
 0x801   :  { %v4320_v12 = vadd.f32 %v4312_v31, %v7608_v62 }
 0x802   :  { %v6333_v3 = vpop.eup %6332  ;;  %4329 = vst.msk [vmem:[%s7575_s12 + $0x18] sm:$0xff] %vm342_vm1, %v4321_v27 }
 0x803   :  { %v6335_v1 = vpop.eup %6334  ;;  %v4293_v60 = vadd.f32 1.0, %v6333_v3  ;;  %4328 = vst.msk [vmem:[%s7575_s12 + $0x10] sm:$0xff] %vm342_vm1, %v4320_v12 }
 0x804   :  { %v6337_v39 = vpop.eup %6336  ;;  %v4292_v25 = vadd.f32 1.0, %v6335_v1 }
 0x805   :  { %v6339_v10 = vpop.eup %6338  ;;  %v4315_v57 = vmul.f32 %v6337_v39, %v4259_v2  ;;  %6340 = vrcp.f32 %v4293_v60 }
 0x806   :  { %v4314_v42 = vmul.f32 %v6339_v10, %v4258_v26  ;;  %6342 = vrcp.f32 %v4292_v25 }
 0x807   :  { %v4323_v50 = vadd.f32 %v4315_v57, %v7609_v41 }
 0x808   :  { %v4322_v33 = vadd.f32 %v4314_v42, %v7610_v7 }
 0x809   :  { %4331 = vst.msk [vmem:[%s7575_s12 + $0x28] sm:$0xff] %vm342_vm1, %v4323_v50 }
 0x80a   :  { %4330 = vst.msk [vmem:[%s7575_s12 + $0x20] sm:$0xff] %vm342_vm1, %v4322_v33 }
 0x80f   :  { %v6341_v44 = vpop.eup %6340 }
 0x810   :  { %v6343_v21 = vpop.eup %6342  ;;  %v4317_v56 = vmul.f32 %v6341_v44, %v4261_v36 }
 0x811   :  { %v4316_v6 = vmul.f32 %v6343_v21, %v4260_v23 }
 0x812   :  { %v4325_v29 = vadd.f32 %v4317_v56, %v7380_v14 }
 0x813   :  { %v4324_v52 = vadd.f32 %v4316_v6, %v7383_v61 }
 0x814   :  { %4333 = vst.msk [vmem:[%s7575_s12 + $0x38] sm:$0xff] %vm342_vm1, %v4325_v29 }
 0x815   :  { %4332 = vst.msk [vmem:[%s7575_s12 + $0x30] sm:$0xff] %vm342_vm1, %v4324_v52 }

</bundles_post_ra>
